<compile_context>
chip_gen: v7x
topology: tpu7x:2x2x1
jax: 0.10.0
libtpu: 0.0.40
codegen_flags: <defaults>
</compile_context>

<pallas_src>
import functools

import numpy as np
import jax
import jax.numpy as jnp
from jax.experimental import pallas as pl
from jax.experimental.pallas import tpu as pltpu


DILATIONS = (1, 1, 4, 16, 64)   # num_cnn_stacks = 1 -> 5 layers
KSIZE = 9


def _kept_shifts(K, dilation, L):
    """Static (tap index, row shift) pairs whose window can overlap a length-L seq."""
    c = K // 2
    return tuple((k, (k - c) * dilation) for k in range(K)
                 if abs((k - c) * dilation) < L)


# -----------------------------------------------------------------------------
# Fused kernel: stem + 5 residual dilated-conv layers + final 1x1 convs,
# processing TB stacked sequences (R = TB*L rows) per grid step.
# -----------------------------------------------------------------------------
def _fused_cnn_kernel(mask_ref, seqc_ref, tadd_ref, wcat_ref, fw2t_ref,
                      consts_ref, o_ref, *, R, H, NL, KAP,
                      layer_plans, fw1_off, pad_rows, eps):
    f32, bf16 = jnp.float32, jnp.bfloat16

    stem_b = consts_ref[0:1, :]          # (1, H)
    fb1 = consts_ref[1:2, :]             # (1, H)

    # --- stem: relu(im2col(seq) @ Wstem + b); im2col done in the wrapper ----
    feat = jnp.maximum(
        jnp.dot(seqc_ref[...], wcat_ref[0:KAP, :],
                preferred_element_type=f32) + stem_b, 0.0)          # (R, H) f32

    # --- residual dilated-conv layers (dropout = eval identity) -------------
    for i, (w_off, taps) in enumerate(layer_plans):
        h = feat + tadd_ref[i]                                      # + Dense_i(t_emb)
        mu = jnp.mean(h, axis=-1, keepdims=True)                    # LayerNorm (f32)
        var = jnp.mean(jnp.square(h - mu), axis=-1, keepdims=True)
        gamma = consts_ref[2 + i:3 + i, :]
        beta = consts_ref[2 + NL + i:3 + NL + i, :]
        hn = (h - mu) * jax.lax.rsqrt(var + eps) * gamma + beta     # (R, H)

        if len(taps) > 1:
            # Zero-padded copy for shifted taps ('same' conv padding).
            z = jnp.zeros((pad_rows, H), f32)
            hp = jnp.concatenate([z, hn, z], axis=0)                # (R + 2*pad, H)

        acc = None
        for j, (s, mcol) in enumerate(taps):
            w_k = wcat_ref[w_off + j * H: w_off + (j + 1) * H, :]   # (H, H) bf16
            if s == 0:
                xk = hn
            else:
                # Shifted rows; mask zeroes pad rows AND cross-sequence bleed
                # at the boundaries between the TB stacked sequences.
                xk = (hp[pad_rows + s: pad_rows + s + R, :]
                      * mask_ref[:, mcol:mcol + 1])
            term = jnp.dot(xk.astype(bf16), w_k, preferred_element_type=f32)
            acc = term if acc is None else acc + term

        cbias = consts_ref[2 + 2 * NL + i:3 + 2 * NL + i, :]
        feat = jnp.maximum(acc + cbias, 0.0) + feat                 # residual

    # --- final_conv: 1x1 conv -> ReLU -> 1x1 conv (emitted transposed) ------
    h1 = jnp.maximum(
        jnp.dot(feat.astype(bf16), wcat_ref[fw1_off:fw1_off + H, :],
                preferred_element_type=f32) + fb1, 0.0)             # (R, H)
    # out_t[a, r] = sum_h fw2t[a, h] * h1[r, h]   -> lane-dense (A_pad, R) tile.
    out_t = jax.lax.dot_general(
        fw2t_ref[...], h1.astype(bf16),
        dimension_numbers=(((1,), (1,)), ((), ())),
        preferred_element_type=f32)
    o_ref[...] = out_t[None].astype(o_ref.dtype)                    # (1, A_pad, R)


# -----------------------------------------------------------------------------
# Wrapper: hoisted glue (time embedding, stem im2col, weight packing) + pallas_call
# -----------------------------------------------------------------------------
def cnn_model_forward_impl(seq, t, params, dilations=DILATIONS):
    B, L, A = seq.shape
    H = params["time_lin_w"].shape[0]
    K = params["stem_w"].shape[0]
    NL = len(dilations)
    f32, bf16 = jnp.float32, jnp.bfloat16

    # ---- batch tiling: TB sequences per grid step, TB*L ~= 128 rows --------
    TB = max(1, min(B, (128 // L) if L <= 128 else 1))
    while TB > 1 and -(-B // TB) < 2:       # keep >= 2 grid steps (v7x has 2 TCs)
        TB = max(1, TB // 2)
    n_steps = -(-B // TB)
    B_pad = n_steps * TB
    R = TB * L
    assert R % 8 == 0, "TB*L must be a multiple of 8 for TPU sublane tiling"

    if B_pad != B:
        seq = jnp.pad(seq, ((0, B_pad - B), (0, 0), (0, 0)))
        t = jnp.pad(t, (0, B_pad - B))

    # ---- time embedding + per-layer Dense_i(time_emb), hoisted to XLA ------
    x_proj = t[:, None] * params["fourier_w"][None, :] * (2.0 * jnp.pi)
    emb = jnp.concatenate([jnp.sin(x_proj), jnp.cos(x_proj)], axis=-1)   # (B, H)
    time_emb = jax.nn.relu(emb @ params["time_lin_w"] + params["time_lin_b"])
    dense_w = jnp.stack([params[f"dense_w_{i}"] for i in range(NL)])     # (NL,H,H)
    dense_b = jnp.stack([params[f"dense_b_{i}"] for i in range(NL)])     # (NL,H)
    tadd = jnp.einsum("bh,lhk->lbk", time_emb, dense_w) + dense_b[:, None, :]
    tadd_exp = jnp.broadcast_to(tadd[:, :, None, :], (NL, B_pad, L, H)) \
                  .reshape(NL, B_pad * L, H).astype(f32)                 # (NL, B*L, H)

    # ---- stem im2col hoisted to XLA: (B*L, KAP) bf16 ------------------------
    KA = K * A
    KAP = -(-KA // 8) * 8
    hw = K // 2
    seq_p = jnp.pad(seq, ((0, 0), (hw, hw), (0, 0)))
    cols = jnp.concatenate([seq_p[:, k:k + L, :] for k in range(K)], axis=-1)
    cols = jnp.pad(cols, ((0, 0), (0, 0), (0, KAP - KA)))
    seq_cols = cols.reshape(B_pad * L, KAP).astype(bf16)

    # ---- static conv plan: tap skipping + per-row shift masks ---------------
    layer_taps = tuple(_kept_shifts(K, d, L) for d in dilations)
    shifts = sorted({s for taps in layer_taps for (_, s) in taps if s != 0})
    shift_col = {s: j for j, s in enumerate(shifts)}
    n_shift = max(1, len(shifts))
    pad_rows = (-(-max((abs(s) for s in shifts), default=8) // 8) * 8)

    pos = np.arange(R) % L
    mask_np = np.zeros((R, n_shift), np.float32)
    for s, j in shift_col.items():
        mask_np[:, j] = ((pos + s >= 0) & (pos + s < L)).astype(np.float32)
    masks = jnp.asarray(mask_np)                                     # (R, n_shift)

    # ---- concatenate all H-column weights into one bf16 array --------------
    w_parts = [jnp.pad(
        jnp.concatenate([params["stem_w"][k] for k in range(K)], axis=0),
        ((0, KAP - KA), (0, 0)))]                                    # (KAP, H)
    offs = KAP
    layer_plans = []
    for i, taps in enumerate(layer_taps):
        w_parts.append(jnp.concatenate(
            [params[f"conv_w_{i}"][k] for (k, _) in taps], axis=0))
        layer_plans.append(
            (offs, tuple((s, shift_col.get(s, 0)) for (_, s) in taps)))
        offs += len(taps) * H
    fw1_off = offs
    w_parts.append(params["final_w1"])
    offs += H
    w_cat = jnp.concatenate(w_parts, axis=0).astype(bf16)            # (offs, H)
    layer_plans = tuple(layer_plans)

    # ---- small per-channel constants bundled into one f32 array ------------
    A_pad = -(-A // 8) * 8
    fw2t = jnp.pad(params["final_w2"].T, ((0, A_pad - A), (0, 0))).astype(bf16)
    consts = jnp.concatenate(
        [params["stem_b"].reshape(1, H), params["final_b1"].reshape(1, H)]
        + [params[f"ln_g_{i}"].reshape(1, H) for i in range(NL)]
        + [params[f"ln_b_{i}"].reshape(1, H) for i in range(NL)]
        + [params[f"conv_b_{i}"].reshape(1, H) for i in range(NL)],
        axis=0).astype(f32)                                          # (2+3*NL, H)

    kernel = functools.partial(
        _fused_cnn_kernel, R=R, H=H, NL=NL, KAP=KAP,
        layer_plans=layer_plans, fw1_off=fw1_off, pad_rows=pad_rows, eps=1e-5)

    out = pl.pallas_call(
        kernel,
        out_shape=jax.ShapeDtypeStruct((n_steps, A_pad, R), f32),
        grid=(n_steps,),
        in_specs=[
            pl.BlockSpec((R, n_shift), lambda i: (0, 0)),     # shift masks
            pl.BlockSpec((R, KAP), lambda i: (i, 0)),         # stem im2col slab
            pl.BlockSpec((NL, R, H), lambda i: (0, i, 0)),    # time additions
            pl.BlockSpec(w_cat.shape, lambda i: (0, 0)),      # all H-col weights
            pl.BlockSpec((A_pad, H), lambda i: (0, 0)),       # final w2^T
            pl.BlockSpec(consts.shape, lambda i: (0, 0)),     # biases / LN params
        ],
        out_specs=pl.BlockSpec((1, A_pad, R), lambda i: (i, 0, 0)),
        compiler_params=pltpu.CompilerParams(
            dimension_semantics=("parallel",)),
    )(masks, seq_cols, tadd_exp, w_cat, fw2t, consts)

    # ---- un-transpose the lane-dense output, add final bias ----------------
    out = out[:, :A, :].reshape(n_steps, A, TB, L)
    out = jnp.transpose(out, (0, 2, 3, 1)).reshape(B_pad, L, A)
    return out[:B] + params["final_b2"].reshape(1, 1, A)


@jax.jit
def cnn_model_forward(seq, t, params):
    """seq: (B, L, alphabet_size) simplex features, t: (B,). Returns (B, L, A)."""
    return cnn_model_forward_impl(seq, t, params)


# -----------------------------------------------------------------------------
# Pure-JAX reference (f32) for a tolerance check
# -----------------------------------------------------------------------------
def _reference_forward(seq, t, params, dilations=DILATIONS):
    B, L, A = seq.shape
    K = params["stem_w"].shape[0]
    x_proj = t[:, None] * params["fourier_w"][None, :] * (2.0 * jnp.pi)
    emb = jnp.concatenate([jnp.sin(x_proj), jnp.cos(x_proj)], axis=-1)
    time_emb = jax.nn.relu(emb @ params["time_lin_w"] + params["time_lin_b"])

    def conv1d(x, w, b, d):                      # x (B,L,Cin), w (K,Cin,Cout)
        pad = (K // 2) * d
        xp = jnp.pad(x, ((0, 0), (pad, pad), (0, 0)))
        acc = 0.0
        for k in range(K):
            acc = acc + jnp.einsum("blc,cd->bld", xp[:, k * d:k * d + L, :], w[k])
        return acc + b

    feat = jax.nn.relu(conv1d(seq, params["stem_w"], params["stem_b"], 1))
    for i, d in enumerate(dilations):
        h = feat + (time_emb @ params[f"dense_w_{i}"]
                    + params[f"dense_b_{i}"])[:, None, :]
        mu = h.mean(-1, keepdims=True)
        var = ((h - mu) ** 2).mean(-1, keepdims=True)
        hn = (h - mu) / jnp.sqrt(var + 1e-5) * params[f"ln_g_{i}"] + params[f"ln_b_{i}"]
        feat = jax.nn.relu(conv1d(hn, params[f"conv_w_{i}"],
                                  params[f"conv_b_{i}"], d)) + feat
    h1 = jax.nn.relu(feat @ params["final_w1"] + params["final_b1"])
    return h1 @ params["final_w2"] + params["final_b2"]


# -----------------------------------------------------------------------------
# Parameter setup (JAX-side layout: conv weights (K, C_in, C_out), Linear (in, out))
# -----------------------------------------------------------------------------
def init_params(key, A, H, K=KSIZE, n_layers=len(DILATIONS), scale=0.05):
    assert H % 2 == 0, "GaussianFourierProjection requires an even hidden dim"
    keys = iter(jax.random.split(key, 10 + 6 * n_layers))

    def nrm(shape, s=scale):
        return s * jax.random.normal(next(keys), shape, jnp.float32)

    p = {
        "fourier_w": 30.0 * jax.random.normal(next(keys), (H // 2,), jnp.float32),
        "time_lin_w": nrm((H, H)),
        "time_lin_b": nrm((H,)),
        "stem_w": nrm((K, A, H)),
        "stem_b": nrm((H,)),
        "final_w1": nrm((H, H)),
        "final_b1": nrm((H,)),
        "final_w2": nrm((H, A)),
        "final_b2": nrm((A,)),
    }
    for i in range(n_layers):
        p[f"dense_w_{i}"] = nrm((H, H))
        p[f"dense_b_{i}"] = nrm((H,))
        p[f"ln_g_{i}"] = jnp.ones((H,), jnp.float32)
        p[f"ln_b_{i}"] = jnp.zeros((H,), jnp.float32)
        p[f"conv_w_{i}"] = nrm((K, H, H))
        p[f"conv_b_{i}"] = nrm((H,))
    return p


if __name__ == "__main__":
    B, L, A, H = 16, 16, 4, 32
    key = jax.random.PRNGKey(0)
    k_seq, k_t, k_param = jax.random.split(key, 3)

    # Simplex-valued "noisy sequence" input matching seq of shape (B, L, alphabet).
    seq = jax.nn.softmax(jax.random.normal(k_seq, (B, L, A), jnp.float32), axis=-1)
    t = jax.random.uniform(k_t, (B,), jnp.float32)
    params = init_params(k_param, A, H)

    out = cnn_model_forward(seq, t, params)
    jax.block_until_ready(out)
    assert out.shape == (B, L, A) and out.dtype == jnp.float32
    assert bool(jnp.all(jnp.isfinite(out)))

    # Loose tolerance: kernel matmuls accumulate in f32 from bf16 operands.
    ref = jax.jit(_reference_forward)(seq, t, params)
    err = float(jnp.max(jnp.abs(out - ref)))
    ref_mag = float(jnp.max(jnp.abs(ref)))
    assert err <= 0.05 * ref_mag + 0.05, f"max abs err {err} vs ref max {ref_mag}"
    print("KERNEL_OK")
</pallas_src>

<mosaic_0001>
module attributes {stable_mosaic.version = 11 : i64} {
  func.func @_fused_cnn_kernel(%arg0: i32, %arg1: memref<128x12xf32, #tpu.memory_space<vmem>>, %arg2: memref<128x40xbf16, #tpu.memory_space<vmem>>, %arg3: memref<5x128x32xf32, #tpu.memory_space<vmem>>, %arg4: memref<936x32xbf16, #tpu.memory_space<vmem>>, %arg5: memref<8x32xbf16, #tpu.memory_space<vmem>>, %arg6: memref<17x32xf32, #tpu.memory_space<vmem>>, %arg7: memref<1x8x128xf32, #tpu.memory_space<vmem>>) attributes {dimension_semantics = [#tpu.dimension_semantics<parallel>], iteration_bounds = array<i64: 2>, scalar_prefetch = 0 : i64, scratch_operands = 0 : i64, tpu.core_type = #tpu.core_type<tc>, window_params = [{pipeline_mode = #tpu.pipeline_mode<synchronous>, transform_indices = @transform_0, window_bounds = array<i64: 128, 12>}, {transform_indices = @transform_1, window_bounds = array<i64: 128, 40>}, {transform_indices = @transform_2, window_bounds = array<i64: 5, 128, 32>}, {pipeline_mode = #tpu.pipeline_mode<synchronous>, transform_indices = @transform_3, window_bounds = array<i64: 936, 32>}, {pipeline_mode = #tpu.pipeline_mode<synchronous>, transform_indices = @transform_4, window_bounds = array<i64: 8, 32>}, {pipeline_mode = #tpu.pipeline_mode<synchronous>, transform_indices = @transform_5, window_bounds = array<i64: 17, 32>}, {transform_indices = @transform_6, window_bounds = array<i64: 1, 8, 128>}]} {
    %c0 = arith.constant 0 : index
    %c0_0 = arith.constant 0 : index
    %0 = vector.load %arg6[%c0, %c0_0] : memref<17x32xf32, #tpu.memory_space<vmem>>, vector<1x32xf32>
    %c1 = arith.constant 1 : index
    %c0_1 = arith.constant 0 : index
    %1 = vector.load %arg6[%c1, %c0_1] : memref<17x32xf32, #tpu.memory_space<vmem>>, vector<1x32xf32>
    %c0_2 = arith.constant 0 : index
    %c0_3 = arith.constant 0 : index
    %2 = vector.load %arg2[%c0_2, %c0_3] : memref<128x40xbf16, #tpu.memory_space<vmem>>, vector<128x40xbf16>
    %c0_4 = arith.constant 0 : index
    %c0_5 = arith.constant 0 : index
    %3 = vector.load %arg4[%c0_4, %c0_5] : memref<936x32xbf16, #tpu.memory_space<vmem>>, vector<40x32xbf16>
    %cst = arith.constant dense<0.000000e+00> : vector<128x32xf32>
    %4 = tpu.matmul %2, %3, %cst {dimension_numbers = #tpu.dot_dimension_numbers<[1], [0], [0], [1], [0, 0, 1, 1], [], []>} : vector<128x40xbf16>, vector<40x32xbf16>, vector<128x32xf32> -> vector<128x32xf32>
    %5 = vector.broadcast %0 : vector<1x32xf32> to vector<128x32xf32>
    %6 = arith.addf %4, %5 : vector<128x32xf32>
    %cst_6 = arith.constant 0.000000e+00 : f32
    %7 = vector.broadcast %cst_6 : f32 to vector<128x32xf32>
    %8 = arith.maximumf %6, %7 : vector<128x32xf32>
    %c0_7 = arith.constant 0 : index
    %c0_8 = arith.constant 0 : index
    %c0_9 = arith.constant 0 : index
    %9 = vector.load %arg3[%c0_7, %c0_8, %c0_9] : memref<5x128x32xf32, #tpu.memory_space<vmem>>, vector<1x128x32xf32>
    %10 = vector.shape_cast %9 : vector<1x128x32xf32> to vector<128x32xf32>
    %11 = arith.addf %8, %10 : vector<128x32xf32>
    %cst_10 = arith.constant dense<0.000000e+00> : vector<128xf32>
    %12 = vector.multi_reduction <add>, %11, %cst_10 [1] : vector<128x32xf32> to vector<128xf32>
    %13 = vector.shape_cast %12 : vector<128xf32> to vector<128x1xf32>
    %cst_11 = arith.constant 3.200000e+01 : f32
    %14 = vector.broadcast %cst_11 : f32 to vector<128x1xf32>
    %15 = arith.divf %13, %14 : vector<128x1xf32>
    %16 = vector.broadcast %15 : vector<128x1xf32> to vector<128x32xf32>
    %17 = arith.subf %11, %16 : vector<128x32xf32>
    %18 = arith.mulf %17, %17 : vector<128x32xf32>
    %cst_12 = arith.constant dense<0.000000e+00> : vector<128xf32>
    %19 = vector.multi_reduction <add>, %18, %cst_12 [1] : vector<128x32xf32> to vector<128xf32>
    %20 = vector.shape_cast %19 : vector<128xf32> to vector<128x1xf32>
    %cst_13 = arith.constant 3.200000e+01 : f32
    %21 = vector.broadcast %cst_13 : f32 to vector<128x1xf32>
    %22 = arith.divf %20, %21 : vector<128x1xf32>
    %c2 = arith.constant 2 : index
    %c0_14 = arith.constant 0 : index
    %23 = vector.load %arg6[%c2, %c0_14] : memref<17x32xf32, #tpu.memory_space<vmem>>, vector<1x32xf32>
    %c7 = arith.constant 7 : index
    %c0_15 = arith.constant 0 : index
    %24 = vector.load %arg6[%c7, %c0_15] : memref<17x32xf32, #tpu.memory_space<vmem>>, vector<1x32xf32>
    %25 = vector.broadcast %15 : vector<128x1xf32> to vector<128x32xf32>
    %26 = arith.subf %11, %25 : vector<128x32xf32>
    %cst_16 = arith.constant 9.99999974E-6 : f32
    %27 = vector.broadcast %cst_16 : f32 to vector<128x1xf32>
    %28 = arith.addf %22, %27 : vector<128x1xf32>
    %29 = math.rsqrt %28 : vector<128x1xf32>
    %30 = vector.broadcast %29 : vector<128x1xf32> to vector<128x32xf32>
    %31 = arith.mulf %26, %30 : vector<128x32xf32>
    %32 = vector.broadcast %23 : vector<1x32xf32> to vector<128x32xf32>
    %33 = arith.mulf %31, %32 : vector<128x32xf32>
    %34 = vector.broadcast %24 : vector<1x32xf32> to vector<128x32xf32>
    %35 = arith.addf %33, %34 : vector<128x32xf32>
    %cst_17 = arith.constant 0.000000e+00 : f32
    %36 = vector.broadcast %cst_17 : f32 to vector<16x32xf32>
    %37 = tpu.concatenate %36, %35, %36 in 0 : vector<16x32xf32>, vector<128x32xf32>, vector<16x32xf32> -> vector<160x32xf32>
    %c40 = arith.constant 40 : index
    %c0_18 = arith.constant 0 : index
    %38 = vector.load %arg4[%c40, %c0_18] : memref<936x32xbf16, #tpu.memory_space<vmem>>, vector<32x32xbf16>
    %39 = vector.extract_strided_slice %37 {offsets = [12, 0], sizes = [128, 32], strides = [1, 1]} : vector<160x32xf32> to vector<128x32xf32>
    %c0_19 = arith.constant 0 : index
    %c2_20 = arith.constant 2 : index
    %40 = vector.load %arg1[%c0_19, %c2_20] : memref<128x12xf32, #tpu.memory_space<vmem>>, vector<128x1xf32>
    %41 = vector.broadcast %40 : vector<128x1xf32> to vector<128x32xf32>
    %42 = arith.mulf %39, %41 : vector<128x32xf32>
    %43 = arith.truncf %42 : vector<128x32xf32> to vector<128x32xbf16>
    %cst_21 = arith.constant dense<0.000000e+00> : vector<128x32xf32>
    %44 = tpu.matmul %43, %38, %cst_21 {dimension_numbers = #tpu.dot_dimension_numbers<[1], [0], [0], [1], [0, 0, 1, 1], [], []>} : vector<128x32xbf16>, vector<32x32xbf16>, vector<128x32xf32> -> vector<128x32xf32>
    %c72 = arith.constant 72 : index
    %c0_22 = arith.constant 0 : index
    %45 = vector.load %arg4[%c72, %c0_22] : memref<936x32xbf16, #tpu.memory_space<vmem>>, vector<32x32xbf16>
    %46 = vector.extract_strided_slice %37 {offsets = [13, 0], sizes = [128, 32], strides = [1, 1]} : vector<160x32xf32> to vector<128x32xf32>
    %c0_23 = arith.constant 0 : index
    %c3 = arith.constant 3 : index
    %47 = vector.load %arg1[%c0_23, %c3] : memref<128x12xf32, #tpu.memory_space<vmem>>, vector<128x1xf32>
    %48 = vector.broadcast %47 : vector<128x1xf32> to vector<128x32xf32>
    %49 = arith.mulf %46, %48 : vector<128x32xf32>
    %50 = arith.truncf %49 : vector<128x32xf32> to vector<128x32xbf16>
    %cst_24 = arith.constant dense<0.000000e+00> : vector<128x32xf32>
    %51 = tpu.matmul %50, %45, %cst_24 {dimension_numbers = #tpu.dot_dimension_numbers<[1], [0], [0], [1], [0, 0, 1, 1], [], []>} : vector<128x32xbf16>, vector<32x32xbf16>, vector<128x32xf32> -> vector<128x32xf32>
    %52 = arith.addf %44, %51 : vector<128x32xf32>
    %c104 = arith.constant 104 : index
    %c0_25 = arith.constant 0 : index
    %53 = vector.load %arg4[%c104, %c0_25] : memref<936x32xbf16, #tpu.memory_space<vmem>>, vector<32x32xbf16>
    %54 = vector.extract_strided_slice %37 {offsets = [14, 0], sizes = [128, 32], strides = [1, 1]} : vector<160x32xf32> to vector<128x32xf32>
    %c0_26 = arith.constant 0 : index
    %c4 = arith.constant 4 : index
    %55 = vector.load %arg1[%c0_26, %c4] : memref<128x12xf32, #tpu.memory_space<vmem>>, vector<128x1xf32>
    %56 = vector.broadcast %55 : vector<128x1xf32> to vector<128x32xf32>
    %57 = arith.mulf %54, %56 : vector<128x32xf32>
    %58 = arith.truncf %57 : vector<128x32xf32> to vector<128x32xbf16>
    %cst_27 = arith.constant dense<0.000000e+00> : vector<128x32xf32>
    %59 = tpu.matmul %58, %53, %cst_27 {dimension_numbers = #tpu.dot_dimension_numbers<[1], [0], [0], [1], [0, 0, 1, 1], [], []>} : vector<128x32xbf16>, vector<32x32xbf16>, vector<128x32xf32> -> vector<128x32xf32>
    %60 = arith.addf %52, %59 : vector<128x32xf32>
    %c136 = arith.constant 136 : index
    %c0_28 = arith.constant 0 : index
    %61 = vector.load %arg4[%c136, %c0_28] : memref<936x32xbf16, #tpu.memory_space<vmem>>, vector<32x32xbf16>
    %62 = vector.extract_strided_slice %37 {offsets = [15, 0], sizes = [128, 32], strides = [1, 1]} : vector<160x32xf32> to vector<128x32xf32>
    %c0_29 = arith.constant 0 : index
    %c5 = arith.constant 5 : index
    %63 = vector.load %arg1[%c0_29, %c5] : memref<128x12xf32, #tpu.memory_space<vmem>>, vector<128x1xf32>
    %64 = vector.broadcast %63 : vector<128x1xf32> to vector<128x32xf32>
    %65 = arith.mulf %62, %64 : vector<128x32xf32>
    %66 = arith.truncf %65 : vector<128x32xf32> to vector<128x32xbf16>
    %cst_30 = arith.constant dense<0.000000e+00> : vector<128x32xf32>
    %67 = tpu.matmul %66, %61, %cst_30 {dimension_numbers = #tpu.dot_dimension_numbers<[1], [0], [0], [1], [0, 0, 1, 1], [], []>} : vector<128x32xbf16>, vector<32x32xbf16>, vector<128x32xf32> -> vector<128x32xf32>
    %68 = arith.addf %60, %67 : vector<128x32xf32>
    %c168 = arith.constant 168 : index
    %c0_31 = arith.constant 0 : index
    %69 = vector.load %arg4[%c168, %c0_31] : memref<936x32xbf16, #tpu.memory_space<vmem>>, vector<32x32xbf16>
    %70 = arith.truncf %35 : vector<128x32xf32> to vector<128x32xbf16>
    %cst_32 = arith.constant dense<0.000000e+00> : vector<128x32xf32>
    %71 = tpu.matmul %70, %69, %cst_32 {dimension_numbers = #tpu.dot_dimension_numbers<[1], [0], [0], [1], [0, 0, 1, 1], [], []>} : vector<128x32xbf16>, vector<32x32xbf16>, vector<128x32xf32> -> vector<128x32xf32>
    %72 = arith.addf %68, %71 : vector<128x32xf32>
    %c200 = arith.constant 200 : index
    %c0_33 = arith.constant 0 : index
    %73 = vector.load %arg4[%c200, %c0_33] : memref<936x32xbf16, #tpu.memory_space<vmem>>, vector<32x32xbf16>
    %74 = vector.extract_strided_slice %37 {offsets = [17, 0], sizes = [128, 32], strides = [1, 1]} : vector<160x32xf32> to vector<128x32xf32>
    %c0_34 = arith.constant 0 : index
    %c6 = arith.constant 6 : index
    %75 = vector.load %arg1[%c0_34, %c6] : memref<128x12xf32, #tpu.memory_space<vmem>>, vector<128x1xf32>
    %76 = vector.broadcast %75 : vector<128x1xf32> to vector<128x32xf32>
    %77 = arith.mulf %74, %76 : vector<128x32xf32>
    %78 = arith.truncf %77 : vector<128x32xf32> to vector<128x32xbf16>
    %cst_35 = arith.constant dense<0.000000e+00> : vector<128x32xf32>
    %79 = tpu.matmul %78, %73, %cst_35 {dimension_numbers = #tpu.dot_dimension_numbers<[1], [0], [0], [1], [0, 0, 1, 1], [], []>} : vector<128x32xbf16>, vector<32x32xbf16>, vector<128x32xf32> -> vector<128x32xf32>
    %80 = arith.addf %72, %79 : vector<128x32xf32>
    %c232 = arith.constant 232 : index
    %c0_36 = arith.constant 0 : index
    %81 = vector.load %arg4[%c232, %c0_36] : memref<936x32xbf16, #tpu.memory_space<vmem>>, vector<32x32xbf16>
    %82 = vector.extract_strided_slice %37 {offsets = [18, 0], sizes = [128, 32], strides = [1, 1]} : vector<160x32xf32> to vector<128x32xf32>
    %c0_37 = arith.constant 0 : index
    %c7_38 = arith.constant 7 : index
    %83 = vector.load %arg1[%c0_37, %c7_38] : memref<128x12xf32, #tpu.memory_space<vmem>>, vector<128x1xf32>
    %84 = vector.broadcast %83 : vector<128x1xf32> to vector<128x32xf32>
    %85 = arith.mulf %82, %84 : vector<128x32xf32>
    %86 = arith.truncf %85 : vector<128x32xf32> to vector<128x32xbf16>
    %cst_39 = arith.constant dense<0.000000e+00> : vector<128x32xf32>
    %87 = tpu.matmul %86, %81, %cst_39 {dimension_numbers = #tpu.dot_dimension_numbers<[1], [0], [0], [1], [0, 0, 1, 1], [], []>} : vector<128x32xbf16>, vector<32x32xbf16>, vector<128x32xf32> -> vector<128x32xf32>
    %88 = arith.addf %80, %87 : vector<128x32xf32>
    %c264 = arith.constant 264 : index
    %c0_40 = arith.constant 0 : index
    %89 = vector.load %arg4[%c264, %c0_40] : memref<936x32xbf16, #tpu.memory_space<vmem>>, vector<32x32xbf16>
    %90 = vector.extract_strided_slice %37 {offsets = [19, 0], sizes = [128, 32], strides = [1, 1]} : vector<160x32xf32> to vector<128x32xf32>
    %c0_41 = arith.constant 0 : index
    %c8 = arith.constant 8 : index
    %91 = vector.load %arg1[%c0_41, %c8] : memref<128x12xf32, #tpu.memory_space<vmem>>, vector<128x1xf32>
    %92 = vector.broadcast %91 : vector<128x1xf32> to vector<128x32xf32>
    %93 = arith.mulf %90, %92 : vector<128x32xf32>
    %94 = arith.truncf %93 : vector<128x32xf32> to vector<128x32xbf16>
    %cst_42 = arith.constant dense<0.000000e+00> : vector<128x32xf32>
    %95 = tpu.matmul %94, %89, %cst_42 {dimension_numbers = #tpu.dot_dimension_numbers<[1], [0], [0], [1], [0, 0, 1, 1], [], []>} : vector<128x32xbf16>, vector<32x32xbf16>, vector<128x32xf32> -> vector<128x32xf32>
    %96 = arith.addf %88, %95 : vector<128x32xf32>
    %c296 = arith.constant 296 : index
    %c0_43 = arith.constant 0 : index
    %97 = vector.load %arg4[%c296, %c0_43] : memref<936x32xbf16, #tpu.memory_space<vmem>>, vector<32x32xbf16>
    %98 = vector.extract_strided_slice %37 {offsets = [20, 0], sizes = [128, 32], strides = [1, 1]} : vector<160x32xf32> to vector<128x32xf32>
    %c0_44 = arith.constant 0 : index
    %c9 = arith.constant 9 : index
    %99 = vector.load %arg1[%c0_44, %c9] : memref<128x12xf32, #tpu.memory_space<vmem>>, vector<128x1xf32>
    %100 = vector.broadcast %99 : vector<128x1xf32> to vector<128x32xf32>
    %101 = arith.mulf %98, %100 : vector<128x32xf32>
    %102 = arith.truncf %101 : vector<128x32xf32> to vector<128x32xbf16>
    %cst_45 = arith.constant dense<0.000000e+00> : vector<128x32xf32>
    %103 = tpu.matmul %102, %97, %cst_45 {dimension_numbers = #tpu.dot_dimension_numbers<[1], [0], [0], [1], [0, 0, 1, 1], [], []>} : vector<128x32xbf16>, vector<32x32xbf16>, vector<128x32xf32> -> vector<128x32xf32>
    %104 = arith.addf %96, %103 : vector<128x32xf32>
    %c12 = arith.constant 12 : index
    %c0_46 = arith.constant 0 : index
    %105 = vector.load %arg6[%c12, %c0_46] : memref<17x32xf32, #tpu.memory_space<vmem>>, vector<1x32xf32>
    %106 = vector.broadcast %105 : vector<1x32xf32> to vector<128x32xf32>
    %107 = arith.addf %104, %106 : vector<128x32xf32>
    %cst_47 = arith.constant 0.000000e+00 : f32
    %108 = vector.broadcast %cst_47 : f32 to vector<128x32xf32>
    %109 = arith.maximumf %107, %108 : vector<128x32xf32>
    %110 = arith.addf %109, %8 : vector<128x32xf32>
    %c1_48 = arith.constant 1 : index
    %c0_49 = arith.constant 0 : index
    %c0_50 = arith.constant 0 : index
    %111 = vector.load %arg3[%c1_48, %c0_49, %c0_50] : memref<5x128x32xf32, #tpu.memory_space<vmem>>, vector<1x128x32xf32>
    %112 = vector.shape_cast %111 : vector<1x128x32xf32> to vector<128x32xf32>
    %113 = arith.addf %110, %112 : vector<128x32xf32>
    %cst_51 = arith.constant dense<0.000000e+00> : vector<128xf32>
    %114 = vector.multi_reduction <add>, %113, %cst_51 [1] : vector<128x32xf32> to vector<128xf32>
    %115 = vector.shape_cast %114 : vector<128xf32> to vector<128x1xf32>
    %cst_52 = arith.constant 3.200000e+01 : f32
    %116 = vector.broadcast %cst_52 : f32 to vector<128x1xf32>
    %117 = arith.divf %115, %116 : vector<128x1xf32>
    %118 = vector.broadcast %117 : vector<128x1xf32> to vector<128x32xf32>
    %119 = arith.subf %113, %118 : vector<128x32xf32>
    %120 = arith.mulf %119, %119 : vector<128x32xf32>
    %cst_53 = arith.constant dense<0.000000e+00> : vector<128xf32>
    %121 = vector.multi_reduction <add>, %120, %cst_53 [1] : vector<128x32xf32> to vector<128xf32>
    %122 = vector.shape_cast %121 : vector<128xf32> to vector<128x1xf32>
    %cst_54 = arith.constant 3.200000e+01 : f32
    %123 = vector.broadcast %cst_54 : f32 to vector<128x1xf32>
    %124 = arith.divf %122, %123 : vector<128x1xf32>
    %c3_55 = arith.constant 3 : index
    %c0_56 = arith.constant 0 : index
    %125 = vector.load %arg6[%c3_55, %c0_56] : memref<17x32xf32, #tpu.memory_space<vmem>>, vector<1x32xf32>
    %c8_57 = arith.constant 8 : index
    %c0_58 = arith.constant 0 : index
    %126 = vector.load %arg6[%c8_57, %c0_58] : memref<17x32xf32, #tpu.memory_space<vmem>>, vector<1x32xf32>
    %127 = vector.broadcast %117 : vector<128x1xf32> to vector<128x32xf32>
    %128 = arith.subf %113, %127 : vector<128x32xf32>
    %cst_59 = arith.constant 9.99999974E-6 : f32
    %129 = vector.broadcast %cst_59 : f32 to vector<128x1xf32>
    %130 = arith.addf %124, %129 : vector<128x1xf32>
    %131 = math.rsqrt %130 : vector<128x1xf32>
    %132 = vector.broadcast %131 : vector<128x1xf32> to vector<128x32xf32>
    %133 = arith.mulf %128, %132 : vector<128x32xf32>
    %134 = vector.broadcast %125 : vector<1x32xf32> to vector<128x32xf32>
    %135 = arith.mulf %133, %134 : vector<128x32xf32>
    %136 = vector.broadcast %126 : vector<1x32xf32> to vector<128x32xf32>
    %137 = arith.addf %135, %136 : vector<128x32xf32>
    %cst_60 = arith.constant 0.000000e+00 : f32
    %138 = vector.broadcast %cst_60 : f32 to vector<16x32xf32>
    %139 = tpu.concatenate %138, %137, %138 in 0 : vector<16x32xf32>, vector<128x32xf32>, vector<16x32xf32> -> vector<160x32xf32>
    %c328 = arith.constant 328 : index
    %c0_61 = arith.constant 0 : index
    %140 = vector.load %arg4[%c328, %c0_61] : memref<936x32xbf16, #tpu.memory_space<vmem>>, vector<32x32xbf16>
    %141 = vector.extract_strided_slice %139 {offsets = [12, 0], sizes = [128, 32], strides = [1, 1]} : vector<160x32xf32> to vector<128x32xf32>
    %c0_62 = arith.constant 0 : index
    %c2_63 = arith.constant 2 : index
    %142 = vector.load %arg1[%c0_62, %c2_63] : memref<128x12xf32, #tpu.memory_space<vmem>>, vector<128x1xf32>
    %143 = vector.broadcast %142 : vector<128x1xf32> to vector<128x32xf32>
    %144 = arith.mulf %141, %143 : vector<128x32xf32>
    %145 = arith.truncf %144 : vector<128x32xf32> to vector<128x32xbf16>
    %cst_64 = arith.constant dense<0.000000e+00> : vector<128x32xf32>
    %146 = tpu.matmul %145, %140, %cst_64 {dimension_numbers = #tpu.dot_dimension_numbers<[1], [0], [0], [1], [0, 0, 1, 1], [], []>} : vector<128x32xbf16>, vector<32x32xbf16>, vector<128x32xf32> -> vector<128x32xf32>
    %c360 = arith.constant 360 : index
    %c0_65 = arith.constant 0 : index
    %147 = vector.load %arg4[%c360, %c0_65] : memref<936x32xbf16, #tpu.memory_space<vmem>>, vector<32x32xbf16>
    %148 = vector.extract_strided_slice %139 {offsets = [13, 0], sizes = [128, 32], strides = [1, 1]} : vector<160x32xf32> to vector<128x32xf32>
    %c0_66 = arith.constant 0 : index
    %c3_67 = arith.constant 3 : index
    %149 = vector.load %arg1[%c0_66, %c3_67] : memref<128x12xf32, #tpu.memory_space<vmem>>, vector<128x1xf32>
    %150 = vector.broadcast %149 : vector<128x1xf32> to vector<128x32xf32>
    %151 = arith.mulf %148, %150 : vector<128x32xf32>
    %152 = arith.truncf %151 : vector<128x32xf32> to vector<128x32xbf16>
    %cst_68 = arith.constant dense<0.000000e+00> : vector<128x32xf32>
    %153 = tpu.matmul %152, %147, %cst_68 {dimension_numbers = #tpu.dot_dimension_numbers<[1], [0], [0], [1], [0, 0, 1, 1], [], []>} : vector<128x32xbf16>, vector<32x32xbf16>, vector<128x32xf32> -> vector<128x32xf32>
    %154 = arith.addf %146, %153 : vector<128x32xf32>
    %c392 = arith.constant 392 : index
    %c0_69 = arith.constant 0 : index
    %155 = vector.load %arg4[%c392, %c0_69] : memref<936x32xbf16, #tpu.memory_space<vmem>>, vector<32x32xbf16>
    %156 = vector.extract_strided_slice %139 {offsets = [14, 0], sizes = [128, 32], strides = [1, 1]} : vector<160x32xf32> to vector<128x32xf32>
    %c0_70 = arith.constant 0 : index
    %c4_71 = arith.constant 4 : index
    %157 = vector.load %arg1[%c0_70, %c4_71] : memref<128x12xf32, #tpu.memory_space<vmem>>, vector<128x1xf32>
    %158 = vector.broadcast %157 : vector<128x1xf32> to vector<128x32xf32>
    %159 = arith.mulf %156, %158 : vector<128x32xf32>
    %160 = arith.truncf %159 : vector<128x32xf32> to vector<128x32xbf16>
    %cst_72 = arith.constant dense<0.000000e+00> : vector<128x32xf32>
    %161 = tpu.matmul %160, %155, %cst_72 {dimension_numbers = #tpu.dot_dimension_numbers<[1], [0], [0], [1], [0, 0, 1, 1], [], []>} : vector<128x32xbf16>, vector<32x32xbf16>, vector<128x32xf32> -> vector<128x32xf32>
    %162 = arith.addf %154, %161 : vector<128x32xf32>
    %c424 = arith.constant 424 : index
    %c0_73 = arith.constant 0 : index
    %163 = vector.load %arg4[%c424, %c0_73] : memref<936x32xbf16, #tpu.memory_space<vmem>>, vector<32x32xbf16>
    %164 = vector.extract_strided_slice %139 {offsets = [15, 0], sizes = [128, 32], strides = [1, 1]} : vector<160x32xf32> to vector<128x32xf32>
    %c0_74 = arith.constant 0 : index
    %c5_75 = arith.constant 5 : index
    %165 = vector.load %arg1[%c0_74, %c5_75] : memref<128x12xf32, #tpu.memory_space<vmem>>, vector<128x1xf32>
    %166 = vector.broadcast %165 : vector<128x1xf32> to vector<128x32xf32>
    %167 = arith.mulf %164, %166 : vector<128x32xf32>
    %168 = arith.truncf %167 : vector<128x32xf32> to vector<128x32xbf16>
    %cst_76 = arith.constant dense<0.000000e+00> : vector<128x32xf32>
    %169 = tpu.matmul %168, %163, %cst_76 {dimension_numbers = #tpu.dot_dimension_numbers<[1], [0], [0], [1], [0, 0, 1, 1], [], []>} : vector<128x32xbf16>, vector<32x32xbf16>, vector<128x32xf32> -> vector<128x32xf32>
    %170 = arith.addf %162, %169 : vector<128x32xf32>
    %c456 = arith.constant 456 : index
    %c0_77 = arith.constant 0 : index
    %171 = vector.load %arg4[%c456, %c0_77] : memref<936x32xbf16, #tpu.memory_space<vmem>>, vector<32x32xbf16>
    %172 = arith.truncf %137 : vector<128x32xf32> to vector<128x32xbf16>
    %cst_78 = arith.constant dense<0.000000e+00> : vector<128x32xf32>
    %173 = tpu.matmul %172, %171, %cst_78 {dimension_numbers = #tpu.dot_dimension_numbers<[1], [0], [0], [1], [0, 0, 1, 1], [], []>} : vector<128x32xbf16>, vector<32x32xbf16>, vector<128x32xf32> -> vector<128x32xf32>
    %174 = arith.addf %170, %173 : vector<128x32xf32>
    %c488 = arith.constant 488 : index
    %c0_79 = arith.constant 0 : index
    %175 = vector.load %arg4[%c488, %c0_79] : memref<936x32xbf16, #tpu.memory_space<vmem>>, vector<32x32xbf16>
    %176 = vector.extract_strided_slice %139 {offsets = [17, 0], sizes = [128, 32], strides = [1, 1]} : vector<160x32xf32> to vector<128x32xf32>
    %c0_80 = arith.constant 0 : index
    %c6_81 = arith.constant 6 : index
    %177 = vector.load %arg1[%c0_80, %c6_81] : memref<128x12xf32, #tpu.memory_space<vmem>>, vector<128x1xf32>
    %178 = vector.broadcast %177 : vector<128x1xf32> to vector<128x32xf32>
    %179 = arith.mulf %176, %178 : vector<128x32xf32>
    %180 = arith.truncf %179 : vector<128x32xf32> to vector<128x32xbf16>
    %cst_82 = arith.constant dense<0.000000e+00> : vector<128x32xf32>
    %181 = tpu.matmul %180, %175, %cst_82 {dimension_numbers = #tpu.dot_dimension_numbers<[1], [0], [0], [1], [0, 0, 1, 1], [], []>} : vector<128x32xbf16>, vector<32x32xbf16>, vector<128x32xf32> -> vector<128x32xf32>
    %182 = arith.addf %174, %181 : vector<128x32xf32>
    %c520 = arith.constant 520 : index
    %c0_83 = arith.constant 0 : index
    %183 = vector.load %arg4[%c520, %c0_83] : memref<936x32xbf16, #tpu.memory_space<vmem>>, vector<32x32xbf16>
    %184 = vector.extract_strided_slice %139 {offsets = [18, 0], sizes = [128, 32], strides = [1, 1]} : vector<160x32xf32> to vector<128x32xf32>
    %c0_84 = arith.constant 0 : index
    %c7_85 = arith.constant 7 : index
    %185 = vector.load %arg1[%c0_84, %c7_85] : memref<128x12xf32, #tpu.memory_space<vmem>>, vector<128x1xf32>
    %186 = vector.broadcast %185 : vector<128x1xf32> to vector<128x32xf32>
    %187 = arith.mulf %184, %186 : vector<128x32xf32>
    %188 = arith.truncf %187 : vector<128x32xf32> to vector<128x32xbf16>
    %cst_86 = arith.constant dense<0.000000e+00> : vector<128x32xf32>
    %189 = tpu.matmul %188, %183, %cst_86 {dimension_numbers = #tpu.dot_dimension_numbers<[1], [0], [0], [1], [0, 0, 1, 1], [], []>} : vector<128x32xbf16>, vector<32x32xbf16>, vector<128x32xf32> -> vector<128x32xf32>
    %190 = arith.addf %182, %189 : vector<128x32xf32>
    %c552 = arith.constant 552 : index
    %c0_87 = arith.constant 0 : index
    %191 = vector.load %arg4[%c552, %c0_87] : memref<936x32xbf16, #tpu.memory_space<vmem>>, vector<32x32xbf16>
    %192 = vector.extract_strided_slice %139 {offsets = [19, 0], sizes = [128, 32], strides = [1, 1]} : vector<160x32xf32> to vector<128x32xf32>
    %c0_88 = arith.constant 0 : index
    %c8_89 = arith.constant 8 : index
    %193 = vector.load %arg1[%c0_88, %c8_89] : memref<128x12xf32, #tpu.memory_space<vmem>>, vector<128x1xf32>
    %194 = vector.broadcast %193 : vector<128x1xf32> to vector<128x32xf32>
    %195 = arith.mulf %192, %194 : vector<128x32xf32>
    %196 = arith.truncf %195 : vector<128x32xf32> to vector<128x32xbf16>
    %cst_90 = arith.constant dense<0.000000e+00> : vector<128x32xf32>
    %197 = tpu.matmul %196, %191, %cst_90 {dimension_numbers = #tpu.dot_dimension_numbers<[1], [0], [0], [1], [0, 0, 1, 1], [], []>} : vector<128x32xbf16>, vector<32x32xbf16>, vector<128x32xf32> -> vector<128x32xf32>
    %198 = arith.addf %190, %197 : vector<128x32xf32>
    %c584 = arith.constant 584 : index
    %c0_91 = arith.constant 0 : index
    %199 = vector.load %arg4[%c584, %c0_91] : memref<936x32xbf16, #tpu.memory_space<vmem>>, vector<32x32xbf16>
    %200 = vector.extract_strided_slice %139 {offsets = [20, 0], sizes = [128, 32], strides = [1, 1]} : vector<160x32xf32> to vector<128x32xf32>
    %c0_92 = arith.constant 0 : index
    %c9_93 = arith.constant 9 : index
    %201 = vector.load %arg1[%c0_92, %c9_93] : memref<128x12xf32, #tpu.memory_space<vmem>>, vector<128x1xf32>
    %202 = vector.broadcast %201 : vector<128x1xf32> to vector<128x32xf32>
    %203 = arith.mulf %200, %202 : vector<128x32xf32>
    %204 = arith.truncf %203 : vector<128x32xf32> to vector<128x32xbf16>
    %cst_94 = arith.constant dense<0.000000e+00> : vector<128x32xf32>
    %205 = tpu.matmul %204, %199, %cst_94 {dimension_numbers = #tpu.dot_dimension_numbers<[1], [0], [0], [1], [0, 0, 1, 1], [], []>} : vector<128x32xbf16>, vector<32x32xbf16>, vector<128x32xf32> -> vector<128x32xf32>
    %206 = arith.addf %198, %205 : vector<128x32xf32>
    %c13 = arith.constant 13 : index
    %c0_95 = arith.constant 0 : index
    %207 = vector.load %arg6[%c13, %c0_95] : memref<17x32xf32, #tpu.memory_space<vmem>>, vector<1x32xf32>
    %208 = vector.broadcast %207 : vector<1x32xf32> to vector<128x32xf32>
    %209 = arith.addf %206, %208 : vector<128x32xf32>
    %cst_96 = arith.constant 0.000000e+00 : f32
    %210 = vector.broadcast %cst_96 : f32 to vector<128x32xf32>
    %211 = arith.maximumf %209, %210 : vector<128x32xf32>
    %212 = arith.addf %211, %110 : vector<128x32xf32>
    %c2_97 = arith.constant 2 : index
    %c0_98 = arith.constant 0 : index
    %c0_99 = arith.constant 0 : index
    %213 = vector.load %arg3[%c2_97, %c0_98, %c0_99] : memref<5x128x32xf32, #tpu.memory_space<vmem>>, vector<1x128x32xf32>
    %214 = vector.shape_cast %213 : vector<1x128x32xf32> to vector<128x32xf32>
    %215 = arith.addf %212, %214 : vector<128x32xf32>
    %cst_100 = arith.constant dense<0.000000e+00> : vector<128xf32>
    %216 = vector.multi_reduction <add>, %215, %cst_100 [1] : vector<128x32xf32> to vector<128xf32>
    %217 = vector.shape_cast %216 : vector<128xf32> to vector<128x1xf32>
    %cst_101 = arith.constant 3.200000e+01 : f32
    %218 = vector.broadcast %cst_101 : f32 to vector<128x1xf32>
    %219 = arith.divf %217, %218 : vector<128x1xf32>
    %220 = vector.broadcast %219 : vector<128x1xf32> to vector<128x32xf32>
    %221 = arith.subf %215, %220 : vector<128x32xf32>
    %222 = arith.mulf %221, %221 : vector<128x32xf32>
    %cst_102 = arith.constant dense<0.000000e+00> : vector<128xf32>
    %223 = vector.multi_reduction <add>, %222, %cst_102 [1] : vector<128x32xf32> to vector<128xf32>
    %224 = vector.shape_cast %223 : vector<128xf32> to vector<128x1xf32>
    %cst_103 = arith.constant 3.200000e+01 : f32
    %225 = vector.broadcast %cst_103 : f32 to vector<128x1xf32>
    %226 = arith.divf %224, %225 : vector<128x1xf32>
    %c4_104 = arith.constant 4 : index
    %c0_105 = arith.constant 0 : index
    %227 = vector.load %arg6[%c4_104, %c0_105] : memref<17x32xf32, #tpu.memory_space<vmem>>, vector<1x32xf32>
    %c9_106 = arith.constant 9 : index
    %c0_107 = arith.constant 0 : index
    %228 = vector.load %arg6[%c9_106, %c0_107] : memref<17x32xf32, #tpu.memory_space<vmem>>, vector<1x32xf32>
    %229 = vector.broadcast %219 : vector<128x1xf32> to vector<128x32xf32>
    %230 = arith.subf %215, %229 : vector<128x32xf32>
    %cst_108 = arith.constant 9.99999974E-6 : f32
    %231 = vector.broadcast %cst_108 : f32 to vector<128x1xf32>
    %232 = arith.addf %226, %231 : vector<128x1xf32>
    %233 = math.rsqrt %232 : vector<128x1xf32>
    %234 = vector.broadcast %233 : vector<128x1xf32> to vector<128x32xf32>
    %235 = arith.mulf %230, %234 : vector<128x32xf32>
    %236 = vector.broadcast %227 : vector<1x32xf32> to vector<128x32xf32>
    %237 = arith.mulf %235, %236 : vector<128x32xf32>
    %238 = vector.broadcast %228 : vector<1x32xf32> to vector<128x32xf32>
    %239 = arith.addf %237, %238 : vector<128x32xf32>
    %cst_109 = arith.constant 0.000000e+00 : f32
    %240 = vector.broadcast %cst_109 : f32 to vector<16x32xf32>
    %241 = tpu.concatenate %240, %239, %240 in 0 : vector<16x32xf32>, vector<128x32xf32>, vector<16x32xf32> -> vector<160x32xf32>
    %c616 = arith.constant 616 : index
    %c0_110 = arith.constant 0 : index
    %242 = vector.load %arg4[%c616, %c0_110] : memref<936x32xbf16, #tpu.memory_space<vmem>>, vector<32x32xbf16>
    %243 = vector.extract_strided_slice %241 {offsets = [4, 0], sizes = [128, 32], strides = [1, 1]} : vector<160x32xf32> to vector<128x32xf32>
    %c0_111 = arith.constant 0 : index
    %c0_112 = arith.constant 0 : index
    %244 = vector.load %arg1[%c0_111, %c0_112] : memref<128x12xf32, #tpu.memory_space<vmem>>, vector<128x1xf32>
    %245 = vector.broadcast %244 : vector<128x1xf32> to vector<128x32xf32>
    %246 = arith.mulf %243, %245 : vector<128x32xf32>
    %247 = arith.truncf %246 : vector<128x32xf32> to vector<128x32xbf16>
    %cst_113 = arith.constant dense<0.000000e+00> : vector<128x32xf32>
    %248 = tpu.matmul %247, %242, %cst_113 {dimension_numbers = #tpu.dot_dimension_numbers<[1], [0], [0], [1], [0, 0, 1, 1], [], []>} : vector<128x32xbf16>, vector<32x32xbf16>, vector<128x32xf32> -> vector<128x32xf32>
    %c648 = arith.constant 648 : index
    %c0_114 = arith.constant 0 : index
    %249 = vector.load %arg4[%c648, %c0_114] : memref<936x32xbf16, #tpu.memory_space<vmem>>, vector<32x32xbf16>
    %250 = vector.extract_strided_slice %241 {offsets = [8, 0], sizes = [128, 32], strides = [1, 1]} : vector<160x32xf32> to vector<128x32xf32>
    %c0_115 = arith.constant 0 : index
    %c1_116 = arith.constant 1 : index
    %251 = vector.load %arg1[%c0_115, %c1_116] : memref<128x12xf32, #tpu.memory_space<vmem>>, vector<128x1xf32>
    %252 = vector.broadcast %251 : vector<128x1xf32> to vector<128x32xf32>
    %253 = arith.mulf %250, %252 : vector<128x32xf32>
    %254 = arith.truncf %253 : vector<128x32xf32> to vector<128x32xbf16>
    %cst_117 = arith.constant dense<0.000000e+00> : vector<128x32xf32>
    %255 = tpu.matmul %254, %249, %cst_117 {dimension_numbers = #tpu.dot_dimension_numbers<[1], [0], [0], [1], [0, 0, 1, 1], [], []>} : vector<128x32xbf16>, vector<32x32xbf16>, vector<128x32xf32> -> vector<128x32xf32>
    %256 = arith.addf %248, %255 : vector<128x32xf32>
    %c680 = arith.constant 680 : index
    %c0_118 = arith.constant 0 : index
    %257 = vector.load %arg4[%c680, %c0_118] : memref<936x32xbf16, #tpu.memory_space<vmem>>, vector<32x32xbf16>
    %258 = vector.extract_strided_slice %241 {offsets = [12, 0], sizes = [128, 32], strides = [1, 1]} : vector<160x32xf32> to vector<128x32xf32>
    %c0_119 = arith.constant 0 : index
    %c2_120 = arith.constant 2 : index
    %259 = vector.load %arg1[%c0_119, %c2_120] : memref<128x12xf32, #tpu.memory_space<vmem>>, vector<128x1xf32>
    %260 = vector.broadcast %259 : vector<128x1xf32> to vector<128x32xf32>
    %261 = arith.mulf %258, %260 : vector<128x32xf32>
    %262 = arith.truncf %261 : vector<128x32xf32> to vector<128x32xbf16>
    %cst_121 = arith.constant dense<0.000000e+00> : vector<128x32xf32>
    %263 = tpu.matmul %262, %257, %cst_121 {dimension_numbers = #tpu.dot_dimension_numbers<[1], [0], [0], [1], [0, 0, 1, 1], [], []>} : vector<128x32xbf16>, vector<32x32xbf16>, vector<128x32xf32> -> vector<128x32xf32>
    %264 = arith.addf %256, %263 : vector<128x32xf32>
    %c712 = arith.constant 712 : index
    %c0_122 = arith.constant 0 : index
    %265 = vector.load %arg4[%c712, %c0_122] : memref<936x32xbf16, #tpu.memory_space<vmem>>, vector<32x32xbf16>
    %266 = arith.truncf %239 : vector<128x32xf32> to vector<128x32xbf16>
    %cst_123 = arith.constant dense<0.000000e+00> : vector<128x32xf32>
    %267 = tpu.matmul %266, %265, %cst_123 {dimension_numbers = #tpu.dot_dimension_numbers<[1], [0], [0], [1], [0, 0, 1, 1], [], []>} : vector<128x32xbf16>, vector<32x32xbf16>, vector<128x32xf32> -> vector<128x32xf32>
    %268 = arith.addf %264, %267 : vector<128x32xf32>
    %c744 = arith.constant 744 : index
    %c0_124 = arith.constant 0 : index
    %269 = vector.load %arg4[%c744, %c0_124] : memref<936x32xbf16, #tpu.memory_space<vmem>>, vector<32x32xbf16>
    %270 = vector.extract_strided_slice %241 {offsets = [20, 0], sizes = [128, 32], strides = [1, 1]} : vector<160x32xf32> to vector<128x32xf32>
    %c0_125 = arith.constant 0 : index
    %c9_126 = arith.constant 9 : index
    %271 = vector.load %arg1[%c0_125, %c9_126] : memref<128x12xf32, #tpu.memory_space<vmem>>, vector<128x1xf32>
    %272 = vector.broadcast %271 : vector<128x1xf32> to vector<128x32xf32>
    %273 = arith.mulf %270, %272 : vector<128x32xf32>
    %274 = arith.truncf %273 : vector<128x32xf32> to vector<128x32xbf16>
    %cst_127 = arith.constant dense<0.000000e+00> : vector<128x32xf32>
    %275 = tpu.matmul %274, %269, %cst_127 {dimension_numbers = #tpu.dot_dimension_numbers<[1], [0], [0], [1], [0, 0, 1, 1], [], []>} : vector<128x32xbf16>, vector<32x32xbf16>, vector<128x32xf32> -> vector<128x32xf32>
    %276 = arith.addf %268, %275 : vector<128x32xf32>
    %c776 = arith.constant 776 : index
    %c0_128 = arith.constant 0 : index
    %277 = vector.load %arg4[%c776, %c0_128] : memref<936x32xbf16, #tpu.memory_space<vmem>>, vector<32x32xbf16>
    %278 = vector.extract_strided_slice %241 {offsets = [24, 0], sizes = [128, 32], strides = [1, 1]} : vector<160x32xf32> to vector<128x32xf32>
    %c0_129 = arith.constant 0 : index
    %c10 = arith.constant 10 : index
    %279 = vector.load %arg1[%c0_129, %c10] : memref<128x12xf32, #tpu.memory_space<vmem>>, vector<128x1xf32>
    %280 = vector.broadcast %279 : vector<128x1xf32> to vector<128x32xf32>
    %281 = arith.mulf %278, %280 : vector<128x32xf32>
    %282 = arith.truncf %281 : vector<128x32xf32> to vector<128x32xbf16>
    %cst_130 = arith.constant dense<0.000000e+00> : vector<128x32xf32>
    %283 = tpu.matmul %282, %277, %cst_130 {dimension_numbers = #tpu.dot_dimension_numbers<[1], [0], [0], [1], [0, 0, 1, 1], [], []>} : vector<128x32xbf16>, vector<32x32xbf16>, vector<128x32xf32> -> vector<128x32xf32>
    %284 = arith.addf %276, %283 : vector<128x32xf32>
    %c808 = arith.constant 808 : index
    %c0_131 = arith.constant 0 : index
    %285 = vector.load %arg4[%c808, %c0_131] : memref<936x32xbf16, #tpu.memory_space<vmem>>, vector<32x32xbf16>
    %286 = vector.extract_strided_slice %241 {offsets = [28, 0], sizes = [128, 32], strides = [1, 1]} : vector<160x32xf32> to vector<128x32xf32>
    %c0_132 = arith.constant 0 : index
    %c11 = arith.constant 11 : index
    %287 = vector.load %arg1[%c0_132, %c11] : memref<128x12xf32, #tpu.memory_space<vmem>>, vector<128x1xf32>
    %288 = vector.broadcast %287 : vector<128x1xf32> to vector<128x32xf32>
    %289 = arith.mulf %286, %288 : vector<128x32xf32>
    %290 = arith.truncf %289 : vector<128x32xf32> to vector<128x32xbf16>
    %cst_133 = arith.constant dense<0.000000e+00> : vector<128x32xf32>
    %291 = tpu.matmul %290, %285, %cst_133 {dimension_numbers = #tpu.dot_dimension_numbers<[1], [0], [0], [1], [0, 0, 1, 1], [], []>} : vector<128x32xbf16>, vector<32x32xbf16>, vector<128x32xf32> -> vector<128x32xf32>
    %292 = arith.addf %284, %291 : vector<128x32xf32>
    %c14 = arith.constant 14 : index
    %c0_134 = arith.constant 0 : index
    %293 = vector.load %arg6[%c14, %c0_134] : memref<17x32xf32, #tpu.memory_space<vmem>>, vector<1x32xf32>
    %294 = vector.broadcast %293 : vector<1x32xf32> to vector<128x32xf32>
    %295 = arith.addf %292, %294 : vector<128x32xf32>
    %cst_135 = arith.constant 0.000000e+00 : f32
    %296 = vector.broadcast %cst_135 : f32 to vector<128x32xf32>
    %297 = arith.maximumf %295, %296 : vector<128x32xf32>
    %298 = arith.addf %297, %212 : vector<128x32xf32>
    %c3_136 = arith.constant 3 : index
    %c0_137 = arith.constant 0 : index
    %c0_138 = arith.constant 0 : index
    %299 = vector.load %arg3[%c3_136, %c0_137, %c0_138] : memref<5x128x32xf32, #tpu.memory_space<vmem>>, vector<1x128x32xf32>
    %300 = vector.shape_cast %299 : vector<1x128x32xf32> to vector<128x32xf32>
    %301 = arith.addf %298, %300 : vector<128x32xf32>
    %cst_139 = arith.constant dense<0.000000e+00> : vector<128xf32>
    %302 = vector.multi_reduction <add>, %301, %cst_139 [1] : vector<128x32xf32> to vector<128xf32>
    %303 = vector.shape_cast %302 : vector<128xf32> to vector<128x1xf32>
    %cst_140 = arith.constant 3.200000e+01 : f32
    %304 = vector.broadcast %cst_140 : f32 to vector<128x1xf32>
    %305 = arith.divf %303, %304 : vector<128x1xf32>
    %306 = vector.broadcast %305 : vector<128x1xf32> to vector<128x32xf32>
    %307 = arith.subf %301, %306 : vector<128x32xf32>
    %308 = arith.mulf %307, %307 : vector<128x32xf32>
    %cst_141 = arith.constant dense<0.000000e+00> : vector<128xf32>
    %309 = vector.multi_reduction <add>, %308, %cst_141 [1] : vector<128x32xf32> to vector<128xf32>
    %310 = vector.shape_cast %309 : vector<128xf32> to vector<128x1xf32>
    %cst_142 = arith.constant 3.200000e+01 : f32
    %311 = vector.broadcast %cst_142 : f32 to vector<128x1xf32>
    %312 = arith.divf %310, %311 : vector<128x1xf32>
    %c5_143 = arith.constant 5 : index
    %c0_144 = arith.constant 0 : index
    %313 = vector.load %arg6[%c5_143, %c0_144] : memref<17x32xf32, #tpu.memory_space<vmem>>, vector<1x32xf32>
    %c10_145 = arith.constant 10 : index
    %c0_146 = arith.constant 0 : index
    %314 = vector.load %arg6[%c10_145, %c0_146] : memref<17x32xf32, #tpu.memory_space<vmem>>, vector<1x32xf32>
    %315 = vector.broadcast %305 : vector<128x1xf32> to vector<128x32xf32>
    %316 = arith.subf %301, %315 : vector<128x32xf32>
    %cst_147 = arith.constant 9.99999974E-6 : f32
    %317 = vector.broadcast %cst_147 : f32 to vector<128x1xf32>
    %318 = arith.addf %312, %317 : vector<128x1xf32>
    %319 = math.rsqrt %318 : vector<128x1xf32>
    %320 = vector.broadcast %319 : vector<128x1xf32> to vector<128x32xf32>
    %321 = arith.mulf %316, %320 : vector<128x32xf32>
    %322 = vector.broadcast %313 : vector<1x32xf32> to vector<128x32xf32>
    %323 = arith.mulf %321, %322 : vector<128x32xf32>
    %324 = vector.broadcast %314 : vector<1x32xf32> to vector<128x32xf32>
    %325 = arith.addf %323, %324 : vector<128x32xf32>
    %c840 = arith.constant 840 : index
    %c0_148 = arith.constant 0 : index
    %326 = vector.load %arg4[%c840, %c0_148] : memref<936x32xbf16, #tpu.memory_space<vmem>>, vector<32x32xbf16>
    %327 = arith.truncf %325 : vector<128x32xf32> to vector<128x32xbf16>
    %cst_149 = arith.constant dense<0.000000e+00> : vector<128x32xf32>
    %328 = tpu.matmul %327, %326, %cst_149 {dimension_numbers = #tpu.dot_dimension_numbers<[1], [0], [0], [1], [0, 0, 1, 1], [], []>} : vector<128x32xbf16>, vector<32x32xbf16>, vector<128x32xf32> -> vector<128x32xf32>
    %c15 = arith.constant 15 : index
    %c0_150 = arith.constant 0 : index
    %329 = vector.load %arg6[%c15, %c0_150] : memref<17x32xf32, #tpu.memory_space<vmem>>, vector<1x32xf32>
    %330 = vector.broadcast %329 : vector<1x32xf32> to vector<128x32xf32>
    %331 = arith.addf %328, %330 : vector<128x32xf32>
    %cst_151 = arith.constant 0.000000e+00 : f32
    %332 = vector.broadcast %cst_151 : f32 to vector<128x32xf32>
    %333 = arith.maximumf %331, %332 : vector<128x32xf32>
    %334 = arith.addf %333, %298 : vector<128x32xf32>
    %c4_152 = arith.constant 4 : index
    %c0_153 = arith.constant 0 : index
    %c0_154 = arith.constant 0 : index
    %335 = vector.load %arg3[%c4_152, %c0_153, %c0_154] : memref<5x128x32xf32, #tpu.memory_space<vmem>>, vector<1x128x32xf32>
    %336 = vector.shape_cast %335 : vector<1x128x32xf32> to vector<128x32xf32>
    %337 = arith.addf %334, %336 : vector<128x32xf32>
    %cst_155 = arith.constant dense<0.000000e+00> : vector<128xf32>
    %338 = vector.multi_reduction <add>, %337, %cst_155 [1] : vector<128x32xf32> to vector<128xf32>
    %339 = vector.shape_cast %338 : vector<128xf32> to vector<128x1xf32>
    %cst_156 = arith.constant 3.200000e+01 : f32
    %340 = vector.broadcast %cst_156 : f32 to vector<128x1xf32>
    %341 = arith.divf %339, %340 : vector<128x1xf32>
    %342 = vector.broadcast %341 : vector<128x1xf32> to vector<128x32xf32>
    %343 = arith.subf %337, %342 : vector<128x32xf32>
    %344 = arith.mulf %343, %343 : vector<128x32xf32>
    %cst_157 = arith.constant dense<0.000000e+00> : vector<128xf32>
    %345 = vector.multi_reduction <add>, %344, %cst_157 [1] : vector<128x32xf32> to vector<128xf32>
    %346 = vector.shape_cast %345 : vector<128xf32> to vector<128x1xf32>
    %cst_158 = arith.constant 3.200000e+01 : f32
    %347 = vector.broadcast %cst_158 : f32 to vector<128x1xf32>
    %348 = arith.divf %346, %347 : vector<128x1xf32>
    %c6_159 = arith.constant 6 : index
    %c0_160 = arith.constant 0 : index
    %349 = vector.load %arg6[%c6_159, %c0_160] : memref<17x32xf32, #tpu.memory_space<vmem>>, vector<1x32xf32>
    %c11_161 = arith.constant 11 : index
    %c0_162 = arith.constant 0 : index
    %350 = vector.load %arg6[%c11_161, %c0_162] : memref<17x32xf32, #tpu.memory_space<vmem>>, vector<1x32xf32>
    %351 = vector.broadcast %341 : vector<128x1xf32> to vector<128x32xf32>
    %352 = arith.subf %337, %351 : vector<128x32xf32>
    %cst_163 = arith.constant 9.99999974E-6 : f32
    %353 = vector.broadcast %cst_163 : f32 to vector<128x1xf32>
    %354 = arith.addf %348, %353 : vector<128x1xf32>
    %355 = math.rsqrt %354 : vector<128x1xf32>
    %356 = vector.broadcast %355 : vector<128x1xf32> to vector<128x32xf32>
    %357 = arith.mulf %352, %356 : vector<128x32xf32>
    %358 = vector.broadcast %349 : vector<1x32xf32> to vector<128x32xf32>
    %359 = arith.mulf %357, %358 : vector<128x32xf32>
    %360 = vector.broadcast %350 : vector<1x32xf32> to vector<128x32xf32>
    %361 = arith.addf %359, %360 : vector<128x32xf32>
    %c872 = arith.constant 872 : index
    %c0_164 = arith.constant 0 : index
    %362 = vector.load %arg4[%c872, %c0_164] : memref<936x32xbf16, #tpu.memory_space<vmem>>, vector<32x32xbf16>
    %363 = arith.truncf %361 : vector<128x32xf32> to vector<128x32xbf16>
    %cst_165 = arith.constant dense<0.000000e+00> : vector<128x32xf32>
    %364 = tpu.matmul %363, %362, %cst_165 {dimension_numbers = #tpu.dot_dimension_numbers<[1], [0], [0], [1], [0, 0, 1, 1], [], []>} : vector<128x32xbf16>, vector<32x32xbf16>, vector<128x32xf32> -> vector<128x32xf32>
    %c16 = arith.constant 16 : index
    %c0_166 = arith.constant 0 : index
    %365 = vector.load %arg6[%c16, %c0_166] : memref<17x32xf32, #tpu.memory_space<vmem>>, vector<1x32xf32>
    %366 = vector.broadcast %365 : vector<1x32xf32> to vector<128x32xf32>
    %367 = arith.addf %364, %366 : vector<128x32xf32>
    %cst_167 = arith.constant 0.000000e+00 : f32
    %368 = vector.broadcast %cst_167 : f32 to vector<128x32xf32>
    %369 = arith.maximumf %367, %368 : vector<128x32xf32>
    %370 = arith.addf %369, %334 : vector<128x32xf32>
    %371 = arith.truncf %370 : vector<128x32xf32> to vector<128x32xbf16>
    %c904 = arith.constant 904 : index
    %c0_168 = arith.constant 0 : index
    %372 = vector.load %arg4[%c904, %c0_168] : memref<936x32xbf16, #tpu.memory_space<vmem>>, vector<32x32xbf16>
    %cst_169 = arith.constant dense<0.000000e+00> : vector<128x32xf32>
    %373 = tpu.matmul %371, %372, %cst_169 {dimension_numbers = #tpu.dot_dimension_numbers<[1], [0], [0], [1], [0, 0, 1, 1], [], []>} : vector<128x32xbf16>, vector<32x32xbf16>, vector<128x32xf32> -> vector<128x32xf32>
    %374 = vector.broadcast %1 : vector<1x32xf32> to vector<128x32xf32>
    %375 = arith.addf %373, %374 : vector<128x32xf32>
    %cst_170 = arith.constant 0.000000e+00 : f32
    %376 = vector.broadcast %cst_170 : f32 to vector<128x32xf32>
    %377 = arith.maximumf %375, %376 : vector<128x32xf32>
    %c0_171 = arith.constant 0 : index
    %c0_172 = arith.constant 0 : index
    %378 = vector.load %arg5[%c0_171, %c0_172] : memref<8x32xbf16, #tpu.memory_space<vmem>>, vector<8x32xbf16>
    %379 = arith.truncf %377 : vector<128x32xf32> to vector<128x32xbf16>
    %cst_173 = arith.constant dense<0.000000e+00> : vector<8x128xf32>
    %380 = tpu.matmul %378, %379, %cst_173 {dimension_numbers = #tpu.dot_dimension_numbers<[1], [1], [0], [0], [0, 0, 1, 0], [], []>} : vector<8x32xbf16>, vector<128x32xbf16>, vector<8x128xf32> -> vector<8x128xf32>
    %381 = vector.shape_cast %380 : vector<8x128xf32> to vector<1x8x128xf32>
    %c0_174 = arith.constant 0 : index
    %c0_175 = arith.constant 0 : index
    %c0_176 = arith.constant 0 : index
    %382 = vector.load %arg7[%c0_174, %c0_175, %c0_176] : memref<1x8x128xf32, #tpu.memory_space<vmem>>, vector<1x8x128xf32>
    tpu.vector_store %arg7[%c0_174, %c0_175, %c0_176], %381 {strides = array<i32>} : memref<1x8x128xf32, #tpu.memory_space<vmem>>, vector<1x8x128xf32>,
    return
  }
  func.func @transform_0(%arg0: i32) -> (i32, i32) {
    %c0_i32 = arith.constant 0 : i32
    %c0_i32_0 = arith.constant 0 : i32
    %c0_i32_1 = arith.constant 0 : i32
    return %c0_i32, %c0_i32_0 : i32, i32
  }
  func.func @transform_1(%arg0: i32) -> (i32, i32) {
    %c0_i32 = arith.constant 0 : i32
    %c0_i32_0 = arith.constant 0 : i32
    return %arg0, %c0_i32 : i32, i32
  }
  func.func @transform_2(%arg0: i32) -> (i32, i32, i32) {
    %c0_i32 = arith.constant 0 : i32
    %c0_i32_0 = arith.constant 0 : i32
    %c0_i32_1 = arith.constant 0 : i32
    return %c0_i32, %arg0, %c0_i32_0 : i32, i32, i32
  }
  func.func @transform_3(%arg0: i32) -> (i32, i32) {
    %c0_i32 = arith.constant 0 : i32
    %c0_i32_0 = arith.constant 0 : i32
    %c0_i32_1 = arith.constant 0 : i32
    return %c0_i32, %c0_i32_0 : i32, i32
  }
  func.func @transform_4(%arg0: i32) -> (i32, i32) {
    %c0_i32 = arith.constant 0 : i32
    %c0_i32_0 = arith.constant 0 : i32
    %c0_i32_1 = arith.constant 0 : i32
    return %c0_i32, %c0_i32_0 : i32, i32
  }
  func.func @transform_5(%arg0: i32) -> (i32, i32) {
    %c0_i32 = arith.constant 0 : i32
    %c0_i32_0 = arith.constant 0 : i32
    %c0_i32_1 = arith.constant 0 : i32
    return %c0_i32, %c0_i32_0 : i32, i32
  }
  func.func @transform_6(%arg0: i32) -> (i32, i32, i32) {
    %c0_i32 = arith.constant 0 : i32
    %c0_i32_0 = arith.constant 0 : i32
    %c0_i32_1 = arith.constant 0 : i32
    return %arg0, %c0_i32, %c0_i32_0 : i32, i32, i32
  }
}

</mosaic_0001>

<bundles_post_ra>
// kernel: cnn_model_forward.1
= control target key start
LH: loop header
LB: loop body
LE: loop exit
PB: predicated region body
PF: predicated region fallthrough
CT: control target
= control target key end

     0   :  { %s11515_s21 = smov 0   ;;  %s11517_s22 = smov 0   ;;  %s16099_s0 = inlined_call_operand.vmem [shape: f32[128,12], index: 0, kind: input, shape index: {}]   ;;  %s16100_s1 = inlined_call_operand.vmem [shape: bf16[256,40], index: 1, kind: input, shape index: {}]   ;;  %s16101_s2 = inlined_call_operand.vmem [shape: f32[5,256,32], index: 2, kind: input, shape index: {}]   ;;  %s16102_s3 = inlined_call_operand.vmem [shape: bf16[936,32], index: 3, kind: input, shape index: {}]   ;;  %s16103_s4 = inlined_call_operand.vmem [shape: bf16[8,32], index: 4, kind: input, shape index: {}]   ;;  %s16104_s5 = inlined_call_operand.vmem [shape: f32[17,32], index: 5, kind: input, shape index: {}]   ;;  %s16105_s6 = inlined_call_operand.vmem [shape: f32[2,8,128], index: 6, kind: output, shape index: {}]  }
   0x1   :  { %s11519_s23 = smov 0  }
   0x2 LB: > { %s11531_s24 = sadd.s32 4294967295, %s11464_s23   ;;  %s11534_s25 = sadd.s32 1, %s11464_s23   ;;  %s11464_s23 = sphi %s11519_s23, %s16726_s23   ;;  %s11460_s22 = sphi %s11517_s22, %s16725_s22   ;;  %s11456_s21 = sphi %s11515_s21, %s16724_s21  }
   0x3   : > { %s67_s26 = ssub.s32 %s11464_s23, %s11534_s25  ;;  %s70_s27 = sadd.s32 1, %s11460_s22 }
   0x4   : > { %p68_p0 = scmp.eq.s32.totalorder %s67_s26, 0  ;;  %p77_p1 = scmp.ne.s32.totalorder %s11460_s22, %s11456_s21 }
   0x5   : > { %p78_p2 = scmp.eq.s32.totalorder %s11464_s23, 0  ;;  %p9453_p4 = scmp.ge.s32.totalorder %s11464_s23, 2 }
   0x6   : > { %s11543_s28 = scalar_select %p68_p0, %s11460_s22, %s70_s27  }
   0x7   : > { %p79_p3 = por %p78_p2, %p77_p1  ;;  %204 = sbr.rel (%p9453_p4) target bundleno = 59 (0x3b), region = 32 }
   0xe   : > { %216 = sbr.rel (!%p79_p3) target bundleno = 59 (0x3b), region = 40  ;;  %s218_s29 = sand.u32 (%p79_p3), 1, %s11460_s22  }
   0xf   : > { %s9843_s30 = sshll.u32 (%p79_p3), %s11464_s23, 7  ;;  %s11103_s7 = smul.u32 (%p79_p3), 640, %s218_s29 }
  0x10   : > { %s11551_s10 = scalar_lea.vmem (%p79_p3), %s16101_s2, %s9843_s30 }
  0x11   : > { %v409_v0 = vld [vmem:[%s11551_s10] sm:$0xff] (%p79_p3)  ;;  %v411_v1 = vld [vmem:[%s11551_s10 + $0x8] sm:$0xff] (%p79_p3)  ;;  %v413_v2 = vld [vmem:[%s11551_s10 + $0x10] sm:$0xff] (%p79_p3)  ;;  %s11559_s11 = scalar_lea.vmem (%p79_p3), [#allocation2], %s11103_s7 }
  0x12   : > { %v415_v3 = vld [vmem:[%s11551_s10 + $0x18] sm:$0xff] (%p79_p3)  ;;  %v417_v4 = vld [vmem:[%s11551_s10 + $0x20] sm:$0xff] (%p79_p3)  ;;  %v419_v5 = vld [vmem:[%s11551_s10 + $0x28] sm:$0xff] (%p79_p3)  ;;  %410 = vst [vmem:[%s11559_s11] sm:$0xff] (%p79_p3), %v409_v0 }
  0x13   : > { %412 = vst [vmem:[%s11559_s11 + $0x8] sm:$0xff] (%p79_p3), %v411_v1  ;;  %414 = vst [vmem:[%s11559_s11 + $0x10] sm:$0xff] (%p79_p3), %v413_v2  ;;  %v421_v6 = vld [vmem:[%s11551_s10 + $0x30] sm:$0xff] (%p79_p3)  ;;  %v423_v7 = vld [vmem:[%s11551_s10 + $0x38] sm:$0xff] (%p79_p3) }
  0x14   : > { %416 = vst [vmem:[%s11559_s11 + $0x18] sm:$0xff] (%p79_p3), %v415_v3  ;;  %418 = vst [vmem:[%s11559_s11 + $0x20] sm:$0xff] (%p79_p3), %v417_v4  ;;  %v425_v8 = vld [vmem:[%s11551_s10 + $0x40] sm:$0xff] (%p79_p3)  ;;  %v427_v9 = vld [vmem:[%s11551_s10 + $0x48] sm:$0xff] (%p79_p3) }
  0x15   : > { %420 = vst [vmem:[%s11559_s11 + $0x28] sm:$0xff] %v419_v5  ;;  %422 = vst [vmem:[%s11559_s11 + $0x30] sm:$0xff] %v421_v6  ;;  %v429_v10 = vld [vmem:[%s11551_s10 + $0x50] sm:$0xff]  ;;  %v431_v11 = vld [vmem:[%s11551_s10 + $0x58] sm:$0xff] }
  0x16   : > { %424 = vst [vmem:[%s11559_s11 + $0x38] sm:$0xff] %v423_v7  ;;  %426 = vst [vmem:[%s11559_s11 + $0x40] sm:$0xff] %v425_v8  ;;  %v433_v12 = vld [vmem:[%s11551_s10 + $0x60] sm:$0xff]  ;;  %v435_v13 = vld [vmem:[%s11551_s10 + $0x68] sm:$0xff] }
  0x17   : > { %428 = vst [vmem:[%s11559_s11 + $0x48] sm:$0xff] %v427_v9  ;;  %430 = vst [vmem:[%s11559_s11 + $0x50] sm:$0xff] %v429_v10  ;;  %v437_v14 = vld [vmem:[%s11551_s10 + $0x70] sm:$0xff]  ;;  %v439_v15 = vld [vmem:[%s11551_s10 + $0x78] sm:$0xff] }
  0x18   : > { %432 = vst [vmem:[%s11559_s11 + $0x58] sm:$0xff] %v431_v11  ;;  %434 = vst [vmem:[%s11559_s11 + $0x60] sm:$0xff] %v433_v12  ;;  %v441_v16 = vld [vmem:[%s11551_s10 + $0x100] sm:$0xff]  ;;  %v443_v17 = vld [vmem:[%s11551_s10 + $0x108] sm:$0xff] }
  0x19   : > { %436 = vst [vmem:[%s11559_s11 + $0x68] sm:$0xff] %v435_v13  ;;  %438 = vst [vmem:[%s11559_s11 + $0x70] sm:$0xff] %v437_v14  ;;  %v445_v18 = vld [vmem:[%s11551_s10 + $0x110] sm:$0xff]  ;;  %v447_v19 = vld [vmem:[%s11551_s10 + $0x118] sm:$0xff] }
  0x1a   : > { %440 = vst [vmem:[%s11559_s11 + $0x78] sm:$0xff] %v439_v15  ;;  %442 = vst [vmem:[%s11559_s11 + $0x80] sm:$0xff] %v441_v16  ;;  %v449_v20 = vld [vmem:[%s11551_s10 + $0x120] sm:$0xff]  ;;  %v451_v21 = vld [vmem:[%s11551_s10 + $0x128] sm:$0xff] }
  0x1b   : > { %444 = vst [vmem:[%s11559_s11 + $0x88] sm:$0xff] %v443_v17  ;;  %446 = vst [vmem:[%s11559_s11 + $0x90] sm:$0xff] %v445_v18  ;;  %v453_v22 = vld [vmem:[%s11551_s10 + $0x130] sm:$0xff]  ;;  %v455_v23 = vld [vmem:[%s11551_s10 + $0x138] sm:$0xff] }
  0x1c   : > { %448 = vst [vmem:[%s11559_s11 + $0x98] sm:$0xff] %v447_v19  ;;  %450 = vst [vmem:[%s11559_s11 + $0xa0] sm:$0xff] %v449_v20  ;;  %v457_v24 = vld [vmem:[%s11551_s10 + $0x140] sm:$0xff]  ;;  %v459_v25 = vld [vmem:[%s11551_s10 + $0x148] sm:$0xff] }
  0x1d   : > { %452 = vst [vmem:[%s11559_s11 + $0xa8] sm:$0xff] %v451_v21  ;;  %454 = vst [vmem:[%s11559_s11 + $0xb0] sm:$0xff] %v453_v22  ;;  %v461_v26 = vld [vmem:[%s11551_s10 + $0x150] sm:$0xff]  ;;  %v463_v27 = vld [vmem:[%s11551_s10 + $0x158] sm:$0xff] }
  0x1e   : > { %456 = vst [vmem:[%s11559_s11 + $0xb8] sm:$0xff] %v455_v23  ;;  %458 = vst [vmem:[%s11559_s11 + $0xc0] sm:$0xff] %v457_v24  ;;  %v465_v28 = vld [vmem:[%s11551_s10 + $0x160] sm:$0xff]  ;;  %v467_v29 = vld [vmem:[%s11551_s10 + $0x168] sm:$0xff] }
  0x1f   : > { %460 = vst [vmem:[%s11559_s11 + $0xc8] sm:$0xff] %v459_v25  ;;  %462 = vst [vmem:[%s11559_s11 + $0xd0] sm:$0xff] %v461_v26  ;;  %v469_v30 = vld [vmem:[%s11551_s10 + $0x170] sm:$0xff]  ;;  %v471_v31 = vld [vmem:[%s11551_s10 + $0x178] sm:$0xff] }
  0x20   : > { %464 = vst [vmem:[%s11559_s11 + $0xd8] sm:$0xff] %v463_v27  ;;  %466 = vst [vmem:[%s11559_s11 + $0xe0] sm:$0xff] %v465_v28  ;;  %v473_v32 = vld [vmem:[%s11551_s10 + $0x200] sm:$0xff]  ;;  %v475_v33 = vld [vmem:[%s11551_s10 + $0x208] sm:$0xff] }
  0x21   : > { %468 = vst [vmem:[%s11559_s11 + $0xe8] sm:$0xff] %v467_v29  ;;  %470 = vst [vmem:[%s11559_s11 + $0xf0] sm:$0xff] %v469_v30  ;;  %v477_v34 = vld [vmem:[%s11551_s10 + $0x210] sm:$0xff]  ;;  %v479_v35 = vld [vmem:[%s11551_s10 + $0x218] sm:$0xff] }
  0x22   : > { %472 = vst [vmem:[%s11559_s11 + $0xf8] sm:$0xff] %v471_v31  ;;  %474 = vst [vmem:[%s11559_s11 + $0x100] sm:$0xff] %v473_v32  ;;  %v481_v36 = vld [vmem:[%s11551_s10 + $0x220] sm:$0xff]  ;;  %v483_v37 = vld [vmem:[%s11551_s10 + $0x228] sm:$0xff] }
  0x23   : > { %476 = vst [vmem:[%s11559_s11 + $0x108] sm:$0xff] %v475_v33  ;;  %478 = vst [vmem:[%s11559_s11 + $0x110] sm:$0xff] %v477_v34  ;;  %v485_v38 = vld [vmem:[%s11551_s10 + $0x230] sm:$0xff]  ;;  %v487_v39 = vld [vmem:[%s11551_s10 + $0x238] sm:$0xff] }
  0x24   : > { %480 = vst [vmem:[%s11559_s11 + $0x118] sm:$0xff] %v479_v35  ;;  %482 = vst [vmem:[%s11559_s11 + $0x120] sm:$0xff] %v481_v36  ;;  %v489_v40 = vld [vmem:[%s11551_s10 + $0x240] sm:$0xff]  ;;  %v491_v41 = vld [vmem:[%s11551_s10 + $0x248] sm:$0xff] }
  0x25   : > { %484 = vst [vmem:[%s11559_s11 + $0x128] sm:$0xff] %v483_v37  ;;  %486 = vst [vmem:[%s11559_s11 + $0x130] sm:$0xff] %v485_v38  ;;  %v493_v42 = vld [vmem:[%s11551_s10 + $0x250] sm:$0xff]  ;;  %v495_v43 = vld [vmem:[%s11551_s10 + $0x258] sm:$0xff] }
  0x26   : > { %488 = vst [vmem:[%s11559_s11 + $0x138] sm:$0xff] %v487_v39  ;;  %490 = vst [vmem:[%s11559_s11 + $0x140] sm:$0xff] %v489_v40  ;;  %v497_v44 = vld [vmem:[%s11551_s10 + $0x260] sm:$0xff]  ;;  %v499_v45 = vld [vmem:[%s11551_s10 + $0x268] sm:$0xff] }
  0x27   : > { %492 = vst [vmem:[%s11559_s11 + $0x148] sm:$0xff] %v491_v41  ;;  %494 = vst [vmem:[%s11559_s11 + $0x150] sm:$0xff] %v493_v42  ;;  %v501_v46 = vld [vmem:[%s11551_s10 + $0x270] sm:$0xff]  ;;  %v503_v47 = vld [vmem:[%s11551_s10 + $0x278] sm:$0xff] }
  0x28   : > { %496 = vst [vmem:[%s11559_s11 + $0x158] sm:$0xff] %v495_v43  ;;  %498 = vst [vmem:[%s11559_s11 + $0x160] sm:$0xff] %v497_v44  ;;  %v505_v48 = vld [vmem:[%s11551_s10 + $0x300] sm:$0xff]  ;;  %v507_v49 = vld [vmem:[%s11551_s10 + $0x308] sm:$0xff] }
  0x29   : > { %500 = vst [vmem:[%s11559_s11 + $0x168] sm:$0xff] %v499_v45  ;;  %502 = vst [vmem:[%s11559_s11 + $0x170] sm:$0xff] %v501_v46  ;;  %v509_v50 = vld [vmem:[%s11551_s10 + $0x310] sm:$0xff]  ;;  %v511_v51 = vld [vmem:[%s11551_s10 + $0x318] sm:$0xff] }
  0x2a   : > { %504 = vst [vmem:[%s11559_s11 + $0x178] sm:$0xff] %v503_v47  ;;  %506 = vst [vmem:[%s11559_s11 + $0x180] sm:$0xff] %v505_v48  ;;  %v513_v52 = vld [vmem:[%s11551_s10 + $0x320] sm:$0xff]  ;;  %v515_v53 = vld [vmem:[%s11551_s10 + $0x328] sm:$0xff] }
  0x2b   : > { %508 = vst [vmem:[%s11559_s11 + $0x188] sm:$0xff] %v507_v49  ;;  %510 = vst [vmem:[%s11559_s11 + $0x190] sm:$0xff] %v509_v50  ;;  %v517_v54 = vld [vmem:[%s11551_s10 + $0x330] sm:$0xff]  ;;  %v519_v55 = vld [vmem:[%s11551_s10 + $0x338] sm:$0xff] }
  0x2c   : > { %512 = vst [vmem:[%s11559_s11 + $0x198] sm:$0xff] %v511_v51  ;;  %514 = vst [vmem:[%s11559_s11 + $0x1a0] sm:$0xff] %v513_v52  ;;  %v521_v56 = vld [vmem:[%s11551_s10 + $0x340] sm:$0xff]  ;;  %v523_v57 = vld [vmem:[%s11551_s10 + $0x348] sm:$0xff] }
  0x2d   : > { %516 = vst [vmem:[%s11559_s11 + $0x1a8] sm:$0xff] %v515_v53  ;;  %518 = vst [vmem:[%s11559_s11 + $0x1b0] sm:$0xff] %v517_v54  ;;  %v525_v58 = vld [vmem:[%s11551_s10 + $0x350] sm:$0xff]  ;;  %v527_v59 = vld [vmem:[%s11551_s10 + $0x358] sm:$0xff] }
  0x2e   : > { %520 = vst [vmem:[%s11559_s11 + $0x1b8] sm:$0xff] %v519_v55  ;;  %522 = vst [vmem:[%s11559_s11 + $0x1c0] sm:$0xff] %v521_v56  ;;  %v529_v60 = vld [vmem:[%s11551_s10 + $0x360] sm:$0xff]  ;;  %v531_v61 = vld [vmem:[%s11551_s10 + $0x368] sm:$0xff] }
  0x2f   : > { %524 = vst [vmem:[%s11559_s11 + $0x1c8] sm:$0xff] %v523_v57  ;;  %526 = vst [vmem:[%s11559_s11 + $0x1d0] sm:$0xff] %v525_v58  ;;  %v533_v62 = vld [vmem:[%s11551_s10 + $0x370] sm:$0xff]  ;;  %v535_v63 = vld [vmem:[%s11551_s10 + $0x378] sm:$0xff] }
  0x30   : > { %528 = vst [vmem:[%s11559_s11 + $0x1d8] sm:$0xff] %v527_v59  ;;  %530 = vst [vmem:[%s11559_s11 + $0x1e0] sm:$0xff] %v529_v60  ;;  %v537_v0 = vld [vmem:[%s11551_s10 + $0x400] sm:$0xff]  ;;  %v539_v1 = vld [vmem:[%s11551_s10 + $0x408] sm:$0xff] }
  0x31   : > { %532 = vst [vmem:[%s11559_s11 + $0x1e8] sm:$0xff] %v531_v61  ;;  %534 = vst [vmem:[%s11559_s11 + $0x1f0] sm:$0xff] %v533_v62  ;;  %v541_v2 = vld [vmem:[%s11551_s10 + $0x410] sm:$0xff]  ;;  %v543_v3 = vld [vmem:[%s11551_s10 + $0x418] sm:$0xff] }
  0x32   : > { %536 = vst [vmem:[%s11559_s11 + $0x1f8] sm:$0xff] %v535_v63  ;;  %538 = vst [vmem:[%s11559_s11 + $0x200] sm:$0xff] %v537_v0  ;;  %v545_v4 = vld [vmem:[%s11551_s10 + $0x420] sm:$0xff]  ;;  %v547_v5 = vld [vmem:[%s11551_s10 + $0x428] sm:$0xff] }
  0x33   : > { %540 = vst [vmem:[%s11559_s11 + $0x208] sm:$0xff] %v539_v1  ;;  %542 = vst [vmem:[%s11559_s11 + $0x210] sm:$0xff] %v541_v2  ;;  %v549_v6 = vld [vmem:[%s11551_s10 + $0x430] sm:$0xff]  ;;  %v551_v7 = vld [vmem:[%s11551_s10 + $0x438] sm:$0xff] }
  0x34   : > { %544 = vst [vmem:[%s11559_s11 + $0x218] sm:$0xff] %v543_v3  ;;  %546 = vst [vmem:[%s11559_s11 + $0x220] sm:$0xff] %v545_v4  ;;  %v553_v8 = vld [vmem:[%s11551_s10 + $0x440] sm:$0xff]  ;;  %v555_v9 = vld [vmem:[%s11551_s10 + $0x448] sm:$0xff] }
  0x35   : > { %548 = vst [vmem:[%s11559_s11 + $0x228] sm:$0xff] %v547_v5  ;;  %550 = vst [vmem:[%s11559_s11 + $0x230] sm:$0xff] %v549_v6  ;;  %v557_v10 = vld [vmem:[%s11551_s10 + $0x450] sm:$0xff]  ;;  %v559_v11 = vld [vmem:[%s11551_s10 + $0x458] sm:$0xff] }
  0x36   : > { %552 = vst [vmem:[%s11559_s11 + $0x238] sm:$0xff] %v551_v7  ;;  %554 = vst [vmem:[%s11559_s11 + $0x240] sm:$0xff] %v553_v8  ;;  %v561_v12 = vld [vmem:[%s11551_s10 + $0x460] sm:$0xff]  ;;  %v563_v13 = vld [vmem:[%s11551_s10 + $0x468] sm:$0xff] }
  0x37   : > { %556 = vst [vmem:[%s11559_s11 + $0x248] sm:$0xff] %v555_v9  ;;  %558 = vst [vmem:[%s11559_s11 + $0x250] sm:$0xff] %v557_v10  ;;  %v565_v14 = vld [vmem:[%s11551_s10 + $0x470] sm:$0xff]  ;;  %v567_v15 = vld [vmem:[%s11551_s10 + $0x478] sm:$0xff] }
  0x38   : > { %560 = vst [vmem:[%s11559_s11 + $0x258] sm:$0xff] %v559_v11  ;;  %562 = vst [vmem:[%s11559_s11 + $0x260] sm:$0xff] %v561_v12 }
  0x39   : > { %564 = vst [vmem:[%s11559_s11 + $0x268] sm:$0xff] %v563_v13  ;;  %566 = vst [vmem:[%s11559_s11 + $0x270] sm:$0xff] %v565_v14 }
  0x3a   : > { %568 = vst [vmem:[%s11559_s11 + $0x278] sm:$0xff] %v567_v15 }
  0x3b PF: > { %p9456_p5 = scmp.ge.s32.totalorder %s11464_s23, 1  ;;  %p573_p6 = scmp.lt.s32.totalorder %s11464_s23, 3 }
  0x3d   : > { %p574_p7 = pnand %p9456_p5, %p573_p6 }
  0x3f   : > { %577 = sbr.rel (%p574_p7) target bundleno = 4377 (0x1119), region = 78 }
  0x46   : > { %v11173_v16 = vld [vmem:[%s16102_s3] sm:$0xff]   ;;  %v11174_v17 = vld [vmem:[%s16102_s3 + $0x8] sm:$0xff]   ;;  %s9457_s16 = sshll.u32 %s11531_s24, 4  ;;  %v11175_v18 = vld [vmem:[%s16102_s3 + $0x10] ss:$0 sps:$4 sm:$0xff]   ;;  %vm732_vm0 = vcmask 1043456  }
  0x47   : > { %10144 = vmatprep.subr.bf16.mxu0 %v11173_v16  ;;  %p614_p8 = scmp.lt.s32.totalorder %s9457_s16, 31  ;;  %vm707_vm1 = vcmask 326656   ;;  %v734_v19 = vsel %vm732_vm0, %v11175_v18, 0  ;;  %s580_s27 = sand.u32 1, %s11456_s21   ;;  %v11744_v28 = vld [vmem:[%s16104_s5] ss:$0 sm:$0xff] }
  0x48   : > { %10145 = vmatpush3.bf16.msra.mxu0 %v11173_v16  ;;  %s11104_s29 = smul.u32 640, %s580_s27  ;;  %vm881_vm2 = vcmask 261120   ;;  %vm1343_vm3 = vcmask 1044480   ;;  %vm1418_vm4 = vsmask.f32 5376  ;;  %vm1641_vm5 = vcmask 1045504  }
  0x49   : > { %10146 = vmatprep.subr.bf16.mxu0 %v11174_v17  ;;  %s16728_s16 = smov (!%p614_p8, %s9457_s16), 31  ;;  %vm2147_vm6 = vcmask 1046528   ;;  %vm2222_vm7 = vsmask.f32 4352  ;;  %vm2665_vm8 = vcmask 1040384   ;;  %vm3010_vm10 = vcmask 1041408  }
  0x4a   : > { %s9458_s19 = sshll.u32 %s16728_s16, 2  ;;  %s11752_s8 = scalar_lea.vmem [#allocation2], %s11104_s29  ;;  %vm2740_vm9 = vsmask.f32 7424  ;;  %vm3313_vm11 = vcmask 1042432   ;;  %vm11479_vm13 = vmmov 0  }
  0x4b   : > { %s617_s26 = scalar_lea.vmem %s16100_s1, %s9458_s19  ;;  %v851_v34 = vld [vmem:[%s11752_s8 + $0x10] sm:$0xff]  ;;  %v852_v40 = vld [vmem:[%s11752_s8 + $0x18] sm:$0xff]  ;;  %v849_v41 = vld [vmem:[%s11752_s8] sm:$0xff]  ;;  %vm3388_vm12 = vsmask.f32 6400  ;;  %p620_p9 = scmp.lt.s32.totalorder %s11531_s24, 1 }
  0x4c   : > { %10147 = vmatpush3.bf16.msra.mxu0 %v11174_v17  ;;  %v11176_v20 = vld [vmem:[%s617_s26] sm:$0xff]   ;;  %v11177_v21 = vld [vmem:[%s617_s26 + $0x8] sm:$0xff]   ;;  %v11178_v22 = vld [vmem:[%s617_s26 + $0x10] sm:$0xff]  }
  0x4d   : > { %11102 = vmatprep.subr.msk.bf16.mxu0 %vm732_vm0, %v11175_v18  ;;  %10150 = vmatprep.mubr.msk.bf16.mxu0 %vm707_vm1, %v11176_v20  ;;  %v11179_v23 = vld [vmem:[%s617_s26 + $0x18] sm:$0xff]   ;;  %v11180_v24 = vld [vmem:[%s617_s26 + $0x20] sm:$0xff]   ;;  %v11181_v25 = vld [vmem:[%s617_s26 + $0x28] sm:$0xff]   ;;  %s16730_s24 = smov (!%p620_p9, %s11531_s24), 1 }
  0x4e   : > { %v11182_v26 = vld [vmem:[%s617_s26 + $0x30] sm:$0xff]   ;;  %v11183_v27 = vld [vmem:[%s617_s26 + $0x38] sm:$0xff]   ;;  %v850_v45 = vld [vmem:[%s11752_s8 + $0x8] sm:$0xff]  ;;  %s9459_s26 = sshll.u32 %s16730_s24, 3 }
  0x4f   : > { %v855_v56 = vld [vmem:[%s11752_s8 + $0x30] sm:$0xff]  ;;  %v856_v63 = vld [vmem:[%s11752_s8 + $0x38] sm:$0xff]  ;;  %v853_v0 = vld [vmem:[%s11752_s8 + $0x20] sm:$0xff]  ;;  %s623_s29 = scalar_lea.vmem %s16105_s6, %s9459_s26 }
  0x50   : > { %10149 = vmatpush3.bf16.msra.mxu0 %v734_v19  ;;  %v854_v5 = vld [vmem:[%s11752_s8 + $0x28] sm:$0xff]  ;;  %v859_v16 = vld [vmem:[%s11752_s8 + $0x50] sm:$0xff] }
  0x53   : > { %10151 = vmatmul.mubr.msk.bf16.vlgmr.msra.gmra.mrb[0].mxu0 %vm707_vm1, %v11177_v21 }
  0x54   : > { %10154 = vmatprep.mubr.msk.bf16.mxu0 %vm707_vm1, %v11178_v22 }
  0x5b   : > { %10155 = vmatmul.mubr.msk.bf16.gmra.mrb[4].mxu0 %vm707_vm1, %v11179_v23  ;;  %v860_v23 = vld [vmem:[%s11752_s8 + $0x58] sm:$0xff] }
  0x5c   : > { %10158 = vmatprep.mubr.msk.bf16.mxu0 %vm707_vm1, %v11180_v24  ;;  %v857_v24 = vld [vmem:[%s11752_s8 + $0x40] sm:$0xff] }
  0x63   : > { %10159 = vmatmul.mubr.msk.bf16.gmra.mrb[8].mxu0 %vm707_vm1, %v11181_v25 }
  0x64   : > { %10162 = vmatprep.mubr.msk.bf16.mxu0 %vm707_vm1, %v11182_v26 }
  0x6b   : > { %10163 = vmatmul.mubr.msk.bf16.gmra.mrb[12].mxu0 %vm707_vm1, %v11183_v27 }
 0x126   : > { %v10152_v29 = vpop.f32.mrb[0].mxu0 }
 0x127   : > { %v11747_v30 = vadd.f32 %v10152_v29, %v11744_v28  ;;  %v770_v31 = vpop.f32.mrb[1].mxu0 }
 0x128   : > { %v11750_v32 = vadd.f32 %v11744_v28, %v770_v31  ;;  %v10153_v33 = vpop.f32.mrb[2].mxu0  ;;  %v858_v31 = vld [vmem:[%s11752_s8 + $0x48] sm:$0xff] }
 0x129   : > { %v16121_v35 = vmax.f32 %v11747_v30, 0.0  ;;  %v11757_v36 = vadd.f32 %v10153_v33, %v11744_v28  ;;  %v773_v37 = vpop.f32.mrb[3].mxu0 }
 0x12a   : > { %16331 = vst [vmem:[#allocation3_spill] sm:$0xff] %v11750_v32  ;;  %v16120_v38 = vmax.f32 %v11750_v32, 0.0  ;;  %v11761_v39 = vadd.f32 %v11744_v28, %v773_v37 }
 0x12b   : > { %16332 = vst [vmem:[#allocation4_spill] sm:$0xff] %v11757_v36  ;;  %v16118_v42 = vmax.f32 %v11757_v36, 0.0  ;;  %v11768_v43 = vadd.f32 %v851_v34, %v16121_v35 }
 0x12c   : > { %16333 = vst [vmem:[#allocation5_spill] sm:$0xff] %v11761_v39  ;;  %v16119_v44 = vmax.f32 %v11761_v39, 0.0  ;;  %v11780_v48 = vadd.f32 %v849_v41, %v16120_v38 }
 0x12d   : > { %v888_v46 = vsel %vm881_vm2, %v11768_v43, 0.0  ;;  %v11776_v47 = vadd.f32 %v852_v40, %v16118_v42 }
 0x12e   : > { %v10156_v49 = vpop.f32.mrb[4].mxu0  ;;  %889 = vadd.xlane.f32.xlu1 %v888_v46  ;;  %v11789_v53 = vadd.f32 %v850_v45, %v16119_v44  ;;  %v882_v60 = vsel %vm881_vm2, %v11780_v48, 0.0 }
 0x12f   : > { %v11783_v50 = vadd.f32 %v10156_v49, %v11744_v28  ;;  %v786_v51 = vpop.f32.mrb[5].mxu0  ;;  %v891_v52 = vsel %vm881_vm2, %v11776_v47, 0.0 }
 0x130   : > { %v11792_v54 = vadd.f32 %v11744_v28, %v786_v51  ;;  %v10157_v55 = vpop.f32.mrb[6].mxu0  ;;  %892 = vadd.xlane.f32.xlu0 %v891_v52  ;;  %v885_v2 = vsel %vm881_vm2, %v11789_v53, 0.0 }
 0x131   : > { %16334 = vst [vmem:[#allocation6_spill] sm:$0xff] %v11783_v50  ;;  %v16116_v57 = vmax.f32 %v11783_v50, 0.0  ;;  %v11797_v58 = vadd.f32 %v10157_v55, %v11744_v28  ;;  %v789_v59 = vpop.f32.mrb[7].mxu0  ;;  %v863_v55 = vld [vmem:[%s11752_s8 + $0x70] sm:$0xff] }
 0x132   : > { %16335 = vst [vmem:[#allocation7_spill] sm:$0xff] %v11792_v54  ;;  %v16117_v61 = vmax.f32 %v11792_v54, 0.0  ;;  %v11803_v62 = vadd.f32 %v11744_v28, %v789_v59  ;;  %883 = vadd.xlane.f32.xlu1 %v882_v60 }
 0x133   : > { %16336 = vst [vmem:[#allocation8_spill] sm:$0xff] %v11797_v58  ;;  %v16115_v1 = vmax.f32 %v11797_v58, 0.0  ;;  %v11812_v3 = vadd.f32 %v855_v56, %v16116_v57 }
 0x134   : > { %16337 = vst [vmem:[#allocation9_spill] sm:$0xff] %v11803_v62  ;;  %v16114_v4 = vmax.f32 %v11803_v62, 0.0  ;;  %886 = vadd.xlane.f32.xlu0 %v885_v2  ;;  %v11824_v8 = vadd.f32 %v853_v0, %v16117_v61  ;;  %v861_v0 = vld [vmem:[%s11752_s8 + $0x60] sm:$0xff] }
 0x135   : > { %v900_v6 = vsel %vm881_vm2, %v11812_v3, 0.0  ;;  %v11820_v7 = vadd.f32 %v856_v63, %v16115_v1  ;;  %v16124_v1 = vmov 5  }
 0x136   : > { %v10160_v9 = vpop.f32.mrb[8].mxu0  ;;  %901 = vadd.xlane.f32.xlu1 %v900_v6  ;;  %v11833_v13 = vadd.f32 %v854_v5, %v16114_v4  ;;  %v894_v20 = vsel %vm881_vm2, %v11824_v8, 0.0 }
 0x137   : > { %v11827_v10 = vadd.f32 %v10160_v9, %v11744_v28  ;;  %v802_v11 = vpop.f32.mrb[9].mxu0  ;;  %v903_v12 = vsel %vm881_vm2, %v11820_v7, 0.0 }
 0x138   : > { %v11836_v14 = vadd.f32 %v11744_v28, %v802_v11  ;;  %v10161_v15 = vpop.f32.mrb[10].mxu0  ;;  %904 = vadd.xlane.f32.xlu0 %v903_v12  ;;  %v897_v26 = vsel %vm881_vm2, %v11833_v13, 0.0  ;;  %v862_v12 = vld [vmem:[%s11752_s8 + $0x68] sm:$0xff] }
 0x139   : > { %16338 = vst [vmem:[#allocation10_spill] sm:$0xff] %v11827_v10  ;;  %v16113_v17 = vmax.f32 %v11827_v10, 0.0  ;;  %v11841_v18 = vadd.f32 %v10161_v15, %v11744_v28  ;;  %v805_v19 = vpop.f32.mrb[11].mxu0 }
 0x13a   : > { %16339 = vst [vmem:[#allocation11_spill] sm:$0xff] %v11836_v14  ;;  %v16112_v21 = vmax.f32 %v11836_v14, 0.0  ;;  %v11847_v22 = vadd.f32 %v11744_v28, %v805_v19  ;;  %895 = vadd.xlane.f32.xlu1 %v894_v20 }
 0x13b   : > { %16340 = vst [vmem:[#allocation12_spill] sm:$0xff] %v11841_v18  ;;  %v16111_v25 = vmax.f32 %v11841_v18, 0.0  ;;  %v11856_v27 = vadd.f32 %v859_v16, %v16113_v17 }
 0x13c   : > { %16341 = vst [vmem:[#allocation13_spill] sm:$0xff] %v11847_v22  ;;  %v16110_v29 = vmax.f32 %v11847_v22, 0.0  ;;  %898 = vadd.xlane.f32.xlu0 %v897_v26  ;;  %v11868_v37 = vadd.f32 %v857_v24, %v16112_v21 }
 0x13d   : > { %v912_v33 = vsel %vm881_vm2, %v11856_v27, 0.0  ;;  %v11864_v34 = vadd.f32 %v860_v23, %v16111_v25 }
 0x13e   : > { %v10164_v40 = vpop.f32.mrb[12].mxu0  ;;  %913 = vadd.xlane.f32.xlu1 %v912_v33  ;;  %v11877_v49 = vadd.f32 %v858_v31, %v16110_v29  ;;  %v906_v63 = vsel %vm881_vm2, %v11868_v37, 0.0  ;;  %v16122_v33 = vmov 3   ;;  %v12139_v29 = vld [vmem:[%s16099_s0 + $0x50] sm:$0xff] }
 0x13f   : > { %v11871_v41 = vadd.f32 %v10164_v40, %v11744_v28  ;;  %v818_v45 = vpop.f32.mrb[13].mxu0  ;;  %v915_v46 = vsel %vm881_vm2, %v11864_v34, 0.0  ;;  %11144 = vset.pattern.permute.xlu1 %v16122_v33  ;;  %11143 = vset.pattern.permute.xlu0 %v16122_v33 }
 0x140   : > { %v11880_v51 = vadd.f32 %v11744_v28, %v818_v45  ;;  %v10165_v52 = vpop.f32.mrb[14].mxu0  ;;  %916 = vadd.xlane.f32.xlu0 %v915_v46  ;;  %v909_v9 = vsel %vm881_vm2, %v11877_v49, 0.0 }
 0x141   : > { %16342 = vst [vmem:[#allocation14_spill] sm:$0xff] %v11871_v41  ;;  %v16108_v56 = vmax.f32 %v11871_v41, 0.0  ;;  %v11885_v59 = vadd.f32 %v10165_v52, %v11744_v28  ;;  %v821_v60 = vpop.f32.mrb[15].mxu0 }
 0x142   : > { %16343 = vst [vmem:[#allocation15_spill] sm:$0xff] %v11880_v51  ;;  %v16109_v2 = vmax.f32 %v11880_v51, 0.0  ;;  %v11892_v5 = vadd.f32 %v11744_v28, %v821_v60  ;;  %907 = vadd.xlane.f32.xlu1 %v906_v63  ;;  %v864_v28 = vld [vmem:[%s11752_s8 + $0x78] sm:$0xff] }
 0x143   : > { %16344 = vst [vmem:[#allocation16_spill] sm:$0xff] %v11885_v59  ;;  %v16106_v6 = vmax.f32 %v11885_v59, 0.0  ;;  %v11899_v11 = vadd.f32 %v863_v55, %v16108_v56 }
 0x144   : > { %16345 = vst [vmem:[#allocation17_spill] sm:$0xff] %v11892_v5  ;;  %v16107_v15 = vmax.f32 %v11892_v5, 0.0  ;;  %910 = vadd.xlane.f32.xlu0 %v909_v9  ;;  %v11905_v16 = vadd.f32 %v861_v0, %v16109_v2 }
 0x145   : > { %v924_v19 = vsel %vm881_vm2, %v11899_v11, 0.0  ;;  %v11918_v24 = vadd.f32 %v864_v28, %v16106_v6  ;;  %v12121_v6 = vld [vmem:[%s16099_s0 + $0x40] sm:$0xff] }
 0x146   : > { %925 = vadd.xlane.f32.xlu1 %v924_v19  ;;  %v918_v20 = vsel %vm881_vm2, %v11905_v16, 0.0  ;;  %v11914_v23 = vadd.f32 %v862_v12, %v16107_v15  ;;  %v12126_v15 = vld [vmem:[%s16099_s0 + $0x48] sm:$0xff] }
 0x147   : > { %v927_v31 = vsel %vm881_vm2, %v11918_v24, 0.0 }
 0x148   : > { %919 = vadd.xlane.f32.xlu0 %v918_v20  ;;  %v921_v26 = vsel %vm881_vm2, %v11914_v23, 0.0 }
 0x14a   : > { %922 = vadd.xlane.f32.xlu1 %v921_v26 }
 0x14c   : > { %928 = vadd.xlane.f32.xlu0 %v927_v31 }
 0x1bb   : > { %v890_v40 = vpop.xlane.xlu1 %889 }
 0x1bc   : > { %v933_v45 = vmul.f32 0.03125, %v890_v40 }
 0x1bd   : > { %v893_v46 = vpop.xlane.xlu0 %892 }
 0x1be   : > { %v11927_v52 = vsub.f32 %v11768_v43, %v933_v45  ;;  %v934_v55 = vmul.f32 0.03125, %v893_v46 }
 0x1bf   : > { %v884_v60 = vpop.xlane.xlu1 %883 }
 0x1c0   : > { %v11930_v63 = vsub.f32 %v11776_v47, %v934_v55  ;;  %v931_v0 = vmul.f32 0.03125, %v884_v60  ;;  %v965_v9 = vmul.f32 %v11927_v52, %v11927_v52 }
 0x1c1   : > { %v887_v12 = vpop.xlane.xlu0 %886 }
 0x1c2   : > { %v11935_v28 = vsub.f32 %v11780_v48, %v931_v0  ;;  %v932_v19 = vmul.f32 0.03125, %v887_v12  ;;  %v985_v20 = vsel %vm881_vm2, %v965_v9, 0.0  ;;  %v966_v43 = vmul.f32 %v11930_v63, %v11930_v63 }
 0x1c3   : > { %986 = vadd.xlane.f32.xlu1 %v985_v20  ;;  %v902_v26 = vpop.xlane.xlu1 %901 }
 0x1c4   : > { %v11941_v31 = vsub.f32 %v11789_v53, %v932_v19  ;;  %v937_v47 = vmul.f32 0.03125, %v902_v26  ;;  %v988_v40 = vsel %vm881_vm2, %v966_v43, 0.0  ;;  %v963_v45 = vmul.f32 %v11935_v28, %v11935_v28 }
 0x1c5   : > { %989 = vadd.xlane.f32.xlu0 %v988_v40  ;;  %v905_v48 = vpop.xlane.xlu0 %904 }
 0x1c6   : > { %v11947_v46 = vsub.f32 %v11812_v3, %v937_v47  ;;  %v938_v55 = vmul.f32 0.03125, %v905_v48  ;;  %v979_v60 = vsel %vm881_vm2, %v963_v45, 0.0  ;;  %v964_v0 = vmul.f32 %v11941_v31, %v11941_v31 }
 0x1c7   : > { %980 = vadd.xlane.f32.xlu1 %v979_v60  ;;  %v896_v53 = vpop.xlane.xlu1 %895 }
 0x1c8   : > { %v11953_v9 = vsub.f32 %v11820_v7, %v938_v55  ;;  %v935_v12 = vmul.f32 0.03125, %v896_v53  ;;  %v982_v19 = vsel %vm881_vm2, %v964_v0, 0.0  ;;  %v969_v20 = vmul.f32 %v11947_v46, %v11947_v46 }
 0x1c9   : > { %983 = vadd.xlane.f32.xlu0 %v982_v19  ;;  %v899_v3 = vpop.xlane.xlu0 %898 }
 0x1ca   : > { %v11959_v43 = vsub.f32 %v11824_v8, %v935_v12  ;;  %v936_v26 = vmul.f32 0.03125, %v899_v3  ;;  %v997_v47 = vsel %vm881_vm2, %v969_v20, 0.0  ;;  %v970_v40 = vmul.f32 %v11953_v9, %v11953_v9 }
 0x1cb   : > { %998 = vadd.xlane.f32.xlu1 %v997_v47  ;;  %v914_v7 = vpop.xlane.xlu1 %913 }
 0x1cc   : > { %v11965_v45 = vsub.f32 %v11833_v13, %v936_v26  ;;  %v1000_v48 = vsel %vm881_vm2, %v970_v40, 0.0  ;;  %v967_v55 = vmul.f32 %v11959_v43, %v11959_v43 }
 0x1cd   : > { %1001 = vadd.xlane.f32.xlu0 %v1000_v48  ;;  %v917_v60 = vpop.xlane.xlu0 %916 }
 0x1ce   : > { %v942_v8 = vmul.f32 0.03125, %v917_v60  ;;  %v991_v0 = vsel %vm881_vm2, %v967_v55, 0.0  ;;  %v968_v53 = vmul.f32 %v11965_v45, %v11965_v45 }
 0x1cf   : > { %992 = vadd.xlane.f32.xlu1 %v991_v0  ;;  %v908_v12 = vpop.xlane.xlu1 %907 }
 0x1d0   : > { %v11974_v19 = vsub.f32 %v11864_v34, %v942_v8  ;;  %v939_v13 = vmul.f32 0.03125, %v908_v12  ;;  %v994_v20 = vsel %vm881_vm2, %v968_v53, 0.0 }
 0x1d1   : > { %995 = vadd.xlane.f32.xlu0 %v994_v20  ;;  %v911_v3 = vpop.xlane.xlu0 %910 }
 0x1d2   : > { %v11978_v26 = vsub.f32 %v11868_v37, %v939_v13  ;;  %v974_v47 = vmul.f32 %v11974_v19, %v11974_v19 }
 0x1d3   : > { %v926_v40 = vpop.xlane.xlu1 %925 }
 0x1d4   : > { %v945_v48 = vmul.f32 0.03125, %v926_v40  ;;  %v1012_v55 = vsel %vm881_vm2, %v974_v47, 0.0  ;;  %v971_v60 = vmul.f32 %v11978_v26, %v11978_v26 }
 0x1d5   : > { %1013 = vadd.xlane.f32.xlu0 %v1012_v55  ;;  %v920_v34 = vpop.xlane.xlu0 %919 }
 0x1d6   : > { %v11986_v8 = vsub.f32 %v11899_v11, %v945_v48  ;;  %v943_v0 = vmul.f32 0.03125, %v920_v34  ;;  %v1003_v53 = vsel %vm881_vm2, %v971_v60, 0.0 }
 0x1d7   : > { %1004 = vadd.xlane.f32.xlu1 %v1003_v53  ;;  %v923_v37 = vpop.xlane.xlu1 %922 }
 0x1d8   : > { %v11990_v12 = vsub.f32 %v11905_v16, %v943_v0  ;;  %v944_v13 = vmul.f32 0.03125, %v923_v37  ;;  %v977_v20 = vmul.f32 %v11986_v8, %v11986_v8 }
 0x1d9   : > { %v929_v47 = vpop.xlane.xlu0 %928 }
 0x1da   : > { %v946_v40 = vmul.f32 0.03125, %v929_v47  ;;  %v1021_v55 = vsel %vm881_vm2, %v977_v20, 0.0  ;;  %v975_v11 = vmul.f32 %v11990_v12, %v11990_v12  ;;  %v11998_v48 = vsub.f32 %v11914_v23, %v944_v13  ;;  %v12013_v23 = vld [vmem:[%s16099_s0 + $0x60] sm:$0xff]  ;;  %v12025_v13 = vld [vmem:[%s16099_s0 + $0x70] sm:$0xff]  ;;  %v12031_v20 = vld [vmem:[%s16099_s0 + $0x58] sm:$0xff] }
 0x1db   : > { %1022 = vadd.xlane.f32.xlu1 %v1021_v55  ;;  %v12036_v47 = vld [vmem:[%s16099_s0 + $0x78] sm:$0xff]  ;;  %v11184_v55 = vld [vmem:[%s16102_s3 + $0x24] sm:$0xff]  }
 0x1dc   : > { %v12001_v60 = vsub.f32 %v11918_v24, %v946_v40  ;;  %v1015_v16 = vsel %vm881_vm2, %v975_v11, 0.0  ;;  %v976_v53 = vmul.f32 %v11998_v48, %v11998_v48  ;;  %v12019_v24 = vld [vmem:[%s16099_s0 + $0x68] sm:$0xff]  ;;  %v11467_v40 = vmov 2   ;;  %10746 = vmatprep.subr.bf16.mxu1 %v11184_v55  ;;  %10166 = vmatprep.subr.bf16.mxu0 %v11184_v55 }
 0x1dd   : > { %v941_v11 = vmul.f32 0.03125, %v914_v7  ;;  %10748 = vmatpush3.bf16.msra.mxu1 %v11184_v55  ;;  %10167 = vmatpush3.bf16.msra.mxu0 %v11184_v55 }
 0x1de   : > { %v978_v34 = vmul.f32 %v12001_v60, %v12001_v60  ;;  %v1018_v37 = vsel %vm881_vm2, %v976_v53, 0.0 }
 0x1df   : > { %1016 = vadd.xlane.f32.xlu1 %v1015_v16  ;;  %v11185_v16 = vld [vmem:[%s16102_s3 + $0x2c] sm:$0xff]  }
 0x1e0   : > { %v1024_v0 = vsel %vm881_vm2, %v978_v34, 0.0  ;;  %10747 = vmatprep.subr.bf16.mxu1 %v11185_v16  ;;  %10168 = vmatprep.subr.bf16.mxu0 %v11185_v16  ;;  %v12047_v34 = vsub.f32 %v11856_v27, %v941_v11  ;;  %v12061_v27 = vld [vmem:[%s16099_s0 + $0x8] sm:$0xff]  ;;  %v12080_v11 = vld [vmem:[%s16099_s0 + $0x18] sm:$0xff] }
 0x1e1   : > { %1025 = vadd.xlane.f32.xlu0 %v1024_v0  ;;  %10749 = vmatpush3.bf16.msra.mxu1 %v11185_v16  ;;  %v940_v0 = vmul.f32 0.03125, %v911_v3  ;;  %v12066_v3 = vld [vmem:[%s16099_s0] sm:$0xff] }
 0x1e2   : > { %10169 = vmatpush3.bf16.msra.mxu0 %v11185_v16  ;;  %v973_v53 = vmul.f32 %v12047_v34, %v12047_v34  ;;  %v12087_v16 = vld [vmem:[%s16099_s0 + $0x20] sm:$0xff] }
 0x1e4   : > { %v1009_v7 = vsel %vm881_vm2, %v973_v53, 0.0  ;;  %v12094_v53 = vld [vmem:[%s16099_s0 + $0x28] sm:$0xff] }
 0x1e5   : > { %1019 = vadd.xlane.f32.xlu0 %v1018_v37  ;;  %v12052_v37 = vsub.f32 %v11877_v49, %v940_v0  ;;  %v12073_v49 = vld [vmem:[%s16099_s0 + $0x10] sm:$0xff]  ;;  %v11468_v0 = vmov 4  }
 0x1f0   : > { %1332 = vperm.xlu1 %11144, %v12013_v23  }
 0x1f4   : > { %1335 = vperm.xlu1 %11144, %v12019_v24  }
 0x1f8   : > { %1338 = vperm.xlu1 %11144, %v12025_v13  }
 0x1fb   : > { %1329 = vperm.xlu0 %11143, %v12031_v20  }
 0x1fc   : > { %1341 = vperm.xlu1 %11144, %v12036_v47  }
 0x1ff   : > { %11146 = vset.pattern.permute.xlu0 %v11467_v40 }
 0x200   : > { %11145 = vset.pattern.permute.xlu1 %v11467_v40  ;;  %v972_v40 = vmul.f32 %v12052_v37, %v12052_v37 }
 0x202   : > { %v1006_v55 = vsel %vm881_vm2, %v972_v40, 0.0  ;;  %v12106_v40 = vld [vmem:[%s16102_s3 + $0x14] sm:$0xff]  }
 0x203   : > { %10186 = vmatprep.subr.bf16.mxu1 %v12106_v40 }
 0x21a   : > { %1010 = vadd.xlane.f32.xlu0 %v1009_v7  ;;  %v12101_v7 = vld [vmem:[%s16099_s0 + $0x30] sm:$0xff] }
 0x220   : > { %1007 = vadd.xlane.f32.xlu1 %v1006_v55  ;;  %v12113_v55 = vld [vmem:[%s16099_s0 + $0x38] sm:$0xff] }
 0x230   : > { %1159 = vperm.xlu0 %11146, %v12061_v27  }
 0x231   : > { %1155 = vperm.xlu1 %11145, %v12066_v3  }
 0x234   : > { %1203 = vperm.xlu0 %11146, %v12013_v23  }
 0x235   : > { %1163 = vperm.xlu1 %11145, %v12073_v49  }
 0x238   : > { %1211 = vperm.xlu0 %11146, %v12025_v13  }
 0x239   : > { %1167 = vperm.xlu1 %11145, %v12080_v11  }
 0x23c   : > { %11147 = vset.pattern.permute.xlu0 %v11468_v0 }
 0x23d   : > { %1171 = vperm.xlu1 %11145, %v12087_v16   ;;  %1797 = vperm.xlu0 %11147, %v12066_v3  }
 0x241   : > { %1175 = vperm.xlu1 %11145, %v12094_v53   ;;  %1806 = vperm.xlu0 %11147, %v12080_v11  }
 0x245   : > { %1179 = vperm.xlu1 %11145, %v12101_v7   ;;  %1812 = vperm.xlu0 %11147, %v12094_v53  }
 0x249   : > { %1183 = vperm.xlu1 %11145, %v12113_v55   ;;  %1818 = vperm.xlu0 %11147, %v12113_v55  }
 0x24d   : > { %1187 = vperm.xlu1 %11145, %v12121_v6   ;;  %1824 = vperm.xlu0 %11147, %v12126_v15  }
 0x250   : > { %v12130_v56 = vpop.xlane.xlu1 %986 }
 0x251   : > { %1191 = vperm.xlu1 %11145, %v12126_v15   ;;  %1830 = vperm.xlu0 %11147, %v12031_v20  }
 0x252   : > { %v12134_v2 = vpop.xlane.xlu0 %989 }
 0x254   : > { %v12141_v25 = vpop.xlane.xlu1 %980 }
 0x255   : > { %1195 = vperm.xlu1 %11145, %v12139_v29   ;;  %1836 = vperm.xlu0 %11147, %v12019_v24  }
 0x256   : > { %v12145_v21 = vpop.xlane.xlu0 %983 }
 0x258   : > { %v12149_v17 = vpop.xlane.xlu1 %998 }
 0x259   : > { %1199 = vperm.xlu1 %11145, %v12031_v20   ;;  %1842 = vperm.xlu0 %11147, %v12036_v47  }
 0x25a   : > { %v12151_v4 = vpop.xlane.xlu0 %1001 }
 0x25c   : > { %v12158_v61 = vpop.xlane.xlu1 %992 }
 0x25d   : > { %1207 = vperm.xlu1 %11145, %v12019_v24   ;;  %11150 = vset.pattern.permute.xlu0 %v16124_v1 }
 0x25e   : > { %v12155_v57 = vpop.xlane.xlu0 %995  ;;  %2103 = vperm.xlu0 %11150, %v12061_v27  }
 0x261   : > { %1215 = vperm.xlu1 %11145, %v12036_v47  }
 0x262   : > { %v1014_v42 = vpop.xlane.xlu0 %1013  ;;  %2112 = vperm.xlu0 %11150, %v12087_v16  }
 0x263   : > { %v1038_v44 = vmul.f32 0.03125, %v1014_v42 }
 0x264   : > { %v12162_v38 = vpop.xlane.xlu1 %1004 }
 0x265   : > { %11148 = vset.pattern.permute.xlu1 %v11468_v0  ;;  %v1056_v35 = vadd.f32 1e-05, %v1038_v44 }
 0x266   : > { %1800 = vperm.xlu1 %11148, %v12061_v27   ;;  %2118 = vperm.xlu0 %11150, %v12101_v7  }
 0x267   : > { %11240 = vrsqrt.f32 %v1056_v35 }
 0x268   : > { %v1023_v33 = vpop.xlane.xlu1 %1022 }
 0x269   : > { %v1041_v1 = vmul.f32 0.03125, %v1023_v33 }
 0x26a   : > { %1803 = vperm.xlu1 %11148, %v12073_v49   ;;  %2124 = vperm.xlu0 %11150, %v12121_v6  }
 0x26b   : > { %v1059_v59 = vadd.f32 1e-05, %v1041_v1 }
 0x26c   : > { %v1017_v5 = vpop.xlane.xlu1 %1016 }
 0x26d   : > { %v1039_v41 = vmul.f32 0.03125, %v1017_v5  ;;  %11242 = vrsqrt.f32 %v1059_v59 }
 0x26e   : > { %v1026_v51 = vpop.xlane.xlu0 %1025  ;;  %1809 = vperm.xlu1 %11148, %v12087_v16   ;;  %2130 = vperm.xlu0 %11150, %v12139_v29  }
 0x26f   : > { %v1057_v42 = vadd.f32 1e-05, %v1039_v41  ;;  %v1042_v0 = vmul.f32 0.03125, %v1026_v51 }
 0x270   : > { %v1333_v22 = vpop.permute.xlu1 %1332 }
 0x271   : > { %11244 = vrsqrt.f32 %v1057_v42  ;;  %v1060_v44 = vadd.f32 1e-05, %v1042_v0  ;;  %v11241_v5 = vpop.eup %11240  ;;  %v16132_v42 = vmov 6  }
 0x272   : > { %1815 = vperm.xlu1 %11148, %v12101_v7   ;;  %2136 = vperm.xlu0 %11150, %v12013_v23   ;;  %v1020_v33 = vpop.xlane.xlu0 %1019  ;;  %v1088_v41 = vmul.f32 %v11241_v5, %v11974_v19 }
 0x273   : > { %11246 = vrsqrt.f32 %v1060_v44  ;;  %v1040_v35 = vmul.f32 0.03125, %v1020_v33  ;;  %v12182_v33 = vld [vmem:[%s16104_s5 + $0x2] ss:$0 sm:$0xff] }
 0x274   : > { %v1336_v1 = vpop.permute.xlu1 %1335 }
 0x275   : > { %v1058_v18 = vadd.f32 1e-05, %v1040_v35  ;;  %v1369_v10 = vrot.slane %v1336_v1, 3  ;;  %v12195_v35 = vld [vmem:[%s16104_s5 + $0x7] ss:$0 sm:$0xff] }
 0x276   : > { %1821 = vperm.xlu1 %11148, %v12121_v6   ;;  %2142 = vperm.xlu0 %11150, %v12025_v13  }
 0x277   : > { %11248 = vrsqrt.f32 %v1058_v18  ;;  %v11243_v59 = vpop.eup %11242  ;;  %v1108_v18 = vmul.f32 %v12182_v33, %v1088_v41 }
 0x278   : > { %v1339_v51 = vpop.permute.xlu1 %1338  ;;  %v1091_v14 = vmul.f32 %v11243_v59, %v11986_v8 }
 0x27a   : > { %1827 = vperm.xlu1 %11148, %v12139_v29   ;;  %11151 = vset.pattern.permute.xlu0 %v16132_v42  ;;  %v12177_v0 = vpop.permute.xlu0 %1329  ;;  %v1367_v42 = vrot.slane %v1333_v22, 3  ;;  %v12204_v22 = vadd.f32 %v12195_v35, %v1108_v18  ;;  %v1111_v59 = vmul.f32 %v12182_v33, %v1091_v14 }
 0x27b   : > { %v11245_v44 = vpop.eup %11244  ;;  %2618 = vperm.xlu0 %11151, %v12066_v3  }
 0x27c   : > { %v1089_v19 = vmul.f32 %v11245_v44, %v11990_v12  ;;  %v1342_v50 = vpop.permute.xlu1 %1341  ;;  %v16346_v12 = vrot.slane %v12177_v0, 3  ;;  %v12212_v44 = vsel %vm1343_vm3, %v1367_v42, %v1369_v10 }
 0x27d   : > { %v11247_v5 = vpop.eup %11246  ;;  %16348 = vst [vmem:[#allocation19_spill] sm:$0xff] %v12212_v44 }
 0x27e   : > { %v1109_v62 = vmul.f32 %v12182_v33, %v1089_v19  ;;  %v1092_v58 = vmul.f32 %v11247_v5, %v12001_v60  ;;  %1833 = vperm.xlu1 %11148, %v12013_v23   ;;  %v12200_v41 = vsel %vm1343_vm3, %v16346_v12, %v1367_v42  ;;  %v12214_v19 = vrot.slane %v1342_v50, 3 }
 0x27f   : > { %16347 = vst [vmem:[#allocation18_spill] sm:$0xff] %v12200_v41  ;;  %2627 = vperm.xlu0 %11151, %v12080_v11  }
 0x280   : > { %v12207_v8 = vadd.f32 %v12195_v35, %v1109_v62  ;;  %v1112_v60 = vmul.f32 %v12182_v33, %v1092_v58  ;;  %16349 = vst [vmem:[#allocation20_spill] sm:$0xff] %v12214_v19  ;;  %v1404_v62 = vmul.f32 %v12200_v41, %v12204_v22  ;;  %v1371_v58 = vrot.slane %v1339_v51, 3 }
 0x281   : > { %v11249_v1 = vpop.eup %11248  ;;  %v16351_v51 = vmov 5  }
 0x282   : > { %v12217_v5 = vadd.f32 %v12195_v35, %v1112_v60  ;;  %v1090_v12 = vmul.f32 %v11249_v1, %v11998_v48  ;;  %v1405_v18 = vmul.f32 %v12212_v44, %v12207_v8  ;;  %1839 = vperm.xlu1 %11148, %v12025_v13   ;;  %v12231_v48 = vsel %vm1343_vm3, %v1371_v58, %v12214_v19 }
 0x283   : > { %2633 = vperm.xlu0 %11151, %v12094_v53   ;;  %16350 = vst [vmem:[#allocation21_spill] sm:$0xff] %v12231_v48  ;;  %v12234_v60 = vadd.f32 %v12195_v35, %v1111_v59  ;;  %v12241_v41 = vsel %vm1343_vm3, %v1369_v10, %v1371_v58 }
 0x284   : > { %v1110_v14 = vmul.f32 %v12182_v33, %v1090_v12  ;;  %v1415_v50 = vpack.c.bf16 %v1405_v18, %v1404_v62  ;;  %v1408_v42 = vmul.f32 %v12214_v19, %v12217_v5 }
 0x285   : > { %v1407_v59 = vmul.f32 %v12231_v48, %v12234_v60 }
 0x286   : > { %v12237_v1 = vadd.f32 %v12195_v35, %v1110_v14  ;;  %v1417_v44 = vpack.c.bf16 %v1408_v42, %v1408_v42  ;;  %11149 = vset.pattern.permute.xlu1 %v16351_v51  ;;  %v1473_v12 = vshrl.u32 %v1415_v50, 16  ;;  %v1476_v18 = vshll.u32 %v1415_v50, 16 }
 0x287   : > { %2100 = vperm.xlu1 %11149, %v12066_v3   ;;  %2639 = vperm.xlu0 %11151, %v12113_v55  }
 0x288   : > { %v1406_v62 = vmul.f32 %v12241_v41, %v12237_v1  ;;  %v1491_v14 = vshrl.u32 %v1417_v44, 16  ;;  %v1494_v19 = vshll.u32 %v1417_v44, 16  ;;  %v1475_v10 = vrot.slane %v1473_v12, 2 }
 0x289   : > { %v1478_v58 = vrot.slane %v1476_v18, 3  ;;  %v1028_v18 = vmul.f32 0.03125, %v12145_v21 }
 0x28a   : > { %v1416_v42 = vpack.c.bf16 %v1407_v59, %v1406_v62  ;;  %v1493_v51 = vrot.slane %v1491_v14, 2  ;;  %v1496_v54 = vrot.slane %v1494_v19, 3 }
 0x28b   : > { %2106 = vperm.xlu1 %11149, %v12073_v49   ;;  %2645 = vperm.xlu0 %11151, %v12126_v15   ;;  %v12253_v48 = vor.u32 %v1478_v58, %v1475_v10  ;;  %v1046_v14 = vadd.f32 1e-05, %v1028_v18 }
 0x28c   : > { %v1482_v36 = vshrl.u32 %v1416_v42, 16  ;;  %v1485_v39 = vshll.u32 %v1416_v42, 16  ;;  %v1497_v62 = vor.u32 %v1496_v54, %v1493_v51  ;;  %v16146_v54 = vmov 7  }
 0x28d   : > { %v1030_v42 = vmul.f32 0.03125, %v12134_v2  ;;  %v16352_v51 = vmov 6   ;;  %v1033_v2 = vmul.f32 0.03125, %v12149_v17 }
 0x28e   : > { %v1484_v50 = vrot.slane %v1482_v36, 2  ;;  %v1487_v32 = vrot.slane %v1485_v39, 3  ;;  %v11187_v36 = vld [vmem:[%s16102_s3 + $0x1c] sm:$0xff]   ;;  %v1027_v39 = vmul.f32 0.03125, %v12141_v25 }
 0x28f   : > { %2109 = vperm.xlu1 %11149, %v12080_v11   ;;  %2651 = vperm.xlu0 %11151, %v12031_v20   ;;  %v1048_v21 = vadd.f32 1e-05, %v1030_v42 }
 0x290   : > { %v1488_v44 = vor.u32 %v1487_v32, %v1484_v50  ;;  %v12271_v32 = vld [vmem:[%s16102_s3 + $0x34] sm:$0xff]   ;;  %v1045_v19 = vadd.f32 1e-05, %v1027_v39  ;;  %v1051_v39 = vadd.f32 1e-05, %v1033_v2 }
 0x292   : > { %v1489_v59 = vsel %vm1418_vm4, %v12253_v48, %v1488_v44  ;;  %v1498_v12 = vsel %vm1418_vm4, %v1488_v44, %v1497_v62  ;;  %11250 = vrsqrt.f32 %v1045_v19 }
 0x293   : > { %2115 = vperm.xlu1 %11149, %v12094_v53   ;;  %2657 = vperm.xlu0 %11151, %v12019_v24  }
 0x294   : > { %10182 = vmatprep.mubr.msk.bf16.mxu1 %vm881_vm2, %v1489_v59 }
 0x295   : > { %10183 = vmatmul.mubr.msk.bf16.vlgmr.msra.gmra.mrb[0].mxu1 %vm881_vm2, %v1498_v12 }
 0x296   : > { %10187 = vmatpush3.bf16.msra.mxu1 %v12106_v40  ;;  %v1029_v40 = vmul.f32 0.03125, %v12130_v56  ;;  %v1031_v56 = vmul.f32 0.03125, %v12158_v61  ;;  %v1032_v61 = vmul.f32 0.03125, %v12155_v57 }
 0x297   : > { %2121 = vperm.xlu1 %11149, %v12113_v55   ;;  %2663 = vperm.xlu0 %11151, %v12036_v47  }
 0x298   : > { %10188 = vmatprep.subr.bf16.mxu1 %v11187_v36  ;;  %v1047_v25 = vadd.f32 1e-05, %v1029_v40  ;;  %v1049_v10 = vadd.f32 1e-05, %v1031_v56  ;;  %v1050_v19 = vadd.f32 1e-05, %v1032_v61 }
 0x29a   : > { %10189 = vmatpush3.bf16.msra.mxu1 %v11187_v36  ;;  %11252 = vrsqrt.f32 %v1047_v25 }
 0x29b   : > { %2127 = vperm.xlu1 %11149, %v12126_v15   ;;  %11154 = vset.pattern.permute.xlu0 %v16146_v54  ;;  %11254 = vrsqrt.f32 %v1046_v14 }
 0x29c   : > { %2966 = vperm.xlu0 %11154, %v12061_v27   ;;  %10206 = vmatprep.subr.bf16.mxu1 %v12271_v32  ;;  %v11251_v50 = vpop.eup %11250  ;;  %11256 = vrsqrt.f32 %v1048_v21  ;;  %v1035_v21 = vmul.f32 0.03125, %v12162_v38 }
 0x29d   : > { %11258 = vrsqrt.f32 %v1049_v10  ;;  %v1077_v59 = vmul.f32 %v11251_v50, %v11935_v28  ;;  %v1034_v28 = vmul.f32 0.03125, %v12151_v4 }
 0x29e   : > { %11260 = vrsqrt.f32 %v1051_v39 }
 0x29f   : > { %2133 = vperm.xlu1 %11149, %v12031_v20   ;;  %v1097_v14 = vmul.f32 %v12182_v33, %v1077_v59  ;;  %11262 = vrsqrt.f32 %v1050_v19  ;;  %v16145_v59 = vmov 8  }
 0x2a0   : > { %2975 = vperm.xlu0 %11154, %v12087_v16  }
 0x2a1   : > { %v12310_v50 = vadd.f32 %v12195_v35, %v1097_v14 }
 0x2a3   : > { %2139 = vperm.xlu1 %11149, %v12019_v24  }
 0x2a4   : > { %2981 = vperm.xlu0 %11154, %v12101_v7   ;;  %v11253_v62 = vpop.eup %11252 }
 0x2a5   : > { %v11255_v36 = vpop.eup %11254  ;;  %v1079_v17 = vmul.f32 %v11253_v62, %v11927_v52  ;;  %v1052_v62 = vadd.f32 1e-05, %v1034_v28 }
 0x2a6   : > { %v1078_v57 = vmul.f32 %v11255_v36, %v11941_v31 }
 0x2a7   : > { %2145 = vperm.xlu1 %11149, %v12036_v47   ;;  %v1011_v58 = vpop.xlane.xlu0 %1010  ;;  %v1099_v31 = vmul.f32 %v12182_v33, %v1079_v17  ;;  %11264 = vrsqrt.f32 %v1052_v62 }
 0x2a8   : > { %2987 = vperm.xlu0 %11154, %v12121_v6   ;;  %v1098_v4 = vmul.f32 %v12182_v33, %v1078_v57 }
 0x2a9   : > { %v12327_v14 = vadd.f32 %v12195_v35, %v1099_v31 }
 0x2aa   : > { %v12330_v57 = vadd.f32 %v12195_v35, %v1098_v4 }
 0x2ab   : > { %11152 = vset.pattern.permute.xlu1 %v16352_v51  ;;  %v11257_v51 = vpop.eup %11256 }
 0x2ac   : > { %2621 = vperm.xlu1 %11152, %v12061_v27   ;;  %2993 = vperm.xlu0 %11154, %v12139_v29   ;;  %v11259_v61 = vpop.eup %11258  ;;  %v1080_v39 = vmul.f32 %v11257_v51, %v11930_v63 }
 0x2ad   : > { %v1008_v44 = vpop.xlane.xlu1 %1007 }
 0x2ae   : > { %v1100_v31 = vmul.f32 %v12182_v33, %v1080_v39 }
 0x2af   : > { %v1160_v12 = vpop.permute.xlu0 %1159 }
 0x2b0   : > { %2624 = vperm.xlu1 %11152, %v12073_v49   ;;  %2999 = vperm.xlu0 %11154, %v12013_v23   ;;  %v1218_v18 = vrot.slane %v1160_v12, 4  ;;  %v12352_v39 = vadd.f32 %v12195_v35, %v1100_v31 }
 0x2b1   : > { %v1156_v40 = vpop.permute.xlu1 %1155 }
 0x2b2   : > { %v1217_v25 = vrot.slane %v1156_v40, 4  ;;  %v1053_v40 = vadd.f32 1e-05, %v1035_v21 }
 0x2b3   : > { %v12299_v42 = vpop.permute.xlu0 %1203 }
 0x2b4   : > { %2630 = vperm.xlu1 %11152, %v12087_v16   ;;  %3005 = vperm.xlu0 %11154, %v12025_v13   ;;  %v12306_v10 = vsel %vm732_vm0, %v1217_v25, %v1218_v18  ;;  %v12317_v38 = vmul.f32 0.0, %v1217_v25  ;;  %v1081_v25 = vmul.f32 %v11259_v61, %v11959_v43  ;;  %11266 = vrsqrt.f32 %v1053_v40  ;;  %v11261_v61 = vpop.eup %11260 }
 0x2b5   : > { %v1164_v56 = vpop.permute.xlu1 %1163  ;;  %16353 = vst [vmem:[#allocation22_spill] sm:$0xff] %v12306_v10  ;;  %v1266_v12 = vmul.f32 %v12306_v10, %v12310_v50 }
 0x2b6   : > { %v1220_v52 = vrot.slane %v1164_v56, 4  ;;  %16354 = vst [vmem:[#allocation23_spill] sm:$0xff] %v12317_v38  ;;  %v1037_v56 = vmul.f32 0.03125, %v1011_v58  ;;  %v1101_v62 = vmul.f32 %v12182_v33, %v1081_v25 }
 0x2b7   : > { %v12313_v2 = vpop.permute.xlu0 %1211 }
 0x2b8   : > { %2636 = vperm.xlu1 %11152, %v12101_v7   ;;  %11155 = vset.pattern.permute.xlu0 %v16145_v59  ;;  %v12324_v19 = vsel %vm732_vm0, %v1218_v18, %v1220_v52  ;;  %v1282_v18 = vpack.c.bf16 %v1266_v12, %v12317_v38  ;;  %v1055_v59 = vadd.f32 1e-05, %v1037_v56 }
 0x2b9   : > { %3266 = vperm.xlu0 %11155, %v12066_v3   ;;  %v1168_v36 = vpop.permute.xlu1 %1167  ;;  %16355 = vst [vmem:[#allocation24_spill] sm:$0xff] %v12324_v19  ;;  %v1267_v21 = vmul.f32 %v12324_v19, %v12330_v57 }
 0x2ba   : > { %v1222_v17 = vrot.slane %v1168_v36, 4  ;;  %v11263_v36 = vpop.eup %11262  ;;  %v1642_v38 = vrot.slane %v1282_v18, 2  ;;  %11268 = vrsqrt.f32 %v1055_v59 }
 0x2bb   : > { %v1082_v56 = vmul.f32 %v11263_v36, %v11965_v45 }
 0x2bc   : > { %v12334_v28 = vsel %vm732_vm0, %v1220_v52, %v1222_v17  ;;  %2642 = vperm.xlu1 %11152, %v12121_v6   ;;  %v12337_v63 = vpop.permute.xlu0 %1797  ;;  %v1036_v52 = vmul.f32 0.03125, %v1008_v44 }
 0x2bd   : > { %16356 = vst [vmem:[#allocation25_spill] sm:$0xff] %v12334_v28  ;;  %v1268_v51 = vmul.f32 %v12334_v28, %v12327_v14  ;;  %3275 = vperm.xlu0 %11155, %v12080_v11   ;;  %v1172_v43 = vpop.permute.xlu1 %1171 }
 0x2be   : > { %v1224_v4 = vrot.slane %v1172_v43, 4  ;;  %v1054_v44 = vadd.f32 1e-05, %v1036_v52  ;;  %v1102_v52 = vmul.f32 %v12182_v33, %v1082_v56 }
 0x2bf   : > { %v1283_v58 = vpack.c.bf16 %v1268_v51, %v1267_v21  ;;  %v1083_v21 = vmul.f32 %v11261_v61, %v11947_v46  ;;  %v12359_v51 = vadd.f32 %v12195_v35, %v1101_v62 }
 0x2c0   : > { %2648 = vperm.xlu1 %11152, %v12139_v29   ;;  %v12348_v12 = vpop.permute.xlu0 %1806  ;;  %v12355_v40 = vsel %vm732_vm0, %v1222_v17, %v1224_v4  ;;  %11270 = vrsqrt.f32 %v1054_v44  ;;  %v12389_v56 = vadd.f32 %v12195_v35, %v1102_v52 }
 0x2c1   : > { %3281 = vperm.xlu0 %11155, %v12094_v53   ;;  %v1176_v54 = vpop.permute.xlu1 %1175  ;;  %v1643_v19 = vrot.slane %v1283_v58, 2  ;;  %16357 = vst [vmem:[#allocation26_spill] sm:$0xff] %v12355_v40  ;;  %v1269_v46 = vmul.f32 %v12355_v40, %v12352_v39  ;;  %v1103_v31 = vmul.f32 %v12182_v33, %v1083_v21 }
 0x2c2   : > { %v1226_v25 = vrot.slane %v1176_v54, 4 }
 0x2c3   : > { %v1644_v43 = vsel %vm1641_vm5, %v1642_v38, %v1643_v19  ;;  %v11265_v38 = vpop.eup %11264  ;;  %v12386_v21 = vadd.f32 %v12195_v35, %v1103_v31 }
 0x2c4   : > { %v12364_v18 = vsel %vm732_vm0, %v1224_v4, %v1226_v25  ;;  %v12366_v58 = vpop.permute.xlu0 %1812  ;;  %2654 = vperm.xlu1 %11152, %v12013_v23   ;;  %10190 = vmatprep.mubr.msk.bf16.mxu1 %vm881_vm2, %v1644_v43  ;;  %v11267_v4 = vpop.eup %11266  ;;  %v1084_v36 = vmul.f32 %v11265_v38, %v11953_v9 }
 0x2c5   : > { %16358 = vst [vmem:[#allocation27_spill] sm:$0xff] %v12364_v18  ;;  %v1270_v54 = vmul.f32 %v12364_v18, %v12359_v51  ;;  %3287 = vperm.xlu0 %11155, %v12113_v55   ;;  %v1180_v45 = vpop.permute.xlu1 %1179  ;;  %v11269_v52 = vpop.eup %11268 }
 0x2c6   : > { %v1228_v17 = vrot.slane %v1180_v45, 4  ;;  %v16361_v45 = vmov 7  }
 0x2c7   : > { %v1284_v23 = vpack.c.bf16 %v1270_v54, %v1269_v46  ;;  %v1085_v46 = vmul.f32 %v11267_v4, %v11978_v26  ;;  %v11189_v54 = vld [vmem:[%s16102_s3 + $0x3c] sm:$0xff]  }
 0x2c8   : > { %v12377_v61 = vpop.permute.xlu0 %1818  ;;  %2660 = vperm.xlu1 %11152, %v12025_v13   ;;  %v12383_v43 = vsel %vm732_vm0, %v1226_v25, %v1228_v17 }
 0x2c9   : > { %3293 = vperm.xlu0 %11155, %v12126_v15   ;;  %v1184_v59 = vpop.permute.xlu1 %1183  ;;  %v1645_v62 = vrot.slane %v1284_v23, 2  ;;  %16359 = vst [vmem:[#allocation28_spill] sm:$0xff] %v12383_v43  ;;  %v1271_v38 = vmul.f32 %v12383_v43, %v12389_v56  ;;  %v1105_v23 = vmul.f32 %v12182_v33, %v1085_v46  ;;  %v1087_v43 = vmul.f32 %v11269_v52, %v12047_v34 }
 0x2ca   : > { %v1230_v44 = vrot.slane %v1184_v59, 4  ;;  %v12415_v59 = vld [vmem:[%s16102_s3 + $0x44] sm:$0xff]  }
 0x2cb   : > { %v1646_v13 = vsel %vm1641_vm5, %v1643_v19, %v1645_v62 }
 0x2cc   : > { %v12397_v9 = vsel %vm732_vm0, %v1228_v17, %v1230_v44  ;;  %v12399_v25 = vpop.permute.xlu0 %1824  ;;  %11153 = vset.pattern.permute.xlu1 %v16361_v45  ;;  %10191 = vmatmul.mubr.msk.bf16.vlgmr.msra.gmra.mrb[4].mxu1 %vm881_vm2, %v1646_v13  ;;  %v1104_v17 = vmul.f32 %v12182_v33, %v1084_v36  ;;  %v11271_v13 = vpop.eup %11270 }
 0x2cd   : > { %16360 = vst [vmem:[#allocation29_spill] sm:$0xff] %v12397_v9  ;;  %v1272_v26 = vmul.f32 %v12397_v9, %v12386_v21  ;;  %3299 = vperm.xlu0 %11155, %v12031_v20   ;;  %2963 = vperm.xlu1 %11153, %v12066_v3   ;;  %v1188_v19 = vpop.permute.xlu1 %1187  ;;  %v1086_v40 = vmul.f32 %v11271_v13, %v12052_v37 }
 0x2ce   : > { %v1232_v31 = vrot.slane %v1188_v19, 4  ;;  %10207 = vmatpush3.bf16.msra.mxu1 %v12271_v32  ;;  %v12422_v32 = vadd.f32 %v12195_v35, %v1104_v17 }
 0x2cf   : > { %v1285_v4 = vpack.c.bf16 %v1272_v26, %v1271_v38  ;;  %10208 = vmatprep.subr.bf16.mxu1 %v11189_v54  ;;  %v12428_v26 = vadd.f32 %v12195_v35, %v1105_v23 }
 0x2d0   : > { %v12417_v45 = vpop.permute.xlu0 %1830  ;;  %v12425_v46 = vsel %vm732_vm0, %v1230_v44, %v1232_v31 }
 0x2d1   : > { %3305 = vperm.xlu0 %11155, %v12019_v24   ;;  %2969 = vperm.xlu1 %11153, %v12073_v49   ;;  %v1192_v36 = vpop.permute.xlu1 %1191  ;;  %v1647_v19 = vrot.slane %v1285_v4, 2  ;;  %16362 = vst [vmem:[#allocation30_spill] sm:$0xff] %v12425_v46  ;;  %v1273_v44 = vmul.f32 %v12425_v46, %v12422_v32  ;;  %v1240_v46 = vrot.slane %v12299_v42, 4 }
 0x2d2   : > { %v1234_v38 = vrot.slane %v1192_v36, 4  ;;  %10209 = vmatpush3.bf16.msra.mxu1 %v11189_v54 }
 0x2d3   : > { %v1648_v9 = vsel %vm1641_vm5, %v1645_v62, %v1647_v19  ;;  %10226 = vmatprep.subr.bf16.mxu1 %v12415_v59  ;;  %v1107_v62 = vmul.f32 %v12182_v33, %v1087_v43 }
 0x2d4   : > { %v12435_v4 = vsel %vm732_vm0, %v1232_v31, %v1234_v38  ;;  %v12437_v17 = vpop.permute.xlu0 %1836  ;;  %10194 = vmatprep.mubr.msk.bf16.mxu1 %vm881_vm2, %v1648_v9  ;;  %v1106_v31 = vmul.f32 %v12182_v33, %v1086_v40  ;;  %v16364_v9 = vmov 3  }
 0x2d5   : > { %16363 = vst [vmem:[#allocation31_spill] sm:$0xff] %v12435_v4  ;;  %v1274_v54 = vmul.f32 %v12435_v4, %v12428_v26  ;;  %3311 = vperm.xlu0 %11155, %v12036_v47   ;;  %2972 = vperm.xlu1 %11153, %v12080_v11   ;;  %v1196_v34 = vpop.permute.xlu1 %1195  ;;  %v12458_v43 = vadd.f32 %v12195_v35, %v1107_v62  ;;  %v1244_v62 = vrot.slane %v12313_v2, 4 }
 0x2d6   : > { %v1236_v37 = vrot.slane %v1196_v34, 4  ;;  %v12461_v33 = vadd.f32 %v12195_v35, %v1106_v31 }
 0x2d7   : > { %v1286_v52 = vpack.c.bf16 %v1274_v54, %v1273_v44 }
 0x2d8   : > { %v12448_v23 = vpop.permute.xlu0 %1842  ;;  %v12454_v4 = vsel %vm732_vm0, %v1234_v38, %v1236_v37 }
 0x2d9   : > { %11158 = vset.pattern.permute.xlu0 %v16364_v9  ;;  %2978 = vperm.xlu1 %11153, %v12094_v53   ;;  %v1200_v13 = vpop.permute.xlu1 %1199  ;;  %v1649_v36 = vrot.slane %v1286_v52, 2  ;;  %16365 = vst [vmem:[#allocation32_spill] sm:$0xff] %v12454_v4  ;;  %v1275_v42 = vmul.f32 %v12454_v4, %v12461_v33 }
 0x2da   : > { %v1238_v18 = vrot.slane %v1200_v13, 4  ;;  %1299 = vperm.xlu0 %11158, %v12061_v27  }
 0x2db   : > { %v1650_v40 = vsel %vm1641_vm5, %v1647_v19, %v1649_v36 }
 0x2dc   : > { %v12465_v44 = vsel %vm732_vm0, %v1236_v37, %v1238_v18  ;;  %10195 = vmatmul.mubr.msk.bf16.gmra.mrb[8].mxu1 %vm881_vm2, %v1650_v40  ;;  %v12476_v35 = vsel %vm732_vm0, %v1238_v18, %v1240_v46 }
 0x2dd   : > { %16366 = vst [vmem:[#allocation33_spill] sm:$0xff] %v12465_v44  ;;  %v1276_v38 = vmul.f32 %v12465_v44, %v12458_v43  ;;  %2984 = vperm.xlu1 %11153, %v12113_v55   ;;  %v1208_v54 = vpop.permute.xlu1 %1207  ;;  %v12473_v34 = vpop.permute.xlu0 %2103  ;;  %16367 = vst [vmem:[#allocation34_spill] sm:$0xff] %v12476_v35  ;;  %v1277_v52 = vmul.f32 %v12476_v35, %v12204_v22 }
 0x2de   : > { %v1242_v19 = vrot.slane %v1208_v54, 4  ;;  %1308 = vperm.xlu0 %11158, %v12087_v16  }
 0x2df   : > { %v1287_v37 = vpack.c.bf16 %v1276_v38, %v1275_v42  ;;  %v1845_v38 = vrot.slane %v12337_v63, 2 }
 0x2e0   : > { %v12481_v31 = vsel %vm732_vm0, %v1240_v46, %v1242_v19  ;;  %v12489_v54 = vsel %vm732_vm0, %v1242_v19, %v1244_v62 }
 0x2e1   : > { %16368 = vst [vmem:[#allocation35_spill] sm:$0xff] %v12481_v31  ;;  %v1278_v13 = vmul.f32 %v12481_v31, %v12207_v8  ;;  %2990 = vperm.xlu1 %11153, %v12126_v15   ;;  %v1216_v40 = vpop.permute.xlu1 %1215  ;;  %v1651_v18 = vrot.slane %v1287_v37, 2  ;;  %16369 = vst [vmem:[#allocation36_spill] sm:$0xff] %v12489_v54  ;;  %v12494_v2 = vpop.permute.xlu0 %2112  ;;  %v1279_v37 = vmul.f32 %v12489_v54, %v12237_v1 }
 0x2e2   : > { %v12491_v4 = vrot.slane %v1216_v40, 4  ;;  %1317 = vperm.xlu0 %11158, %v12113_v55  }
 0x2e3   : > { %v1652_v46 = vsel %vm1641_vm5, %v1649_v36, %v1651_v18  ;;  %v1288_v42 = vpack.c.bf16 %v1278_v13, %v1277_v52  ;;  %v16171_v52 = vmov 9  }
 0x2e4   : > { %16370 = vst [vmem:[#allocation37_spill] sm:$0xff] %v12491_v4  ;;  %v12500_v35 = vsel %vm732_vm0, %v1244_v62, %v12491_v4  ;;  %10198 = vmatprep.mubr.msk.bf16.mxu1 %vm881_vm2, %v1652_v46  ;;  %v1281_v19 = vmul.f32 %v12491_v4, %v12217_v5  ;;  %v1850_v4 = vrot.slane %v12348_v12, 2 }
 0x2e5   : > { %16371 = vst [vmem:[#allocation38_spill] sm:$0xff] %v12500_v35  ;;  %2996 = vperm.xlu1 %11153, %v12031_v20   ;;  %v1801_v55 = vpop.permute.xlu1 %1800  ;;  %v1653_v40 = vrot.slane %v1288_v42, 2  ;;  %v1280_v36 = vmul.f32 %v12500_v35, %v12234_v60  ;;  %v12518_v20 = vmul.f32 0.0, %v1845_v38 }
 0x2e6   : > { %v1846_v63 = vrot.slane %v1801_v55, 2  ;;  %11161 = vset.pattern.permute.xlu0 %v16171_v52  ;;  %v1290_v46 = vpack.c.bf16 %v1281_v19, %v1281_v19  ;;  %v12522_v55 = vpop.permute.xlu0 %2118 }
 0x2e7   : > { %3623 = vperm.xlu0 %11161, %v12066_v3   ;;  %v1654_v62 = vsel %vm1641_vm5, %v1651_v18, %v1653_v40  ;;  %v1289_v13 = vpack.c.bf16 %v1280_v36, %v1279_v37  ;;  %16373 = vst [vmem:[#allocation40_spill] sm:$0xff] %v12518_v20  ;;  %v1854_v36 = vrot.slane %v12366_v58, 2 }
 0x2e8   : > { %v12515_v54 = vsel %vm1641_vm5, %v1845_v38, %v1846_v63  ;;  %10199 = vmatmul.mubr.msk.bf16.gmra.mrb[12].mxu1 %vm881_vm2, %v1654_v62  ;;  %v1657_v19 = vrot.slane %v1290_v46, 2 }
 0x2e9   : > { %16372 = vst [vmem:[#allocation39_spill] sm:$0xff] %v12515_v54  ;;  %v1894_v42 = vmul.f32 %v12515_v54, %v12310_v50  ;;  %3002 = vperm.xlu1 %11153, %v12019_v24   ;;  %v1804_v3 = vpop.permute.xlu1 %1803  ;;  %v1655_v18 = vrot.slane %v1289_v13, 2 }
 0x2ea   : > { %v1848_v37 = vrot.slane %v1804_v3, 2  ;;  %v12541_v46 = vpop.permute.xlu0 %2124 }
 0x2eb   : > { %3632 = vperm.xlu0 %11161, %v12080_v11   ;;  %v1656_v12 = vsel %vm1641_vm5, %v1653_v40, %v1655_v18  ;;  %v1910_v40 = vpack.c.bf16 %v1894_v42, %v12518_v20 }
 0x2ec   : > { %v12529_v38 = vsel %vm1641_vm5, %v1846_v63, %v1848_v37  ;;  %v12532_v62 = vsel %vm1641_vm5, %v1848_v37, %v1850_v4  ;;  %10202 = vmatprep.mubr.msk.bf16.mxu1 %vm881_vm2, %v1656_v12  ;;  %v1658_v63 = vsel %vm1641_vm5, %v1655_v18, %v1657_v19  ;;  %v1858_v37 = vrot.slane %v12377_v61, 2 }
 0x2ed   : > { %16374 = vst [vmem:[#allocation41_spill] sm:$0xff] %v12529_v38  ;;  %16375 = vst [vmem:[#allocation42_spill] sm:$0xff] %v12532_v62  ;;  %v1895_v24 = vmul.f32 %v12529_v38, %v12330_v57  ;;  %v1896_v13 = vmul.f32 %v12532_v62, %v12327_v14  ;;  %3008 = vperm.xlu1 %11153, %v12036_v47   ;;  %v1810_v11 = vpop.permute.xlu1 %1809  ;;  %v1929_v19 = vrot.slane %v1910_v40, 3 }
 0x2ee   : > { %v1852_v58 = vrot.slane %v1810_v11, 2 }
 0x2ef   : > { %3638 = vperm.xlu0 %11161, %v12094_v53   ;;  %v1911_v3 = vpack.c.bf16 %v1896_v13, %v1895_v24  ;;  %v16378_v53 = vmov 8  }
 0x2f0   : > { %v12547_v12 = vsel %vm1641_vm5, %v1850_v4, %v1852_v58  ;;  %v12550_v52 = vsel %vm1641_vm5, %v1852_v58, %v1854_v36  ;;  %10203 = vmatmul.mubr.msk.bf16.gmra.mrb[0].mxu1 %vm881_vm2, %v1658_v63 }
 0x2f1   : > { %16376 = vst [vmem:[#allocation43_spill] sm:$0xff] %v12547_v12  ;;  %16377 = vst [vmem:[#allocation44_spill] sm:$0xff] %v12550_v52  ;;  %v1897_v47 = vmul.f32 %v12547_v12, %v12352_v39  ;;  %v1898_v42 = vmul.f32 %v12550_v52, %v12359_v51  ;;  %11156 = vset.pattern.permute.xlu1 %v16378_v53  ;;  %v1816_v18 = vpop.permute.xlu1 %1815  ;;  %v1930_v24 = vrot.slane %v1911_v3, 3  ;;  %v12568_v53 = vpop.permute.xlu0 %2130 }
 0x2f2   : > { %v1856_v61 = vrot.slane %v1816_v18, 2  ;;  %3269 = vperm.xlu1 %11156, %v12061_v27  }
 0x2f3   : > { %v1912_v4 = vpack.c.bf16 %v1898_v42, %v1897_v47  ;;  %3641 = vperm.xlu0 %11161, %v12101_v7   ;;  %v1931_v13 = vsel %vm1343_vm3, %v1929_v19, %v1930_v24  ;;  %v1862_v47 = vrot.slane %v12399_v25, 2 }
 0x2f4   : > { %v12562_v11 = vsel %vm1641_vm5, %v1854_v36, %v1856_v61  ;;  %v12565_v58 = vsel %vm1641_vm5, %v1856_v61, %v1858_v37  ;;  %10210 = vmatprep.mubr.msk.bf16.mxu1 %vm881_vm2, %v1931_v13  ;;  %v11191_v36 = vld [vmem:[%s16102_s3 + $0x4c] sm:$0xff]  }
 0x2f5   : > { %16379 = vst [vmem:[#allocation45_spill] sm:$0xff] %v12562_v11  ;;  %16380 = vst [vmem:[#allocation46_spill] sm:$0xff] %v12565_v58  ;;  %v1932_v63 = vrot.slane %v1912_v4, 3  ;;  %v1899_v40 = vmul.f32 %v12562_v11, %v12389_v56  ;;  %v1900_v27 = vmul.f32 %v12565_v58, %v12386_v21  ;;  %v1822_v3 = vpop.permute.xlu1 %1821 }
 0x2f6   : > { %v1860_v42 = vrot.slane %v1822_v3, 2  ;;  %3272 = vperm.xlu1 %11156, %v12073_v49  }
 0x2f7   : > { %3650 = vperm.xlu0 %11161, %v12126_v15   ;;  %v1933_v18 = vsel %vm1343_vm3, %v1930_v24, %v1932_v63  ;;  %v1913_v19 = vpack.c.bf16 %v1900_v27, %v1899_v40  ;;  %v1866_v15 = vrot.slane %v12417_v45, 2  ;;  %v12600_v40 = vpop.permute.xlu0 %2136 }
 0x2f8   : > { %v12582_v61 = vsel %vm1641_vm5, %v1858_v37, %v1860_v42  ;;  %v12585_v4 = vsel %vm1641_vm5, %v1860_v42, %v1862_v47  ;;  %10211 = vmatmul.mubr.msk.bf16.vlgmr.msra.gmra.mrb[4].mxu1 %vm881_vm2, %v1933_v18  ;;  %v12598_v37 = vld [vmem:[%s16102_s3 + $0x54] sm:$0xff]  }
 0x2f9   : > { %16381 = vst [vmem:[#allocation47_spill] sm:$0xff] %v12582_v61  ;;  %16382 = vst [vmem:[#allocation48_spill] sm:$0xff] %v12585_v4  ;;  %v1901_v49 = vmul.f32 %v12582_v61, %v12422_v32  ;;  %v1902_v25 = vmul.f32 %v12585_v4, %v12428_v26  ;;  %v1828_v13 = vpop.permute.xlu1 %1827  ;;  %v1934_v3 = vrot.slane %v1913_v19, 3  ;;  %10227 = vmatpush3.bf16.msra.mxu1 %v12415_v59 }
 0x2fa   : > { %v1864_v24 = vrot.slane %v1828_v13, 2  ;;  %3278 = vperm.xlu1 %11156, %v12087_v16   ;;  %10228 = vmatprep.subr.bf16.mxu1 %v11191_v36 }
 0x2fb   : > { %3653 = vperm.xlu0 %11161, %v12139_v29   ;;  %v1935_v27 = vsel %vm1343_vm3, %v1932_v63, %v1934_v3  ;;  %v1914_v42 = vpack.c.bf16 %v1902_v25, %v1901_v49  ;;  %v1870_v63 = vrot.slane %v12437_v17, 2 }
 0x2fc   : > { %v12605_v59 = vsel %vm1641_vm5, %v1862_v47, %v1864_v24  ;;  %v12608_v45 = vsel %vm1641_vm5, %v1864_v24, %v1866_v15  ;;  %10214 = vmatprep.mubr.msk.bf16.mxu1 %vm881_vm2, %v1935_v27  ;;  %v11400_v24 = vld [vmem:[%s16099_s0 + $0x60] sm:$0xff]  ;;  %v12623_v27 = vrot.slane %v12448_v23, 2 }
 0x2fd   : > { %16383 = vst [vmem:[#allocation49_spill] sm:$0xff] %v12605_v59  ;;  %16384 = vst [vmem:[#allocation50_spill] sm:$0xff] %v12608_v45  ;;  %v1903_v16 = vmul.f32 %v12605_v59, %v12461_v33  ;;  %v1904_v18 = vmul.f32 %v12608_v45, %v12458_v43  ;;  %v1834_v19 = vpop.permute.xlu1 %1833  ;;  %v1936_v13 = vrot.slane %v1914_v42, 3  ;;  %10229 = vmatpush3.bf16.msra.mxu1 %v11191_v36 }
 0x2fe   : > { %v1868_v49 = vrot.slane %v1834_v19, 2  ;;  %3284 = vperm.xlu1 %11156, %v12101_v7   ;;  %10246 = vmatprep.subr.bf16.mxu1 %v12598_v37  ;;  %16385 = vst [vmem:[#allocation51_spill] sm:$0xff] %v12623_v27  ;;  %v12632_v7 = vpop.permute.xlu0 %2142 }
 0x2ff   : > { %v1937_v47 = vsel %vm1343_vm3, %v1934_v3, %v1936_v13  ;;  %v1915_v25 = vpack.c.bf16 %v1904_v18, %v1903_v16  ;;  %3659 = vperm.xlu0 %11161, %v11400_v24  }
 0x300   : > { %v12626_v36 = vsel %vm1641_vm5, %v1866_v15, %v1868_v49  ;;  %v12629_v17 = vsel %vm1641_vm5, %v1868_v49, %v1870_v63  ;;  %10215 = vmatmul.mubr.msk.bf16.gmra.mrb[8].mxu1 %vm881_vm2, %v1937_v47  ;;  %v11401_v49 = vld [vmem:[%s16099_s0 + $0x70] sm:$0xff]  ;;  %v1909_v47 = vmul.f32 %v12623_v27, %v12217_v5 }
 0x301   : > { %16386 = vst [vmem:[#allocation52_spill] sm:$0xff] %v12626_v36  ;;  %16387 = vst [vmem:[#allocation53_spill] sm:$0xff] %v12629_v17  ;;  %v1905_v3 = vmul.f32 %v12626_v36, %v12204_v22  ;;  %v1906_v42 = vmul.f32 %v12629_v17, %v12207_v8  ;;  %v1840_v16 = vpop.permute.xlu1 %1839  ;;  %v1938_v18 = vrot.slane %v1915_v25, 3 }
 0x302   : > { %v1872_v23 = vrot.slane %v1840_v16, 2  ;;  %3290 = vperm.xlu1 %11156, %v12121_v6   ;;  %v2149_v6 = vrot.slane %v12473_v34, 1  ;;  %v12659_v16 = vpop.permute.xlu0 %2618  ;;  %v1918_v34 = vpack.c.bf16 %v1909_v47, %v1909_v47  ;;  %v2155_v47 = vrot.slane %v12494_v2, 1 }
 0x303   : > { %v1939_v15 = vsel %vm1343_vm3, %v1936_v13, %v1938_v18  ;;  %v1916_v19 = vpack.c.bf16 %v1906_v42, %v1905_v3  ;;  %3665 = vperm.xlu0 %11161, %v11401_v49  }
 0x304   : > { %v12646_v36 = vsel %vm1641_vm5, %v1870_v63, %v1872_v23  ;;  %v12650_v25 = vsel %vm1641_vm5, %v1872_v23, %v12623_v27  ;;  %10218 = vmatprep.mubr.msk.bf16.mxu1 %vm881_vm2, %v1939_v15 }
 0x305   : > { %16388 = vst [vmem:[#allocation54_spill] sm:$0xff] %v12646_v36  ;;  %16389 = vst [vmem:[#allocation55_spill] sm:$0xff] %v12650_v25  ;;  %v1907_v13 = vmul.f32 %v12646_v36, %v12237_v1  ;;  %v1908_v3 = vmul.f32 %v12650_v25, %v12234_v60  ;;  %v1940_v42 = vrot.slane %v1916_v19, 3 }
 0x306   : > { %3296 = vperm.xlu1 %11156, %v12139_v29   ;;  %v2101_v63 = vpop.permute.xlu1 %2100  ;;  %v12666_v19 = vpop.permute.xlu0 %2627 }
 0x307   : > { %v2148_v17 = vrot.slane %v2101_v63, 1  ;;  %v1941_v23 = vsel %vm1343_vm3, %v1938_v18, %v1940_v42  ;;  %v1917_v27 = vpack.c.bf16 %v1908_v3, %v1907_v13  ;;  %v1944_v13 = vrot.slane %v1918_v34, 3 }
 0x308   : > { %10219 = vmatmul.mubr.msk.bf16.gmra.mrb[12].mxu1 %vm881_vm2, %v1941_v23  ;;  %v2159_v34 = vrot.slane %v12522_v55, 1 }
 0x309   : > { %v12664_v15 = vsel %vm2147_vm6, %v2148_v17, %v2149_v6  ;;  %v1942_v36 = vrot.slane %v1917_v27, 3  ;;  %v12668_v29 = vmul.f32 0.0, %v2148_v17 }
 0x30a   : > { %16390 = vst [vmem:[#allocation56_spill] sm:$0xff] %v12664_v15  ;;  %3302 = vperm.xlu1 %11156, %v11400_v24   ;;  %v2107_v25 = vpop.permute.xlu1 %2106  ;;  %v2197_v59 = vmul.f32 %v12664_v15, %v12310_v50 }
 0x30b   : > { %16391 = vst [vmem:[#allocation57_spill] sm:$0xff] %v12668_v29  ;;  %v2151_v63 = vrot.slane %v2107_v25, 1  ;;  %v1943_v18 = vsel %vm1343_vm3, %v1940_v42, %v1942_v36  ;;  %v1945_v23 = vsel %vm1343_vm3, %v1942_v36, %v1944_v13  ;;  %v12681_v25 = vpop.permute.xlu0 %2633 }
 0x30c   : > { %10222 = vmatprep.mubr.msk.bf16.mxu1 %vm881_vm2, %v1943_v18  ;;  %v2213_v24 = vpack.c.bf16 %v2197_v59, %v12668_v29 }
 0x30d   : > { %v12677_v27 = vsel %vm2147_vm6, %v2149_v6, %v2151_v63 }
 0x30e   : > { %3308 = vperm.xlu1 %11156, %v11401_v49   ;;  %v2110_v3 = vpop.permute.xlu1 %2109  ;;  %16392 = vst [vmem:[#allocation58_spill] sm:$0xff] %v12677_v27  ;;  %v2198_v2 = vmul.f32 %v12677_v27, %v12330_v57  ;;  %v2224_v6 = vshrl.u32 %v2213_v24, 16  ;;  %v2227_v36 = vshll.u32 %v2213_v24, 16 }
 0x30f   : > { %v2153_v17 = vrot.slane %v2110_v3, 1  ;;  %v12705_v15 = vpop.permute.xlu0 %2639 }
 0x310   : > { %10223 = vmatmul.mubr.msk.bf16.gmra.mrb[0].mxu1 %vm881_vm2, %v1945_v23 }
 0x311   : > { %v12684_v42 = vsel %vm2147_vm6, %v2151_v63, %v2153_v17  ;;  %v12693_v18 = vsel %vm2147_vm6, %v2153_v17, %v2155_v47  ;;  %v11402_v63 = vld [vmem:[%s16099_s0] sm:$0xff] }
 0x312   : > { %16393 = vst [vmem:[#allocation59_spill] sm:$0xff] %v12684_v42  ;;  %v2199_v59 = vmul.f32 %v12684_v42, %v12327_v14  ;;  %11157 = vset.pattern.permute.xlu1 %v16364_v9  ;;  %v2116_v49 = vpop.permute.xlu1 %2115  ;;  %16394 = vst [vmem:[#allocation60_spill] sm:$0xff] %v12693_v18  ;;  %v2200_v23 = vmul.f32 %v12693_v18, %v12352_v39  ;;  %v2226_v42 = vrot.slane %v2224_v6, 3 }
 0x313   : > { %v2157_v13 = vrot.slane %v2116_v49, 1  ;;  %1296 = vperm.xlu1 %11157, %v11402_v63   ;;  %v2229_v49 = vrot.slane %v2227_v36, 4  ;;  %v12731_v11 = vpop.permute.xlu0 %2645 }
 0x314   : > { %v2214_v55 = vpack.c.bf16 %v2199_v59, %v2198_v2 }
 0x315   : > { %v12699_v3 = vsel %vm2147_vm6, %v2155_v47, %v2157_v13  ;;  %v12708_v61 = vsel %vm2147_vm6, %v2157_v13, %v2159_v34  ;;  %v12713_v47 = vld [vmem:[%s16099_s0 + $0x10] sm:$0xff] }
 0x316   : > { %16395 = vst [vmem:[#allocation61_spill] sm:$0xff] %v12699_v3  ;;  %v2201_v29 = vmul.f32 %v12699_v3, %v12359_v51  ;;  %v2122_v24 = vpop.permute.xlu1 %2121  ;;  %v2232_v27 = vshrl.u32 %v2214_v55, 16  ;;  %v2235_v17 = vshll.u32 %v2214_v55, 16  ;;  %16396 = vst [vmem:[#allocation62_spill] sm:$0xff] %v12708_v61  ;;  %v2163_v55 = vrot.slane %v12541_v46, 1  ;;  %v11404_v46 = vld [vmem:[%s16099_s0 + $0x18] sm:$0xff] }
 0x317   : > { %v2161_v2 = vrot.slane %v2122_v24, 1  ;;  %1302 = vperm.xlu1 %11157, %v12713_v47   ;;  %v2202_v36 = vmul.f32 %v12708_v61, %v12389_v56 }
 0x318   : > { %v2215_v59 = vpack.c.bf16 %v2201_v29, %v2200_v23  ;;  %v2234_v63 = vrot.slane %v2232_v27, 3  ;;  %v2237_v18 = vrot.slane %v2235_v17, 4  ;;  %v2230_v27 = vor.u32 %v2229_v49, %v2226_v42 }
 0x319   : > { %v12718_v6 = vsel %vm2147_vm6, %v2159_v34, %v2161_v2  ;;  %v12725_v4 = vsel %vm2147_vm6, %v2161_v2, %v2163_v55 }
 0x31a   : > { %16397 = vst [vmem:[#allocation63_spill] sm:$0xff] %v12718_v6  ;;  %v2241_v13 = vshrl.u32 %v2215_v59, 16  ;;  %v2244_v24 = vshll.u32 %v2215_v59, 16  ;;  %v2203_v3 = vmul.f32 %v12718_v6, %v12386_v21  ;;  %v2128_v45 = vpop.permute.xlu1 %2127  ;;  %16398 = vst [vmem:[#allocation64_spill] sm:$0xff] %v12725_v4  ;;  %v2238_v34 = vor.u32 %v2237_v18, %v2234_v63  ;;  %v11405_v63 = vld [vmem:[%s16099_s0 + $0x28] sm:$0xff] }
 0x31b   : > { %v2165_v29 = vrot.slane %v2128_v45, 1  ;;  %1305 = vperm.xlu1 %11157, %v11404_v46   ;;  %v2167_v59 = vrot.slane %v12568_v53, 1  ;;  %v2204_v45 = vmul.f32 %v12725_v4, %v12422_v32 }
 0x31c   : > { %v2243_v23 = vrot.slane %v2241_v13, 3  ;;  %v2246_v17 = vrot.slane %v2244_v24, 4  ;;  %v2216_v61 = vpack.c.bf16 %v2203_v3, %v2202_v36  ;;  %v2239_v2 = vsel %vm2222_vm7, %v2230_v27, %v2238_v34  ;;  %v11193_v36 = vld [vmem:[%s16102_s3 + $0x5c] sm:$0xff]  }
 0x31d   : > { %v12734_v6 = vsel %vm2147_vm6, %v2163_v55, %v2165_v29  ;;  %10230 = vmatprep.mubr.msk.bf16.mxu1 %vm881_vm2, %v2239_v2  ;;  %v12743_v53 = vsel %vm2147_vm6, %v2165_v29, %v2167_v59 }
 0x31e   : > { %16399 = vst [vmem:[#allocation65_spill] sm:$0xff] %v12734_v6  ;;  %v2205_v46 = vmul.f32 %v12734_v6, %v12428_v26  ;;  %v2134_v42 = vpop.permute.xlu1 %2133  ;;  %v2247_v18 = vor.u32 %v2246_v17, %v2243_v23  ;;  %v2250_v3 = vshrl.u32 %v2216_v61, 16  ;;  %16400 = vst [vmem:[#allocation66_spill] sm:$0xff] %v12743_v53  ;;  %v2253_v55 = vshll.u32 %v2216_v61, 16 }
 0x31f   : > { %v2169_v49 = vrot.slane %v2134_v42, 1  ;;  %1311 = vperm.xlu1 %11157, %v11405_v63   ;;  %v2171_v23 = vrot.slane %v12600_v40, 1  ;;  %v2206_v2 = vmul.f32 %v12743_v53, %v12461_v33 }
 0x320   : > { %v2217_v13 = vpack.c.bf16 %v2205_v46, %v2204_v45  ;;  %v2248_v24 = vsel %vm2222_vm7, %v2238_v34, %v2247_v18  ;;  %v2252_v27 = vrot.slane %v2250_v3, 3  ;;  %v2255_v17 = vrot.slane %v2253_v55, 4  ;;  %v12762_v46 = vpop.permute.xlu0 %2651  ;;  %v12771_v55 = vld [vmem:[%s16102_s3 + $0x64] sm:$0xff]  }
 0x321   : > { %v12754_v29 = vsel %vm2147_vm6, %v2167_v59, %v2169_v49  ;;  %10231 = vmatmul.mubr.msk.bf16.vlgmr.msra.gmra.mrb[4].mxu1 %vm881_vm2, %v2248_v24  ;;  %v12765_v40 = vsel %vm2147_vm6, %v2169_v49, %v2171_v23  ;;  %v16403_v3 = vmov 9   ;;  %v2175_v49 = vrot.slane %v12632_v7, 1 }
 0x322   : > { %16401 = vst [vmem:[#allocation67_spill] sm:$0xff] %v12754_v29  ;;  %v2207_v61 = vmul.f32 %v12754_v29, %v12458_v43  ;;  %v2140_v42 = vpop.permute.xlu1 %2139  ;;  %10247 = vmatpush3.bf16.msra.mxu1 %v12598_v37  ;;  %v2259_v45 = vshrl.u32 %v2217_v13, 16  ;;  %v2262_v34 = vshll.u32 %v2217_v13, 16  ;;  %16402 = vst [vmem:[#allocation68_spill] sm:$0xff] %v12765_v40  ;;  %v2256_v63 = vor.u32 %v2255_v17, %v2252_v27  ;;  %v11406_v37 = vld [vmem:[%s16099_s0 + $0x8] sm:$0xff] }
 0x323   : > { %v2173_v59 = vrot.slane %v2140_v42, 1  ;;  %11159 = vset.pattern.permute.xlu1 %v16403_v3  ;;  %10248 = vmatprep.subr.bf16.mxu1 %v11193_v36  ;;  %v2208_v17 = vmul.f32 %v12765_v40, %v12204_v22 }
 0x324   : > { %v2218_v24 = vpack.c.bf16 %v2207_v61, %v2206_v2  ;;  %3626 = vperm.xlu1 %11159, %v11406_v37   ;;  %v2261_v13 = vrot.slane %v2259_v45, 3  ;;  %v2264_v53 = vrot.slane %v2262_v34, 4  ;;  %v2257_v27 = vsel %vm2222_vm7, %v2247_v18, %v2256_v63 }
 0x325   : > { %v12778_v42 = vsel %vm2147_vm6, %v2171_v23, %v2173_v59  ;;  %10234 = vmatprep.mubr.msk.bf16.mxu1 %vm881_vm2, %v2257_v27  ;;  %v12787_v45 = vsel %vm2147_vm6, %v2173_v59, %v2175_v49 }
 0x326   : > { %16404 = vst [vmem:[#allocation69_spill] sm:$0xff] %v12778_v42  ;;  %v2209_v2 = vmul.f32 %v12778_v42, %v12207_v8  ;;  %v2146_v61 = vpop.permute.xlu1 %2145  ;;  %v2265_v4 = vor.u32 %v2264_v53, %v2261_v13  ;;  %v2268_v37 = vshrl.u32 %v2218_v24, 16  ;;  %10249 = vmatpush3.bf16.msra.mxu1 %v11193_v36  ;;  %16405 = vst [vmem:[#allocation70_spill] sm:$0xff] %v12787_v45  ;;  %v2271_v23 = vshll.u32 %v2218_v24, 16  ;;  %v12794_v42 = vpop.permute.xlu0 %2657 }
 0x327   : > { %v12789_v7 = vrot.slane %v2146_v61, 1  ;;  %10266 = vmatprep.subr.bf16.mxu1 %v12771_v55  ;;  %v2210_v24 = vmul.f32 %v12787_v45, %v12237_v1  ;;  %v11407_v61 = vld [vmem:[%s16099_s0 + $0x20] sm:$0xff] }
 0x328   : > { %v2219_v18 = vpack.c.bf16 %v2209_v2, %v2208_v17  ;;  %3629 = vperm.xlu1 %11159, %v12713_v47   ;;  %v2266_v34 = vsel %vm2222_vm7, %v2256_v63, %v2265_v4  ;;  %v2270_v40 = vrot.slane %v2268_v37, 3  ;;  %v2273_v59 = vrot.slane %v2271_v23, 4 }
 0x329   : > { %16406 = vst [vmem:[#allocation71_spill] sm:$0xff] %v12789_v7  ;;  %v12798_v53 = vsel %vm2147_vm6, %v2175_v49, %v12789_v7  ;;  %v2212_v36 = vmul.f32 %v12789_v7, %v12217_v5  ;;  %10235 = vmatmul.mubr.msk.bf16.gmra.mrb[8].mxu1 %vm881_vm2, %v2266_v34 }
 0x32a   : > { %16407 = vst [vmem:[#allocation72_spill] sm:$0xff] %v12798_v53  ;;  %v2211_v47 = vmul.f32 %v12798_v53, %v12234_v60  ;;  %v2277_v63 = vshrl.u32 %v2219_v18, 16  ;;  %v2280_v13 = vshll.u32 %v2219_v18, 16  ;;  %v2274_v2 = vor.u32 %v2273_v59, %v2270_v40 }
 0x32b   : > { %v2221_v27 = vpack.c.bf16 %v2212_v36, %v2212_v36  ;;  %v12807_v17 = vpop.permute.xlu1 %2621  ;;  %v12814_v36 = vpop.permute.xlu0 %2663 }
 0x32c   : > { %v2220_v49 = vpack.c.bf16 %v2211_v47, %v2210_v24  ;;  %3635 = vperm.xlu1 %11159, %v11407_v61   ;;  %v2279_v37 = vrot.slane %v2277_v63, 3  ;;  %v2275_v7 = vsel %vm2222_vm7, %v2265_v4, %v2274_v2  ;;  %v2282_v45 = vrot.slane %v2280_v13, 4  ;;  %v11408_v63 = vld [vmem:[%s16099_s0 + $0x30] sm:$0xff] }
 0x32d   : > { %v2295_v23 = vshrl.u32 %v2221_v27, 16  ;;  %v2298_v34 = vshll.u32 %v2221_v27, 16  ;;  %10238 = vmatprep.mubr.msk.bf16.mxu1 %vm881_vm2, %v2275_v7  ;;  %v2695_v38 = vrot.slane %v12814_v36, 7 }
 0x32e   : > { %v2286_v53 = vshrl.u32 %v2220_v49, 16  ;;  %v2289_v18 = vshll.u32 %v2220_v49, 16  ;;  %v2283_v40 = vor.u32 %v2282_v45, %v2279_v37 }
 0x32f   : > { %v2625_v29 = vpop.permute.xlu1 %2624  ;;  %v2297_v47 = vrot.slane %v2295_v23, 3  ;;  %v2300_v61 = vrot.slane %v2298_v34, 4  ;;  %v12825_v27 = vpop.permute.xlu0 %2966  ;;  %v2456_v34 = vpack.c.bf16 %v12330_v57, %v12310_v50 }
 0x330   : > { %11160 = vset.pattern.permute.xlu1 %v16364_v9  ;;  %v2288_v59 = vrot.slane %v2286_v53, 3  ;;  %v2291_v24 = vrot.slane %v2289_v18, 4  ;;  %v2284_v4 = vsel %vm2222_vm7, %v2274_v2, %v2283_v40  ;;  %v11409_v53 = vld [vmem:[%s16099_s0 + $0x40] sm:$0xff]  ;;  %v11410_v2 = vld [vmem:[%s16099_s0 + $0x48] sm:$0xff] }
 0x331   : > { %1314 = vperm.xlu1 %11160, %v11408_v63   ;;  %10239 = vmatmul.mubr.msk.bf16.gmra.mrb[12].mxu1 %vm881_vm2, %v2284_v4  ;;  %v2301_v49 = vor.u32 %v2300_v61, %v2297_v47  ;;  %v2457_v47 = vpack.c.bf16 %v12352_v39, %v12327_v14  ;;  %v11195_v61 = vld [vmem:[%s16102_s3 + $0x6c] sm:$0xff]   ;;  %v2667_v4 = vrot.slane %v12807_v17, 7  ;;  %v12873_v17 = vld [vmem:[%s16102_s3 + $0x74] sm:$0xff]  }
 0x332   : > { %v2292_v7 = vor.u32 %v2291_v24, %v2288_v59  ;;  %v11411_v59 = vld [vmem:[%s16099_s0 + $0x38] sm:$0xff] }
 0x333   : > { %v12822_v13 = vpop.permute.xlu1 %2630  ;;  %v12840_v18 = vpop.permute.xlu0 %2975 }
 0x334   : > { %v2293_v45 = vsel %vm2222_vm7, %v2283_v40, %v2292_v7  ;;  %v2302_v23 = vsel %vm2222_vm7, %v2292_v7, %v2301_v49  ;;  %v2458_v7 = vpack.c.bf16 %v12389_v56, %v12359_v51  ;;  %v2671_v49 = vrot.slane %v12666_v19, 7 }
 0x335   : > { %1320 = vperm.xlu1 %11160, %v11409_v53   ;;  %10242 = vmatprep.mubr.msk.bf16.mxu1 %vm881_vm2, %v2293_v45  ;;  %v12863_v45 = vrot.slane %v12659_v16, 7 }
 0x337   : > { %v12831_v37 = vpop.permute.xlu1 %2636  ;;  %v12856_v63 = vpop.permute.xlu0 %2981  ;;  %16408 = vst [vmem:[#allocation73_spill] sm:$0xff] %v12863_v45 }
 0x339   : > { %1323 = vperm.xlu1 %11160, %v11410_v2   ;;  %10243 = vmatmul.mubr.msk.bf16.gmra.mrb[0].mxu1 %vm881_vm2, %v2302_v23  ;;  %v2669_v2 = vrot.slane %v2625_v29, 7 }
 0x33a   : > { %10250 = vmatprep.mubr.msk.bf16.mxu1 %vm881_vm2, %v2456_v34 }
 0x33b   : > { %v12843_v40 = vpop.permute.xlu1 %2642  ;;  %v12880_v16 = vpop.permute.xlu0 %2987  ;;  %v12883_v19 = vsel %vm2665_vm8, %v2667_v4, %v2669_v2  ;;  %v12886_v29 = vsel %vm2665_vm8, %v2669_v2, %v2671_v49  ;;  %v2714_v2 = vmul.f32 %v12863_v45, %v12310_v50 }
 0x33c   : > { %16410 = vst [vmem:[#allocation75_spill] sm:$0xff] %v12883_v19  ;;  %16411 = vst [vmem:[#allocation76_spill] sm:$0xff] %v12886_v29 }
 0x33d   : > { %11162 = vset.pattern.permute.xlu1 %v16403_v3 }
 0x33e   : > { %3644 = vperm.xlu1 %11162, %v11411_v59  }
 0x33f   : > { %v12849_v24 = vpop.permute.xlu1 %2648  ;;  %v12918_v6 = vpop.permute.xlu0 %2993 }
 0x341   : > { %10251 = vmatmul.mubr.msk.bf16.vlgmr.msra.gmra.mrb[4].mxu1 %vm881_vm2, %v2457_v47  ;;  %v2675_v47 = vrot.slane %v12681_v25, 7  ;;  %v2677_v25 = vrot.slane %v12831_v37, 7 }
 0x342   : > { %3647 = vperm.xlu1 %11162, %v11409_v53   ;;  %10254 = vmatprep.mubr.msk.bf16.mxu1 %vm881_vm2, %v2458_v7  ;;  %v12877_v53 = vsel %vm2665_vm8, %v12863_v45, %v2667_v4  ;;  %v2673_v4 = vrot.slane %v12822_v13, 7  ;;  %v2460_v7 = vpack.c.bf16 %v12461_v33, %v12428_v26  ;;  %v11413_v45 = vld [vmem:[%s16099_s0 + $0x58] sm:$0xff] }
 0x343   : > { %v12867_v23 = vpop.permute.xlu1 %2654  ;;  %10267 = vmatpush3.bf16.msra.mxu1 %v12771_v55  ;;  %16409 = vst [vmem:[#allocation74_spill] sm:$0xff] %v12877_v53  ;;  %v11412_v55 = vld [vmem:[%s16099_s0 + $0x50] sm:$0xff]  ;;  %v2715_v59 = vmul.f32 %v12877_v53, %v12330_v57  ;;  %v2679_v53 = vrot.slane %v12705_v15, 7  ;;  %v12956_v12 = vpop.permute.xlu0 %2999 }
 0x344   : > { %10268 = vmatprep.subr.bf16.mxu1 %v11195_v61  ;;  %v12924_v15 = vsel %vm2665_vm8, %v2673_v4, %v2675_v47 }
 0x345   : > { %v2731_v13 = vpack.c.bf16 %v2715_v59, %v2714_v2  ;;  %16413 = vst [vmem:[#allocation78_spill] sm:$0xff] %v12924_v15  ;;  %v12932_v59 = vsel %vm2665_vm8, %v2677_v25, %v2679_v53 }
 0x346   : > { %11163 = vset.pattern.permute.xlu1 %v16364_v9  ;;  %v2459_v9 = vpack.c.bf16 %v12422_v32, %v12386_v21  ;;  %16415 = vst [vmem:[#allocation80_spill] sm:$0xff] %v12932_v59 }
 0x347   : > { %1326 = vperm.xlu1 %11163, %v11412_v55   ;;  %v12891_v34 = vpop.permute.xlu1 %2660  ;;  %10269 = vmatpush3.bf16.msra.mxu1 %v11195_v61  ;;  %v2716_v61 = vmul.f32 %v12883_v19, %v12327_v14  ;;  %v2717_v55 = vmul.f32 %v12886_v29, %v12352_v39  ;;  %v2744_v2 = vshll.u32 %v2731_v13, 16  ;;  %v2687_v29 = vrot.slane %v12762_v46, 7 }
 0x348   : > { %10286 = vmatprep.subr.bf16.mxu1 %v12873_v17  ;;  %v2742_v20 = vshrl.u32 %v2731_v13, 16 }
 0x349   : > { %10255 = vmatmul.mubr.msk.bf16.gmra.mrb[8].mxu1 %vm881_vm2, %v2459_v9  ;;  %v12921_v9 = vsel %vm2665_vm8, %v2671_v49, %v2673_v4  ;;  %v12926_v37 = vpack.c.bf16 %v2717_v55, %v2716_v61  ;;  %v11414_v49 = vld [vmem:[%s16099_s0 + $0x68] sm:$0xff]  ;;  %v2683_v61 = vrot.slane %v12731_v11, 7  ;;  %v2681_v55 = vrot.slane %v12843_v40, 7 }
 0x34a   : > { %10258 = vmatprep.mubr.msk.bf16.mxu1 %vm881_vm2, %v2460_v7  ;;  %16412 = vst [vmem:[#allocation77_spill] sm:$0xff] %v12921_v9  ;;  %v2719_v7 = vmul.f32 %v12924_v15, %v12389_v56  ;;  %v2685_v11 = vrot.slane %v12849_v24, 7 }
 0x34b   : > { %11164 = vset.pattern.permute.xlu1 %v16403_v3  ;;  %v12929_v3 = vsel %vm2665_vm8, %v2675_v47, %v2677_v25  ;;  %v2461_v47 = vpack.c.bf16 %v12204_v22, %v12458_v43  ;;  %v2462_v25 = vpack.c.bf16 %v12237_v1, %v12207_v8  ;;  %v12969_v46 = vsel %vm2665_vm8, %v2681_v55, %v2683_v61 }
 0x34c   : > { %3656 = vperm.xlu1 %11164, %v11413_v45   ;;  %v12916_v19 = vpop.permute.xlu1 %2963  ;;  %16414 = vst [vmem:[#allocation79_spill] sm:$0xff] %v12929_v3  ;;  %v2718_v45 = vmul.f32 %v12921_v9, %v12359_v51  ;;  %v2720_v15 = vmul.f32 %v12929_v3, %v12386_v21  ;;  %v2721_v9 = vmul.f32 %v12932_v59, %v12422_v32  ;;  %v11415_v3 = vld [vmem:[%s16099_s0 + $0x78] sm:$0xff]  ;;  %v2746_v59 = vrot.slane %v2744_v2, 1 }
 0x34d   : > { %16417 = vst [vmem:[#allocation82_spill] sm:$0xff] %v12969_v46  ;;  %v2723_v2 = vmul.f32 %v12969_v46, %v12461_v33  ;;  %v13053_v35 = vrot.slane %v12916_v19, 6 }
 0x34e   : > { %v2733_v40 = vpack.c.bf16 %v2719_v7, %v2718_v45  ;;  %v2734_v52 = vpack.c.bf16 %v2721_v9, %v2720_v15  ;;  %v12975_v45 = vsel %vm2665_vm8, %v2685_v11, %v2687_v29  ;;  %v2747_v13 = vor.u32 %v2746_v59, %v2742_v20 }
 0x34f   : > { %16419 = vst [vmem:[#allocation84_spill] sm:$0xff] %v12975_v45  ;;  %v2691_v15 = vrot.slane %v12794_v42, 7  ;;  %v2693_v20 = vrot.slane %v12891_v34, 7  ;;  %16424 = vst [vmem:[#allocation89_spill] sm:$0xff] %v13053_v35 }
 0x350   : > { %3662 = vperm.xlu1 %11164, %v11414_v49   ;;  %v12941_v4 = vpop.permute.xlu1 %2969  ;;  %v2749_v49 = vshll.u32 %v12926_v37, 16  ;;  %v2757_v7 = vshll.u32 %v2733_v40, 16  ;;  %v2765_v46 = vshll.u32 %v2734_v52, 16 }
 0x351   : > { %10259 = vmatmul.mubr.msk.bf16.gmra.mrb[12].mxu1 %vm881_vm2, %v2461_v47  ;;  %v12966_v47 = vsel %vm2665_vm8, %v2679_v53, %v2681_v55  ;;  %v2689_v55 = vrot.slane %v12867_v23, 7  ;;  %v13012_v34 = vsel %vm2665_vm8, %v2691_v15, %v2693_v20 }
 0x352   : > { %10262 = vmatprep.mubr.msk.bf16.mxu1 %vm881_vm2, %v2462_v25  ;;  %16416 = vst [vmem:[#allocation81_spill] sm:$0xff] %v12966_v47  ;;  %v2751_v24 = vrot.slane %v2749_v49, 1  ;;  %v12972_v25 = vsel %vm2665_vm8, %v2683_v61, %v2685_v11  ;;  %v2722_v53 = vmul.f32 %v12966_v47, %v12428_v26  ;;  %v12986_v61 = vpop.permute.xlu0 %3005  ;;  %v2725_v11 = vmul.f32 %v12975_v45, %v12204_v22 }
 0x353   : > { %16418 = vst [vmem:[#allocation83_spill] sm:$0xff] %v12972_v25  ;;  %v2724_v49 = vmul.f32 %v12972_v25, %v12458_v43  ;;  %v2759_v42 = vrot.slane %v2757_v7, 1  ;;  %v2753_v25 = vshrl.u32 %v12926_v37, 16  ;;  %v13002_v62 = vsel %vm2665_vm8, %v2687_v29, %v2689_v55  ;;  %16422 = vst [vmem:[#allocation87_spill] sm:$0xff] %v13012_v34 }
 0x354   : > { %3668 = vperm.xlu1 %11164, %v11415_v3   ;;  %v12963_v58 = vpop.permute.xlu1 %2972  ;;  %v2463_v3 = vpack.c.bf16 %v12217_v5, %v12234_v60  ;;  %v2752_v47 = vsel %vm2740_vm9, %v2747_v13, %v2751_v24  ;;  %v2735_v59 = vpack.c.bf16 %v2723_v2, %v2722_v53  ;;  %16420 = vst [vmem:[#allocation85_spill] sm:$0xff] %v13002_v62  ;;  %v2761_v45 = vshrl.u32 %v2733_v40, 16 }
 0x355   : > { %v13007_v13 = vpack.c.bf16 %v2725_v11, %v2724_v49  ;;  %v2767_v36 = vrot.slane %v2765_v46, 1  ;;  %v2755_v7 = vor.u32 %v2753_v25, %v2751_v24  ;;  %v2726_v29 = vmul.f32 %v13002_v62, %v12207_v8  ;;  %v11197_v46 = vld [vmem:[%s16102_s3 + $0x7c] sm:$0xff]  }
 0x356   : > { %v13009_v54 = vpop.permute.xlu0 %3266  ;;  %v2763_v2 = vor.u32 %v2761_v45, %v2759_v42  ;;  %v2773_v40 = vshll.u32 %v2735_v59, 16  ;;  %v3016_v62 = vrot.slane %v12963_v58, 6 }
 0x357   : > { %v2781_v49 = vshll.u32 %v13007_v13, 16 }
 0x358   : > { %v12983_v9 = vpop.permute.xlu1 %2978  ;;  %v2768_v25 = vsel %vm2740_vm9, %v2763_v2, %v2767_v36 }
 0x359   : > { %10263 = vmatmul.mubr.msk.bf16.gmra.mrb[0].mxu1 %vm881_vm2, %v2463_v3  ;;  %v13005_v3 = vsel %vm2665_vm8, %v2689_v55, %v2691_v15  ;;  %v2760_v15 = vsel %vm2740_vm9, %v2755_v7, %v2759_v42  ;;  %v2728_v55 = vmul.f32 %v13012_v34, %v12234_v60  ;;  %v2775_v42 = vrot.slane %v2773_v40, 1  ;;  %v13043_v7 = vld [vmem:[%s16102_s3 + $0x84] sm:$0xff]  }
 0x35a   : > { %10270 = vmatprep.mubr.msk.bf16.mxu1 %vm881_vm2, %v2752_v47  ;;  %16421 = vst [vmem:[#allocation86_spill] sm:$0xff] %v13005_v3  ;;  %v13015_v47 = vsel %vm2665_vm8, %v2693_v20, %v2695_v38  ;;  %v2727_v37 = vmul.f32 %v13005_v3, %v12237_v1  ;;  %v13034_v45 = vpop.permute.xlu0 %3275  ;;  %v2777_v34 = vshrl.u32 %v2735_v59, 16 }
 0x35b   : > { %16423 = vst [vmem:[#allocation88_spill] sm:$0xff] %v13015_v47  ;;  %v2729_v24 = vmul.f32 %v13015_v47, %v12217_v5  ;;  %v2783_v47 = vrot.slane %v2781_v49, 1 }
 0x35c   : > { %v12998_v23 = vpop.permute.xlu1 %2984  ;;  %v2737_v11 = vpack.c.bf16 %v2727_v37, %v2726_v29  ;;  %v3012_v37 = vrot.slane %v12825_v27, 6 }
 0x35d   : > { %v2738_v2 = vpack.c.bf16 %v2729_v24, %v2728_v55  ;;  %v3020_v55 = vrot.slane %v12983_v9, 6  ;;  %v2785_v24 = vshrl.u32 %v13007_v13, 16  ;;  %v3024_v49 = vrot.slane %v12998_v23, 6 }
 0x35e   : > { %v2789_v29 = vshll.u32 %v2737_v11, 16  ;;  %v13050_v40 = vpop.permute.xlu0 %3281  ;;  %v3059_v9 = vmul.f32 %v13053_v35, %v12310_v50 }
 0x360   : > { %v13021_v53 = vpop.permute.xlu1 %2990  ;;  %v2791_v19 = vrot.slane %v2789_v29, 1  ;;  %v3018_v29 = vrot.slane %v12840_v18, 6 }
 0x361   : > { %10271 = vmatmul.mubr.msk.bf16.vlgmr.msra.gmra.mrb[4].mxu1 %vm881_vm2, %v2760_v15  ;;  %v2769_v15 = vshrl.u32 %v2734_v52, 16  ;;  %v3014_v52 = vrot.slane %v12941_v4, 6  ;;  %v13067_v4 = vsel %vm3010_vm10, %v13053_v35, %v3012_v37 }
 0x362   : > { %10274 = vmatprep.mubr.msk.bf16.mxu1 %vm881_vm2, %v2768_v25  ;;  %10287 = vmatpush3.bf16.msra.mxu1 %v12873_v17  ;;  %v2779_v17 = vor.u32 %v2777_v34, %v2775_v42  ;;  %v2730_v34 = vmul.f32 0.0, %v2695_v38  ;;  %16426 = vst [vmem:[#allocation91_spill] sm:$0xff] %v13067_v4  ;;  %v3060_v13 = vmul.f32 %v13067_v4, %v12330_v57 }
 0x363   : > { %10288 = vmatprep.subr.bf16.mxu1 %v11197_v46  ;;  %v2771_v3 = vor.u32 %v2769_v15, %v2767_v36  ;;  %v2797_v36 = vshll.u32 %v2738_v2, 16 }
 0x364   : > { %v13038_v20 = vpop.permute.xlu1 %2996  ;;  %v2784_v58 = vsel %vm2740_vm9, %v2779_v17, %v2783_v47  ;;  %v2739_v17 = vpack.c.bf16 %v2730_v34, %v2730_v34  ;;  %v3076_v4 = vpack.c.bf16 %v3060_v13, %v3059_v9  ;;  %v3026_v13 = vrot.slane %v12880_v16, 6 }
 0x365   : > { %v2776_v59 = vsel %vm2740_vm9, %v2771_v3, %v2775_v42  ;;  %v13070_v3 = vsel %vm3010_vm10, %v3012_v37, %v3014_v52  ;;  %v2793_v42 = vshrl.u32 %v2737_v11, 16  ;;  %v2799_v15 = vrot.slane %v2797_v36, 1 }
 0x366   : > { %10289 = vmatpush3.bf16.msra.mxu1 %v11197_v46  ;;  %v13060_v46 = vsel %vm3010_vm10, %v3014_v52, %v3016_v62  ;;  %16427 = vst [vmem:[#allocation92_spill] sm:$0xff] %v13070_v3  ;;  %v2787_v37 = vor.u32 %v2785_v24, %v2783_v47  ;;  %v3061_v52 = vmul.f32 %v13070_v3, %v12327_v14  ;;  %v13098_v24 = vshll.u32 %v2739_v17, 16 }
 0x367   : > { %10306 = vmatprep.subr.bf16.mxu1 %v13043_v7  ;;  %16425 = vst [vmem:[#allocation90_spill] sm:$0xff] %v13060_v46  ;;  %v3062_v38 = vmul.f32 %v13060_v46, %v12352_v39  ;;  %v2795_v23 = vor.u32 %v2793_v42, %v2791_v19  ;;  %v13088_v11 = vsel %vm3010_vm10, %v3018_v29, %v3020_v55  ;;  %v2801_v42 = vshrl.u32 %v2738_v2, 16 }
 0x368   : > { %v13046_v25 = vpop.permute.xlu1 %3002  ;;  %16428 = vst [vmem:[#allocation93_spill] sm:$0xff] %v13088_v11  ;;  %v2792_v18 = vsel %vm2740_vm9, %v2787_v37, %v2791_v19  ;;  %16430 = vst [vmem:[#allocation95_spill] sm:$0xff] %v13098_v24  ;;  %v13101_v3 = vsel %vm3010_vm10, %v3016_v62, %v3018_v29  ;;  %v3064_v37 = vmul.f32 %v13088_v11, %v12389_v56  ;;  %v3028_v29 = vrot.slane %v13021_v53, 6 }
 0x369   : > { %10275 = vmatmul.mubr.msk.bf16.gmra.mrb[8].mxu1 %vm881_vm2, %v2776_v59  ;;  %v3022_v59 = vrot.slane %v12856_v63, 6  ;;  %v2800_v47 = vsel %vm2740_vm9, %v2795_v23, %v2799_v15  ;;  %v3077_v34 = vpack.c.bf16 %v3062_v38, %v3061_v52  ;;  %16431 = vst [vmem:[#allocation96_spill] sm:$0xff] %v13101_v3  ;;  %v2803_v52 = vor.u32 %v2801_v42, %v2799_v15 }
 0x36a   : > { %10278 = vmatprep.mubr.msk.bf16.mxu1 %vm881_vm2, %v2784_v58  ;;  %v13079_v58 = vpop.permute.xlu0 %3287  ;;  %v3063_v62 = vmul.f32 %v13101_v3, %v12359_v51  ;;  %v16229_v9 = vrot.slane %v13098_v24, 1  ;;  %v3030_v23 = vrot.slane %v12918_v6, 6  ;;  %v3323_v24 = vrot.slane %v13050_v40, 5 }
 0x36b   : > { %v13094_v63 = vsel %vm3010_vm10, %v3022_v59, %v3024_v49  ;;  %v13105_v19 = vsel %vm3010_vm10, %v3020_v55, %v3022_v59  ;;  %v3096_v2 = vrot.slane %v3077_v34, 1  ;;  %v3032_v59 = vrot.slane %v13038_v20, 6 }
 0x36c   : > { %v13063_v27 = vpop.permute.xlu1 %3008  ;;  %16429 = vst [vmem:[#allocation94_spill] sm:$0xff] %v13094_v63  ;;  %16432 = vst [vmem:[#allocation97_spill] sm:$0xff] %v13105_v19  ;;  %v3066_v38 = vmul.f32 %v13094_v63, %v12422_v32  ;;  %v3065_v55 = vmul.f32 %v13105_v19, %v12386_v21  ;;  %v2808_v15 = vsel %vm2740_vm9, %v2803_v52, %v16229_v9 }
 0x36d   : > { %v13128_v34 = vsel %vm3010_vm10, %v3026_v13, %v3028_v29  ;;  %v13135_v6 = vsel %vm3010_vm10, %v3030_v23, %v3032_v59 }
 0x36e   : > { %v13109_v46 = vpop.permute.xlu0 %3293  ;;  %v3079_v53 = vpack.c.bf16 %v3066_v38, %v3065_v55  ;;  %16433 = vst [vmem:[#allocation98_spill] sm:$0xff] %v13128_v34  ;;  %16434 = vst [vmem:[#allocation99_spill] sm:$0xff] %v13135_v6  ;;  %v3036_v38 = vrot.slane %v13046_v25, 6  ;;  %v3068_v52 = vmul.f32 %v13128_v34, %v12461_v33  ;;  %v13155_v25 = vrot.slane %v13009_v54, 5 }
 0x370   : > { %16437 = vst [vmem:[#allocation102_spill] sm:$0xff] %v13155_v25 }
 0x371   : > { %v13091_v36 = vpop.permute.xlu1 %3269  ;;  %10279 = vmatmul.mubr.msk.bf16.gmra.mrb[12].mxu1 %vm881_vm2, %v2792_v18  ;;  %v3078_v18 = vpack.c.bf16 %v3064_v37, %v3063_v62  ;;  %v13142_v37 = vsel %vm3010_vm10, %v3028_v29, %v3030_v23  ;;  %v16234_v62 = vrot.slane %v13063_v27, 6 }
 0x372   : > { %10282 = vmatprep.mubr.msk.bf16.mxu1 %vm881_vm2, %v2800_v47  ;;  %v3095_v47 = vrot.slane %v3076_v4, 1  ;;  %v13132_v63 = vpop.permute.xlu0 %3299  ;;  %v13139_v4 = vsel %vm3010_vm10, %v3024_v49, %v3026_v13  ;;  %16436 = vst [vmem:[#allocation101_spill] sm:$0xff] %v13142_v37  ;;  %v3315_v55 = vrot.slane %v13091_v36, 5  ;;  %v3070_v49 = vmul.f32 %v13135_v6, %v12204_v22 }
 0x373   : > { %v3098_v16 = vrot.slane %v3078_v18, 1  ;;  %16435 = vst [vmem:[#allocation100_spill] sm:$0xff] %v13139_v4  ;;  %v3319_v18 = vrot.slane %v13034_v45, 5  ;;  %v3038_v13 = vrot.slane %v12986_v61, 6  ;;  %v3067_v23 = vmul.f32 %v13139_v4, %v12428_v26  ;;  %v11199_v45 = vld [vmem:[%s16102_s3 + $0x8c] sm:$0xff]  }
 0x374   : > { %v3097_v20 = vsel %vm2147_vm6, %v3095_v47, %v3096_v2  ;;  %v3069_v36 = vmul.f32 %v13142_v37, %v12458_v43  ;;  %v13177_v61 = vsel %vm3313_vm11, %v13155_v25, %v3315_v55 }
 0x375   : > { %v3273_v17 = vpop.permute.xlu1 %3272  ;;  %v13173_v54 = vsel %vm3010_vm10, %v3038_v13, %v16234_v62  ;;  %16440 = vst [vmem:[#allocation105_spill] sm:$0xff] %v13177_v61  ;;  %v13194_v19 = vsel %vm3010_vm10, %v3036_v38, %v3038_v13  ;;  %v3363_v40 = vmul.f32 %v13177_v61, %v12330_v57 }
 0x376   : > { %v3317_v29 = vrot.slane %v3273_v17, 5  ;;  %v13168_v17 = vpop.permute.xlu0 %3305  ;;  %16439 = vst [vmem:[#allocation104_spill] sm:$0xff] %v13173_v54  ;;  %v3081_v62 = vpack.c.bf16 %v3070_v49, %v3069_v36  ;;  %16444 = vst [vmem:[#allocation109_spill] sm:$0xff] %v13194_v19 }
 0x378   : > { %v13186_v6 = vsel %vm3313_vm11, %v3315_v55, %v3317_v29  ;;  %v13189_v34 = vsel %vm3313_vm11, %v3317_v29, %v3319_v18  ;;  %v3074_v55 = vmul.f32 %v13173_v54, %v12217_v5  ;;  %v3073_v29 = vmul.f32 %v13194_v19, %v12234_v60 }
 0x379   : > { %v13125_v42 = vpop.permute.xlu1 %3278  ;;  %10283 = vmatmul.mubr.msk.bf16.gmra.mrb[0].mxu1 %vm881_vm2, %v2808_v15  ;;  %v3100_v15 = vrot.slane %v3079_v53, 1  ;;  %16442 = vst [vmem:[#allocation107_spill] sm:$0xff] %v13186_v6  ;;  %16443 = vst [vmem:[#allocation108_spill] sm:$0xff] %v13189_v34  ;;  %v3104_v13 = vrot.slane %v3081_v62, 1 }
 0x37a   : > { %10290 = vmatprep.mubr.msk.bf16.mxu1 %vm881_vm2, %v3097_v20  ;;  %v3034_v20 = vrot.slane %v12956_v12, 6  ;;  %v3099_v12 = vsel %vm2147_vm6, %v3096_v2, %v3098_v16  ;;  %v3080_v2 = vpack.c.bf16 %v3068_v52, %v3067_v23  ;;  %v3327_v52 = vrot.slane %v13079_v58, 5  ;;  %v13221_v23 = vpop.permute.xlu0 %3311 }
 0x37b   : > { %v3101_v37 = vsel %vm2147_vm6, %v3098_v16, %v3100_v15  ;;  %v3365_v58 = vmul.f32 %v13189_v34, %v12352_v39 }
 0x37c   : > { %v13162_v53 = vsel %vm3010_vm10, %v3034_v20, %v3036_v38  ;;  %v13183_v4 = vsel %vm3010_vm10, %v3032_v59, %v3034_v20  ;;  %v3321_v59 = vrot.slane %v13125_v42, 5  ;;  %v13209_v38 = vld [vmem:[%s16102_s3 + $0x94] sm:$0xff]   ;;  %v3102_v49 = vrot.slane %v3080_v2, 1 }
 0x37d   : > { %v3285_v47 = vpop.permute.xlu1 %3284  ;;  %16438 = vst [vmem:[#allocation103_spill] sm:$0xff] %v13162_v53  ;;  %16441 = vst [vmem:[#allocation106_spill] sm:$0xff] %v13183_v4  ;;  %v3072_v16 = vmul.f32 %v13162_v53, %v12237_v1  ;;  %v3071_v42 = vmul.f32 %v13183_v4, %v12207_v8  ;;  %v3083_v4 = vpack.c.bf16 %v3074_v55, %v3073_v29 }
 0x37e   : > { %v3325_v20 = vrot.slane %v3285_v47, 5  ;;  %v3362_v47 = vmul.f32 %v13155_v25, %v12310_v50  ;;  %v13224_v36 = vsel %vm3313_vm11, %v3319_v18, %v3321_v59  ;;  %v3103_v19 = vsel %vm2147_vm6, %v3100_v15, %v3102_v49 }
 0x37f   : > { %16445 = vst [vmem:[#allocation110_spill] sm:$0xff] %v13224_v36 }
 0x380   : > { %v3379_v61 = vpack.c.bf16 %v3363_v40, %v3362_v47  ;;  %v13230_v2 = vsel %vm3313_vm11, %v3323_v24, %v3325_v20  ;;  %v13233_v34 = vsel %vm3313_vm11, %v3325_v20, %v3327_v52  ;;  %v16449_v20 = vrot.slane %v13063_v27, 6  ;;  %v13255_v47 = vpop.permute.xlu0 %1299 }
 0x381   : > { %v13179_v9 = vpop.permute.xlu1 %3290  ;;  %10291 = vmatmul.mubr.msk.bf16.vlgmr.msra.gmra.mrb[4].mxu1 %vm881_vm2, %v3099_v12  ;;  %v13227_v12 = vsel %vm3313_vm11, %v3321_v59, %v3323_v24  ;;  %16447 = vst [vmem:[#allocation112_spill] sm:$0xff] %v13230_v2  ;;  %16448 = vst [vmem:[#allocation113_spill] sm:$0xff] %v13233_v34  ;;  %v3366_v59 = vmul.f32 %v13224_v36, %v12359_v51  ;;  %v3105_v24 = vsel %vm2147_vm6, %v3102_v49, %v3104_v13 }
 0x382   : > { %10294 = vmatprep.mubr.msk.bf16.mxu1 %vm881_vm2, %v3101_v37  ;;  %10307 = vmatpush3.bf16.msra.mxu1 %v13043_v7  ;;  %v3364_v7 = vmul.f32 %v13186_v6, %v12327_v14  ;;  %16446 = vst [vmem:[#allocation111_spill] sm:$0xff] %v13227_v12  ;;  %v3082_v6 = vpack.c.bf16 %v3072_v16, %v3071_v42  ;;  %v3331_v16 = vrot.slane %v13109_v46, 5  ;;  %v3329_v40 = vrot.slane %v13179_v9, 5 }
 0x383   : > { %10308 = vmatprep.subr.bf16.mxu1 %v11199_v45  ;;  %v3368_v55 = vmul.f32 %v13230_v2, %v12386_v21  ;;  %v3369_v15 = vmul.f32 %v13233_v34, %v12422_v32  ;;  %v3075_v42 = vmul.f32 0.0, %v16449_v20  ;;  %v3335_v49 = vrot.slane %v13132_v63, 5 }
 0x384   : > { %v3380_v62 = vpack.c.bf16 %v3365_v58, %v3364_v7  ;;  %v3106_v7 = vrot.slane %v3082_v6, 1  ;;  %v3108_v58 = vrot.slane %v3083_v4, 1  ;;  %v3339_v34 = vrot.slane %v13168_v17, 5 }
 0x385   : > { %v3297_v37 = vpop.permute.xlu1 %3296  ;;  %v3382_v27 = vpack.c.bf16 %v3369_v15, %v3368_v55  ;;  %v13261_v6 = vsel %vm3313_vm11, %v3327_v52, %v3329_v40  ;;  %v13264_v63 = vsel %vm3313_vm11, %v3329_v40, %v3331_v16  ;;  %v3393_v4 = vshll.u32 %v3379_v61, 16 }
 0x386   : > { %10309 = vmatpush3.bf16.msra.mxu1 %v11199_v45  ;;  %v3367_v45 = vmul.f32 %v13227_v12, %v12389_v56  ;;  %v3333_v46 = vrot.slane %v3297_v37, 5  ;;  %v3398_v2 = vshrl.u32 %v3380_v62, 16  ;;  %v3401_v12 = vshll.u32 %v3380_v62, 16  ;;  %16450 = vst [vmem:[#allocation114_spill] sm:$0xff] %v13261_v6  ;;  %16451 = vst [vmem:[#allocation115_spill] sm:$0xff] %v13264_v63 }
 0x387   : > { %10326 = vmatprep.subr.bf16.mxu1 %v13209_v38  ;;  %v3084_v37 = vpack.c.bf16 %v3075_v42, %v3075_v42  ;;  %v3107_v20 = vsel %vm2147_vm6, %v3104_v13, %v3106_v7  ;;  %v3109_v62 = vsel %vm2147_vm6, %v3106_v7, %v3108_v58  ;;  %v3370_v40 = vmul.f32 %v13261_v6, %v12428_v26 }
 0x388   : > { %v3381_v36 = vpack.c.bf16 %v3367_v45, %v3366_v59  ;;  %v13269_v9 = vsel %vm3313_vm11, %v3331_v16, %v3333_v46  ;;  %v13272_v59 = vsel %vm3313_vm11, %v3333_v46, %v3335_v49  ;;  %v3400_v45 = vrot.slane %v3398_v2, 1 }
 0x389   : > { %v13237_v18 = vpop.permute.xlu1 %3302  ;;  %10295 = vmatmul.mubr.msk.bf16.gmra.mrb[8].mxu1 %vm881_vm2, %v3103_v19  ;;  %v3390_v19 = vshrl.u32 %v3379_v61, 16  ;;  %16452 = vst [vmem:[#allocation116_spill] sm:$0xff] %v13269_v9  ;;  %16453 = vst [vmem:[#allocation117_spill] sm:$0xff] %v13272_v59  ;;  %v3403_v55 = vrot.slane %v3401_v12, 2  ;;  %v3371_v61 = vmul.f32 %v13264_v63, %v12461_v33  ;;  %v3395_v42 = vrot.slane %v3393_v4, 2 }
 0x38a   : > { %10298 = vmatprep.mubr.msk.bf16.mxu1 %vm881_vm2, %v3105_v24  ;;  %v1345_v24 = vrot.slane %v13255_v47, 3  ;;  %v3407_v52 = vshrl.u32 %v3381_v36, 16  ;;  %v3410_v15 = vshll.u32 %v3381_v36, 16  ;;  %v3416_v7 = vshrl.u32 %v3382_v27, 16  ;;  %v13280_v47 = vpop.permute.xlu0 %1308 }
 0x38b   : > { %v3392_v17 = vrot.slane %v3390_v19, 1  ;;  %v3419_v19 = vshll.u32 %v3382_v27, 16  ;;  %v13282_v12 = vrot.slane %v3084_v37, 1  ;;  %v3372_v36 = vmul.f32 %v13269_v9, %v12458_v43 }
 0x38c   : > { %v3373_v2 = vmul.f32 %v13272_v59, %v12204_v22  ;;  %v3337_v46 = vrot.slane %v13237_v18, 5  ;;  %v3404_v4 = vor.u32 %v3403_v55, %v3400_v45  ;;  %v3409_v27 = vrot.slane %v3407_v52, 1 }
 0x38d   : > { %v3309_v29 = vpop.permute.xlu1 %3308  ;;  %16454 = vst [vmem:[#allocation118_spill] sm:$0xff] %v13282_v12  ;;  %v3383_v63 = vpack.c.bf16 %v3371_v61, %v3370_v40  ;;  %v3396_v54 = vor.u32 %v3395_v42, %v3392_v17  ;;  %v3418_v53 = vrot.slane %v3416_v7, 1  ;;  %v3421_v59 = vrot.slane %v3419_v19, 2 }
 0x38e   : > { %v1351_v18 = vrot.slane %v13280_v47, 3  ;;  %v13298_v11 = vsel %vm3313_vm11, %v3335_v49, %v3337_v46  ;;  %v3111_v45 = vsel %vm2147_vm6, %v3108_v58, %v13282_v12  ;;  %v13303_v55 = vsel %vm3313_vm11, %v3337_v46, %v3339_v34 }
 0x38f   : > { %16455 = vst [vmem:[#allocation119_spill] sm:$0xff] %v13298_v11  ;;  %16456 = vst [vmem:[#allocation120_spill] sm:$0xff] %v13303_v55  ;;  %v3405_v17 = vsel %vm3388_vm12, %v3396_v54, %v3404_v4  ;;  %v16458_v40 = vrot.slane %v13221_v23, 5  ;;  %v3428_v42 = vshll.u32 %v3383_v63, 16  ;;  %v3422_v19 = vor.u32 %v3421_v59, %v3418_v53 }
 0x390   : > { %v3375_v47 = vmul.f32 %v13303_v55, %v12237_v1  ;;  %v11201_v55 = vld [vmem:[%s16102_s3 + $0x9c] sm:$0xff]  }
 0x391   : > { %10299 = vmatmul.mubr.msk.bf16.gmra.mrb[12].mxu1 %vm881_vm2, %v3107_v20  ;;  %v3341_v20 = vrot.slane %v3309_v29, 5  ;;  %v3384_v29 = vpack.c.bf16 %v3373_v2, %v3372_v36 }
 0x392   : > { %v1297_v13 = vpop.permute.xlu1 %1296  ;;  %10302 = vmatprep.mubr.msk.bf16.mxu1 %vm881_vm2, %v3109_v62 }
 0x393   : > { %v1344_v16 = vrot.slane %v1297_v13, 3  ;;  %v3412_v13 = vrot.slane %v3410_v15, 2  ;;  %v13306_v52 = vsel %vm3313_vm11, %v3339_v34, %v3341_v20  ;;  %v13310_v15 = vpop.permute.xlu0 %1317  ;;  %v13315_v49 = vsel %vm3313_vm11, %v3341_v20, %v16458_v40 }
 0x394   : > { %16457 = vst [vmem:[#allocation121_spill] sm:$0xff] %v13306_v52  ;;  %16459 = vst [vmem:[#allocation122_spill] sm:$0xff] %v13315_v49  ;;  %v3374_v34 = vmul.f32 %v13298_v11, %v12207_v8  ;;  %v3376_v36 = vmul.f32 %v13306_v52, %v12234_v60  ;;  %v3434_v2 = vshrl.u32 %v3384_v29, 16  ;;  %v3437_v46 = vshll.u32 %v3384_v29, 16 }
 0x395   : > { %v13290_v6 = vsel %vm1343_vm3, %v1344_v16, %v1345_v24  ;;  %v13292_v62 = vmul.f32 0.0, %v1344_v16  ;;  %v3413_v61 = vor.u32 %v3412_v13, %v3409_v27  ;;  %v3425_v16 = vshrl.u32 %v3383_v63, 16 }
 0x396   : > { %v1393_v37 = vmul.f32 %v13290_v6, %v12310_v50  ;;  %v1303_v25 = vpop.permute.xlu1 %1302  ;;  %v3377_v63 = vmul.f32 %v13315_v49, %v12217_v5  ;;  %v3436_v11 = vrot.slane %v3434_v2, 1  ;;  %v3439_v49 = vrot.slane %v3437_v46, 2 }
 0x397   : > { %v1347_v9 = vrot.slane %v1303_v25, 3  ;;  %v3624_v40 = vpop.permute.xlu0 %3623 }
 0x398   : > { %v1409_v25 = vpack.c.bf16 %v1393_v37, %v13292_v62  ;;  %v3414_v37 = vsel %vm3388_vm12, %v3404_v4, %v3413_v61  ;;  %v3386_v12 = vpack.c.bf16 %v3377_v63, %v3376_v36 }
 0x399   : > { %10303 = vmatmul.mubr.msk.bf16.gmra.mrb[0].mxu1 %vm881_vm2, %v3111_v45  ;;  %v13321_v7 = vsel %vm1343_vm3, %v1345_v24, %v1347_v9  ;;  %v3427_v45 = vrot.slane %v3425_v16, 1 }
 0x39a   : > { %v1306_v58 = vpop.permute.xlu1 %1305  ;;  %10310 = vmatprep.mubr.msk.bf16.mxu1 %vm881_vm2, %v3405_v17  ;;  %v1420_v20 = vshrl.u32 %v1409_v25, 16  ;;  %v1423_v27 = vshll.u32 %v1409_v25, 16  ;;  %v1394_v13 = vmul.f32 %v13321_v7, %v12330_v57  ;;  %v3423_v25 = vsel %vm3388_vm12, %v3413_v61, %v3422_v19 }
 0x39b   : > { %v1349_v54 = vrot.slane %v1306_v58, 3  ;;  %v3385_v58 = vpack.c.bf16 %v3375_v47, %v3374_v34  ;;  %v3633_v3 = vpop.permute.xlu0 %3632 }
 0x39c   : > { %v1422_v4 = vrot.slane %v1420_v20, 2  ;;  %v1425_v16 = vrot.slane %v1423_v27, 3  ;;  %v3440_v27 = vor.u32 %v3439_v49, %v3436_v11  ;;  %v3675_v28 = vrot.slane %v3633_v3, 4 }
 0x39d   : > { %v13331_v24 = vsel %vm1343_vm3, %v1347_v9, %v1349_v54  ;;  %v13341_v29 = vsel %vm1343_vm3, %v1349_v54, %v1351_v18  ;;  %v3430_v9 = vrot.slane %v3428_v42, 2  ;;  %v3443_v20 = vshrl.u32 %v3385_v58, 16 }
 0x39e   : > { %v1395_v53 = vmul.f32 %v13331_v24, %v12327_v14  ;;  %v13337_v59 = vpop.permute.xlu1 %1311  ;;  %v1396_v61 = vmul.f32 %v13341_v29, %v12352_v39  ;;  %v1426_v31 = vor.u32 %v1425_v16, %v1422_v4  ;;  %v13369_v16 = vrot.slane %v3624_v40, 4 }
 0x39f   : > { %v16259_v17 = vrot.slane %v13337_v59, 3  ;;  %v3431_v2 = vor.u32 %v3430_v9, %v3427_v45  ;;  %v3445_v49 = vrot.slane %v3443_v20, 1  ;;  %v3639_v20 = vpop.permute.xlu0 %3638 }
 0x3a0   : > { %v1410_v52 = vpack.c.bf16 %v1395_v53, %v1394_v13  ;;  %v3446_v13 = vshll.u32 %v3385_v58, 16  ;;  %v3452_v53 = vshrl.u32 %v3386_v12, 16 }
 0x3a1   : > { %v13351_v54 = vsel %vm1343_vm3, %v1351_v18, %v16259_v17  ;;  %10311 = vmatmul.mubr.msk.bf16.vlgmr.msra.gmra.mrb[4].mxu1 %vm881_vm2, %v3414_v37  ;;  %v3455_v17 = vshll.u32 %v3386_v12, 16  ;;  %v3432_v12 = vsel %vm3388_vm12, %v3422_v19, %v3431_v2 }
 0x3a2   : > { %v1397_v42 = vmul.f32 %v13351_v54, %v12359_v51  ;;  %v1428_v34 = vshrl.u32 %v1410_v52, 16  ;;  %v1431_v47 = vshll.u32 %v1410_v52, 16  ;;  %10314 = vmatprep.mubr.msk.bf16.mxu1 %vm881_vm2, %v3423_v25  ;;  %10327 = vmatpush3.bf16.msra.mxu1 %v13209_v38  ;;  %v16460_v25 = vrot.slane %v13221_v23, 5 }
 0x3a3   : > { %v3627_v36 = vpop.permute.xlu1 %3626  ;;  %10328 = vmatprep.subr.bf16.mxu1 %v11201_v55  ;;  %v3448_v58 = vrot.slane %v3446_v13, 2  ;;  %v3441_v23 = vsel %vm3388_vm12, %v3431_v2, %v3440_v27  ;;  %v3454_v3 = vrot.slane %v3452_v53, 1  ;;  %v3679_v13 = vrot.slane %v3639_v20, 4 }
 0x3a4   : > { %v1411_v46 = vpack.c.bf16 %v1397_v42, %v1396_v61  ;;  %v1430_v63 = vrot.slane %v1428_v34, 2  ;;  %v1433_v18 = vrot.slane %v1431_v47, 3  ;;  %v3378_v44 = vmul.f32 0.0, %v16460_v25 }
 0x3a5   : > { %v3671_v11 = vrot.slane %v3627_v36, 4  ;;  %v3718_v25 = vmul.f32 %v13369_v16, %v12310_v50 }
 0x3a6   : > { %v1437_v35 = vshrl.u32 %v1411_v46, 16  ;;  %v1440_v37 = vshll.u32 %v1411_v46, 16  ;;  %v1434_v52 = vor.u32 %v1433_v18, %v1430_v63  ;;  %10329 = vmatpush3.bf16.msra.mxu1 %v11201_v55  ;;  %v3457_v55 = vrot.slane %v3455_v17, 2 }
 0x3a7   : > { %v3630_v38 = vpop.permute.xlu1 %3629  ;;  %v13382_v36 = vsel %vm732_vm0, %v13369_v16, %v3671_v11 }
 0x3a8   : > { %v1439_v45 = vrot.slane %v1437_v35, 2  ;;  %v1442_v9 = vrot.slane %v1440_v37, 3  ;;  %v3673_v61 = vrot.slane %v3630_v38, 4  ;;  %v1435_v42 = vsel %vm1418_vm4, %v1426_v31, %v1434_v52 }
 0x3a9   : > { %10170 = vmatprep.mubr.msk.bf16.mxu0 %vm881_vm2, %v1435_v42  ;;  %10315 = vmatmul.mubr.msk.bf16.gmra.mrb[8].mxu1 %vm881_vm2, %v3432_v12  ;;  %v3387_v35 = vpack.c.bf16 %v3378_v44, %v3378_v44  ;;  %v3449_v44 = vor.u32 %v3448_v58, %v3445_v49  ;;  %v3458_v46 = vor.u32 %v3457_v55, %v3454_v3 }
 0x3aa   : > { %v13367_v4 = vor.u32 %v1442_v9, %v1439_v45  ;;  %v13372_v31 = vsel %vm732_vm0, %v3671_v11, %v3673_v61  ;;  %v13375_v34 = vsel %vm732_vm0, %v3673_v61, %v3675_v28  ;;  %10318 = vmatprep.mubr.msk.bf16.mxu1 %vm881_vm2, %v3441_v23  ;;  %v3719_v53 = vmul.f32 %v13382_v36, %v12330_v57 }
 0x3ab   : > { %v3636_v19 = vpop.permute.xlu1 %3635  ;;  %v3720_v17 = vmul.f32 %v13372_v31, %v12327_v14  ;;  %v3721_v40 = vmul.f32 %v13375_v34, %v12352_v39  ;;  %v3461_v63 = vshrl.u32 %v3387_v35, 16  ;;  %v3464_v18 = vshll.u32 %v3387_v35, 16  ;;  %v3642_v35 = vpop.permute.xlu0 %3641 }
 0x3ac   : > { %v1444_v47 = vsel %vm1418_vm4, %v1434_v52, %v13367_v4  ;;  %v3677_v2 = vrot.slane %v3636_v19, 4  ;;  %v1357_v52 = vrot.slane %v13310_v15, 3  ;;  %v3450_v14 = vsel %vm3388_vm12, %v3440_v27, %v3449_v44 }
 0x3ad   : > { %10171 = vmatmul.mubr.msk.bf16.vlgmr.msra.gmra.mrb[16].mxu0 %vm881_vm2, %v1444_v47  ;;  %v3459_v9 = vsel %vm3388_vm12, %v3449_v44, %v3458_v46  ;;  %v3736_v57 = vpack.c.bf16 %v3721_v40, %v3720_v17  ;;  %v3463_v61 = vrot.slane %v3461_v63, 1  ;;  %v3466_v42 = vrot.slane %v3464_v18, 2 }
 0x3ae   : > { %v13396_v39 = vsel %vm732_vm0, %v3675_v28, %v3677_v2  ;;  %v13399_v45 = vsel %vm732_vm0, %v3677_v2, %v3679_v13  ;;  %v16462_v15 = vrot.slane %v13337_v59, 3  ;;  %v3735_v49 = vpack.c.bf16 %v3719_v53, %v3718_v25 }
 0x3af   : > { %16461 = vst [vmem:[#allocation123_spill] sm:$0xff] %v13396_v39  ;;  %v3722_v58 = vmul.f32 %v13396_v39, %v12359_v51  ;;  %v3723_v59 = vmul.f32 %v13399_v45, %v12389_v56  ;;  %v3754_v55 = vrot.slane %v3736_v57, 2  ;;  %v13420_v19 = vor.u32 %v3466_v42, %v3463_v61 }
 0x3b0   : > { %v1315_v37 = vpop.permute.xlu1 %1314  ;;  %v3753_v44 = vrot.slane %v3735_v49, 2  ;;  %v3681_v20 = vrot.slane %v3642_v35, 4 }
 0x3b1   : > { %v1355_v38 = vrot.slane %v1315_v37, 3  ;;  %10319 = vmatmul.mubr.msk.bf16.gmra.mrb[12].mxu1 %vm881_vm2, %v3450_v14  ;;  %v3737_v2 = vpack.c.bf16 %v3723_v59, %v3722_v58  ;;  %v3468_v51 = vsel %vm3388_vm12, %v3458_v46, %v13420_v19 }
 0x3b2   : > { %10322 = vmatprep.mubr.msk.bf16.mxu1 %vm881_vm2, %v3459_v9  ;;  %v13438_v57 = vsel %vm732_vm0, %v3679_v13, %v3681_v20 }
 0x3b3   : > { %v13406_v50 = vsel %vm1343_vm3, %v16462_v15, %v1355_v38  ;;  %v13409_v27 = vsel %vm1343_vm3, %v1355_v38, %v1357_v52  ;;  %v3756_v46 = vrot.slane %v3737_v2, 2  ;;  %16463 = vst [vmem:[#allocation124_spill] sm:$0xff] %v13438_v57  ;;  %v3724_v58 = vmul.f32 %v13438_v57, %v12386_v21 }
 0x3b4   : > { %v1398_v28 = vmul.f32 %v13406_v50, %v12389_v56  ;;  %v1399_v11 = vmul.f32 %v13409_v27, %v12386_v21  ;;  %v1321_v12 = vpop.permute.xlu1 %1320  ;;  %v3755_v56 = vsel %vm1641_vm5, %v3753_v44, %v3754_v55 }
 0x3b5   : > { %v1359_v23 = vrot.slane %v1321_v12, 3  ;;  %v3757_v59 = vsel %vm1641_vm5, %v3754_v55, %v3756_v46 }
 0x3b6   : > { %v1412_v3 = vpack.c.bf16 %v1399_v11, %v1398_v28  ;;  %v3651_v28 = vpop.permute.xlu0 %3650 }
 0x3b7   : > { %v13423_v63 = vsel %vm1343_vm3, %v1357_v52, %v1359_v23 }
 0x3b8   : > { %v1324_v47 = vpop.permute.xlu1 %1323  ;;  %v1446_v17 = vshrl.u32 %v1412_v3, 16  ;;  %v1449_v40 = vshll.u32 %v1412_v3, 16  ;;  %v1400_v52 = vmul.f32 %v13423_v63, %v12422_v32  ;;  %v3687_v3 = vrot.slane %v3651_v28, 4 }
 0x3b9   : > { %v1361_v18 = vrot.slane %v1324_v47, 3  ;;  %10323 = vmatmul.mubr.msk.bf16.gmra.mrb[0].mxu1 %vm881_vm2, %v3468_v51 }
 0x3ba   : > { %v1448_v53 = vrot.slane %v1446_v17, 2  ;;  %v1451_v37 = vrot.slane %v1449_v40, 3  ;;  %10330 = vmatprep.mubr.msk.bf16.mxu1 %vm881_vm2, %v3755_v56  ;;  %v3654_v2 = vpop.permute.xlu0 %3653 }
 0x3bb   : > { %v13430_v25 = vsel %vm1343_vm3, %v1359_v23, %v1361_v18 }
 0x3bc   : > { %v1401_v38 = vmul.f32 %v13430_v25, %v12428_v26  ;;  %v1452_v14 = vor.u32 %v1451_v37, %v1448_v53 }
 0x3bd   : > { %v3645_v9 = vpop.permute.xlu1 %3644 }
 0x3be   : > { %v1413_v61 = vpack.c.bf16 %v1401_v38, %v1400_v52  ;;  %v3683_v42 = vrot.slane %v3645_v9, 4  ;;  %v1453_v15 = vsel %vm1418_vm4, %v13367_v4, %v1452_v14  ;;  %v3689_v38 = vrot.slane %v3654_v2, 4  ;;  %v3660_v9 = vpop.permute.xlu0 %3659 }
 0x3bf   : > { %10174 = vmatprep.mubr.msk.bf16.mxu0 %vm881_vm2, %v1453_v15 }
 0x3c0   : > { %v13444_v11 = vsel %vm732_vm0, %v3681_v20, %v3683_v42  ;;  %v1455_v12 = vshrl.u32 %v1413_v61, 16  ;;  %v1458_v49 = vshll.u32 %v1413_v61, 16 }
 0x3c1   : > { %16464 = vst [vmem:[#allocation125_spill] sm:$0xff] %v13444_v11  ;;  %v3725_v13 = vmul.f32 %v13444_v11, %v12422_v32  ;;  %v3648_v23 = vpop.permute.xlu1 %3647  ;;  %10331 = vmatmul.mubr.msk.bf16.vlgmr.msra.gmra.mrb[4].mxu1 %vm881_vm2, %v3757_v59 }
 0x3c2   : > { %v3685_v4 = vrot.slane %v3648_v23, 4  ;;  %v1457_v35 = vrot.slane %v1455_v12, 2  ;;  %v1460_v47 = vrot.slane %v1458_v49, 3  ;;  %v13480_v49 = vsel %vm732_vm0, %v3687_v3, %v3689_v38 }
 0x3c3   : > { %v3738_v44 = vpack.c.bf16 %v3725_v13, %v3724_v58  ;;  %16468 = vst [vmem:[#allocation128_spill] sm:$0xff] %v13480_v49 }
 0x3c4   : > { %v13453_v17 = vsel %vm732_vm0, %v3683_v42, %v3685_v4  ;;  %v13456_v40 = vsel %vm732_vm0, %v3685_v4, %v3687_v3  ;;  %v1461_v21 = vor.u32 %v1460_v47, %v1457_v35  ;;  %v3666_v4 = vpop.permute.xlu0 %3665 }
 0x3c5   : > { %16465 = vst [vmem:[#allocation126_spill] sm:$0xff] %v13453_v17  ;;  %16466 = vst [vmem:[#allocation127_spill] sm:$0xff] %v13456_v40  ;;  %v3726_v32 = vmul.f32 %v13453_v17, %v12428_v26  ;;  %v3727_v55 = vmul.f32 %v13456_v40, %v12461_v33  ;;  %v3758_v51 = vrot.slane %v3738_v44, 2  ;;  %v16467_v26 = vrot.slane %v12177_v0, 3 }
 0x3c6   : > { %v1327_v20 = vpop.permute.xlu1 %1326  ;;  %v1462_v56 = vsel %vm1418_vm4, %v1452_v14, %v1461_v21  ;;  %v3693_v0 = vrot.slane %v3660_v9, 4 }
 0x3c7   : > { %v1363_v53 = vrot.slane %v1327_v20, 3  ;;  %10175 = vmatmul.mubr.msk.bf16.gmra.mrb[20].mxu0 %vm881_vm2, %v1462_v56  ;;  %v3759_v37 = vsel %vm1641_vm5, %v3756_v46, %v3758_v51  ;;  %v3739_v52 = vpack.c.bf16 %v3727_v55, %v3726_v32 }
 0x3c8   : > { %10334 = vmatprep.mubr.msk.bf16.mxu1 %vm881_vm2, %v3759_v37 }
 0x3c9   : > { %v13467_v61 = vsel %vm1343_vm3, %v1361_v18, %v1363_v53  ;;  %v13472_v42 = vsel %vm1343_vm3, %v1363_v53, %v16467_v26  ;;  %v3760_v15 = vrot.slane %v3739_v52, 2 }
 0x3ca   : > { %v1402_v14 = vmul.f32 %v13467_v61, %v12461_v33  ;;  %v1403_v46 = vmul.f32 %v13472_v42, %v12458_v43  ;;  %v3728_v33 = vmul.f32 %v13480_v49, %v12458_v43 }
 0x3cb   : > { %v3657_v28 = vpop.permute.xlu1 %3656  ;;  %v3761_v12 = vsel %vm1641_vm5, %v3758_v51, %v3760_v15  ;;  %v3697_v51 = vrot.slane %v3666_v4, 4 }
 0x3cc   : > { %v1414_v18 = vpack.c.bf16 %v1403_v46, %v1402_v14  ;;  %v3691_v58 = vrot.slane %v3657_v28, 4  ;;  %10335 = vmatmul.mubr.msk.bf16.gmra.mrb[8].mxu1 %vm881_vm2, %v3761_v12 }
 0x3ce   : > { %v13484_v13 = vsel %vm732_vm0, %v3689_v38, %v3691_v58  ;;  %v1464_v59 = vshrl.u32 %v1414_v18, 16  ;;  %v1467_v23 = vshll.u32 %v1414_v18, 16  ;;  %v13491_v3 = vsel %vm732_vm0, %v3691_v58, %v3693_v0 }
 0x3cf   : > { %16469 = vst [vmem:[#allocation129_spill] sm:$0xff] %v13484_v13  ;;  %v3729_v35 = vmul.f32 %v13484_v13, %v12204_v22  ;;  %v3663_v47 = vpop.permute.xlu1 %3662  ;;  %16470 = vst [vmem:[#allocation130_spill] sm:$0xff] %v13491_v3  ;;  %v3730_v43 = vmul.f32 %v13491_v3, %v12207_v8 }
 0x3d0   : > { %v3695_v44 = vrot.slane %v3663_v47, 4  ;;  %v1466_v2 = vrot.slane %v1464_v59, 2  ;;  %v1469_v32 = vrot.slane %v1467_v23, 3  ;;  %v13529_v47 = vld [vmem:[%s16104_s5 + $0xc] ss:$0 sm:$0xff] }
 0x3d1   : > { %v3740_v55 = vpack.c.bf16 %v3729_v35, %v3728_v33 }
 0x3d2   : > { %v13494_v20 = vsel %vm732_vm0, %v3693_v0, %v3695_v44  ;;  %v1470_v56 = vor.u32 %v1469_v32, %v1466_v2  ;;  %v13501_v52 = vsel %vm732_vm0, %v3695_v44, %v3697_v51 }
 0x3d3   : > { %16471 = vst [vmem:[#allocation131_spill] sm:$0xff] %v13494_v20  ;;  %v3731_v53 = vmul.f32 %v13494_v20, %v12237_v1  ;;  %v3669_v22 = vpop.permute.xlu1 %3668  ;;  %v3762_v37 = vrot.slane %v3740_v55, 2  ;;  %16472 = vst [vmem:[#allocation132_spill] sm:$0xff] %v13501_v52  ;;  %v3732_v28 = vmul.f32 %v13501_v52, %v12234_v60 }
 0x3d4   : > { %v3699_v38 = vrot.slane %v3669_v22, 4  ;;  %v1471_v9 = vsel %vm1418_vm4, %v1461_v21, %v1470_v56  ;;  %v1480_v26 = vsel %vm1418_vm4, %v1470_v56, %v12253_v48 }
 0x3d5   : > { %10178 = vmatprep.mubr.msk.bf16.mxu0 %vm881_vm2, %v1471_v9  ;;  %v3763_v14 = vsel %vm1641_vm5, %v3760_v15, %v3762_v37  ;;  %v3741_v46 = vpack.c.bf16 %v3731_v53, %v3730_v43 }
 0x3d6   : > { %v13509_v8 = vsel %vm732_vm0, %v3697_v51, %v3699_v38  ;;  %v3734_v1 = vmul.f32 0.0, %v3699_v38  ;;  %10179 = vmatmul.mubr.msk.bf16.gmra.mrb[24].mxu0 %vm881_vm2, %v1480_v26  ;;  %10338 = vmatprep.mubr.msk.bf16.mxu1 %vm881_vm2, %v3763_v14 }
 0x3d7   : > { %16473 = vst [vmem:[#allocation133_spill] sm:$0xff] %v13509_v8  ;;  %v3733_v21 = vmul.f32 %v13509_v8, %v12217_v5  ;;  %v3764_v48 = vrot.slane %v3741_v46, 2 }
 0x3d8   : > { %v3743_v12 = vpack.c.bf16 %v3734_v1, %v3734_v1 }
 0x3d9   : > { %v3765_v18 = vsel %vm1641_vm5, %v3762_v37, %v3764_v48  ;;  %v3742_v15 = vpack.c.bf16 %v3733_v21, %v3732_v28  ;;  %v9573_v21 = vld [vmem:[%s11752_s8 + $0x80] sm:$0xff] }
 0x3da   : > { %10339 = vmatmul.mubr.msk.bf16.gmra.mrb[12].mxu1 %vm881_vm2, %v3765_v18  ;;  %v13519_v0 = vrot.slane %v3743_v12, 2  ;;  %v16477_v18 = vld [vmem:[#allocation3_spill] sm:$0xff] }
 0x3db   : > { %v3766_v58 = vrot.slane %v3742_v15, 2  ;;  %v16478_v15 = vmax.f32 %v16477_v18, 0.0 }
 0x3dc   : > { %16474 = vst [vmem:[#allocation134_spill] sm:$0xff] %v13519_v0 }
 0x3dd   : > { %v3767_v59 = vsel %vm1641_vm5, %v3764_v48, %v3766_v58  ;;  %v3769_v60 = vsel %vm1641_vm5, %v3766_v58, %v13519_v0  ;;  %v16475_v48 = vmax.f32 %v11747_v30, 0.0  ;;  %v16483_v30 = vld [vmem:[#allocation4_spill] sm:$0xff] }
 0x3de   : > { %10342 = vmatprep.mubr.msk.bf16.mxu1 %vm881_vm2, %v3767_v59 }
 0x3e2   : > { %10343 = vmatmul.mubr.msk.bf16.gmra.mrb[0].mxu1 %vm881_vm2, %v3769_v60 }
 0x480   : > { %v10172_v5 = vpop.f32.mrb[16].mxu0 }
 0x481   : > { %v1569_v23 = vpop.f32.mrb[17].mxu0 }
 0x482   : > { %v10173_v33 = vpop.f32.mrb[18].mxu0 }
 0x483   : > { %v1572_v4 = vpop.f32.mrb[19].mxu0 }
 0x494   : > { %v10332_v35 = vpop.f32.mrb[4].mxu1 }
 0x495   : > { %v10750_v44 = vadd.f32 %v10332_v35, %v10172_v5  ;;  %v3840_v2 = vpop.f32.mrb[5].mxu1  ;;  %v9574_v5 = vld [vmem:[%s11752_s8 + $0x88] sm:$0xff] }
 0x496   : > { %v10751_v32 = vadd.f32 %v3840_v2, %v1569_v23  ;;  %v10333_v55 = vpop.f32.mrb[6].mxu1  ;;  %v9575_v23 = vld [vmem:[%s11752_s8 + $0x90] sm:$0xff] }
 0x497   : > { %v3926_v51 = vadd.f32 %v10750_v44, %v13529_v47  ;;  %v10752_v56 = vadd.f32 %v10333_v55, %v10173_v33  ;;  %v3843_v43 = vpop.f32.mrb[7].mxu1  ;;  %v16480_v33 = vld [vmem:[#allocation5_spill] sm:$0xff] }
 0x498   : > { %v3924_v53 = vadd.f32 %v10751_v32, %v13529_v47  ;;  %v10753_v22 = vadd.f32 %v3843_v43, %v1572_v4  ;;  %v16481_v4 = vmax.f32 %v16480_v33, 0.0  ;;  %v16484_v32 = vmax.f32 %v16483_v30, 0.0 }
 0x499   : > { %v3942_v37 = vmax.f32 %v3926_v51, 0.0  ;;  %v3927_v38 = vadd.f32 %v10752_v56, %v13529_v47 }
 0x49a   : > { %v10176_v9 = vpop.f32.mrb[20].mxu0  ;;  %v3940_v26 = vmax.f32 %v3924_v53, 0.0  ;;  %v3925_v14 = vadd.f32 %v10753_v22, %v13529_v47 }
 0x49b   : > { %v1585_v46 = vpop.f32.mrb[21].mxu0  ;;  %v3943_v1 = vmax.f32 %v3927_v38, 0.0  ;;  %v13538_v12 = vadd.f32 %v3942_v37, %v16475_v48 }
 0x49c   : > { %v10177_v28 = vpop.f32.mrb[22].mxu0  ;;  %v13542_v58 = vadd.f32 %v3940_v26, %v16478_v15  ;;  %v3941_v59 = vmax.f32 %v3925_v14, 0.0  ;;  %v9576_v26 = vld [vmem:[%s11752_s8 + $0x98] sm:$0xff] }
 0x49d   : > { %16476 = vst [vmem:[#allocation135_spill] sm:$0xff] %v13538_v12  ;;  %v1588_v60 = vpop.f32.mrb[23].mxu0  ;;  %v13555_v55 = vadd.f32 %v3943_v1, %v16484_v32  ;;  %v13563_v38 = vadd.f32 %v9575_v23, %v13538_v12 }
 0x49e   : > { %16479 = vst [vmem:[#allocation3_spill] sm:$0xff] %v13542_v58  ;;  %v13548_v35 = vadd.f32 %v3941_v59, %v16481_v4  ;;  %v13551_v2 = vadd.f32 %v9573_v21, %v13542_v58  ;;  %v16486_v4 = vld [vmem:[#allocation7_spill] sm:$0xff] }
 0x49f   : > { %v10336_v44 = vpop.f32.mrb[8].mxu1  ;;  %16485 = vst [vmem:[#allocation4_spill] sm:$0xff] %v13555_v55  ;;  %v13572_v15 = vadd.f32 %v9576_v26, %v13555_v55  ;;  %v16492_v26 = vld [vmem:[#allocation8_spill] sm:$0xff]  ;;  %v16507_v55 = vld [vmem:[#allocation13_spill] sm:$0xff] }
 0x4a0   : > { %16482 = vst [vmem:[#allocation5_spill] sm:$0xff] %v13548_v35  ;;  %v10754_v51 = vadd.f32 %v10336_v44, %v10176_v9  ;;  %v3856_v56 = vpop.f32.mrb[9].mxu1  ;;  %v4005_v53 = vsel %vm881_vm2, %v13551_v2, 0.0  ;;  %v13560_v37 = vadd.f32 %v9574_v5, %v13548_v35  ;;  %v16487_v44 = vmax.f32 %v16486_v4, 0.0 }
 0x4a1   : > { %v10755_v43 = vadd.f32 %v3856_v56, %v1585_v46  ;;  %v10337_v22 = vpop.f32.mrb[10].mxu1  ;;  %4006 = vadd.xlane.f32.xlu0 %v4005_v53  ;;  %v9578_v56 = vld [vmem:[%s11752_s8 + $0xa8] sm:$0xff] }
 0x4a2   : > { %v3930_v14 = vadd.f32 %v10754_v51, %v13529_v47  ;;  %v10756_v1 = vadd.f32 %v10337_v22, %v10177_v28  ;;  %v3859_v21 = vpop.f32.mrb[11].mxu1  ;;  %v4008_v48 = vsel %vm881_vm2, %v13560_v37, 0.0  ;;  %v4011_v28 = vsel %vm881_vm2, %v13563_v38, 0.0 }
 0x4a3   : > { %v3928_v9 = vadd.f32 %v10755_v43, %v13529_v47  ;;  %v10757_v46 = vadd.f32 %v3859_v21, %v1588_v60  ;;  %4009 = vadd.xlane.f32.xlu1 %v4008_v48  ;;  %v9577_v60 = vld [vmem:[%s11752_s8 + $0xa0] sm:$0xff]  ;;  %v4014_v51 = vsel %vm881_vm2, %v13572_v15, 0.0  ;;  %v16489_v43 = vld [vmem:[#allocation6_spill] sm:$0xff]  ;;  %v16495_v21 = vld [vmem:[#allocation9_spill] sm:$0xff] }
 0x4a4   : > { %v3931_v18 = vadd.f32 %v10756_v1, %v13529_v47  ;;  %v3946_v59 = vmax.f32 %v3930_v14, 0.0  ;;  %v16490_v53 = vmax.f32 %v16489_v43, 0.0  ;;  %v16493_v14 = vmax.f32 %v16492_v26, 0.0 }
 0x4a5   : > { %v3944_v5 = vmax.f32 %v3928_v9, 0.0  ;;  %v3929_v23 = vadd.f32 %v10757_v46, %v13529_v47  ;;  %4012 = vadd.xlane.f32.xlu0 %v4011_v28  ;;  %v16496_v9 = vmax.f32 %v16495_v21, 0.0  ;;  %v9580_v28 = vld [vmem:[%s11752_s8 + $0xb8] sm:$0xff] }
 0x4a6   : > { %v3947_v33 = vmax.f32 %v3931_v18, 0.0  ;;  %v13587_v22 = vadd.f32 %v3946_v59, %v16490_v53 }
 0x4a7   : > { %v13580_v30 = vadd.f32 %v3944_v5, %v16487_v44  ;;  %v3945_v32 = vmax.f32 %v3929_v23, 0.0  ;;  %v9579_v23 = vld [vmem:[%s11752_s8 + $0xb0] sm:$0xff] }
 0x4a8   : > { %16491 = vst [vmem:[#allocation6_spill] sm:$0xff] %v13587_v22  ;;  %v13591_v1 = vadd.f32 %v3947_v33, %v16493_v14  ;;  %v13610_v53 = vadd.f32 %v9579_v23, %v13587_v22  ;;  %v9583_v22 = vld [vmem:[%s11752_s8 + $0xd0] sm:$0xff] }
 0x4a9   : > { %16488 = vst [vmem:[#allocation7_spill] sm:$0xff] %v13580_v30  ;;  %v13595_v46 = vadd.f32 %v3945_v32, %v16496_v9  ;;  %v10180_v48 = vpop.f32.mrb[24].mxu0  ;;  %v13598_v18 = vadd.f32 %v9577_v60, %v13580_v30  ;;  %4015 = vadd.xlane.f32.xlu0 %v4014_v51 }
 0x4aa   : > { %16494 = vst [vmem:[#allocation8_spill] sm:$0xff] %v13591_v1  ;;  %v1601_v5 = vpop.f32.mrb[25].mxu0  ;;  %v13613_v60 = vadd.f32 %v9580_v28, %v13591_v1  ;;  %v4023_v23 = vsel %vm881_vm2, %v13610_v53, 0.0 }
 0x4ab   : > { %16497 = vst [vmem:[#allocation9_spill] sm:$0xff] %v13595_v46  ;;  %v10181_v4 = vpop.f32.mrb[26].mxu0  ;;  %v4017_v59 = vsel %vm881_vm2, %v13598_v18, 0.0  ;;  %v13605_v44 = vadd.f32 %v9578_v56, %v13595_v46 }
 0x4ac   : > { %v1604_v33 = vpop.f32.mrb[27].mxu0  ;;  %v4026_v28 = vsel %vm881_vm2, %v13613_v60, 0.0 }
 0x4ad   : > { %v10340_v43 = vpop.f32.mrb[12].mxu1  ;;  %v4020_v32 = vsel %vm881_vm2, %v13605_v44, 0.0  ;;  %4018 = vadd.xlane.f32.xlu0 %v4017_v59 }
 0x4ae   : > { %v10758_v51 = vadd.f32 %v10340_v43, %v10180_v48  ;;  %4021 = vadd.xlane.f32.xlu1 %v4020_v32  ;;  %v3872_v26 = vpop.f32.mrb[13].mxu1  ;;  %v16498_v43 = vld [vmem:[#allocation10_spill] sm:$0xff] }
 0x4af   : > { %v10759_v14 = vadd.f32 %v3872_v26, %v1601_v5  ;;  %v10341_v21 = vpop.f32.mrb[14].mxu1  ;;  %v16499_v32 = vmax.f32 %v16498_v43, 0.0  ;;  %v16501_v26 = vld [vmem:[#allocation11_spill] sm:$0xff]  ;;  %v9582_v43 = vld [vmem:[%s11752_s8 + $0xc8] sm:$0xff] }
 0x4b0   : > { %v3934_v56 = vadd.f32 %v10758_v51, %v13529_v47  ;;  %v10760_v9 = vadd.f32 %v10341_v21, %v10181_v4  ;;  %v3875_v46 = vpop.f32.mrb[15].mxu1 }
 0x4b1   : > { %v3932_v30 = vadd.f32 %v10759_v14, %v13529_v47  ;;  %v10761_v35 = vadd.f32 %v3875_v46, %v1604_v33  ;;  %4024 = vadd.xlane.f32.xlu0 %v4023_v23  ;;  %v9581_v33 = vld [vmem:[%s11752_s8 + $0xc0] sm:$0xff]  ;;  %v16502_v14 = vmax.f32 %v16501_v26, 0.0  ;;  %v9584_v26 = vld [vmem:[%s11752_s8 + $0xd8] sm:$0xff] }
 0x4b2   : > { %v3950_v48 = vmax.f32 %v3934_v56, 0.0  ;;  %v3935_v5 = vadd.f32 %v10760_v9, %v13529_v47  ;;  %4027 = vadd.xlane.f32.xlu1 %v4026_v28  ;;  %v16504_v9 = vld [vmem:[#allocation12_spill] sm:$0xff] }
 0x4b3   : > { %v3948_v59 = vmax.f32 %v3932_v30, 0.0  ;;  %v3933_v4 = vadd.f32 %v10761_v35, %v13529_v47  ;;  %v16505_v23 = vmax.f32 %v16504_v9, 0.0 }
 0x4b4   : > { %v13625_v51 = vadd.f32 %v3950_v48, %v16499_v32  ;;  %v3951_v46 = vmax.f32 %v3935_v5, 0.0  ;;  %v16508_v48 = vmax.f32 %v16507_v55, 0.0 }
 0x4b5   : > { %v13630_v21 = vadd.f32 %v3948_v59, %v16502_v14  ;;  %v3949_v56 = vmax.f32 %v3933_v4, 0.0  ;;  %v10344_v1 = vpop.f32.mrb[0].mxu1 }
 0x4b6   : > { %16500 = vst [vmem:[#allocation10_spill] sm:$0xff] %v13625_v51  ;;  %v13635_v28 = vadd.f32 %v3951_v46, %v16505_v23  ;;  %v3938_v35 = vadd.f32 %v10344_v1, %v13529_v47  ;;  %v3888_v30 = vpop.f32.mrb[1].mxu1  ;;  %v13650_v1 = vadd.f32 %v9583_v22, %v13625_v51  ;;  %v16513_v51 = vld [vmem:[#allocation14_spill] sm:$0xff] }
 0x4b7   : > { %16503 = vst [vmem:[#allocation11_spill] sm:$0xff] %v13630_v21  ;;  %v13641_v5 = vadd.f32 %v3949_v56, %v16508_v48  ;;  %v3936_v32 = vadd.f32 %v13529_v47, %v3888_v30  ;;  %v10345_v59 = vpop.f32.mrb[2].mxu1  ;;  %v13645_v4 = vadd.f32 %v9581_v33, %v13630_v21  ;;  %v16510_v48 = vld [vmem:[#allocation15_spill] sm:$0xff] }
 0x4b8   : > { %16506 = vst [vmem:[#allocation12_spill] sm:$0xff] %v13635_v28  ;;  %v3954_v14 = vmax.f32 %v3938_v35, 0.0  ;;  %v3939_v46 = vadd.f32 %v10345_v59, %v13529_v47  ;;  %v3891_v9 = vpop.f32.mrb[3].mxu1  ;;  %v13659_v33 = vadd.f32 %v9584_v26, %v13635_v28  ;;  %v9585_v35 = vld [vmem:[%s11752_s8 + $0xe0] sm:$0xff]  ;;  %v16511_v59 = vmax.f32 %v16510_v48, 0.0 }
 0x4b9   : > { %16509 = vst [vmem:[#allocation13_spill] sm:$0xff] %v13641_v5  ;;  %v3952_v23 = vmax.f32 %v3936_v32, 0.0  ;;  %v3937_v55 = vadd.f32 %v13529_v47, %v3891_v9  ;;  %v4029_v56 = vsel %vm881_vm2, %v13645_v4, 0.0  ;;  %v13656_v30 = vadd.f32 %v9582_v43, %v13641_v5  ;;  %v9586_v9 = vld [vmem:[%s11752_s8 + $0xe8] sm:$0xff] }
 0x4ba   : > { %4030 = vadd.xlane.f32.xlu0 %v4029_v56  ;;  %v3955_v22 = vmax.f32 %v3939_v46, 0.0  ;;  %v16514_v43 = vmax.f32 %v16513_v51, 0.0  ;;  %v16516_v56 = vld [vmem:[#allocation17_spill] sm:$0xff]  ;;  %v4038_v51 = vsel %vm881_vm2, %v13659_v33, 0.0 }
 0x4bb   : > { %v13664_v21 = vadd.f32 %v3952_v23, %v16511_v59  ;;  %v3953_v32 = vmax.f32 %v3937_v55, 0.0  ;;  %v4032_v47 = vsel %vm881_vm2, %v13656_v30, 0.0  ;;  %v16517_v26 = vmax.f32 %v16516_v56, 0.0  ;;  %v9587_v46 = vld [vmem:[%s11752_s8 + $0xf0] sm:$0xff]  ;;  %v16519_v55 = vld [vmem:[#allocation16_spill] sm:$0xff] }
 0x4bc   : > { %4033 = vadd.xlane.f32.xlu1 %v4032_v47  ;;  %v13671_v5 = vadd.f32 %v3954_v14, %v16514_v43  ;;  %v4035_v23 = vsel %vm881_vm2, %v13650_v1, 0.0  ;;  %v16520_v59 = vmax.f32 %v16519_v55, 0.0 }
 0x4bd   : > { %16512 = vst [vmem:[#allocation15_spill] sm:$0xff] %v13664_v21  ;;  %v13675_v28 = vadd.f32 %v3953_v32, %v16517_v26  ;;  %v13680_v48 = vadd.f32 %v9585_v35, %v13664_v21  ;;  %v9588_v32 = vld [vmem:[%s11752_s8 + $0xf8] sm:$0xff] }
 0x4be   : > { %16515 = vst [vmem:[#allocation14_spill] sm:$0xff] %v13671_v5  ;;  %4036 = vadd.xlane.f32.xlu0 %v4035_v23  ;;  %v13685_v47 = vadd.f32 %v3955_v22, %v16520_v59  ;;  %v13696_v35 = vadd.f32 %v9587_v46, %v13671_v5 }
 0x4bf   : > { %16518 = vst [vmem:[#allocation17_spill] sm:$0xff] %v13675_v28  ;;  %v13690_v14 = vadd.f32 %v9586_v9, %v13675_v28  ;;  %v4041_v43 = vsel %vm881_vm2, %v13680_v48, 0.0 }
 0x4c0   : > { %16521 = vst [vmem:[#allocation16_spill] sm:$0xff] %v13685_v47  ;;  %4039 = vadd.xlane.f32.xlu1 %v4038_v51  ;;  %v13701_v22 = vadd.f32 %v9588_v32, %v13685_v47  ;;  %v4047_v9 = vsel %vm881_vm2, %v13696_v35, 0.0 }
 0x4c1   : > { %v4044_v56 = vsel %vm881_vm2, %v13690_v14, 0.0 }
 0x4c2   : > { %4042 = vadd.xlane.f32.xlu0 %v4041_v43  ;;  %v4050_v26 = vsel %vm881_vm2, %v13701_v22, 0.0 }
 0x4c4   : > { %4045 = vadd.xlane.f32.xlu1 %v4044_v56 }
 0x4c6   : > { %4048 = vadd.xlane.f32.xlu0 %v4047_v9 }
 0x4c8   : > { %4051 = vadd.xlane.f32.xlu1 %v4050_v26 }
 0x52e   : > { %v4007_v23 = vpop.xlane.xlu0 %4006 }
 0x52f   : > { %v4053_v46 = vmul.f32 0.03125, %v4007_v23 }
 0x530   : > { %v4010_v55 = vpop.xlane.xlu1 %4009 }
 0x531   : > { %v4054_v59 = vmul.f32 0.03125, %v4010_v55  ;;  %v13711_v32 = vsub.f32 %v13551_v2, %v4053_v46 }
 0x532   : > { %v4013_v51 = vpop.xlane.xlu0 %4012 }
 0x533   : > { %v13708_v43 = vsub.f32 %v13560_v37, %v4054_v59  ;;  %v4055_v28 = vmul.f32 0.03125, %v4013_v51 }
 0x535   : > { %v13714_v56 = vsub.f32 %v13563_v38, %v4055_v28  ;;  %v4086_v9 = vmul.f32 %v13708_v43, %v13708_v43  ;;  %v4085_v38 = vmul.f32 %v13711_v32, %v13711_v32 }
 0x536   : > { %v4016_v47 = vpop.xlane.xlu0 %4015 }
 0x537   : > { %v4056_v26 = vmul.f32 0.03125, %v4016_v47  ;;  %v4104_v21 = vsel %vm881_vm2, %v4086_v9, 0.0  ;;  %v4087_v23 = vmul.f32 %v13714_v56, %v13714_v56 }
 0x538   : > { %4105 = vadd.xlane.f32.xlu1 %v4104_v21 }
 0x539   : > { %v13722_v37 = vsub.f32 %v13572_v15, %v4056_v26  ;;  %v4107_v2 = vsel %vm881_vm2, %v4087_v23, 0.0  ;;  %v4101_v15 = vsel %vm881_vm2, %v4085_v38, 0.0 }
 0x53a   : > { %v4019_v28 = vpop.xlane.xlu0 %4018  ;;  %4108 = vadd.xlane.f32.xlu0 %v4107_v2 }
 0x53b   : > { %v4022_v55 = vpop.xlane.xlu1 %4021  ;;  %v4057_v46 = vmul.f32 0.03125, %v4019_v28  ;;  %v4088_v47 = vmul.f32 %v13722_v37, %v13722_v37 }
 0x53c   : > { %v4058_v59 = vmul.f32 0.03125, %v4022_v55 }
 0x53d   : > { %v13730_v51 = vsub.f32 %v13598_v18, %v4057_v46  ;;  %v4110_v9 = vsel %vm881_vm2, %v4088_v47, 0.0 }
 0x53e   : > { %v13733_v21 = vsub.f32 %v13605_v44, %v4058_v59  ;;  %v4025_v26 = vpop.xlane.xlu0 %4024  ;;  %4102 = vadd.xlane.f32.xlu0 %v4101_v15  ;;  %4111 = vadd.xlane.f32.xlu1 %v4110_v9 }
 0x53f   : > { %v4028_v23 = vpop.xlane.xlu1 %4027  ;;  %v4059_v2 = vmul.f32 0.03125, %v4025_v26  ;;  %v4089_v55 = vmul.f32 %v13730_v51, %v13730_v51 }
 0x540   : > { %v4060_v28 = vmul.f32 0.03125, %v4028_v23  ;;  %v4090_v18 = vmul.f32 %v13733_v21, %v13733_v21 }
 0x541   : > { %v13742_v46 = vsub.f32 %v13610_v53, %v4059_v2  ;;  %v4113_v38 = vsel %vm881_vm2, %v4089_v55, 0.0 }
 0x542   : > { %v13745_v44 = vsub.f32 %v13613_v60, %v4060_v28  ;;  %v4116_v59 = vsel %vm881_vm2, %v4090_v18, 0.0  ;;  %4114 = vadd.xlane.f32.xlu0 %v4113_v38 }
 0x543   : > { %4117 = vadd.xlane.f32.xlu1 %v4116_v59  ;;  %v4091_v47 = vmul.f32 %v13742_v46, %v13742_v46 }
 0x544   : > { %v4092_v15 = vmul.f32 %v13745_v44, %v13745_v44 }
 0x545   : > { %v4119_v9 = vsel %vm881_vm2, %v4091_v47, 0.0 }
 0x546   : > { %v4122_v53 = vsel %vm881_vm2, %v4092_v15, 0.0  ;;  %4120 = vadd.xlane.f32.xlu0 %v4119_v9 }
 0x547   : > { %v4031_v26 = vpop.xlane.xlu0 %4030  ;;  %4123 = vadd.xlane.f32.xlu1 %v4122_v53 }
 0x548   : > { %v4061_v60 = vmul.f32 0.03125, %v4031_v26 }
 0x549   : > { %v4034_v23 = vpop.xlane.xlu1 %4033 }
 0x54a   : > { %v13756_v2 = vsub.f32 %v13645_v4, %v4061_v60  ;;  %v4062_v28 = vmul.f32 0.03125, %v4034_v23 }
 0x54b   : > { %v4037_v55 = vpop.xlane.xlu0 %4036 }
 0x54c   : > { %v13759_v18 = vsub.f32 %v13656_v30, %v4062_v28  ;;  %v4063_v38 = vmul.f32 0.03125, %v4037_v55  ;;  %v4093_v59 = vmul.f32 %v13756_v2, %v13756_v2 }
 0x54d   : > { %v4040_v47 = vpop.xlane.xlu1 %4039 }
 0x54e   : > { %v13764_v15 = vsub.f32 %v13650_v1, %v4063_v38  ;;  %v4064_v9 = vmul.f32 0.03125, %v4040_v47  ;;  %v4125_v53 = vsel %vm881_vm2, %v4093_v59, 0.0  ;;  %v4094_v4 = vmul.f32 %v13759_v18, %v13759_v18 }
 0x54f   : > { %4126 = vadd.xlane.f32.xlu0 %v4125_v53  ;;  %v4043_v26 = vpop.xlane.xlu0 %4042 }
 0x550   : > { %v13770_v60 = vsub.f32 %v13659_v33, %v4064_v9  ;;  %v4065_v30 = vmul.f32 0.03125, %v4043_v26  ;;  %v4128_v23 = vsel %vm881_vm2, %v4094_v4, 0.0  ;;  %v4095_v28 = vmul.f32 %v13764_v15, %v13764_v15 }
 0x551   : > { %4129 = vadd.xlane.f32.xlu1 %v4128_v23  ;;  %v4046_v1 = vpop.xlane.xlu1 %4045 }
 0x552   : > { %v13776_v55 = vsub.f32 %v13680_v48, %v4065_v30  ;;  %v4066_v38 = vmul.f32 0.03125, %v4046_v1  ;;  %v4131_v59 = vsel %vm881_vm2, %v4095_v28, 0.0  ;;  %v4096_v47 = vmul.f32 %v13770_v60, %v13770_v60 }
 0x553   : > { %4132 = vadd.xlane.f32.xlu0 %v4131_v59  ;;  %v4049_v33 = vpop.xlane.xlu0 %4048 }
 0x554   : > { %v13782_v9 = vsub.f32 %v13690_v14, %v4066_v38  ;;  %v4067_v53 = vmul.f32 0.03125, %v4049_v33  ;;  %v4134_v4 = vsel %vm881_vm2, %v4096_v47, 0.0  ;;  %v4097_v26 = vmul.f32 %v13776_v55, %v13776_v55 }
 0x555   : > { %4135 = vadd.xlane.f32.xlu1 %v4134_v4  ;;  %v4052_v48 = vpop.xlane.xlu1 %4051  ;;  %v13812_v4 = vld [vmem:[%s16102_s3 + $0xa4] sm:$0xff]  }
 0x556   : > { %v13788_v30 = vsub.f32 %v13696_v35, %v4067_v53  ;;  %v4068_v23 = vmul.f32 0.03125, %v4052_v48  ;;  %v4137_v28 = vsel %vm881_vm2, %v4097_v26, 0.0  ;;  %v4098_v1 = vmul.f32 %v13782_v9, %v13782_v9  ;;  %v11203_v53 = vld [vmem:[%s16102_s3 + $0xbc] sm:$0xff]  }
 0x557   : > { %4138 = vadd.xlane.f32.xlu0 %v4137_v28 }
 0x558   : > { %v13794_v14 = vsub.f32 %v13701_v22, %v4068_v23  ;;  %v4140_v38 = vsel %vm881_vm2, %v4098_v1, 0.0  ;;  %v4099_v59 = vmul.f32 %v13788_v30, %v13788_v30  ;;  %v11202_v22 = vld [vmem:[%s16102_s3 + $0xb4] sm:$0xff]  }
 0x559   : > { %4141 = vadd.xlane.f32.xlu1 %v4140_v38  ;;  %10346 = vmatprep.subr.bf16.mxu0 %v11202_v22 }
 0x55a   : > { %v4143_v47 = vsel %vm881_vm2, %v4099_v59, 0.0  ;;  %v4100_v35 = vmul.f32 %v13794_v14, %v13794_v14  ;;  %10347 = vmatpush3.bf16.msra.mxu0 %v11202_v22 }
 0x55b   : > { %4144 = vadd.xlane.f32.xlu0 %v4143_v47  ;;  %10348 = vmatprep.subr.bf16.mxu0 %v11203_v53 }
 0x55c   : > { %v4146_v33 = vsel %vm881_vm2, %v4100_v35, 0.0 }
 0x55d   : > { %4147 = vadd.xlane.f32.xlu1 %v4146_v33 }
 0x55e   : > { %10349 = vmatpush3.bf16.msra.mxu0 %v11203_v53 }
 0x55f   : > { %10366 = vmatprep.subr.bf16.mxu0 %v13812_v4 }
 0x5c5   : > { %v4106_v26 = vpop.xlane.xlu1 %4105 }
 0x5c6   : > { %v4150_v48 = vmul.f32 0.03125, %v4106_v26 }
 0x5c7   : > { %v4109_v23 = vpop.xlane.xlu0 %4108 }
 0x5c8   : > { %v4168_v28 = vadd.f32 1e-05, %v4150_v48  ;;  %v4151_v1 = vmul.f32 0.03125, %v4109_v23 }
 0x5ca   : > { %11272 = vrsqrt.f32 %v4168_v28  ;;  %v4169_v38 = vadd.f32 1e-05, %v4151_v1  ;;  %v13818_v28 = vld [vmem:[%s16104_s5 + $0x3] ss:$0 sm:$0xff] }
 0x5cb   : > { %v4103_v59 = vpop.xlane.xlu0 %4102  ;;  %v4112_v47 = vpop.xlane.xlu1 %4111 }
 0x5cc   : > { %11274 = vrsqrt.f32 %v4169_v38  ;;  %v4149_v35 = vmul.f32 0.03125, %v4103_v59  ;;  %v4152_v33 = vmul.f32 0.03125, %v4112_v47 }
 0x5ce   : > { %v4167_v22 = vadd.f32 1e-05, %v4149_v35  ;;  %v4170_v53 = vadd.f32 1e-05, %v4152_v33 }
 0x5cf   : > { %v4115_v5 = vpop.xlane.xlu0 %4114 }
 0x5d0   : > { %v4118_v58 = vpop.xlane.xlu1 %4117  ;;  %11276 = vrsqrt.f32 %v4167_v22  ;;  %v4153_v12 = vmul.f32 0.03125, %v4115_v5 }
 0x5d1   : > { %v4154_v0 = vmul.f32 0.03125, %v4118_v58  ;;  %11278 = vrsqrt.f32 %v4170_v53 }
 0x5d2   : > { %v4171_v52 = vadd.f32 1e-05, %v4153_v12  ;;  %v13824_v12 = vld [vmem:[%s16104_s5 + $0x8] ss:$0 sm:$0xff] }
 0x5d3   : > { %v4172_v26 = vadd.f32 1e-05, %v4154_v0  ;;  %v4121_v3 = vpop.xlane.xlu0 %4120 }
 0x5d4   : > { %v4124_v48 = vpop.xlane.xlu1 %4123  ;;  %v11273_v23 = vpop.eup %11272  ;;  %11280 = vrsqrt.f32 %v4171_v52  ;;  %v4155_v1 = vmul.f32 0.03125, %v4121_v3 }
 0x5d5   : > { %v4156_v38 = vmul.f32 0.03125, %v4124_v48  ;;  %v4200_v59 = vmul.f32 %v11273_v23, %v13708_v43  ;;  %11282 = vrsqrt.f32 %v4172_v26 }
 0x5d6   : > { %v11275_v47 = vpop.eup %11274  ;;  %v4173_v0 = vadd.f32 1e-05, %v4155_v1 }
 0x5d7   : > { %v4174_v58 = vadd.f32 1e-05, %v4156_v38  ;;  %v4220_v5 = vmul.f32 %v13818_v28, %v4200_v59  ;;  %v4201_v35 = vmul.f32 %v11275_v47, %v13714_v56 }
 0x5d8   : > { %11284 = vrsqrt.f32 %v4173_v0 }
 0x5d9   : > { %v13829_v52 = vadd.f32 %v13824_v12, %v4220_v5  ;;  %v4221_v3 = vmul.f32 %v13818_v28, %v4201_v35  ;;  %11286 = vrsqrt.f32 %v4174_v58 }
 0x5da   : > { %v11277_v43 = vpop.eup %11276 }
 0x5db   : > { %v11279_v33 = vpop.eup %11278  ;;  %v13833_v22 = vadd.f32 %v13824_v12, %v4221_v3  ;;  %v4199_v53 = vmul.f32 %v11277_v43, %v13711_v32  ;;  %v4289_v38 = vmul.f32 %v13829_v52, %v13321_v7 }
 0x5dc   : > { %v4127_v26 = vpop.xlane.xlu0 %4126  ;;  %v4202_v48 = vmul.f32 %v11279_v33, %v13722_v37 }
 0x5dd   : > { %v4157_v23 = vmul.f32 0.03125, %v4127_v26  ;;  %v4219_v56 = vmul.f32 %v13818_v28, %v4199_v53  ;;  %v4290_v59 = vmul.f32 %v13833_v22, %v13331_v24 }
 0x5de   : > { %v4130_v1 = vpop.xlane.xlu1 %4129  ;;  %v11281_v47 = vpop.eup %11280  ;;  %v4222_v0 = vmul.f32 %v13818_v28, %v4202_v48 }
 0x5df   : > { %v4175_v58 = vadd.f32 1e-05, %v4157_v23  ;;  %v4158_v5 = vmul.f32 0.03125, %v4130_v1  ;;  %v11283_v35 = vpop.eup %11282  ;;  %v13844_v32 = vadd.f32 %v13824_v12, %v4219_v56  ;;  %v4203_v37 = vmul.f32 %v11281_v47, %v13730_v51 }
 0x5e0   : > { %v4133_v3 = vpop.xlane.xlu0 %4132  ;;  %v4305_v43 = vpack.c.bf16 %v4290_v59, %v4289_v38  ;;  %v4204_v33 = vmul.f32 %v11283_v35, %v13733_v21  ;;  %v13849_v53 = vadd.f32 %v13824_v12, %v4222_v0 }
 0x5e1   : > { %11288 = vrsqrt.f32 %v4175_v58  ;;  %v4176_v7 = vadd.f32 1e-05, %v4158_v5  ;;  %v4223_v24 = vmul.f32 %v13818_v28, %v4203_v37  ;;  %v4159_v26 = vmul.f32 0.03125, %v4133_v3 }
 0x5e2   : > { %v4136_v48 = vpop.xlane.xlu1 %4135  ;;  %v4288_v23 = vmul.f32 %v13844_v32, %v13290_v6  ;;  %v11285_v56 = vpop.eup %11284  ;;  %v4224_v1 = vmul.f32 %v13818_v28, %v4204_v33  ;;  %v4322_v38 = vshrl.u32 %v4305_v43, 16  ;;  %v4325_v5 = vshll.u32 %v4305_v43, 16 }
 0x5e3   : > { %11290 = vrsqrt.f32 %v4176_v7  ;;  %v4160_v51 = vmul.f32 0.03125, %v4136_v48  ;;  %v11287_v59 = vpop.eup %11286  ;;  %v4205_v21 = vmul.f32 %v11285_v56, %v13742_v46  ;;  %v4177_v47 = vadd.f32 1e-05, %v4159_v26 }
 0x5e4   : > { %v4139_v58 = vpop.xlane.xlu0 %4138  ;;  %v4304_v0 = vpack.c.bf16 %v4288_v23, %v13292_v62  ;;  %v13858_v35 = vadd.f32 %v13824_v12, %v4223_v24  ;;  %v4206_v37 = vmul.f32 %v11287_v59, %v13745_v44  ;;  %v13863_v46 = vadd.f32 %v13824_v12, %v4224_v1 }
 0x5e5   : > { %v4178_v6 = vadd.f32 1e-05, %v4160_v51  ;;  %v4161_v3 = vmul.f32 0.03125, %v4139_v58  ;;  %v4225_v33 = vmul.f32 %v13818_v28, %v4205_v21  ;;  %11292 = vrsqrt.f32 %v4177_v47 }
 0x5e6   : > { %v4142_v7 = vpop.xlane.xlu1 %4141  ;;  %v4314_v48 = vshrl.u32 %v4304_v0, 16  ;;  %v4317_v8 = vshll.u32 %v4304_v0, 16  ;;  %v4324_v56 = vrot.slane %v4322_v38, 2  ;;  %v4226_v51 = vmul.f32 %v13818_v28, %v4206_v37 }
 0x5e7   : > { %11294 = vrsqrt.f32 %v4178_v6  ;;  %v4179_v26 = vadd.f32 1e-05, %v4161_v3  ;;  %v4162_v62 = vmul.f32 0.03125, %v4142_v7  ;;  %v13866_v43 = vadd.f32 %v13824_v12, %v4225_v33 }
 0x5e8   : > { %v4145_v24 = vpop.xlane.xlu0 %4144  ;;  %v4316_v23 = vrot.slane %v4314_v48, 2  ;;  %v4319_v44 = vrot.slane %v4317_v8, 3  ;;  %v4327_v0 = vrot.slane %v4325_v5, 3  ;;  %v4291_v1 = vmul.f32 %v13849_v53, %v13341_v29 }
 0x5e9   : > { %11296 = vrsqrt.f32 %v4179_v26  ;;  %v4180_v59 = vadd.f32 1e-05, %v4162_v62  ;;  %v4163_v21 = vmul.f32 0.03125, %v4145_v24  ;;  %v4292_v6 = vmul.f32 %v13858_v35, %v13351_v54 }
 0x5ea   : > { %v4148_v47 = vpop.xlane.xlu1 %4147  ;;  %v4320_v58 = vor.u32 %v4319_v44, %v4316_v23  ;;  %v4328_v38 = vor.u32 %v4327_v0, %v4324_v56  ;;  %v4294_v48 = vmul.f32 %v13866_v43, %v13409_v27  ;;  %v13877_v5 = vadd.f32 %v13824_v12, %v4226_v51 }
 0x5eb   : > { %v11289_v3 = vpop.eup %11288  ;;  %11298 = vrsqrt.f32 %v4180_v59  ;;  %v4181_v33 = vadd.f32 1e-05, %v4163_v21  ;;  %v4164_v7 = vmul.f32 0.03125, %v4148_v47  ;;  %v4306_v37 = vpack.c.bf16 %v4292_v6, %v4291_v1 }
 0x5ec   : > { %v4207_v8 = vmul.f32 %v11289_v3, %v13756_v2  ;;  %v4293_v54 = vmul.f32 %v13863_v46, %v13406_v50  ;;  %v4329_v2 = vsel %vm1418_vm4, %v4320_v58, %v4328_v38  ;;  %v4295_v3 = vmul.f32 %v13877_v5, %v13423_v63 }
 0x5ed   : > { %v11291_v26 = vpop.eup %11290  ;;  %11300 = vrsqrt.f32 %v4181_v33  ;;  %v4182_v29 = vadd.f32 1e-05, %v4164_v7  ;;  %v4331_v23 = vshrl.u32 %v4306_v37, 16  ;;  %10350 = vmatprep.mubr.msk.bf16.mxu0 %vm881_vm2, %v4329_v2  ;;  %v4334_v27 = vshll.u32 %v4306_v37, 16 }
 0x5ee   : > { %v4227_v62 = vmul.f32 %v13818_v28, %v4207_v8  ;;  %v4208_v24 = vmul.f32 %v11291_v26, %v13759_v18  ;;  %v4307_v44 = vpack.c.bf16 %v4294_v48, %v4293_v54 }
 0x5ef   : > { %11302 = vrsqrt.f32 %v4182_v29  ;;  %v11293_v56 = vpop.eup %11292  ;;  %v4333_v21 = vrot.slane %v4331_v23, 2  ;;  %v4336_v0 = vrot.slane %v4334_v27, 3 }
 0x5f0   : > { %v13886_v51 = vadd.f32 %v13824_v12, %v4227_v62  ;;  %v4228_v59 = vmul.f32 %v13818_v28, %v4208_v24  ;;  %v4209_v47 = vmul.f32 %v11293_v56, %v13764_v15  ;;  %v4340_v18 = vshrl.u32 %v4307_v44, 16 }
 0x5f1   : > { %v11295_v50 = vpop.eup %11294  ;;  %v4343_v1 = vshll.u32 %v4307_v44, 16  ;;  %v4337_v37 = vor.u32 %v4336_v0, %v4333_v21 }
 0x5f2   : > { %v13891_v58 = vadd.f32 %v13824_v12, %v4228_v59  ;;  %v4210_v6 = vmul.f32 %v11295_v50, %v13770_v60  ;;  %v4296_v33 = vmul.f32 %v13886_v51, %v13430_v25  ;;  %v4229_v8 = vmul.f32 %v13818_v28, %v4209_v47  ;;  %v11205_v60 = vld [vmem:[%s16102_s3 + $0xac] sm:$0xff]  }
 0x5f3   : > { %v11297_v7 = vpop.eup %11296  ;;  %v4342_v48 = vrot.slane %v4340_v18, 2  ;;  %v4345_v15 = vrot.slane %v4343_v1, 3  ;;  %v4338_v25 = vsel %vm1418_vm4, %v4328_v38, %v4337_v37 }
 0x5f4   : > { %v4230_v26 = vmul.f32 %v13818_v28, %v4210_v6  ;;  %v4211_v29 = vmul.f32 %v11297_v7, %v13776_v55  ;;  %v4308_v54 = vpack.c.bf16 %v4296_v33, %v4295_v3  ;;  %v13905_v63 = vadd.f32 %v13824_v12, %v4229_v8  ;;  %10351 = vmatmul.mubr.msk.bf16.vlgmr.msra.gmra.mrb[28].mxu0 %vm881_vm2, %v4338_v25  ;;  %v16523_v7 = vld [vmem:[#allocation19_spill] sm:$0xff] }
 0x5f5   : > { %v11299_v62 = vpop.eup %11298  ;;  %v4346_v24 = vor.u32 %v4345_v15, %v4342_v48  ;;  %10367 = vmatpush3.bf16.msra.mxu0 %v13812_v4  ;;  %v4297_v38 = vmul.f32 %v13891_v58, %v13467_v61  ;;  %v13929_v4 = vld [vmem:[%s16102_s3 + $0xc4] sm:$0xff]  }
 0x5f6   : > { %v13909_v2 = vadd.f32 %v13824_v12, %v4230_v26  ;;  %v4231_v23 = vmul.f32 %v13818_v28, %v4211_v29  ;;  %v4212_v27 = vmul.f32 %v11299_v62, %v13782_v9  ;;  %v4349_v55 = vshrl.u32 %v4308_v54, 16  ;;  %10368 = vmatprep.subr.bf16.mxu0 %v11205_v60 }
 0x5f7   : > { %v11301_v44 = vpop.eup %11300  ;;  %v4347_v56 = vsel %vm1418_vm4, %v4337_v37, %v4346_v24  ;;  %v4352_v59 = vshll.u32 %v4308_v54, 16  ;;  %v4298_v21 = vmul.f32 %v13905_v63, %v13472_v42  ;;  %v16522_v42 = vld [vmem:[#allocation18_spill] sm:$0xff] }
 0x5f8   : > { %v13921_v50 = vadd.f32 %v13824_v12, %v4231_v23  ;;  %v4232_v9 = vmul.f32 %v13818_v28, %v4212_v27  ;;  %v4213_v47 = vmul.f32 %v11301_v44, %v13788_v30  ;;  %10354 = vmatprep.mubr.msk.bf16.mxu0 %vm881_vm2, %v4347_v56  ;;  %v4351_v0 = vrot.slane %v4349_v55, 2  ;;  %v16524_v44 = vld [vmem:[#allocation21_spill] sm:$0xff] }
 0x5f9   : > { %v11303_v61 = vpop.eup %11302  ;;  %v4354_v18 = vrot.slane %v4352_v59, 3  ;;  %v4309_v1 = vpack.c.bf16 %v4298_v21, %v4297_v38  ;;  %v4299_v6 = vmul.f32 %v13909_v2, %v16522_v42  ;;  %10369 = vmatpush3.bf16.msra.mxu0 %v11205_v60 }
 0x5fa   : > { %v13934_v3 = vadd.f32 %v13824_v12, %v4232_v9  ;;  %v4233_v30 = vmul.f32 %v13818_v28, %v4213_v47  ;;  %v4214_v33 = vmul.f32 %v11303_v61, %v13794_v14  ;;  %v4300_v8 = vmul.f32 %v13921_v50, %v16523_v7  ;;  %10386 = vmatprep.subr.bf16.mxu0 %v13929_v4 }
 0x5fb   : > { %v4355_v37 = vor.u32 %v4354_v18, %v4351_v0  ;;  %v4358_v48 = vshrl.u32 %v4309_v1, 16  ;;  %v4361_v15 = vshll.u32 %v4309_v1, 16  ;;  %v16526_v1 = vld [vmem:[#allocation25_spill] sm:$0xff] }
 0x5fc   : > { %v13941_v26 = vadd.f32 %v13824_v12, %v4233_v30  ;;  %v4234_v29 = vmul.f32 %v13818_v28, %v4214_v33  ;;  %v4310_v54 = vpack.c.bf16 %v4300_v8, %v4299_v6  ;;  %v4301_v14 = vmul.f32 %v13934_v3, %v12241_v41 }
 0x5fd   : > { %v4356_v62 = vsel %vm1418_vm4, %v4346_v24, %v4355_v37  ;;  %v4360_v25 = vrot.slane %v4358_v48, 2  ;;  %v4363_v23 = vrot.slane %v4361_v15, 3  ;;  %v16525_v24 = vld [vmem:[#allocation20_spill] sm:$0xff]  ;;  %v4259_v41 = vmul.f32 %v13844_v32, %v12306_v10  ;;  %v16618_v10 = vld [vmem:[#allocation105_spill] sm:$0xff] }
 0x5fe   : > { %v13949_v27 = vadd.f32 %v13824_v12, %v4234_v29  ;;  %10355 = vmatmul.mubr.msk.bf16.gmra.mrb[32].mxu0 %vm881_vm2, %v4356_v62  ;;  %v4367_v60 = vshrl.u32 %v4310_v54, 16  ;;  %v4370_v55 = vshll.u32 %v4310_v54, 16  ;;  %v4302_v28 = vmul.f32 %v13941_v26, %v16524_v44  ;;  %v16527_v15 = vld [vmem:[#allocation24_spill] sm:$0xff]  ;;  %v16528_v54 = vld [vmem:[#allocation23_spill] sm:$0xff] }
 0x5ff   : > { %v4364_v56 = vor.u32 %v4363_v23, %v4360_v25  ;;  %v4261_v42 = vmul.f32 %v13833_v22, %v16526_v1  ;;  %v4260_v29 = vmul.f32 %v13829_v52, %v16527_v15  ;;  %v4275_v62 = vpack.c.bf16 %v4259_v41, %v16528_v54  ;;  %v16617_v54 = vld [vmem:[#allocation109_spill] sm:$0xff] }
 0x600   : > { %v4369_v59 = vrot.slane %v4367_v60, 2  ;;  %v4372_v38 = vrot.slane %v4370_v55, 3  ;;  %v4311_v21 = vpack.c.bf16 %v4302_v28, %v4301_v14  ;;  %v4303_v9 = vmul.f32 %v13949_v27, %v16525_v24  ;;  %v16529_v55 = vld [vmem:[#allocation27_spill] sm:$0xff] }
 0x601   : > { %v4365_v47 = vsel %vm1418_vm4, %v4355_v37, %v4364_v56  ;;  %v4276_v14 = vpack.c.bf16 %v4261_v42, %v4260_v29  ;;  %v4263_v44 = vmul.f32 %v13858_v35, %v16529_v55  ;;  %v4535_v28 = vrot.slane %v4275_v62, 2  ;;  %v16533_v42 = vld [vmem:[#allocation31_spill] sm:$0xff]  ;;  %v11207_v62 = vld [vmem:[%s16102_s3 + $0xcc] sm:$0xff]  }
 0x602   : > { %10358 = vmatprep.mubr.msk.bf16.mxu0 %vm881_vm2, %v4365_v47  ;;  %v4373_v12 = vor.u32 %v4372_v38, %v4369_v59  ;;  %v4376_v0 = vshrl.u32 %v4311_v21, 16  ;;  %v4379_v61 = vshll.u32 %v4311_v21, 16  ;;  %v4312_v18 = vpack.c.bf16 %v4303_v9, %v4303_v9  ;;  %v16531_v38 = vld [vmem:[#allocation26_spill] sm:$0xff]  ;;  %v16532_v9 = vld [vmem:[#allocation28_spill] sm:$0xff] }
 0x603   : > { %v4262_v21 = vmul.f32 %v13849_v53, %v16531_v38  ;;  %v4536_v24 = vrot.slane %v4276_v14, 2  ;;  %v4264_v47 = vmul.f32 %v13863_v46, %v16532_v9  ;;  %v16599_v9 = vld [vmem:[#allocation92_spill] sm:$0xff]  ;;  %v5567_v1 = vmul.f32 %v13941_v26, %v16617_v54 }
 0x604   : > { %v4374_v6 = vsel %vm1418_vm4, %v4364_v56, %v4373_v12  ;;  %v4378_v30 = vrot.slane %v4376_v0, 2  ;;  %v4381_v33 = vrot.slane %v4379_v61, 3  ;;  %v4385_v7 = vshrl.u32 %v4312_v18, 16  ;;  %v16530_v56 = vld [vmem:[#allocation29_spill] sm:$0xff] }
 0x605   : > { %v4388_v8 = vshll.u32 %v4312_v18, 16  ;;  %v4265_v59 = vmul.f32 %v13866_v43, %v16530_v56  ;;  %v4537_v0 = vsel %vm1641_vm5, %v4535_v28, %v4536_v24  ;;  %v16567_v56 = vld [vmem:[#allocation65_spill] sm:$0xff] }
 0x606   : > { %10359 = vmatmul.mubr.msk.bf16.gmra.mrb[36].mxu0 %vm881_vm2, %v4374_v6  ;;  %v4382_v37 = vor.u32 %v4381_v33, %v4378_v30  ;;  %v4387_v48 = vrot.slane %v4385_v7, 2  ;;  %v4267_v6 = vmul.f32 %v13886_v51, %v16533_v42  ;;  %v16534_v33 = vld [vmem:[#allocation33_spill] sm:$0xff] }
 0x607   : > { %v4390_v25 = vrot.slane %v4388_v8, 3  ;;  %v4278_v61 = vpack.c.bf16 %v4265_v59, %v4264_v47  ;;  %v4269_v7 = vmul.f32 %v13905_v63, %v16534_v33  ;;  %v16535_v8 = vld [vmem:[#allocation30_spill] sm:$0xff]  ;;  %v16537_v59 = vld [vmem:[#allocation35_spill] sm:$0xff]  ;;  %v16563_v33 = vld [vmem:[#allocation61_spill] sm:$0xff] }
 0x608   : > { %v4383_v23 = vsel %vm1418_vm4, %v4373_v12, %v4382_v37  ;;  %v4277_v12 = vpack.c.bf16 %v4263_v44, %v4262_v21  ;;  %v11208_v44 = vld [vmem:[%s16102_s3 + $0xd4] sm:$0xff]   ;;  %v4271_v21 = vmul.f32 %v13921_v50, %v16537_v59 }
 0x609   : > { %10362 = vmatprep.mubr.msk.bf16.mxu0 %vm881_vm2, %v4383_v23  ;;  %v4391_v60 = vor.u32 %v4390_v25, %v4387_v48  ;;  %v4540_v30 = vrot.slane %v4278_v61, 2  ;;  %v4266_v48 = vmul.f32 %v13877_v5, %v16535_v8  ;;  %v16538_v47 = vld [vmem:[#allocation38_spill] sm:$0xff] }
 0x60a   : > { %v4538_v18 = vrot.slane %v4277_v12, 2  ;;  %v16539_v12 = vld [vmem:[#allocation34_spill] sm:$0xff] }
 0x60b   : > { %v4392_v41 = vsel %vm1418_vm4, %v4382_v37, %v4391_v60  ;;  %v16536_v37 = vld [vmem:[#allocation32_spill] sm:$0xff]  ;;  %v4279_v23 = vpack.c.bf16 %v4267_v6, %v4266_v48 }
 0x60c   : > { %v4268_v29 = vmul.f32 %v13891_v58, %v16536_v37  ;;  %v4539_v25 = vsel %vm1641_vm5, %v4536_v24, %v4538_v18  ;;  %v4541_v14 = vsel %vm1641_vm5, %v4538_v18, %v4540_v30 }
 0x60d   : > { %v4542_v28 = vrot.slane %v4279_v23, 2 }
 0x60e   : > { %10363 = vmatmul.mubr.msk.bf16.gmra.mrb[40].mxu0 %vm881_vm2, %v4392_v41  ;;  %v4280_v60 = vpack.c.bf16 %v4269_v7, %v4268_v29  ;;  %v4273_v41 = vmul.f32 %v13941_v26, %v16538_v47  ;;  %v16543_v47 = vld [vmem:[#allocation42_spill] sm:$0xff] }
 0x60f   : > { %10370 = vmatprep.mubr.msk.bf16.mxu0 %vm881_vm2, %v4537_v0  ;;  %v4270_v0 = vmul.f32 %v13909_v2, %v16539_v12  ;;  %v4543_v18 = vsel %vm1641_vm5, %v4540_v30, %v4542_v28  ;;  %v4691_v12 = vmul.f32 %v13833_v22, %v16543_v47 }
 0x610   : > { %v4544_v24 = vrot.slane %v4280_v60, 2 }
 0x611   : > { %v4281_v6 = vpack.c.bf16 %v4271_v21, %v4270_v0 }
 0x612   : > { %v4545_v7 = vsel %vm1641_vm5, %v4542_v28, %v4544_v24 }
 0x613   : > { %v4546_v29 = vrot.slane %v4281_v6, 2 }
 0x615   : > { %v4547_v30 = vsel %vm1641_vm5, %v4544_v24, %v4546_v29 }
 0x616   : > { %10371 = vmatmul.mubr.msk.bf16.vlgmr.msra.gmra.mrb[28].mxu0 %vm881_vm2, %v4539_v25  ;;  %v16541_v25 = vld [vmem:[#allocation37_spill] sm:$0xff] }
 0x617   : > { %10387 = vmatpush3.bf16.msra.mxu0 %v13929_v4  ;;  %10374 = vmatprep.mubr.msk.bf16.mxu0 %vm881_vm2, %v4541_v14  ;;  %v16540_v4 = vld [vmem:[#allocation36_spill] sm:$0xff]  ;;  %v4274_v23 = vmul.f32 %v13949_v27, %v16541_v25  ;;  %v16547_v25 = vld [vmem:[#allocation46_spill] sm:$0xff] }
 0x618   : > { %10388 = vmatprep.subr.bf16.mxu0 %v11207_v62  ;;  %v4272_v61 = vmul.f32 %v13934_v3, %v16540_v4  ;;  %v4695_v24 = vmul.f32 %v13866_v43, %v16547_v25  ;;  %v16549_v4 = vld [vmem:[#allocation45_spill] sm:$0xff] }
 0x619   : > { %v4283_v21 = vpack.c.bf16 %v4274_v23, %v4274_v23  ;;  %v16548_v23 = vld [vmem:[#allocation43_spill] sm:$0xff] }
 0x61a   : > { %v4282_v48 = vpack.c.bf16 %v4273_v41, %v4272_v61  ;;  %v16544_v41 = vld [vmem:[#allocation41_spill] sm:$0xff]  ;;  %v16545_v61 = vld [vmem:[#allocation40_spill] sm:$0xff] }
 0x61b   : > { %10389 = vmatpush3.bf16.msra.mxu0 %v11207_v62  ;;  %v16542_v62 = vld [vmem:[#allocation39_spill] sm:$0xff]  ;;  %v4690_v0 = vmul.f32 %v13829_v52, %v16544_v41  ;;  %v4694_v41 = vmul.f32 %v13863_v46, %v16549_v4 }
 0x61c   : > { %10406 = vmatprep.subr.bf16.mxu0 %v11208_v44  ;;  %v4548_v14 = vrot.slane %v4282_v48, 2  ;;  %v4689_v60 = vmul.f32 %v13844_v32, %v16542_v62  ;;  %v16546_v48 = vld [vmem:[#allocation44_spill] sm:$0xff] }
 0x61d   : > { %v4706_v6 = vpack.c.bf16 %v4691_v12, %v4690_v0  ;;  %v4693_v62 = vmul.f32 %v13858_v35, %v16546_v48  ;;  %v16550_v0 = vld [vmem:[#allocation48_spill] sm:$0xff]  ;;  %v16551_v48 = vld [vmem:[#allocation50_spill] sm:$0xff] }
 0x61e   : > { %10375 = vmatmul.mubr.msk.bf16.gmra.mrb[32].mxu0 %vm881_vm2, %v4543_v18  ;;  %v4549_v28 = vsel %vm1641_vm5, %v4546_v29, %v4548_v14  ;;  %v4705_v18 = vpack.c.bf16 %v4689_v60, %v16545_v61  ;;  %v4697_v25 = vmul.f32 %v13886_v51, %v16550_v0  ;;  %v16555_v0 = vld [vmem:[#allocation55_spill] sm:$0xff] }
 0x61f   : > { %10378 = vmatprep.mubr.msk.bf16.mxu0 %vm881_vm2, %v4545_v7  ;;  %v4550_v7 = vrot.slane %v4283_v21, 2  ;;  %v4724_v29 = vrot.slane %v4706_v6, 3  ;;  %v4708_v21 = vpack.c.bf16 %v4695_v24, %v4694_v41  ;;  %v4699_v6 = vmul.f32 %v13905_v63, %v16551_v48  ;;  %v16556_v48 = vld [vmem:[#allocation56_spill] sm:$0xff] }
 0x620   : > { %v4723_v47 = vrot.slane %v4705_v18, 3 }
 0x621   : > { %v4551_v60 = vsel %vm1641_vm5, %v4548_v14, %v4550_v7  ;;  %v4728_v18 = vrot.slane %v4708_v21, 3  ;;  %v16553_v14 = vld [vmem:[#allocation49_spill] sm:$0xff] }
 0x622   : > { %v4725_v12 = vsel %vm1343_vm3, %v4723_v47, %v4724_v29  ;;  %v4698_v7 = vmul.f32 %v13891_v58, %v16553_v14  ;;  %v16559_v14 = vld [vmem:[#allocation59_spill] sm:$0xff] }
 0x624   : > { %v4710_v41 = vpack.c.bf16 %v4699_v6, %v4698_v7  ;;  %v4895_v7 = vmul.f32 %v13833_v22, %v16559_v14  ;;  %v16562_v14 = vld [vmem:[#allocation51_spill] sm:$0xff] }
 0x625   : > { %v4704_v59 = vmul.f32 %v13949_v27, %v16562_v14 }
 0x626   : > { %10379 = vmatmul.mubr.msk.bf16.gmra.mrb[36].mxu0 %vm881_vm2, %v4547_v30  ;;  %v4692_v30 = vmul.f32 %v13849_v53, %v16548_v23  ;;  %v16552_v23 = vld [vmem:[#allocation47_spill] sm:$0xff] }
 0x627   : > { %10382 = vmatprep.mubr.msk.bf16.mxu0 %vm881_vm2, %v4549_v28  ;;  %v4696_v4 = vmul.f32 %v13877_v5, %v16552_v23  ;;  %v16558_v23 = vld [vmem:[#allocation54_spill] sm:$0xff] }
 0x628   : > { %v4707_v61 = vpack.c.bf16 %v4693_v62, %v4692_v30  ;;  %v11209_v62 = vld [vmem:[%s16102_s3 + $0xdc] sm:$0xff]  }
 0x629   : > { %v4709_v24 = vpack.c.bf16 %v4697_v25, %v4696_v4  ;;  %v4703_v25 = vmul.f32 %v13941_v26, %v16555_v0  ;;  %v4702_v4 = vmul.f32 %v13934_v3, %v16558_v23 }
 0x62a   : > { %v4726_v28 = vrot.slane %v4707_v61, 3 }
 0x62b   : > { %v4730_v61 = vrot.slane %v4709_v24, 3 }
 0x62c   : > { %v4727_v47 = vsel %vm1343_vm3, %v4724_v29, %v4726_v28  ;;  %v4729_v30 = vsel %vm1343_vm3, %v4726_v28, %v4728_v18  ;;  %v4732_v29 = vrot.slane %v4710_v41, 3  ;;  %v4893_v28 = vmul.f32 %v13844_v32, %v16556_v48 }
 0x62d   : > { %v4712_v41 = vpack.c.bf16 %v4703_v25, %v4702_v4  ;;  %v16565_v4 = vld [vmem:[#allocation60_spill] sm:$0xff] }
 0x62e   : > { %10383 = vmatmul.mubr.msk.bf16.gmra.mrb[40].mxu0 %vm881_vm2, %v4551_v60  ;;  %v14055_v60 = vld [vmem:[%s16102_s3 + $0xe4] sm:$0xff]  }
 0x62f   : > { %10390 = vmatprep.mubr.msk.bf16.mxu0 %vm881_vm2, %v4725_v12  ;;  %v16554_v12 = vld [vmem:[#allocation53_spill] sm:$0xff] }
 0x630   : > { %v4701_v21 = vmul.f32 %v13921_v50, %v16554_v12  ;;  %v16560_v12 = vld [vmem:[#allocation58_spill] sm:$0xff] }
 0x631   : > { %v4894_v0 = vmul.f32 %v13829_v52, %v16560_v12  ;;  %v4896_v12 = vmul.f32 %v13849_v53, %v16565_v4 }
 0x636   : > { %10391 = vmatmul.mubr.msk.bf16.vlgmr.msra.gmra.mrb[28].mxu0 %vm881_vm2, %v4727_v47  ;;  %v4731_v47 = vsel %vm1343_vm3, %v4728_v18, %v4730_v61  ;;  %v4897_v18 = vmul.f32 %v13858_v35, %v16563_v33 }
 0x637   : > { %10407 = vmatpush3.bf16.msra.mxu0 %v11208_v44  ;;  %10394 = vmatprep.mubr.msk.bf16.mxu0 %vm881_vm2, %v4729_v30  ;;  %v16557_v44 = vld [vmem:[#allocation52_spill] sm:$0xff]  ;;  %v4733_v30 = vsel %vm1343_vm3, %v4730_v61, %v4732_v29  ;;  %v16564_v61 = vld [vmem:[#allocation63_spill] sm:$0xff] }
 0x638   : > { %10408 = vmatprep.subr.bf16.mxu0 %v11209_v62  ;;  %v4700_v6 = vmul.f32 %v13909_v2, %v16557_v44  ;;  %v4910_v44 = vpack.c.bf16 %v4895_v7, %v4894_v0  ;;  %v4899_v25 = vmul.f32 %v13866_v43, %v16564_v61  ;;  %v4713_v0 = vpack.c.bf16 %v4704_v59, %v4704_v59 }
 0x639   : > { %v4911_v14 = vpack.c.bf16 %v4897_v18, %v4896_v12  ;;  %v16568_v12 = vld [vmem:[#allocation67_spill] sm:$0xff] }
 0x63a   : > { %v4711_v24 = vpack.c.bf16 %v4701_v21, %v4700_v6  ;;  %v4736_v21 = vrot.slane %v4712_v41, 3  ;;  %v4738_v37 = vrot.slane %v4713_v0, 3 }
 0x63b   : > { %10409 = vmatpush3.bf16.msra.mxu0 %v11209_v62  ;;  %v16561_v62 = vld [vmem:[#allocation57_spill] sm:$0xff]  ;;  %v4939_v42 = vshll.u32 %v4911_v14, 16 }
 0x63c   : > { %10426 = vmatprep.subr.bf16.mxu0 %v14055_v60  ;;  %v4909_v48 = vpack.c.bf16 %v4893_v28, %v16561_v62  ;;  %v4734_v23 = vrot.slane %v4711_v24, 3  ;;  %v4927_v28 = vshrl.u32 %v4910_v44, 16  ;;  %v4930_v62 = vshll.u32 %v4910_v44, 16 }
 0x63d   : > { %v4936_v44 = vshrl.u32 %v4911_v14, 16  ;;  %v4941_v0 = vrot.slane %v4939_v42, 4  ;;  %v16572_v42 = vld [vmem:[#allocation72_spill] sm:$0xff] }
 0x63e   : > { %10395 = vmatmul.mubr.msk.bf16.gmra.mrb[32].mxu0 %vm881_vm2, %v4731_v47  ;;  %v4919_v6 = vshrl.u32 %v4909_v48, 16  ;;  %v4922_v47 = vshll.u32 %v4909_v48, 16  ;;  %v4735_v24 = vsel %vm1343_vm3, %v4732_v29, %v4734_v23  ;;  %v4737_v33 = vsel %vm1343_vm3, %v4734_v23, %v4736_v21  ;;  %v16569_v23 = vld [vmem:[#allocation64_spill] sm:$0xff] }
 0x63f   : > { %10398 = vmatprep.mubr.msk.bf16.mxu0 %vm881_vm2, %v4733_v30  ;;  %v16566_v30 = vld [vmem:[#allocation62_spill] sm:$0xff]  ;;  %v4929_v61 = vrot.slane %v4927_v28, 3  ;;  %v4932_v4 = vrot.slane %v4930_v62, 4  ;;  %v4739_v62 = vsel %vm1343_vm3, %v4736_v21, %v4738_v37 }
 0x640   : > { %v4898_v7 = vmul.f32 %v13863_v46, %v16566_v30  ;;  %v4921_v41 = vrot.slane %v4919_v6, 3  ;;  %v4924_v48 = vrot.slane %v4922_v47, 4  ;;  %v4901_v30 = vmul.f32 %v13886_v51, %v16567_v56 }
 0x641   : > { %v4900_v6 = vmul.f32 %v13877_v5, %v16569_v23  ;;  %v4933_v47 = vor.u32 %v4932_v4, %v4929_v61  ;;  %v16571_v4 = vld [vmem:[#allocation69_spill] sm:$0xff] }
 0x642   : > { %v4912_v8 = vpack.c.bf16 %v4899_v25, %v4898_v7  ;;  %v4925_v29 = vor.u32 %v4924_v48, %v4921_v41  ;;  %v16570_v25 = vld [vmem:[#allocation66_spill] sm:$0xff]  ;;  %v4938_v7 = vrot.slane %v4936_v44, 3  ;;  %v4905_v23 = vmul.f32 %v13921_v50, %v16571_v4 }
 0x643   : > { %v4902_v28 = vmul.f32 %v13891_v58, %v16570_v25  ;;  %v4913_v14 = vpack.c.bf16 %v4901_v30, %v4900_v6  ;;  %v4907_v44 = vmul.f32 %v13941_v26, %v16572_v42  ;;  %v16573_v30 = vld [vmem:[#allocation68_spill] sm:$0xff] }
 0x644   : > { %v4945_v59 = vshrl.u32 %v4912_v8, 16  ;;  %v4948_v18 = vshll.u32 %v4912_v8, 16  ;;  %v4934_v56 = vsel %vm2222_vm7, %v4925_v29, %v4933_v47  ;;  %v4942_v48 = vor.u32 %v4941_v0, %v4938_v7 }
 0x645   : > { %v4957_v61 = vshll.u32 %v4913_v14, 16  ;;  %v4904_v29 = vmul.f32 %v13909_v2, %v16573_v30 }
 0x646   : > { %10399 = vmatmul.mubr.msk.bf16.gmra.mrb[36].mxu0 %vm881_vm2, %v4735_v24  ;;  %v4903_v24 = vmul.f32 %v13905_v63, %v16568_v12  ;;  %v4947_v8 = vrot.slane %v4945_v59, 3  ;;  %v4954_v12 = vshrl.u32 %v4913_v14, 16  ;;  %v11211_v59 = vld [vmem:[%s16102_s3 + $0xec] sm:$0xff]   ;;  %v4943_v6 = vsel %vm2222_vm7, %v4933_v47, %v4942_v48 }
 0x647   : > { %10402 = vmatprep.mubr.msk.bf16.mxu0 %vm881_vm2, %v4737_v33  ;;  %v4950_v33 = vrot.slane %v4948_v18, 4  ;;  %v16574_v18 = vld [vmem:[#allocation70_spill] sm:$0xff]  ;;  %v4915_v7 = vpack.c.bf16 %v4905_v23, %v4904_v29 }
 0x648   : > { %v4914_v41 = vpack.c.bf16 %v4903_v24, %v4902_v28  ;;  %v4906_v24 = vmul.f32 %v13934_v3, %v16574_v18  ;;  %v4956_v28 = vrot.slane %v4954_v12, 3 }
 0x649   : > { %v4951_v25 = vor.u32 %v4950_v33, %v4947_v8  ;;  %v11212_v33 = vld [vmem:[%s16102_s3 + $0xf4] sm:$0xff]   ;;  %v4975_v12 = vshll.u32 %v4915_v7, 16 }
 0x64a   : > { %v4963_v37 = vshrl.u32 %v4914_v41, 16  ;;  %v4966_v21 = vshll.u32 %v4914_v41, 16  ;;  %v4916_v8 = vpack.c.bf16 %v4907_v44, %v4906_v24  ;;  %v4972_v41 = vshrl.u32 %v4915_v7, 16 }
 0x64b   : > { %v4952_v0 = vsel %vm2222_vm7, %v4942_v48, %v4951_v25  ;;  %v4977_v42 = vrot.slane %v4975_v12, 4  ;;  %v5153_v12 = vpack.c.bf16 %v13863_v46, %v13858_v35 }
 0x64c   : > { %v4965_v14 = vrot.slane %v4963_v37, 3  ;;  %v4981_v48 = vshrl.u32 %v4916_v8, 16  ;;  %v4984_v37 = vshll.u32 %v4916_v8, 16  ;;  %v5151_v8 = vpack.c.bf16 %v13829_v52, %v13844_v32 }
 0x64e   : > { %10403 = vmatmul.mubr.msk.bf16.gmra.mrb[40].mxu0 %vm881_vm2, %v4739_v62  ;;  %v4959_v62 = vrot.slane %v4957_v61, 4  ;;  %v16575_v61 = vld [vmem:[#allocation71_spill] sm:$0xff]  ;;  %v4983_v29 = vrot.slane %v4981_v48, 3  ;;  %v4986_v18 = vrot.slane %v4984_v37, 4  ;;  %v5154_v48 = vpack.c.bf16 %v13877_v5, %v13866_v43  ;;  %v16577_v37 = vld [vmem:[#allocation74_spill] sm:$0xff] }
 0x64f   : > { %10410 = vmatprep.mubr.msk.bf16.mxu0 %vm881_vm2, %v4934_v56  ;;  %v4968_v56 = vrot.slane %v4966_v21, 4  ;;  %v4908_v4 = vmul.f32 %v13949_v27, %v16575_v61  ;;  %v4974_v21 = vrot.slane %v4972_v41, 3  ;;  %v11213_v41 = vld [vmem:[%s16102_s3 + $0xfc] sm:$0xff]   ;;  %v14149_v61 = vld [vmem:[%s16102_s3 + $0x104] sm:$0xff]  }
 0x650   : > { %v4960_v47 = vor.u32 %v4959_v62, %v4956_v28  ;;  %v4987_v62 = vor.u32 %v4986_v18, %v4983_v29 }
 0x651   : > { %v4969_v23 = vor.u32 %v4968_v56, %v4965_v14  ;;  %v4917_v44 = vpack.c.bf16 %v4908_v4, %v4908_v4  ;;  %v4978_v24 = vor.u32 %v4977_v42, %v4974_v21  ;;  %v16576_v4 = vld [vmem:[#allocation73_spill] sm:$0xff]  ;;  %v16578_v42 = vld [vmem:[#allocation76_spill] sm:$0xff] }
 0x653   : > { %v4970_v30 = vsel %vm2222_vm7, %v4960_v47, %v4969_v23  ;;  %v4993_v28 = vshll.u32 %v4917_v44, 16 }
 0x656   : > { %10411 = vmatmul.mubr.msk.bf16.vlgmr.msra.gmra.mrb[28].mxu0 %vm881_vm2, %v4943_v6  ;;  %v4990_v6 = vshrl.u32 %v4917_v44, 16  ;;  %v5315_v44 = vmul.f32 %v13849_v53, %v16578_v42  ;;  %v16584_v42 = vld [vmem:[#allocation82_spill] sm:$0xff] }
 0x657   : > { %10427 = vmatpush3.bf16.msra.mxu0 %v14055_v60  ;;  %10414 = vmatprep.mubr.msk.bf16.mxu0 %vm881_vm2, %v4952_v0  ;;  %v4961_v60 = vsel %vm2222_vm7, %v4951_v25, %v4960_v47  ;;  %v4995_v0 = vrot.slane %v4993_v28, 4  ;;  %v4988_v25 = vsel %vm2222_vm7, %v4978_v24, %v4987_v62  ;;  %v5152_v47 = vpack.c.bf16 %v13849_v53, %v13833_v22  ;;  %v16580_v28 = vld [vmem:[#allocation77_spill] sm:$0xff] }
 0x658   : > { %10428 = vmatprep.subr.bf16.mxu0 %v11211_v59  ;;  %v4992_v7 = vrot.slane %v4990_v6, 3 }
 0x65a   : > { %v4996_v14 = vor.u32 %v4995_v0, %v4992_v7  ;;  %v5157_v0 = vpack.c.bf16 %v13934_v3, %v13921_v50 }
 0x65b   : > { %10429 = vmatpush3.bf16.msra.mxu0 %v11211_v59  ;;  %v4979_v59 = vsel %vm2222_vm7, %v4969_v23, %v4978_v24  ;;  %v5312_v23 = vmul.f32 %v13844_v32, %v16576_v4  ;;  %v5156_v24 = vpack.c.bf16 %v13909_v2, %v13905_v63 }
 0x65c   : > { %10446 = vmatprep.subr.bf16.mxu0 %v11212_v33  ;;  %v4997_v56 = vsel %vm2222_vm7, %v4987_v62, %v4996_v14  ;;  %v5316_v62 = vmul.f32 %v13858_v35, %v16580_v28  ;;  %v16582_v14 = vld [vmem:[#allocation79_spill] sm:$0xff] }
 0x65e   : > { %10415 = vmatmul.mubr.msk.bf16.gmra.mrb[32].mxu0 %vm881_vm2, %v4961_v60  ;;  %v5313_v60 = vmul.f32 %v13829_v52, %v16577_v37  ;;  %v5158_v37 = vpack.c.bf16 %v13949_v27, %v13941_v26 }
 0x65f   : > { %10418 = vmatprep.mubr.msk.bf16.mxu0 %vm881_vm2, %v4970_v30  ;;  %v16579_v30 = vld [vmem:[#allocation75_spill] sm:$0xff] }
 0x660   : > { %v5328_v21 = vpack.c.bf16 %v5313_v60, %v5312_v23  ;;  %v5314_v29 = vmul.f32 %v13833_v22, %v16579_v30  ;;  %v16585_v30 = vld [vmem:[#allocation81_spill] sm:$0xff] }
 0x662   : > { %v5339_v18 = vshll.u32 %v5328_v21, 16  ;;  %v5329_v6 = vpack.c.bf16 %v5315_v44, %v5314_v29  ;;  %v5321_v44 = vmul.f32 %v13891_v58, %v16584_v42  ;;  %v5320_v29 = vmul.f32 %v13886_v51, %v16585_v30  ;;  %v11215_v42 = vld [vmem:[%s16102_s3 + $0x10c] sm:$0xff]  }
 0x663   : > { %v14213_v30 = vld [vmem:[%s16099_s0 + $0x10] sm:$0xff] }
 0x664   : > { %16589 = vst [vmem:[#allocation18_spill] sm:$0xff] %v14213_v30 }
 0x666   : > { %10419 = vmatmul.mubr.msk.bf16.gmra.mrb[36].mxu0 %vm881_vm2, %v4979_v59  ;;  %v16581_v59 = vld [vmem:[#allocation78_spill] sm:$0xff] }
 0x667   : > { %10422 = vmatprep.mubr.msk.bf16.mxu0 %vm881_vm2, %v4988_v25  ;;  %v5317_v7 = vmul.f32 %v13863_v46, %v16581_v59  ;;  %v5341_v25 = vrot.slane %v5339_v18, 1 }
 0x669   : > { %v5330_v4 = vpack.c.bf16 %v5317_v7, %v5316_v62  ;;  %v11474_v62 = vmov 1   ;;  %v5332_v7 = vpack.c.bf16 %v5321_v44, %v5320_v29  ;;  %v16588_v44 = vld [vmem:[#allocation86_spill] sm:$0xff] }
 0x66a   : > { %11165 = vset.pattern.permute.xlu1 %v11474_v62  ;;  %11166 = vset.pattern.permute.xlu0 %v11474_v62 }
 0x66e   : > { %10423 = vmatmul.mubr.msk.bf16.gmra.mrb[40].mxu0 %vm881_vm2, %v4997_v56  ;;  %v5318_v56 = vmul.f32 %v13866_v43, %v16582_v14  ;;  %v14196_v14 = vld [vmem:[%s16099_s0] sm:$0xff] }
 0x66f   : > { %10430 = vmatprep.mubr.msk.bf16.mxu0 %vm881_vm2, %v5151_v8  ;;  %v16583_v8 = vld [vmem:[#allocation80_spill] sm:$0xff]  ;;  %6667 = vperm.xlu1 %11165, %v14196_v14  }
 0x673   : > { %6675 = vperm.xlu1 %11165, %v14213_v30  }
 0x676   : > { %10431 = vmatmul.mubr.msk.bf16.vlgmr.msra.gmra.mrb[28].mxu0 %vm881_vm2, %v5152_v47  ;;  %v5319_v47 = vmul.f32 %v13877_v5, %v16583_v8  ;;  %v14202_v8 = vld [vmem:[%s16099_s0 + $0x8] sm:$0xff] }
 0x677   : > { %10447 = vmatpush3.bf16.msra.mxu0 %v11212_v33  ;;  %10434 = vmatprep.mubr.msk.bf16.mxu0 %vm881_vm2, %v5153_v12  ;;  %v5155_v33 = vpack.c.bf16 %v13891_v58, %v13886_v51  ;;  %v5344_v12 = vshll.u32 %v5329_v6, 16 }
 0x678   : > { %10448 = vmatprep.subr.bf16.mxu0 %v11213_v41  ;;  %6671 = vperm.xlu0 %11166, %v14202_v8  }
 0x679   : > { %v5346_v60 = vrot.slane %v5344_v12, 1 }
 0x67b   : > { %10449 = vmatpush3.bf16.msra.mxu0 %v11213_v41  ;;  %v5337_v41 = vshrl.u32 %v5328_v21, 16 }
 0x67c   : > { %10466 = vmatprep.subr.bf16.mxu0 %v14149_v61 }
 0x67d   : > { %v5342_v23 = vor.u32 %v5341_v25, %v5337_v41 }
 0x67e   : > { %10435 = vmatmul.mubr.msk.bf16.gmra.mrb[32].mxu0 %vm881_vm2, %v5154_v48  ;;  %v5331_v48 = vpack.c.bf16 %v5319_v47, %v5318_v56  ;;  %v5348_v56 = vshrl.u32 %v5329_v6, 16  ;;  %v5356_v47 = vshrl.u32 %v5330_v4, 16  ;;  %v5325_v6 = vmul.f32 %v13934_v3, %v16588_v44 }
 0x67f   : > { %10438 = vmatprep.mubr.msk.bf16.mxu0 %vm881_vm2, %v5155_v33  ;;  %v5352_v33 = vshll.u32 %v5330_v4, 16  ;;  %v5347_v18 = vsel %vm2740_vm9, %v5342_v23, %v5346_v60 }
 0x680   : > { %v5360_v21 = vshll.u32 %v5331_v48, 16  ;;  %v5350_v23 = vor.u32 %v5348_v56, %v5346_v60  ;;  %v14220_v60 = vld [vmem:[%s16099_s0 + $0x50] sm:$0xff] }
 0x681   : > { %v5354_v59 = vrot.slane %v5352_v33, 1  ;;  %v5368_v33 = vshll.u32 %v5332_v7, 16  ;;  %16590 = vst [vmem:[#allocation19_spill] sm:$0xff] %v14220_v60  ;;  %6707 = vperm.xlu0 %11166, %v14220_v60  }
 0x682   : > { %v5362_v41 = vrot.slane %v5360_v21, 1  ;;  %v16591_v21 = vld [vmem:[#allocation85_spill] sm:$0xff] }
 0x683   : > { %v5355_v4 = vsel %vm2740_vm9, %v5350_v23, %v5354_v59  ;;  %v14241_v23 = vld [vmem:[%s16099_s0 + $0x18] sm:$0xff] }
 0x684   : > { %6679 = vperm.xlu1 %11165, %v14241_v23  }
 0x686   : > { %10439 = vmatmul.mubr.msk.bf16.gmra.mrb[36].mxu0 %vm881_vm2, %v5156_v24  ;;  %v16586_v24 = vld [vmem:[#allocation84_spill] sm:$0xff] }
 0x687   : > { %10442 = vmatprep.mubr.msk.bf16.mxu0 %vm881_vm2, %v5157_v0  ;;  %v5323_v28 = vmul.f32 %v13909_v2, %v16586_v24  ;;  %v16587_v0 = vld [vmem:[#allocation83_spill] sm:$0xff]  ;;  %v5324_v24 = vmul.f32 %v13921_v50, %v16591_v21 }
 0x688   : > { %v5322_v25 = vmul.f32 %v13905_v63, %v16587_v0 }
 0x689   : > { %v5334_v0 = vpack.c.bf16 %v5325_v6, %v5324_v24 }
 0x68a   : > { %v5333_v12 = vpack.c.bf16 %v5323_v28, %v5322_v25  ;;  %v16592_v28 = vld [vmem:[#allocation88_spill] sm:$0xff]  ;;  %v16593_v25 = vld [vmem:[#allocation87_spill] sm:$0xff] }
 0x68b   : > { %v5327_v62 = vmul.f32 %v13949_v27, %v16592_v28  ;;  %v5326_v56 = vmul.f32 %v13941_v26, %v16593_v25  ;;  %v5384_v21 = vshll.u32 %v5334_v0, 16  ;;  %v14270_v28 = vld [vmem:[%s16099_s0 + $0x28] sm:$0xff]  ;;  %v5388_v25 = vshrl.u32 %v5334_v0, 16  ;;  %v14286_v0 = vld [vmem:[%s16099_s0 + $0x30] sm:$0xff] }
 0x68d   : > { %v5335_v6 = vpack.c.bf16 %v5327_v62, %v5326_v56  ;;  %v5380_v62 = vshrl.u32 %v5333_v12, 16 }
 0x68e   : > { %10443 = vmatmul.mubr.msk.bf16.gmra.mrb[40].mxu0 %vm881_vm2, %v5158_v37  ;;  %v5358_v37 = vor.u32 %v5356_v47, %v5354_v59  ;;  %v5370_v59 = vrot.slane %v5368_v33, 1  ;;  %v14236_v47 = vld [vmem:[%s16102_s3 + $0x114] sm:$0xff]   ;;  %v5372_v33 = vshrl.u32 %v5332_v7, 16 }
 0x68f   : > { %10450 = vmatprep.mubr.msk.bf16.mxu0 %vm881_vm2, %v5347_v18  ;;  %v5376_v18 = vshll.u32 %v5333_v12, 16  ;;  %v14261_v7 = vld [vmem:[%s16099_s0 + $0x70] sm:$0xff]  ;;  %v5555_v12 = vmul.f32 %v13833_v22, %v16599_v9  ;;  %v14296_v9 = vld [vmem:[%s16099_s0 + $0x38] sm:$0xff] }
 0x690   : > { %v5363_v29 = vsel %vm2740_vm9, %v5358_v37, %v5362_v41  ;;  %v14247_v37 = vld [vmem:[%s16099_s0 + $0x60] sm:$0xff]  ;;  %16595 = vst [vmem:[#allocation20_spill] sm:$0xff] %v14261_v7 }
 0x691   : > { %16594 = vst [vmem:[#allocation21_spill] sm:$0xff] %v14247_v37  ;;  %6715 = vperm.xlu0 %11166, %v14247_v37   ;;  %v5378_v44 = vrot.slane %v5376_v18, 1  ;;  %v5386_v18 = vrot.slane %v5384_v21, 1 }
 0x693   : > { %v5382_v21 = vor.u32 %v5380_v62, %v5378_v44 }
 0x695   : > { %6723 = vperm.xlu0 %11166, %v14261_v7   ;;  %v16619_v7 = vld [vmem:[#allocation107_spill] sm:$0xff] }
 0x696   : > { %10451 = vmatmul.mubr.msk.bf16.vlgmr.msra.gmra.mrb[28].mxu0 %vm881_vm2, %v5355_v4 }
 0x697   : > { %10467 = vmatpush3.bf16.msra.mxu0 %v14149_v61  ;;  %10454 = vmatprep.mubr.msk.bf16.mxu0 %vm881_vm2, %v5363_v29  ;;  %v5364_v61 = vshrl.u32 %v5331_v48, 16  ;;  %v5374_v29 = vor.u32 %v5372_v33, %v5370_v59  ;;  %v14254_v48 = vld [vmem:[%s16099_s0 + $0x20] sm:$0xff] }
 0x698   : > { %10468 = vmatprep.subr.bf16.mxu0 %v11215_v42  ;;  %6683 = vperm.xlu1 %11165, %v14254_v48  }
 0x699   : > { %v5366_v4 = vor.u32 %v5364_v61, %v5362_v41  ;;  %v5379_v41 = vsel %vm2740_vm9, %v5374_v29, %v5378_v44  ;;  %v16596_v61 = vld [vmem:[#allocation89_spill] sm:$0xff] }
 0x69a   : > { %v5553_v33 = vmul.f32 %v13844_v32, %v16596_v61 }
 0x69b   : > { %10469 = vmatpush3.bf16.msra.mxu0 %v11215_v42  ;;  %v5371_v24 = vsel %vm2740_vm9, %v5366_v4, %v5370_v59  ;;  %v5392_v42 = vshll.u32 %v5335_v6, 16  ;;  %v16292_v59 = vmov 0   ;;  %v16597_v4 = vld [vmem:[#allocation90_spill] sm:$0xff] }
 0x69c   : > { %10486 = vmatprep.subr.bf16.mxu0 %v14236_v47  ;;  %6687 = vperm.xlu1 %11165, %v14270_v28   ;;  %v5556_v29 = vmul.f32 %v13849_v53, %v16597_v4  ;;  %v16600_v4 = vld [vmem:[#allocation96_spill] sm:$0xff] }
 0x69d   : > { %11167 = vset.pattern.permute.xlu0 %v16292_v59  ;;  %v5394_v56 = vrot.slane %v5392_v42, 1  ;;  %v5387_v42 = vsel %vm2740_vm9, %v5382_v21, %v5386_v18  ;;  %v16601_v21 = vld [vmem:[#allocation93_spill] sm:$0xff]  ;;  %v14352_v59 = vld [vmem:[%s16102_s3 + $0x124] sm:$0xff]  }
 0x69e   : > { %10455 = vmatmul.mubr.msk.bf16.gmra.mrb[32].mxu0 %vm881_vm2, %v5371_v24  ;;  %6541 = vperm.xlu0 %11167, %v14196_v14   ;;  %v5390_v24 = vor.u32 %v5388_v25, %v5386_v18  ;;  %v5570_v62 = vpack.c.bf16 %v5556_v29, %v5555_v12  ;;  %v5396_v25 = vshrl.u32 %v5335_v6, 16  ;;  %v5557_v18 = vmul.f32 %v13858_v35, %v16600_v4  ;;  %v16603_v6 = vld [vmem:[#allocation94_spill] sm:$0xff] }
 0x69f   : > { %10458 = vmatprep.mubr.msk.bf16.mxu0 %vm881_vm2, %v5379_v41  ;;  %v16598_v41 = vld [vmem:[#allocation91_spill] sm:$0xff]  ;;  %v5560_v12 = vmul.f32 %v13877_v5, %v16603_v6  ;;  %v16606_v6 = vld [vmem:[#allocation98_spill] sm:$0xff] }
 0x6a0   : > { %v5554_v38 = vmul.f32 %v13829_v52, %v16598_v41  ;;  %6691 = vperm.xlu1 %11165, %v14286_v0   ;;  %v5395_v14 = vsel %vm2740_vm9, %v5390_v24, %v5394_v56  ;;  %v5398_v61 = vor.u32 %v5396_v25, %v5394_v56  ;;  %v5558_v41 = vmul.f32 %v13863_v46, %v16601_v21  ;;  %v16604_v56 = vld [vmem:[#allocation95_spill] sm:$0xff]  ;;  %v14322_v21 = vld [vmem:[%s16099_s0 + $0x48] sm:$0xff] }
 0x6a2   : > { %v5569_v44 = vpack.c.bf16 %v5554_v38, %v5553_v33  ;;  %v5586_v38 = vrot.slane %v5570_v62, 1  ;;  %v16602_v33 = vld [vmem:[#allocation97_spill] sm:$0xff]  ;;  %v5571_v4 = vpack.c.bf16 %v5558_v41, %v5557_v18  ;;  %v16607_v18 = vld [vmem:[#allocation99_spill] sm:$0xff] }
 0x6a3   : > { %v5559_v29 = vmul.f32 %v13866_v43, %v16602_v33  ;;  %v5564_v41 = vmul.f32 %v13909_v2, %v16607_v18 }
 0x6a4   : > { %6695 = vperm.xlu1 %11165, %v14296_v9   ;;  %v5585_v24 = vrot.slane %v5569_v44, 1  ;;  %v5588_v33 = vrot.slane %v5571_v4, 1  ;;  %v14339_v4 = vld [vmem:[%s16099_s0 + $0x58] sm:$0xff] }
 0x6a5   : > { %v5572_v62 = vpack.c.bf16 %v5560_v12, %v5559_v29  ;;  %v16609_v29 = vld [vmem:[#allocation101_spill] sm:$0xff]  ;;  %16610 = vst [vmem:[#allocation39_spill] sm:$0xff] %v14339_v4 }
 0x6a6   : > { %10459 = vmatmul.mubr.msk.bf16.gmra.mrb[36].mxu0 %vm881_vm2, %v5387_v42  ;;  %v14310_v42 = vld [vmem:[%s16099_s0 + $0x40] sm:$0xff]  ;;  %v5587_v44 = vsel %vm2147_vm6, %v5585_v24, %v5586_v38  ;;  %v5563_v12 = vmul.f32 %v13905_v63, %v16609_v29 }
 0x6a7   : > { %10462 = vmatprep.mubr.msk.bf16.mxu0 %vm881_vm2, %v5395_v14  ;;  %v16605_v14 = vrot.slane %v16604_v56, 1  ;;  %v5562_v56 = vmul.f32 %v13891_v58, %v16606_v6 }
 0x6a8   : > { %6699 = vperm.xlu1 %11165, %v14310_v42   ;;  %v5574_v18 = vpack.c.bf16 %v5564_v41, %v5563_v12  ;;  %v16614_v41 = vld [vmem:[#allocation102_spill] sm:$0xff] }
 0x6a9   : > { %v5399_v25 = vsel %vm2740_vm9, %v5398_v61, %v16605_v14  ;;  %v5590_v61 = vrot.slane %v5572_v62, 1  ;;  %v16608_v14 = vld [vmem:[#allocation100_spill] sm:$0xff] }
 0x6aa   : > { %v5561_v24 = vmul.f32 %v13886_v51, %v16608_v14  ;;  %v16611_v14 = vld [vmem:[#allocation103_spill] sm:$0xff]  ;;  %v5594_v12 = vrot.slane %v5574_v18, 1  ;;  %v14378_v18 = vld [vmem:[%s16099_s0 + $0x78] sm:$0xff] }
 0x6ab   : > { %v5591_v6 = vsel %vm2147_vm6, %v5588_v33, %v5590_v61  ;;  %v5566_v29 = vmul.f32 %v13934_v3, %v16611_v14  ;;  %v16616_v14 = vld [vmem:[#allocation108_spill] sm:$0xff]  ;;  %16620 = vst [vmem:[#allocation41_spill] sm:$0xff] %v14378_v18 }
 0x6ac   : > { %6703 = vperm.xlu1 %11165, %v14322_v21   ;;  %v5573_v62 = vpack.c.bf16 %v5562_v56, %v5561_v24  ;;  %v5754_v24 = vmul.f32 %v13844_v32, %v16614_v41  ;;  %v5757_v55 = vmul.f32 %v13849_v53, %v16616_v14  ;;  %v16622_v14 = vmov 0  }
 0x6ae   : > { %10463 = vmatmul.mubr.msk.bf16.gmra.mrb[40].mxu0 %vm881_vm2, %v5399_v25  ;;  %v11217_v25 = vld [vmem:[%s16102_s3 + $0x11c] sm:$0xff]  }
 0x6af   : > { %10470 = vmatprep.mubr.msk.bf16.mxu0 %vm881_vm2, %v5587_v44  ;;  %v5589_v44 = vsel %vm2147_vm6, %v5586_v38, %v5588_v33  ;;  %v14357_v38 = vld [vmem:[%s16099_s0 + $0x68] sm:$0xff]  ;;  %v5592_v33 = vrot.slane %v5573_v62, 1  ;;  %v5755_v62 = vmul.f32 %v13829_v52, %v16618_v10 }
 0x6b0   : > { %6711 = vperm.xlu1 %11165, %v14339_v4   ;;  %16612 = vst [vmem:[#allocation42_spill] sm:$0xff] %v14357_v38 }
 0x6b1   : > { %v5770_v54 = vpack.c.bf16 %v5755_v62, %v5754_v24  ;;  %v5595_v10 = vsel %vm2147_vm6, %v5592_v33, %v5594_v12  ;;  %v16625_v24 = vld [vmem:[#allocation113_spill] sm:$0xff] }
 0x6b3   : > { %v5779_v60 = vshrl.u32 %v5770_v54, 16 }
 0x6b4   : > { %6719 = vperm.xlu1 %11165, %v14357_v38   ;;  %v16623_v38 = vld [vmem:[#allocation111_spill] sm:$0xff] }
 0x6b6   : > { %10471 = vmatmul.mubr.msk.bf16.vlgmr.msra.gmra.mrb[28].mxu0 %vm881_vm2, %v5589_v44  ;;  %v16615_v44 = vld [vmem:[#allocation106_spill] sm:$0xff] }
 0x6b7   : > { %10487 = vmatpush3.bf16.msra.mxu0 %v14236_v47  ;;  %10474 = vmatprep.mubr.msk.bf16.mxu0 %vm881_vm2, %v5591_v6  ;;  %v16613_v47 = vld [vmem:[#allocation104_spill] sm:$0xff]  ;;  %v5565_v6 = vmul.f32 %v13921_v50, %v16615_v44  ;;  %v16621_v44 = vld [vmem:[#allocation110_spill] sm:$0xff] }
 0x6b8   : > { %10488 = vmatprep.subr.bf16.mxu0 %v11217_v25  ;;  %v5568_v56 = vmul.f32 %v13949_v27, %v16613_v47  ;;  %v5756_v47 = vmul.f32 %v13833_v22, %v16619_v7  ;;  %6727 = vperm.xlu1 %11165, %v14378_v18   ;;  %v5782_v18 = vshll.u32 %v5770_v54, 16 }
 0x6b9   : > { %v5575_v15 = vpack.c.bf16 %v5566_v29, %v5565_v6  ;;  %v5758_v6 = vmul.f32 %v13858_v35, %v16621_v44 }
 0x6ba   : > { %v5576_v41 = vpack.c.bf16 %v5568_v56, %v5567_v1  ;;  %v5771_v29 = vpack.c.bf16 %v5757_v55, %v5756_v47  ;;  %v5759_v1 = vmul.f32 %v13863_v46, %v16623_v38  ;;  %v5781_v47 = vrot.slane %v5779_v60, 1 }
 0x6bb   : > { %10489 = vmatpush3.bf16.msra.mxu0 %v11217_v25  ;;  %v5593_v25 = vsel %vm2147_vm6, %v5590_v61, %v5592_v33  ;;  %v5596_v7 = vrot.slane %v5575_v15, 1  ;;  %v16624_v33 = vld [vmem:[#allocation112_spill] sm:$0xff]  ;;  %v5761_v15 = vmul.f32 %v13877_v5, %v16625_v24 }
 0x6bc   : > { %10506 = vmatprep.subr.bf16.mxu0 %v14352_v59  ;;  %11168 = vset.pattern.permute.xlu1 %v16622_v14  ;;  %v5598_v37 = vrot.slane %v5576_v41, 1  ;;  %v5787_v61 = vshrl.u32 %v5771_v29, 16  ;;  %v5790_v56 = vshll.u32 %v5771_v29, 16  ;;  %v5760_v55 = vmul.f32 %v13866_v43, %v16624_v33  ;;  %v16626_v33 = vld [vmem:[#allocation115_spill] sm:$0xff] }
 0x6bd   : > { %6544 = vperm.xlu1 %11168, %v14202_v8   ;;  %v5597_v62 = vsel %vm2147_vm6, %v5594_v12, %v5596_v7  ;;  %v5772_v41 = vpack.c.bf16 %v5759_v1, %v5758_v6  ;;  %v5763_v12 = vmul.f32 %v13891_v58, %v16626_v33  ;;  %v16627_v1 = vld [vmem:[#allocation117_spill] sm:$0xff] }
 0x6be   : > { %10475 = vmatmul.mubr.msk.bf16.gmra.mrb[32].mxu0 %vm881_vm2, %v5593_v25  ;;  %v5784_v25 = vrot.slane %v5782_v18, 2  ;;  %v5599_v38 = vsel %vm2147_vm6, %v5596_v7, %v5598_v37  ;;  %v5789_v8 = vrot.slane %v5787_v61, 1  ;;  %v5792_v54 = vrot.slane %v5790_v56, 2  ;;  %v16629_v61 = vld [vmem:[#allocation116_spill] sm:$0xff] }
 0x6bf   : > { %10478 = vmatprep.mubr.msk.bf16.mxu0 %vm881_vm2, %v5595_v10  ;;  %v5773_v10 = vpack.c.bf16 %v5761_v15, %v5760_v55  ;;  %v5796_v44 = vshrl.u32 %v5772_v41, 16  ;;  %v5799_v14 = vshll.u32 %v5772_v41, 16  ;;  %v5765_v24 = vmul.f32 %v13909_v2, %v16627_v1  ;;  %v16630_v55 = vld [vmem:[#allocation118_spill] sm:$0xff] }
 0x6c0   : > { %v5785_v29 = vor.u32 %v5784_v25, %v5781_v47  ;;  %v5793_v60 = vor.u32 %v5792_v54, %v5789_v8  ;;  %v5764_v56 = vmul.f32 %v13905_v63, %v16629_v61  ;;  %v5600_v15 = vsel %vm2147_vm6, %v5598_v37, %v16630_v55 }
 0x6c1   : > { %6547 = vperm.xlu1 %11168, %v14213_v30   ;;  %v5805_v18 = vshrl.u32 %v5773_v10, 16  ;;  %v5808_v6 = vshll.u32 %v5773_v10, 16  ;;  %v5798_v47 = vrot.slane %v5796_v44, 1  ;;  %v5801_v25 = vrot.slane %v5799_v14, 2  ;;  %v16631_v30 = vld [vmem:[#allocation120_spill] sm:$0xff]  ;;  %v16632_v14 = vld [vmem:[#allocation122_spill] sm:$0xff] }
 0x6c2   : > { %v5775_v10 = vpack.c.bf16 %v5765_v24, %v5764_v56  ;;  %v5767_v61 = vmul.f32 %v13934_v3, %v16631_v30 }
 0x6c3   : > { %v5807_v8 = vrot.slane %v5805_v18, 1  ;;  %v5810_v54 = vrot.slane %v5808_v6, 2  ;;  %v5802_v33 = vor.u32 %v5801_v25, %v5798_v47  ;;  %v11219_v18 = vld [vmem:[%s16102_s3 + $0x12c] sm:$0xff]  }
 0x6c4   : > { %v5823_v37 = vshrl.u32 %v5775_v10, 16  ;;  %v5826_v44 = vshll.u32 %v5775_v10, 16  ;;  %v16634_v6 = vld [vmem:[#allocation121_spill] sm:$0xff] }
 0x6c5   : > { %v5811_v4 = vor.u32 %v5810_v54, %v5807_v8  ;;  %v5768_v24 = vmul.f32 %v13941_v26, %v16634_v6  ;;  %v5803_v56 = vsel %vm3388_vm12, %v5793_v60, %v5802_v33  ;;  %v6005_v6 = vmul.f32 %v13833_v22, %v13372_v31 }
 0x6c6   : > { %10479 = vmatmul.mubr.msk.bf16.gmra.mrb[36].mxu0 %vm881_vm2, %v5597_v62  ;;  %v16628_v62 = vld [vmem:[#allocation114_spill] sm:$0xff]  ;;  %v5825_v25 = vrot.slane %v5823_v37, 1  ;;  %v6009_v22 = vmul.f32 %v13866_v43, %v13438_v57  ;;  %v6014_v43 = vmul.f32 %v13909_v2, %v13484_v13  ;;  %v6016_v2 = vmul.f32 %v13934_v3, %v13494_v20 }
 0x6c7   : > { %10482 = vmatprep.mubr.msk.bf16.mxu0 %vm881_vm2, %v5599_v38  ;;  %v5762_v7 = vmul.f32 %v13886_v51, %v16628_v62  ;;  %v5794_v38 = vsel %vm3388_vm12, %v5785_v29, %v5793_v60  ;;  %v5812_v47 = vsel %vm3388_vm12, %v5802_v33, %v5811_v4 }
 0x6c9   : > { %v5774_v41 = vpack.c.bf16 %v5763_v12, %v5762_v7  ;;  %v5769_v12 = vmul.f32 %v13949_v27, %v16632_v14  ;;  %v16633_v7 = vld [vmem:[#allocation119_spill] sm:$0xff] }
 0x6ca   : > { %v5766_v29 = vmul.f32 %v13921_v50, %v16633_v7 }
 0x6cb   : > { %v5814_v1 = vshrl.u32 %v5774_v41, 16  ;;  %v5817_v62 = vshll.u32 %v5774_v41, 16  ;;  %v5828_v41 = vrot.slane %v5826_v44, 2 }
 0x6cd   : > { %v5816_v55 = vrot.slane %v5814_v1, 1  ;;  %v5819_v30 = vrot.slane %v5817_v62, 2  ;;  %v5829_v14 = vor.u32 %v5828_v41, %v5825_v25 }
 0x6ce   : > { %10483 = vmatmul.mubr.msk.bf16.gmra.mrb[40].mxu0 %vm881_vm2, %v5600_v15  ;;  %v5776_v15 = vpack.c.bf16 %v5767_v61, %v5766_v29  ;;  %v6003_v29 = vmul.f32 %v13844_v32, %v13369_v16  ;;  %v6007_v32 = vmul.f32 %v13858_v35, %v13396_v39 }
 0x6cf   : > { %10490 = vmatprep.mubr.msk.bf16.mxu0 %vm881_vm2, %v5794_v38  ;;  %v5777_v38 = vpack.c.bf16 %v5769_v12, %v5768_v24  ;;  %v5820_v8 = vor.u32 %v5819_v30, %v5816_v55 }
 0x6d0   : > { %v5832_v54 = vshrl.u32 %v5776_v15, 16  ;;  %v5835_v10 = vshll.u32 %v5776_v15, 16 }
 0x6d1   : > { %v5841_v60 = vshrl.u32 %v5777_v38, 16  ;;  %v5844_v1 = vshll.u32 %v5777_v38, 16  ;;  %v5821_v62 = vsel %vm3388_vm12, %v5811_v4, %v5820_v8  ;;  %v5830_v33 = vsel %vm3388_vm12, %v5820_v8, %v5829_v14 }
 0x6d2   : > { %v5834_v61 = vrot.slane %v5832_v54, 1  ;;  %v5837_v7 = vrot.slane %v5835_v10, 2  ;;  %v6004_v4 = vmul.f32 %v13829_v52, %v13382_v36  ;;  %v6012_v8 = vmul.f32 %v13891_v58, %v13456_v40 }
 0x6d3   : > { %v5843_v37 = vrot.slane %v5841_v60, 1 }
 0x6d4   : > { %v5838_v44 = vor.u32 %v5837_v7, %v5834_v61  ;;  %v6019_v55 = vpack.c.bf16 %v6004_v4, %v6003_v29  ;;  %v16635_v61 = vld [vmem:[#allocation133_spill] sm:$0xff]  ;;  %v16636_v7 = vld [vmem:[#allocation130_spill] sm:$0xff] }
 0x6d6   : > { %10491 = vmatmul.mubr.msk.bf16.vlgmr.msra.gmra.mrb[28].mxu0 %vm881_vm2, %v5803_v56  ;;  %v5839_v24 = vsel %vm3388_vm12, %v5829_v14, %v5838_v44  ;;  %v6035_v52 = vrot.slane %v6019_v55, 2 }
 0x6d7   : > { %10507 = vmatpush3.bf16.msra.mxu0 %v14352_v59  ;;  %10494 = vmatprep.mubr.msk.bf16.mxu0 %vm881_vm2, %v5812_v47  ;;  %v5846_v59 = vrot.slane %v5844_v1, 2  ;;  %v6010_v47 = vmul.f32 %v13877_v5, %v13444_v11  ;;  %v6011_v5 = vmul.f32 %v13886_v51, %v13453_v17  ;;  %v6018_v51 = vmul.f32 %v13949_v27, %v16635_v61 }
 0x6d8   : > { %10508 = vmatprep.subr.bf16.mxu0 %v11219_v18 }
 0x6d9   : > { %v5847_v12 = vor.u32 %v5846_v59, %v5843_v37  ;;  %v6022_v35 = vpack.c.bf16 %v6010_v47, %v6009_v22  ;;  %v6023_v14 = vpack.c.bf16 %v6012_v8, %v6011_v5  ;;  %v9682_v5 = vld [vmem:[%s11752_s8 + $0x100] sm:$0xff] }
 0x6db   : > { %10509 = vmatpush3.bf16.msra.mxu0 %v11219_v18  ;;  %v6006_v18 = vmul.f32 %v13849_v53, %v13375_v34  ;;  %v5848_v56 = vsel %vm3388_vm12, %v5838_v44, %v5847_v12  ;;  %v6008_v53 = vmul.f32 %v13863_v46, %v13399_v45  ;;  %v5849_v25 = vsel %vm3388_vm12, %v5847_v12, %v13420_v19 }
 0x6dc   : > { %v6040_v54 = vrot.slane %v6022_v35, 2  ;;  %v6013_v19 = vmul.f32 %v13905_v63, %v13480_v49  ;;  %v6042_v58 = vrot.slane %v6023_v14, 2  ;;  %v6015_v63 = vmul.f32 %v13921_v50, %v16636_v7 }
 0x6dd   : > { %v6020_v30 = vpack.c.bf16 %v6006_v18, %v6005_v6  ;;  %v6021_v41 = vpack.c.bf16 %v6008_v53, %v6007_v32  ;;  %v14492_v6 = vld [vmem:[%s16104_s5 + $0xd] ss:$0 sm:$0xff] }
 0x6de   : > { %10495 = vmatmul.mubr.msk.bf16.gmra.mrb[32].mxu0 %vm881_vm2, %v5821_v62  ;;  %v6024_v1 = vpack.c.bf16 %v6014_v43, %v6013_v19  ;;  %v6043_v59 = vsel %vm1641_vm5, %v6040_v54, %v6042_v58  ;;  %v6025_v44 = vpack.c.bf16 %v6016_v2, %v6015_v63  ;;  %v9685_v43 = vld [vmem:[%s11752_s8 + $0x118] sm:$0xff]  ;;  %v16643_v19 = vld [vmem:[#allocation4_spill] sm:$0xff] }
 0x6df   : > { %10498 = vmatprep.mubr.msk.bf16.mxu0 %vm881_vm2, %v5830_v33  ;;  %v6036_v15 = vrot.slane %v6020_v30, 2  ;;  %v6038_v46 = vrot.slane %v6021_v41, 2  ;;  %v16637_v33 = vld [vmem:[#allocation132_spill] sm:$0xff]  ;;  %v16639_v41 = vld [vmem:[#allocation135_spill] sm:$0xff] }
 0x6e0   : > { %v6044_v62 = vrot.slane %v6024_v1, 2  ;;  %v6017_v37 = vmul.f32 %v13941_v26, %v16637_v33  ;;  %v6046_v3 = vrot.slane %v6025_v44, 2  ;;  %v16638_v26 = vld [vmem:[#allocation134_spill] sm:$0xff]  ;;  %v9683_v2 = vld [vmem:[%s11752_s8 + $0x108] sm:$0xff] }
 0x6e1   : > { %v6037_v38 = vsel %vm1641_vm5, %v6035_v52, %v6036_v15  ;;  %v6039_v10 = vsel %vm1641_vm5, %v6036_v15, %v6038_v46  ;;  %v6041_v60 = vsel %vm1641_vm5, %v6038_v46, %v6040_v54  ;;  %v16641_v46 = vld [vmem:[#allocation3_spill] sm:$0xff] }
 0x6e2   : > { %v6045_v12 = vsel %vm1641_vm5, %v6042_v58, %v6044_v62  ;;  %v6026_v29 = vpack.c.bf16 %v6018_v51, %v6017_v37  ;;  %v6047_v27 = vsel %vm1641_vm5, %v6044_v62, %v6046_v3 }
 0x6e4   : > { %v6048_v18 = vrot.slane %v6026_v29, 2 }
 0x6e6   : > { %10499 = vmatmul.mubr.msk.bf16.gmra.mrb[36].mxu0 %vm881_vm2, %v5839_v24  ;;  %v6049_v50 = vsel %vm1641_vm5, %v6046_v3, %v6048_v18  ;;  %v6050_v4 = vsel %vm1641_vm5, %v6048_v18, %v16638_v26 }
 0x6e7   : > { %10502 = vmatprep.mubr.msk.bf16.mxu0 %vm881_vm2, %v5848_v56 }
 0x6ee   : > { %10503 = vmatmul.mubr.msk.bf16.gmra.mrb[40].mxu0 %vm881_vm2, %v5849_v25  ;;  %v9684_v25 = vld [vmem:[%s11752_s8 + $0x110] sm:$0xff] }
 0x6ef   : > { %10510 = vmatprep.mubr.msk.bf16.mxu0 %vm881_vm2, %v6037_v38 }
 0x6f6   : > { %10511 = vmatmul.mubr.msk.bf16.vlgmr.msra.gmra.mrb[28].mxu0 %vm881_vm2, %v6039_v10 }
 0x6f7   : > { %10514 = vmatprep.mubr.msk.bf16.mxu0 %vm881_vm2, %v6041_v60  ;;  %v16645_v60 = vld [vmem:[#allocation5_spill] sm:$0xff] }
 0x6fe   : > { %10515 = vmatmul.mubr.msk.bf16.gmra.mrb[32].mxu0 %vm881_vm2, %v6043_v59 }
 0x6ff   : > { %10518 = vmatprep.mubr.msk.bf16.mxu0 %vm881_vm2, %v6045_v12 }
 0x706   : > { %10519 = vmatmul.mubr.msk.bf16.gmra.mrb[36].mxu0 %vm881_vm2, %v6047_v27 }
 0x707   : > { %10522 = vmatprep.mubr.msk.bf16.mxu0 %vm881_vm2, %v6049_v50 }
 0x70e   : > { %10523 = vmatmul.mubr.msk.bf16.gmra.mrb[40].mxu0 %vm881_vm2, %v6050_v4 }
 0x7c9   : > { %v10512_v24 = vpop.f32.mrb[28].mxu0 }
 0x7ca   : > { %v6207_v56 = vadd.f32 %v10512_v24, %v14492_v6  ;;  %v6121_v55 = vpop.f32.mrb[29].mxu0 }
 0x7cb   : > { %v6205_v30 = vadd.f32 %v14492_v6, %v6121_v55  ;;  %v10513_v32 = vpop.f32.mrb[30].mxu0  ;;  %v16647_v55 = vld [vmem:[#allocation6_spill] sm:$0xff] }
 0x7cc   : > { %v6223_v53 = vmax.f32 %v6207_v56, 0.0  ;;  %v6208_v52 = vadd.f32 %v10513_v32, %v14492_v6  ;;  %v6124_v15 = vpop.f32.mrb[31].mxu0  ;;  %v9688_v56 = vld [vmem:[%s11752_s8 + $0x130] sm:$0xff] }
 0x7cd   : > { %v6221_v22 = vmax.f32 %v6205_v30, 0.0  ;;  %v6206_v47 = vadd.f32 %v14492_v6, %v6124_v15 }
 0x7ce   : > { %v14500_v38 = vadd.f32 %v6223_v53, %v16639_v41  ;;  %v6224_v35 = vmax.f32 %v6208_v52, 0.0  ;;  %v16649_v52 = vld [vmem:[#allocation7_spill] sm:$0xff]  ;;  %v16651_v41 = vld [vmem:[#allocation8_spill] sm:$0xff] }
 0x7cf   : > { %v14503_v8 = vadd.f32 %v6221_v22, %v16641_v46  ;;  %v6222_v54 = vmax.f32 %v6206_v47, 0.0  ;;  %v9689_v47 = vld [vmem:[%s11752_s8 + $0x138] sm:$0xff] }
 0x7d0   : > { %16640 = vst [vmem:[#allocation40_spill] sm:$0xff] %v14500_v38  ;;  %v14508_v10 = vadd.f32 %v6224_v35, %v16643_v19  ;;  %v14511_v14 = vadd.f32 %v9684_v25, %v14500_v38  ;;  %v9686_v25 = vld [vmem:[%s11752_s8 + $0x120] sm:$0xff] }
 0x7d1   : > { %16642 = vst [vmem:[#allocation44_spill] sm:$0xff] %v14503_v8  ;;  %v14514_v1 = vadd.f32 %v6222_v54, %v16645_v60  ;;  %v10516_v58 = vpop.f32.mrb[32].mxu0  ;;  %v14524_v59 = vadd.f32 %v9682_v5, %v14503_v8  ;;  %v9687_v60 = vld [vmem:[%s11752_s8 + $0x128] sm:$0xff] }
 0x7d2   : > { %16644 = vst [vmem:[#allocation46_spill] sm:$0xff] %v14508_v10  ;;  %v6211_v62 = vadd.f32 %v10516_v58, %v14492_v6  ;;  %v6137_v51 = vpop.f32.mrb[33].mxu0  ;;  %v6292_v63 = vsel %vm881_vm2, %v14511_v14, 0.0  ;;  %v14521_v37 = vadd.f32 %v9685_v43, %v14508_v10  ;;  %v16653_v43 = vld [vmem:[#allocation9_spill] sm:$0xff] }
 0x7d3   : > { %16646 = vst [vmem:[#allocation43_spill] sm:$0xff] %v14514_v1  ;;  %v6209_v44 = vadd.f32 %v14492_v6, %v6137_v51  ;;  %6293 = vadd.xlane.f32.xlu0 %v6292_v63  ;;  %v10517_v12 = vpop.f32.mrb[34].mxu0  ;;  %v14531_v50 = vadd.f32 %v9683_v2, %v14514_v1  ;;  %v6286_v53 = vsel %vm881_vm2, %v14524_v59, 0.0 }
 0x7d4   : > { %v6227_v29 = vmax.f32 %v6211_v62, 0.0  ;;  %v6212_v3 = vadd.f32 %v10517_v12, %v14492_v6  ;;  %v6140_v18 = vpop.f32.mrb[35].mxu0  ;;  %v6295_v27 = vsel %vm881_vm2, %v14521_v37, 0.0 }
 0x7d5   : > { %v6225_v4 = vmax.f32 %v6209_v44, 0.0  ;;  %v6210_v24 = vadd.f32 %v14492_v6, %v6140_v18  ;;  %6296 = vadd.xlane.f32.xlu1 %v6295_v27  ;;  %v6289_v46 = vsel %vm881_vm2, %v14531_v50, 0.0 }
 0x7d6   : > { %v14536_v30 = vadd.f32 %v6227_v29, %v16647_v55  ;;  %v6228_v32 = vmax.f32 %v6212_v3, 0.0  ;;  %v9692_v55 = vld [vmem:[%s11752_s8 + $0x150] sm:$0xff] }
 0x7d7   : > { %v14541_v15 = vadd.f32 %v6225_v4, %v16649_v52  ;;  %v6226_v22 = vmax.f32 %v6210_v24, 0.0  ;;  %6287 = vadd.xlane.f32.xlu0 %v6286_v53 }
 0x7d8   : > { %16648 = vst [vmem:[#allocation45_spill] sm:$0xff] %v14536_v30  ;;  %v14546_v35 = vadd.f32 %v6228_v32, %v16651_v41  ;;  %v14551_v54 = vadd.f32 %v9688_v56, %v14536_v30  ;;  %v16655_v32 = vld [vmem:[#allocation10_spill] sm:$0xff] }
 0x7d9   : > { %16650 = vst [vmem:[#allocation48_spill] sm:$0xff] %v14541_v15  ;;  %v14554_v5 = vadd.f32 %v6226_v22, %v16653_v43  ;;  %6290 = vadd.xlane.f32.xlu1 %v6289_v46  ;;  %v10520_v19 = vpop.f32.mrb[36].mxu0  ;;  %v14564_v63 = vadd.f32 %v9686_v25, %v14541_v15  ;;  %v9693_v46 = vld [vmem:[%s11752_s8 + $0x158] sm:$0xff]  ;;  %v9690_v43 = vld [vmem:[%s11752_s8 + $0x140] sm:$0xff] }
 0x7da   : > { %16652 = vst [vmem:[#allocation50_spill] sm:$0xff] %v14546_v35  ;;  %v6215_v58 = vadd.f32 %v10520_v19, %v14492_v6  ;;  %v6153_v2 = vpop.f32.mrb[37].mxu0  ;;  %v6304_v62 = vsel %vm881_vm2, %v14551_v54, 0.0  ;;  %v14561_v51 = vadd.f32 %v9689_v47, %v14546_v35  ;;  %v16657_v47 = vld [vmem:[#allocation11_spill] sm:$0xff]  ;;  %v16659_v19 = vld [vmem:[#allocation12_spill] sm:$0xff] }
 0x7db   : > { %16654 = vst [vmem:[#allocation47_spill] sm:$0xff] %v14554_v5  ;;  %v6213_v44 = vadd.f32 %v14492_v6, %v6153_v2  ;;  %6305 = vadd.xlane.f32.xlu0 %v6304_v62  ;;  %v10521_v12 = vpop.f32.mrb[38].mxu0  ;;  %v14571_v4 = vadd.f32 %v9687_v60, %v14554_v5  ;;  %v6298_v22 = vsel %vm881_vm2, %v14564_v63, 0.0  ;;  %v16661_v62 = vld [vmem:[#allocation13_spill] sm:$0xff] }
 0x7dc   : > { %v6231_v29 = vmax.f32 %v6215_v58, 0.0  ;;  %v6216_v3 = vadd.f32 %v10521_v12, %v14492_v6  ;;  %v6156_v18 = vpop.f32.mrb[39].mxu0  ;;  %v6307_v27 = vsel %vm881_vm2, %v14561_v51, 0.0 }
 0x7dd   : > { %v6229_v24 = vmax.f32 %v6213_v44, 0.0  ;;  %v6214_v56 = vadd.f32 %v14492_v6, %v6156_v18  ;;  %6308 = vadd.xlane.f32.xlu1 %v6307_v27  ;;  %v6301_v58 = vsel %vm881_vm2, %v14571_v4, 0.0 }
 0x7de   : > { %v14576_v53 = vadd.f32 %v6231_v29, %v16655_v32  ;;  %v6232_v52 = vmax.f32 %v6216_v3, 0.0  ;;  %v9691_v29 = vld [vmem:[%s11752_s8 + $0x148] sm:$0xff] }
 0x7df   : > { %v14581_v25 = vadd.f32 %v6229_v24, %v16657_v47  ;;  %v6230_v41 = vmax.f32 %v6214_v56, 0.0  ;;  %6299 = vadd.xlane.f32.xlu0 %v6298_v22 }
 0x7e0   : > { %16656 = vst [vmem:[#allocation49_spill] sm:$0xff] %v14576_v53  ;;  %v14586_v60 = vadd.f32 %v6232_v52, %v16659_v19  ;;  %v14591_v2 = vadd.f32 %v9692_v55, %v14576_v53 }
 0x7e1   : > { %16658 = vst [vmem:[#allocation53_spill] sm:$0xff] %v14581_v25  ;;  %v14594_v44 = vadd.f32 %v6230_v41, %v16661_v62  ;;  %6302 = vadd.xlane.f32.xlu1 %v6301_v58  ;;  %v10524_v12 = vpop.f32.mrb[40].mxu0  ;;  %v14604_v56 = vadd.f32 %v9690_v43, %v14581_v25  ;;  %v9696_v43 = vld [vmem:[%s11752_s8 + $0x170] sm:$0xff]  ;;  %v16663_v62 = vld [vmem:[#allocation14_spill] sm:$0xff] }
 0x7e2   : > { %16660 = vst [vmem:[#allocation55_spill] sm:$0xff] %v14586_v60  ;;  %v6219_v3 = vadd.f32 %v10524_v12, %v14492_v6  ;;  %v6169_v18 = vpop.f32.mrb[41].mxu0  ;;  %v6316_v27 = vsel %vm881_vm2, %v14591_v2, 0.0  ;;  %v14601_v24 = vadd.f32 %v9693_v46, %v14586_v60 }
 0x7e3   : > { %16662 = vst [vmem:[#allocation56_spill] sm:$0xff] %v14594_v44  ;;  %v6217_v55 = vadd.f32 %v14492_v6, %v6169_v18  ;;  %6317 = vadd.xlane.f32.xlu0 %v6316_v27  ;;  %v10525_v32 = vpop.f32.mrb[42].mxu0  ;;  %v14611_v19 = vadd.f32 %v9691_v29, %v14594_v44  ;;  %v16665_v18 = vld [vmem:[#allocation15_spill] sm:$0xff] }
 0x7e4   : > { %v6235_v52 = vmax.f32 %v6219_v3, 0.0  ;;  %v6220_v22 = vadd.f32 %v10525_v32, %v14492_v6  ;;  %v6172_v47 = vpop.f32.mrb[43].mxu0  ;;  %v6319_v41 = vsel %vm881_vm2, %v14601_v24, 0.0  ;;  %v6310_v3 = vsel %vm881_vm2, %v14604_v56, 0.0  ;;  %v9694_v32 = vld [vmem:[%s11752_s8 + $0x160] sm:$0xff] }
 0x7e5   : > { %v6233_v46 = vmax.f32 %v6217_v55, 0.0  ;;  %v6218_v58 = vadd.f32 %v14492_v6, %v6172_v47  ;;  %6320 = vadd.xlane.f32.xlu1 %v6319_v41  ;;  %v6313_v29 = vsel %vm881_vm2, %v14611_v19, 0.0 }
 0x7e6   : > { %v14616_v12 = vadd.f32 %v6235_v52, %v16663_v62 }
 0x7e7   : > { %v14621_v27 = vadd.f32 %v6233_v46, %v16665_v18  ;;  %6311 = vadd.xlane.f32.xlu0 %v6310_v3  ;;  %v6234_v41 = vmax.f32 %v6218_v58, 0.0  ;;  %v14638_v46 = vpop.permute.xlu1 %6667  ;;  %v9695_v3 = vld [vmem:[%s11752_s8 + $0x168] sm:$0xff]  ;;  %v6236_v18 = vmax.f32 %v6220_v22, 0.0 }
 0x7e8   : > { %16664 = vst [vmem:[#allocation52_spill] sm:$0xff] %v14616_v12  ;;  %v14627_v55 = vadd.f32 %v9696_v43, %v14616_v12  ;;  %v16667_v43 = vld [vmem:[#allocation17_spill] sm:$0xff] }
 0x7e9   : > { %16666 = vst [vmem:[#allocation54_spill] sm:$0xff] %v14621_v27  ;;  %6314 = vadd.xlane.f32.xlu1 %v6313_v29  ;;  %v14632_v52 = vadd.f32 %v9694_v32, %v14621_v27  ;;  %v14641_v62 = vadd.f32 %v6234_v41, %v16667_v43 }
 0x7ea   : > { %v6328_v6 = vsel %vm881_vm2, %v14627_v55, 0.0 }
 0x7eb   : > { %6329 = vadd.xlane.f32.xlu0 %v6328_v6  ;;  %v6322_v47 = vsel %vm881_vm2, %v14632_v52, 0.0  ;;  %16668 = vst [vmem:[#allocation59_spill] sm:$0xff] %v14641_v62  ;;  %v14644_v29 = vpop.permute.xlu1 %6675  ;;  %v14647_v32 = vadd.f32 %v9695_v3, %v14641_v62  ;;  %v16669_v6 = vld [vmem:[#allocation16_spill] sm:$0xff] }
 0x7ec   : > { %v14650_v12 = vadd.f32 %v6236_v18, %v16669_v6 }
 0x7ed   : > { %v6325_v27 = vsel %vm881_vm2, %v14647_v32, 0.0 }
 0x7ee   : > { %16670 = vst [vmem:[#allocation58_spill] sm:$0xff] %v14650_v12 }
 0x7ef   : > { %6323 = vadd.xlane.f32.xlu0 %v6322_v47  ;;  %v9697_v47 = vld [vmem:[%s11752_s8 + $0x178] sm:$0xff]  ;;  %v14655_v58 = vpop.permute.xlu1 %6679 }
 0x7f0   : > { %v14658_v41 = vadd.f32 %v9697_v47, %v14650_v12 }
 0x7f2   : > { %v6331_v22 = vsel %vm881_vm2, %v14658_v41, 0.0 }
 0x7f3   : > { %v14662_v43 = vpop.permute.xlu1 %6683 }
 0x7f7   : > { %v14664_v3 = vpop.permute.xlu1 %6687 }
 0x7fa   : > { %6553 = vperm.xlu1 %11168, %v14254_v48  }
 0x7fb   : > { %v14666_v18 = vpop.permute.xlu1 %6691 }
 0x7ff   : > { %v14668_v6 = vpop.permute.xlu1 %6695 }
 0x803   : > { %v14670_v62 = vpop.permute.xlu1 %6699 }
 0x805   : > { %6550 = vperm.xlu0 %11167, %v14241_v23  }
 0x807   : > { %v14672_v44 = vpop.permute.xlu1 %6703 }
 0x80b   : > { %v14676_v47 = vpop.permute.xlu1 %6711 }
 0x80f   : > { %v14680_v60 = vpop.permute.xlu1 %6719 }
 0x81e   : > { %6326 = vadd.xlane.f32.xlu1 %v6325_v27  ;;  %v14674_v27 = vpop.permute.xlu0 %6671 }
 0x822   : > { %v14678_v12 = vpop.permute.xlu0 %6707 }
 0x824   : > { %6332 = vadd.xlane.f32.xlu0 %v6331_v22  ;;  %v14684_v22 = vpop.permute.xlu1 %6727 }
 0x826   : > { %v14682_v53 = vpop.permute.xlu0 %6715 }
 0x828   : > { %v14688_v5 = vpop.permute.xlu1 %6544 }
 0x82a   : > { %v14686_v25 = vpop.permute.xlu0 %6723 }
 0x82c   : > { %v14692_v30 = vpop.permute.xlu1 %6547 }
 0x82e   : > { %v14690_v35 = vpop.permute.xlu0 %6541 }
 0x860   : > { %v6294_v15 = vpop.xlane.xlu0 %6293 }
 0x861   : > { %v6336_v1 = vmul.f32 0.03125, %v6294_v15 }
 0x862   : > { %v6297_v38 = vpop.xlane.xlu1 %6296 }
 0x863   : > { %v14695_v10 = vsub.f32 %v14511_v14, %v6336_v1  ;;  %v6337_v8 = vmul.f32 0.03125, %v6297_v38 }
 0x864   : > { %v6288_v26 = vpop.xlane.xlu0 %6287 }
 0x865   : > { %v6334_v33 = vmul.f32 0.03125, %v6288_v26  ;;  %v6368_v7 = vmul.f32 %v14695_v10, %v14695_v10  ;;  %v14700_v61 = vsub.f32 %v14521_v37, %v6337_v8 }
 0x866   : > { %v6291_v20 = vpop.xlane.xlu1 %6290 }
 0x867   : > { %v14703_v49 = vsub.f32 %v14524_v59, %v6334_v33  ;;  %v6335_v13 = vmul.f32 0.03125, %v6291_v20  ;;  %v6388_v15 = vsel %vm881_vm2, %v6368_v7, 0.0  ;;  %v6369_v8 = vmul.f32 %v14700_v61, %v14700_v61 }
 0x868   : > { %v6306_v17 = vpop.xlane.xlu0 %6305  ;;  %6389 = vadd.xlane.f32.xlu1 %v6388_v15 }
 0x869   : > { %v14707_v14 = vsub.f32 %v14531_v50, %v6335_v13  ;;  %v6340_v38 = vmul.f32 0.03125, %v6306_v17  ;;  %v6366_v26 = vmul.f32 %v14703_v49, %v14703_v49 }
 0x86a   : > { %v6309_v1 = vpop.xlane.xlu1 %6308 }
 0x86b   : > { %v14714_v37 = vsub.f32 %v14551_v54, %v6340_v38  ;;  %v6341_v33 = vmul.f32 0.03125, %v6309_v1  ;;  %v6382_v20 = vsel %vm881_vm2, %v6366_v26, 0.0  ;;  %v6367_v7 = vmul.f32 %v14707_v14, %v14707_v14 }
 0x86c   : > { %v6300_v59 = vpop.xlane.xlu0 %6299  ;;  %6383 = vadd.xlane.f32.xlu1 %v6382_v20  ;;  %v6391_v1 = vsel %vm881_vm2, %v6369_v8, 0.0 }
 0x86d   : > { %v14720_v17 = vsub.f32 %v14561_v51, %v6341_v33  ;;  %v6338_v13 = vmul.f32 0.03125, %v6300_v59  ;;  %v6385_v50 = vsel %vm881_vm2, %v6367_v7, 0.0  ;;  %v6372_v15 = vmul.f32 %v14714_v37, %v14714_v37 }
 0x86e   : > { %6386 = vadd.xlane.f32.xlu0 %v6385_v50  ;;  %v6303_v54 = vpop.xlane.xlu1 %6302 }
 0x86f   : > { %v14726_v38 = vsub.f32 %v14564_v63, %v6338_v13  ;;  %v6339_v26 = vmul.f32 0.03125, %v6303_v54  ;;  %v6373_v20 = vmul.f32 %v14720_v17, %v14720_v17  ;;  %v6400_v7 = vsel %vm881_vm2, %v6372_v15, 0.0 }
 0x870   : > { %v6318_v40 = vpop.xlane.xlu0 %6317  ;;  %6392 = vadd.xlane.f32.xlu1 %v6391_v1 }
 0x871   : > { %v14732_v51 = vsub.f32 %v14571_v4, %v6339_v26  ;;  %v6344_v33 = vmul.f32 0.03125, %v6318_v40  ;;  %v6370_v59 = vmul.f32 %v14726_v38, %v14726_v38  ;;  %v6403_v50 = vsel %vm881_vm2, %v6373_v20, 0.0 }
 0x872   : > { %6401 = vadd.xlane.f32.xlu0 %v6400_v7  ;;  %v6321_v63 = vpop.xlane.xlu1 %6320 }
 0x873   : > { %v14738_v13 = vsub.f32 %v14591_v2, %v6344_v33  ;;  %v6345_v8 = vmul.f32 0.03125, %v6321_v63  ;;  %v6371_v54 = vmul.f32 %v14732_v51, %v14732_v51  ;;  %v6394_v15 = vsel %vm881_vm2, %v6370_v59, 0.0 }
 0x874   : > { %v6312_v1 = vpop.xlane.xlu0 %6311  ;;  %6404 = vadd.xlane.f32.xlu1 %v6403_v50 }
 0x875   : > { %v14744_v40 = vsub.f32 %v14601_v24, %v6345_v8  ;;  %v6342_v4 = vmul.f32 0.03125, %v6312_v1  ;;  %v6376_v26 = vmul.f32 %v14738_v13, %v14738_v13  ;;  %v6397_v7 = vsel %vm881_vm2, %v6371_v54, 0.0 }
 0x876   : > { %6395 = vadd.xlane.f32.xlu0 %v6394_v15  ;;  %v6315_v2 = vpop.xlane.xlu1 %6314 }
 0x877   : > { %v14750_v33 = vsub.f32 %v14604_v56, %v6342_v4  ;;  %v6343_v20 = vmul.f32 0.03125, %v6315_v2  ;;  %v6377_v63 = vmul.f32 %v14744_v40, %v14744_v40  ;;  %v6412_v8 = vsel %vm881_vm2, %v6376_v26, 0.0 }
 0x878   : > { %v6330_v50 = vpop.xlane.xlu0 %6329  ;;  %6398 = vadd.xlane.f32.xlu1 %v6397_v7 }
 0x879   : > { %v14756_v24 = vsub.f32 %v14611_v19, %v6343_v20  ;;  %v6348_v59 = vmul.f32 0.03125, %v6330_v50  ;;  %v6374_v1 = vmul.f32 %v14750_v33, %v14750_v33  ;;  %v6415_v54 = vsel %vm881_vm2, %v6377_v63, 0.0 }
 0x87a   : > { %6413 = vadd.xlane.f32.xlu0 %v6412_v8  ;;  %v14789_v8 = vpop.permute.xlu1 %6553 }
 0x87b   : > { %v14762_v56 = vsub.f32 %v14627_v55, %v6348_v59  ;;  %v6375_v4 = vmul.f32 %v14756_v24, %v14756_v24  ;;  %v6406_v19 = vsel %vm881_vm2, %v6374_v1, 0.0  ;;  %v11221_v59 = vld [vmem:[%s16102_s3 + $0x14c] sm:$0xff]   ;;  %v16671_v1 = vld [vmem:[#allocation39_spill] sm:$0xff] }
 0x87c   : > { %v6324_v15 = vpop.xlane.xlu0 %6323  ;;  %6416 = vadd.xlane.f32.xlu1 %v6415_v54 }
 0x87d   : > { %v6346_v2 = vmul.f32 0.03125, %v6324_v15  ;;  %v6380_v26 = vmul.f32 %v14762_v56, %v14762_v56  ;;  %v6409_v55 = vsel %vm881_vm2, %v6375_v4, 0.0  ;;  %v16672_v15 = vld [vmem:[#allocation42_spill] sm:$0xff] }
 0x87e   : > { %6407 = vadd.xlane.f32.xlu0 %v6406_v19  ;;  %v16673_v19 = vld [vmem:[#allocation41_spill] sm:$0xff] }
 0x87f   : > { %v14771_v20 = vsub.f32 %v14632_v52, %v6346_v2  ;;  %v6424_v7 = vsel %vm881_vm2, %v6380_v26, 0.0  ;;  %v11220_v52 = vld [vmem:[%s16102_s3 + $0x144] sm:$0xff]   ;;  %v11476_v26 = vmov 10  }
 0x880   : > { %6410 = vadd.xlane.f32.xlu1 %v6409_v55  ;;  %10526 = vmatprep.subr.bf16.mxu1 %v11220_v52 }
 0x881   : > { %v6378_v63 = vmul.f32 %v14771_v20, %v14771_v20  ;;  %10527 = vmatpush3.bf16.msra.mxu1 %v11220_v52  ;;  %v16675_v52 = vld [vmem:[#allocation19_spill] sm:$0xff] }
 0x882   : > { %6425 = vadd.xlane.f32.xlu0 %v6424_v7  ;;  %10528 = vmatprep.subr.bf16.mxu1 %v11221_v59  ;;  %v11432_v7 = vld [vmem:[%s16099_s0] sm:$0xff] }
 0x883   : > { %v6418_v50 = vsel %vm881_vm2, %v6378_v63, 0.0 }
 0x885   : > { %10529 = vmatpush3.bf16.msra.mxu1 %v11221_v59  ;;  %v16676_v59 = vld [vmem:[#allocation21_spill] sm:$0xff] }
 0x886   : > { %6419 = vadd.xlane.f32.xlu0 %v6418_v50  ;;  %v14806_v50 = vld [vmem:[%s16099_s0 + $0x8] sm:$0xff] }
 0x891   : > { %6559 = vperm.xlu1 %11168, %v14286_v0  }
 0x895   : > { %6565 = vperm.xlu1 %11168, %v14310_v42  }
 0x89c   : > { %6556 = vperm.xlu0 %11167, %v14270_v28  }
 0x8a0   : > { %6562 = vperm.xlu0 %11167, %v14296_v9  }
 0x8a4   : > { %6568 = vperm.xlu0 %11167, %v14322_v21  }
 0x8a8   : > { %6574 = vperm.xlu0 %11167, %v16671_v1  }
 0x8ab   : > { %v6327_v54 = vpop.xlane.xlu1 %6326 }
 0x8ac   : > { %v6347_v4 = vmul.f32 0.03125, %v6327_v54  ;;  %6580 = vperm.xlu0 %11167, %v16672_v15   ;;  %v16677_v54 = vld [vmem:[#allocation20_spill] sm:$0xff] }
 0x8ae   : > { %v14794_v2 = vsub.f32 %v14647_v32, %v6347_v4  ;;  %v16674_v32 = vld [vmem:[#allocation18_spill] sm:$0xff] }
 0x8b0   : > { %6586 = vperm.xlu0 %11167, %v16673_v19   ;;  %v6379_v55 = vmul.f32 %v14794_v2, %v14794_v2 }
 0x8b2   : > { %v6421_v63 = vsel %vm881_vm2, %v6379_v55, 0.0  ;;  %v16327_v55 = vmov 11  }
 0x8b4   : > { %11169 = vset.pattern.permute.xlu0 %v11476_v26 }
 0x8b5   : > { %7617 = vperm.xlu0 %11169, %v11432_v7  }
 0x8b9   : > { %7621 = vperm.xlu0 %11169, %v14806_v50   ;;  %6422 = vadd.xlane.f32.xlu1 %v6421_v63 }
 0x8bd   : > { %7625 = vperm.xlu0 %11169, %v16674_v32   ;;  %v11435_v32 = vld [vmem:[%s16099_s0 + $0x18] sm:$0xff] }
 0x8c1   : > { %7629 = vperm.xlu0 %11169, %v14241_v23   ;;  %v14822_v23 = vld [vmem:[%s16099_s0 + $0x50] sm:$0xff] }
 0x8c5   : > { %7633 = vperm.xlu0 %11169, %v14254_v48   ;;  %v14828_v48 = vld [vmem:[%s16102_s3 + $0x134] sm:$0xff]  }
 0x8c6   : > { %10546 = vmatprep.subr.bf16.mxu1 %v14828_v48 }
 0x8c9   : > { %7637 = vperm.xlu0 %11169, %v14270_v28  }
 0x8ca   : > { %6571 = vperm.xlu1 %11168, %v16675_v52  }
 0x8cd   : > { %7641 = vperm.xlu0 %11169, %v14286_v0   ;;  %v14833_v0 = vpop.permute.xlu0 %6550 }
 0x8ce   : > { %6577 = vperm.xlu1 %11168, %v16676_v59  }
 0x8d1   : > { %7645 = vperm.xlu0 %11169, %v14296_v9   ;;  %v6333_v4 = vpop.xlane.xlu0 %6332 }
 0x8d2   : > { %6583 = vperm.xlu1 %11168, %v16677_v54  }
 0x8d5   : > { %7653 = vperm.xlu0 %11169, %v14322_v21  }
 0x8d6   : > { %11170 = vset.pattern.permute.xlu1 %v11476_v26  ;;  %v6349_v26 = vmul.f32 0.03125, %v6333_v4 }
 0x8d8   : > { %v14838_v63 = vsub.f32 %v14658_v41, %v6349_v26 }
 0x8d9   : > { %7657 = vperm.xlu0 %11169, %v14822_v23  }
 0x8da   : > { %v6381_v52 = vmul.f32 %v14838_v63, %v14838_v63 }
 0x8dd   : > { %7661 = vperm.xlu0 %11169, %v16671_v1  }
 0x8e1   : > { %7665 = vperm.xlu0 %11169, %v16676_v59  }
 0x8e5   : > { %7673 = vperm.xlu0 %11169, %v16677_v54   ;;  %v6427_v54 = vsel %vm881_vm2, %v6381_v52, 0.0 }
 0x8e9   : > { %11171 = vset.pattern.permute.xlu0 %v16327_v55 }
 0x8ea   : > { %7858 = vperm.xlu0 %11171, %v11432_v7  }
 0x8ee   : > { %7867 = vperm.xlu0 %11171, %v11435_v32  }
 0x8f2   : > { %7873 = vperm.xlu0 %11171, %v14270_v28  }
 0x8f5   : > { %v6390_v59 = vpop.xlane.xlu1 %6389 }
 0x8f6   : > { %v6432_v4 = vmul.f32 0.03125, %v6390_v59  ;;  %6428 = vadd.xlane.f32.xlu1 %v6427_v54  ;;  %7879 = vperm.xlu0 %11171, %v14296_v9  }
 0x8f8   : > { %v6450_v7 = vadd.f32 1e-05, %v6432_v4 }
 0x8f9   : > { %v6384_v41 = vpop.xlane.xlu1 %6383 }
 0x8fa   : > { %11304 = vrsqrt.f32 %v6450_v7  ;;  %v6430_v26 = vmul.f32 0.03125, %v6384_v41  ;;  %7885 = vperm.xlu0 %11171, %v14322_v21  }
 0x8fb   : > { %v6387_v55 = vpop.xlane.xlu0 %6386 }
 0x8fc   : > { %v6448_v32 = vadd.f32 1e-05, %v6430_v26  ;;  %v6431_v57 = vmul.f32 0.03125, %v6387_v55 }
 0x8fd   : > { %v6393_v11 = vpop.xlane.xlu1 %6392 }
 0x8fe   : > { %11306 = vrsqrt.f32 %v6448_v32  ;;  %v6449_v39 = vadd.f32 1e-05, %v6431_v57  ;;  %v6433_v28 = vmul.f32 0.03125, %v6393_v11  ;;  %7891 = vperm.xlu0 %11171, %v16671_v1  }
 0x8ff   : > { %v6402_v52 = vpop.xlane.xlu0 %6401 }
 0x900   : > { %11308 = vrsqrt.f32 %v6449_v39  ;;  %v6451_v59 = vadd.f32 1e-05, %v6433_v28  ;;  %v6436_v54 = vmul.f32 0.03125, %v6402_v52  ;;  %v14856_v39 = vld [vmem:[%s16104_s5 + $0x4] ss:$0 sm:$0xff] }
 0x901   : > { %v6405_v9 = vpop.xlane.xlu1 %6404 }
 0x902   : > { %11310 = vrsqrt.f32 %v6451_v59  ;;  %v6454_v4 = vadd.f32 1e-05, %v6436_v54  ;;  %v6437_v7 = vmul.f32 0.03125, %v6405_v9  ;;  %7897 = vperm.xlu0 %11171, %v16672_v15  }
 0x903   : > { %v6396_v21 = vpop.xlane.xlu0 %6395 }
 0x904   : > { %v11305_v41 = vpop.eup %11304  ;;  %11312 = vrsqrt.f32 %v6454_v4  ;;  %v6434_v55 = vmul.f32 0.03125, %v6396_v21  ;;  %v6455_v26 = vadd.f32 1e-05, %v6437_v7 }
 0x905   : > { %v6399_v32 = vpop.xlane.xlu1 %6398  ;;  %v6482_v57 = vmul.f32 %v11305_v41, %v14695_v10 }
 0x906   : > { %v6452_v11 = vadd.f32 1e-05, %v6434_v55  ;;  %v6435_v1 = vmul.f32 0.03125, %v6399_v32  ;;  %7903 = vperm.xlu0 %11171, %v16673_v19   ;;  %v14864_v55 = vld [vmem:[%s16104_s5 + $0x9] ss:$0 sm:$0xff] }
 0x907   : > { %v6414_v28 = vpop.xlane.xlu0 %6413  ;;  %7649 = vperm.xlu1 %11170, %v14310_v42   ;;  %v6502_v7 = vmul.f32 %v14856_v39, %v6482_v57 }
 0x908   : > { %v11307_v52 = vpop.eup %11306  ;;  %11314 = vrsqrt.f32 %v6452_v11  ;;  %v6453_v59 = vadd.f32 1e-05, %v6435_v1  ;;  %v6440_v54 = vmul.f32 0.03125, %v6414_v28 }
 0x909   : > { %v6480_v9 = vmul.f32 %v11307_v52, %v14703_v49  ;;  %11316 = vrsqrt.f32 %v6455_v26  ;;  %v6417_v10 = vpop.xlane.xlu1 %6416 }
 0x90a   : > { %v11309_v4 = vpop.eup %11308  ;;  %11318 = vrsqrt.f32 %v6453_v59  ;;  %v6458_v21 = vadd.f32 1e-05, %v6440_v54  ;;  %v6441_v41 = vmul.f32 0.03125, %v6417_v10 }
 0x90b   : > { %v6500_v42 = vmul.f32 %v14856_v39, %v6480_v9  ;;  %v6481_v32 = vmul.f32 %v11309_v4, %v14707_v14  ;;  %v6408_v11 = vpop.xlane.xlu0 %6407  ;;  %7669 = vperm.xlu1 %11170, %v16672_v15   ;;  %v14875_v9 = vadd.f32 %v14864_v55, %v6502_v7  ;;  %v6730_v15 = vmul.f32 0.0, %v14638_v46 }
 0x90c   : > { %v11311_v49 = vpop.eup %11310  ;;  %11320 = vrsqrt.f32 %v6458_v21  ;;  %v6459_v26 = vadd.f32 1e-05, %v6441_v41  ;;  %v6438_v1 = vmul.f32 0.03125, %v6408_v11 }
 0x90d   : > { %v14870_v57 = vadd.f32 %v14864_v55, %v6500_v42  ;;  %v6501_v28 = vmul.f32 %v14856_v39, %v6481_v32  ;;  %v6483_v52 = vmul.f32 %v11311_v49, %v14700_v61  ;;  %v6411_v59 = vpop.xlane.xlu1 %6410  ;;  %v6733_v49 = vmul.f32 %v14655_v58, %v14875_v9 }
 0x90e   : > { %v11313_v54 = vpop.eup %11312  ;;  %v6456_v14 = vadd.f32 1e-05, %v6438_v1  ;;  %v6439_v10 = vmul.f32 0.03125, %v6411_v59  ;;  %11322 = vrsqrt.f32 %v6459_v26 }
 0x90f   : > { %v14879_v4 = vadd.f32 %v14864_v55, %v6501_v28  ;;  %v14881_v21 = vpop.xlane.xlu0 %6425  ;;  %7677 = vperm.xlu1 %11170, %v16673_v19   ;;  %v6731_v61 = vmul.f32 %v14674_v27, %v14870_v57  ;;  %v6486_v41 = vmul.f32 %v11313_v54, %v14714_v37  ;;  %v6503_v42 = vmul.f32 %v14856_v39, %v6483_v52 }
 0x910   : > { %11324 = vrsqrt.f32 %v6456_v14  ;;  %v6457_v7 = vadd.f32 1e-05, %v6439_v10  ;;  %v16678_v27 = vmov 11  }
 0x911   : > { %v6746_v32 = vpack.c.bf16 %v6731_v61, %v6730_v15  ;;  %v6732_v46 = vmul.f32 %v14644_v29, %v14879_v4  ;;  %v6506_v28 = vmul.f32 %v14856_v39, %v6486_v41  ;;  %v11223_v29 = vld [vmem:[%s16102_s3 + $0x13c] sm:$0xff]   ;;  %v14901_v58 = vadd.f32 %v14864_v55, %v6503_v42 }
 0x912   : > { %v11315_v11 = vpop.eup %11314  ;;  %11326 = vrsqrt.f32 %v6457_v7 }
 0x913   : > { %v11317_v26 = vpop.eup %11316  ;;  %v6484_v19 = vmul.f32 %v11315_v11, %v14726_v38  ;;  %v6420_v1 = vpop.xlane.xlu0 %6419  ;;  %11172 = vset.pattern.permute.xlu1 %v16678_v27  ;;  %10530 = vmatprep.mubr.msk.bf16.mxu1 %vm881_vm2, %v6746_v32  ;;  %v6747_v59 = vpack.c.bf16 %v6733_v49, %v6732_v46  ;;  %v14913_v41 = vadd.f32 %v14864_v55, %v6506_v28  ;;  %v11437_v27 = vld [vmem:[%s16099_s0 + $0x20] sm:$0xff] }
 0x914   : > { %v11319_v37 = vpop.eup %11318  ;;  %v6442_v52 = vmul.f32 0.03125, %v6420_v1  ;;  %7861 = vperm.xlu1 %11172, %v14806_v50   ;;  %v6487_v10 = vmul.f32 %v11317_v26, %v14720_v17  ;;  %v11436_v17 = vld [vmem:[%s16099_s0 + $0x10] sm:$0xff]  ;;  %v6734_v32 = vmul.f32 %v14662_v43, %v14901_v58 }
 0x915   : > { %v6504_v38 = vmul.f32 %v14856_v39, %v6484_v19  ;;  %v6485_v54 = vmul.f32 %v11319_v37, %v14732_v51  ;;  %10531 = vmatmul.mubr.msk.bf16.vlgmr.msra.gmra.mrb[16].mxu1 %vm881_vm2, %v6747_v59  ;;  %v14922_v51 = vld [vmem:[%s16102_s3 + $0x154] sm:$0xff]  }
 0x916   : > { %v11321_v14 = vpop.eup %11320  ;;  %v6460_v15 = vadd.f32 1e-05, %v6442_v52  ;;  %10547 = vmatpush3.bf16.msra.mxu1 %v14828_v48  ;;  %v6507_v46 = vmul.f32 %v14856_v39, %v6487_v10 }
 0x917   : > { %v14908_v50 = vadd.f32 %v14864_v55, %v6504_v38  ;;  %v6505_v61 = vmul.f32 %v14856_v39, %v6485_v54  ;;  %v6490_v7 = vmul.f32 %v11321_v14, %v14738_v13  ;;  %10548 = vmatprep.subr.bf16.mxu1 %v11223_v29 }
 0x918   : > { %11328 = vrsqrt.f32 %v6460_v15  ;;  %7864 = vperm.xlu1 %11172, %v11436_v17   ;;  %v11323_v42 = vpop.eup %11322  ;;  %v14947_v52 = vadd.f32 %v14864_v55, %v6507_v46  ;;  %v11441_v46 = vld [vmem:[%s16099_s0 + $0x70] sm:$0xff] }
 0x919   : > { %v14925_v48 = vadd.f32 %v14864_v55, %v6505_v61  ;;  %v6735_v13 = vmul.f32 %v14664_v3, %v14908_v50  ;;  %v6510_v1 = vmul.f32 %v14856_v39, %v6490_v7  ;;  %v6737_v3 = vmul.f32 %v14668_v6, %v14913_v41  ;;  %v11439_v61 = vld [vmem:[%s16099_s0 + $0x40] sm:$0xff] }
 0x91a   : > { %v11325_v11 = vpop.eup %11324  ;;  %10549 = vmatpush3.bf16.msra.mxu1 %v11223_v29  ;;  %v6738_v10 = vmul.f32 %v14670_v62, %v14947_v52 }
 0x91b   : > { %v6488_v49 = vmul.f32 %v11325_v11, %v14750_v33  ;;  %v6748_v26 = vpack.c.bf16 %v6735_v13, %v6734_v32  ;;  %v6736_v43 = vmul.f32 %v14666_v18, %v14925_v48  ;;  %10566 = vmatprep.subr.bf16.mxu1 %v14922_v51  ;;  %v6491_v33 = vmul.f32 %v11323_v42, %v14744_v40  ;;  %v11438_v40 = vld [vmem:[%s16099_s0 + $0x30] sm:$0xff]  ;;  %v11440_v11 = vld [vmem:[%s16099_s0 + $0x60] sm:$0xff] }
 0x91c   : > { %v11327_v19 = vpop.eup %11326  ;;  %7870 = vperm.xlu1 %11172, %v11437_v27   ;;  %v14954_v6 = vadd.f32 %v14864_v55, %v6510_v1  ;;  %v6557_v1 = vpop.permute.xlu0 %6556 }
 0x91d   : > { %v6508_v37 = vmul.f32 %v14856_v39, %v6488_v49  ;;  %v6489_v28 = vmul.f32 %v11327_v19, %v14756_v24  ;;  %10534 = vmatprep.mubr.msk.bf16.mxu1 %vm881_vm2, %v6748_v26  ;;  %v6749_v59 = vpack.c.bf16 %v6737_v3, %v6736_v43  ;;  %v6511_v24 = vmul.f32 %v14856_v39, %v6491_v33  ;;  %v6560_v49 = vpop.permute.xlu1 %6559 }
 0x91e   : > { %v6741_v42 = vmul.f32 %v14676_v47, %v14954_v6  ;;  %v6589_v33 = vrot.slane %v14688_v5, 4 }
 0x91f   : > { %v14950_v29 = vadd.f32 %v14864_v55, %v6508_v37  ;;  %v6509_v18 = vmul.f32 %v14856_v39, %v6489_v28  ;;  %10535 = vmatmul.mubr.msk.bf16.gmra.mrb[20].mxu1 %vm881_vm2, %v6749_v59  ;;  %v6588_v37 = vrot.slane %v14690_v35, 4  ;;  %v6593_v28 = vrot.slane %v14833_v0, 4 }
 0x920   : > { %7876 = vperm.xlu1 %11172, %v11438_v40   ;;  %v6563_v3 = vpop.permute.xlu0 %6562 }
 0x921   : > { %v14962_v38 = vadd.f32 %v14864_v55, %v6509_v18  ;;  %v6739_v54 = vmul.f32 %v14672_v44, %v14950_v29  ;;  %v14977_v44 = vadd.f32 %v14864_v55, %v6511_v24  ;;  %v6566_v26 = vpop.permute.xlu1 %6565  ;;  %v6590_v18 = vsel %vm732_vm0, %v6588_v37, %v6589_v33 }
 0x922   : > { %v11329_v14 = vpop.eup %11328  ;;  %v6636_v5 = vmul.f32 0.0, %v6588_v37  ;;  %v6637_v0 = vmul.f32 0.0, %v6590_v18 }
 0x923   : > { %v6492_v15 = vmul.f32 %v11329_v14, %v14771_v20  ;;  %v6750_v7 = vpack.c.bf16 %v6739_v54, %v6738_v10  ;;  %v6740_v17 = vmul.f32 %v14678_v12, %v14962_v38  ;;  %v6742_v12 = vmul.f32 %v14682_v53, %v14977_v44 }
 0x924   : > { %7882 = vperm.xlu1 %11172, %v11439_v61   ;;  %v6597_v54 = vrot.slane %v6557_v1, 4  ;;  %v6569_v14 = vpop.permute.xlu0 %6568  ;;  %v6601_v61 = vrot.slane %v6563_v3, 4 }
 0x925   : > { %v6512_v32 = vmul.f32 %v14856_v39, %v6492_v15  ;;  %10538 = vmatprep.mubr.msk.bf16.mxu1 %vm881_vm2, %v6750_v7  ;;  %v6751_v62 = vpack.c.bf16 %v6741_v42, %v6740_v17  ;;  %v6599_v17 = vrot.slane %v6560_v49, 4 }
 0x927   : > { %v14982_v20 = vadd.f32 %v14864_v55, %v6512_v32  ;;  %10539 = vmatmul.mubr.msk.bf16.gmra.mrb[24].mxu1 %vm881_vm2, %v6751_v62 }
 0x928   : > { %7888 = vperm.xlu1 %11172, %v14822_v23   ;;  %v6444_v23 = vmul.f32 0.03125, %v14881_v21  ;;  %v6591_v21 = vrot.slane %v14692_v30, 4 }
 0x929   : > { %v6743_v47 = vmul.f32 %v14680_v60, %v14982_v20 }
 0x92a   : > { %v6462_v53 = vadd.f32 1e-05, %v6444_v23  ;;  %v6594_v40 = vsel %vm732_vm0, %v6591_v21, %v6593_v28  ;;  %v6592_v35 = vsel %vm732_vm0, %v6589_v33, %v6591_v21  ;;  %v6600_v23 = vsel %vm732_vm0, %v6597_v54, %v6599_v17 }
 0x92b   : > { %v6752_v13 = vpack.c.bf16 %v6743_v47, %v6742_v12  ;;  %v6639_v10 = vmul.f32 %v6594_v40, %v14879_v4  ;;  %v6638_v7 = vmul.f32 %v6592_v35, %v14870_v57 }
 0x92c   : > { %7894 = vperm.xlu1 %11172, %v11440_v11   ;;  %11330 = vrsqrt.f32 %v6462_v53  ;;  %v6653_v11 = vpack.c.bf16 %v6637_v0, %v6636_v5  ;;  %v6605_v53 = vrot.slane %v6569_v14, 4 }
 0x92d   : > { %10542 = vmatprep.mubr.msk.bf16.mxu1 %vm881_vm2, %v6752_v13  ;;  %v6654_v47 = vpack.c.bf16 %v6639_v10, %v6638_v7  ;;  %v6602_v13 = vsel %vm732_vm0, %v6599_v17, %v6601_v61 }
 0x92e   : > { %v6896_v37 = vrot.slane %v6653_v11, 2 }
 0x930   : > { %7900 = vperm.xlu1 %11172, %v11441_v46   ;;  %v6575_v46 = vpop.permute.xlu0 %6574 }
 0x936   : > { %v11331_v43 = vpop.eup %11330 }
 0x937   : > { %v6494_v59 = vmul.f32 %v11331_v43, %v14762_v56  ;;  %v6595_v56 = vrot.slane %v14789_v8, 4  ;;  %v6603_v43 = vrot.slane %v6566_v26, 4 }
 0x939   : > { %v6514_v24 = vmul.f32 %v14856_v39, %v6494_v59  ;;  %v6598_v32 = vsel %vm732_vm0, %v6595_v56, %v6597_v54  ;;  %v6606_v40 = vsel %vm732_vm0, %v6603_v43, %v6605_v53  ;;  %v6604_v54 = vsel %vm732_vm0, %v6601_v61, %v6603_v43 }
 0x93a   : > { %v6641_v49 = vmul.f32 %v6598_v32, %v14901_v58  ;;  %v6644_v35 = vmul.f32 %v6604_v54, %v14913_v41 }
 0x93b   : > { %v15012_v42 = vadd.f32 %v14864_v55, %v6514_v24  ;;  %v6609_v24 = vrot.slane %v6575_v46, 4 }
 0x93d   : > { %v6745_v1 = vmul.f32 %v14684_v22, %v15012_v42 }
 0x946   : > { %v6423_v60 = vpop.xlane.xlu1 %6422 }
 0x947   : > { %v6443_v19 = vmul.f32 0.03125, %v6423_v60  ;;  %v6643_v60 = vmul.f32 %v6602_v13, %v14925_v48 }
 0x949   : > { %v6461_v27 = vadd.f32 1e-05, %v6443_v19 }
 0x94a   : > { %v6572_v12 = vpop.permute.xlu1 %6571 }
 0x94b   : > { %11332 = vrsqrt.f32 %v6461_v27  ;;  %v6897_v27 = vrot.slane %v6654_v47, 2  ;;  %v6607_v33 = vrot.slane %v6572_v12, 4  ;;  %v11225_v12 = vld [vmem:[%s16102_s3 + $0x15c] sm:$0xff]  }
 0x94d   : > { %v6898_v22 = vsel %vm1641_vm5, %v6896_v37, %v6897_v27  ;;  %v6608_v14 = vsel %vm732_vm0, %v6605_v53, %v6607_v33  ;;  %v6610_v10 = vsel %vm732_vm0, %v6607_v33, %v6609_v24 }
 0x94e   : > { %v6578_v59 = vpop.permute.xlu1 %6577  ;;  %v6646_v0 = vmul.f32 %v6608_v14, %v14950_v29  ;;  %v6647_v61 = vmul.f32 %v6610_v10, %v14962_v38  ;;  %v16681_v14 = vld [vmem:[#allocation25_spill] sm:$0xff] }
 0x94f   : > { %v7052_v10 = vmul.f32 %v14875_v9, %v16681_v14 }
 0x950   : > { %v6658_v11 = vpack.c.bf16 %v6647_v61, %v6646_v0  ;;  %v16682_v61 = vld [vmem:[#allocation23_spill] sm:$0xff] }
 0x952   : > { %v6905_v33 = vrot.slane %v6658_v11, 2 }
 0x955   : > { %v11333_v15 = vpop.eup %11332 }
 0x956   : > { %v6493_v30 = vmul.f32 %v11333_v15, %v14794_v2  ;;  %v6596_v2 = vsel %vm732_vm0, %v6593_v28, %v6595_v56  ;;  %v6642_v28 = vmul.f32 %v6600_v23, %v14908_v50  ;;  %v6645_v15 = vmul.f32 %v6606_v40, %v14947_v52 }
 0x957   : > { %v6640_v3 = vmul.f32 %v6596_v2, %v14875_v9  ;;  %v6611_v56 = vrot.slane %v6578_v59, 4 }
 0x958   : > { %v6513_v62 = vmul.f32 %v14856_v39, %v6493_v30  ;;  %v6656_v26 = vpack.c.bf16 %v6643_v60, %v6642_v28  ;;  %v6584_v30 = vpop.permute.xlu1 %6583  ;;  %v11226_v60 = vld [vmem:[%s16102_s3 + $0x164] sm:$0xff]  }
 0x959   : > { %v6655_v18 = vpack.c.bf16 %v6641_v49, %v6640_v3  ;;  %v6615_v47 = vrot.slane %v6584_v30, 4  ;;  %v6612_v46 = vsel %vm732_vm0, %v6609_v24, %v6611_v56  ;;  %v16679_v24 = vld [vmem:[#allocation24_spill] sm:$0xff]  ;;  %v16683_v30 = vld [vmem:[#allocation27_spill] sm:$0xff] }
 0x95a   : > { %v15018_v8 = vadd.f32 %v14864_v55, %v6513_v62  ;;  %v6901_v7 = vrot.slane %v6656_v26, 2  ;;  %v6657_v62 = vpack.c.bf16 %v6645_v15, %v6644_v35  ;;  %v7051_v54 = vmul.f32 %v14879_v4, %v16679_v24 }
 0x95b   : > { %v6899_v5 = vrot.slane %v6655_v18, 2 }
 0x95c   : > { %v6744_v19 = vmul.f32 %v14686_v25, %v15018_v8  ;;  %v6581_v25 = vpop.permute.xlu0 %6580  ;;  %v6903_v53 = vrot.slane %v6657_v62, 2  ;;  %v7067_v35 = vpack.c.bf16 %v7052_v10, %v7051_v54  ;;  %v11227_v54 = vld [vmem:[%s16102_s3 + $0x16c] sm:$0xff]   ;;  %v11228_v10 = vld [vmem:[%s16102_s3 + $0x174] sm:$0xff]  }
 0x95d   : > { %v6613_v17 = vrot.slane %v6581_v25, 4  ;;  %v6900_v13 = vsel %vm1641_vm5, %v6897_v27, %v6899_v5  ;;  %v6902_v23 = vsel %vm1641_vm5, %v6899_v5, %v6901_v7 }
 0x95e   : > { %v6753_v21 = vpack.c.bf16 %v6745_v1, %v6744_v19  ;;  %v6648_v19 = vmul.f32 %v6612_v46, %v14954_v6  ;;  %v6904_v28 = vsel %vm1641_vm5, %v6901_v7, %v6903_v53  ;;  %v7054_v7 = vmul.f32 %v14908_v50, %v16683_v30  ;;  %v16686_v46 = vld [vmem:[#allocation29_spill] sm:$0xff] }
 0x95f   : > { %v6614_v2 = vsel %vm732_vm0, %v6611_v56, %v6613_v17  ;;  %v6616_v27 = vsel %vm732_vm0, %v6613_v17, %v6615_v47  ;;  %v7085_v17 = vrot.slane %v7067_v35, 2 }
 0x960   : > { %10543 = vmatmul.mubr.msk.bf16.gmra.mrb[28].mxu1 %vm881_vm2, %v6753_v21  ;;  %v6587_v32 = vpop.permute.xlu0 %6586  ;;  %v6649_v1 = vmul.f32 %v6614_v2, %v14977_v44  ;;  %v6906_v21 = vsel %vm1641_vm5, %v6903_v53, %v6905_v33  ;;  %v7056_v2 = vmul.f32 %v14913_v41, %v16686_v46 }
 0x961   : > { %10550 = vmatprep.mubr.msk.bf16.mxu1 %vm881_vm2, %v6898_v22  ;;  %v6617_v49 = vrot.slane %v6587_v32, 4  ;;  %v16680_v22 = vld [vmem:[#allocation22_spill] sm:$0xff]  ;;  %v16684_v32 = vld [vmem:[#allocation28_spill] sm:$0xff] }
 0x962   : > { %v6659_v37 = vpack.c.bf16 %v6649_v1, %v6648_v19  ;;  %v7050_v26 = vmul.f32 %v14870_v57, %v16680_v22  ;;  %v7055_v62 = vmul.f32 %v14925_v48, %v16684_v32 }
 0x963   : > { %v6618_v43 = vsel %vm732_vm0, %v6615_v47, %v6617_v49  ;;  %v6652_v25 = vmul.f32 %v6617_v49, %v15012_v42  ;;  %v16685_v47 = vld [vmem:[#allocation26_spill] sm:$0xff] }
 0x964   : > { %v6651_v3 = vmul.f32 %v6618_v43, %v15018_v8  ;;  %v6907_v18 = vrot.slane %v6659_v37, 2  ;;  %v7066_v56 = vpack.c.bf16 %v7050_v26, %v16682_v61  ;;  %v7069_v19 = vpack.c.bf16 %v7056_v2, %v7055_v62  ;;  %v16687_v43 = vld [vmem:[#allocation31_spill] sm:$0xff]  ;;  %v16688_v37 = vld [vmem:[#allocation32_spill] sm:$0xff] }
 0x965   : > { %v6661_v0 = vpack.c.bf16 %v6652_v25, %v6652_v25 }
 0x966   : > { %v6908_v15 = vsel %vm1641_vm5, %v6905_v33, %v6907_v18  ;;  %v7084_v11 = vrot.slane %v7066_v56, 2  ;;  %v16692_v56 = vld [vmem:[#allocation36_spill] sm:$0xff] }
 0x967   : > { %v7063_v30 = vmul.f32 %v15018_v8, %v16692_v56 }
 0x968   : > { %10551 = vmatmul.mubr.msk.bf16.vlgmr.msra.gmra.mrb[16].mxu1 %vm881_vm2, %v6900_v13  ;;  %v7053_v13 = vmul.f32 %v14901_v58, %v16685_v47  ;;  %v7086_v53 = vsel %vm1641_vm5, %v7084_v11, %v7085_v17 }
 0x969   : > { %10567 = vmatpush3.bf16.msra.mxu1 %v14922_v51  ;;  %10554 = vmatprep.mubr.msk.bf16.mxu1 %vm881_vm2, %v6902_v23  ;;  %v6650_v51 = vmul.f32 %v6616_v27, %v14982_v20 }
 0x96a   : > { %10568 = vmatprep.subr.bf16.mxu1 %v11225_v12  ;;  %v7068_v49 = vpack.c.bf16 %v7054_v7, %v7053_v13  ;;  %v16693_v7 = vld [vmem:[#allocation34_spill] sm:$0xff] }
 0x96b   : > { %v6660_v59 = vpack.c.bf16 %v6651_v3, %v6650_v51  ;;  %v7058_v3 = vmul.f32 %v14950_v29, %v16687_v43  ;;  %v7089_v51 = vrot.slane %v7069_v19, 2 }
 0x96c   : > { %v7087_v27 = vrot.slane %v7068_v49, 2 }
 0x96d   : > { %10569 = vmatpush3.bf16.msra.mxu1 %v11225_v12  ;;  %v6909_v40 = vrot.slane %v6660_v59, 2  ;;  %v6911_v12 = vrot.slane %v6661_v0, 2  ;;  %v16689_v59 = vld [vmem:[#allocation30_spill] sm:$0xff]  ;;  %v15108_v0 = vpop.permute.xlu0 %7617 }
 0x96e   : > { %10586 = vmatprep.subr.bf16.mxu1 %v11226_v60  ;;  %v7088_v25 = vsel %vm1641_vm5, %v7085_v17, %v7087_v27  ;;  %v7090_v26 = vsel %vm1641_vm5, %v7087_v27, %v7089_v51  ;;  %v16694_v17 = vld [vmem:[#allocation38_spill] sm:$0xff] }
 0x96f   : > { %v6910_v5 = vsel %vm1641_vm5, %v6907_v18, %v6909_v40  ;;  %v6912_v23 = vsel %vm1641_vm5, %v6909_v40, %v6911_v12  ;;  %v16690_v40 = vld [vmem:[#allocation33_spill] sm:$0xff]  ;;  %v7064_v32 = vmul.f32 %v15012_v42, %v16694_v17 }
 0x970   : > { %10555 = vmatmul.mubr.msk.bf16.gmra.mrb[20].mxu1 %vm881_vm2, %v6904_v28  ;;  %v7059_v28 = vmul.f32 %v14962_v38, %v16688_v37  ;;  %v7060_v24 = vmul.f32 %v14954_v6, %v16690_v40 }
 0x971   : > { %10558 = vmatprep.mubr.msk.bf16.mxu1 %vm881_vm2, %v6906_v21  ;;  %v7057_v21 = vmul.f32 %v14947_v52, %v16689_v59  ;;  %v7073_v13 = vpack.c.bf16 %v7064_v32, %v7063_v30  ;;  %v15120_v46 = vpop.permute.xlu0 %7621  ;;  %v7255_v59 = vpack.c.bf16 %v14901_v58, %v14875_v9  ;;  %v7420_v30 = vmul.f32 %v14925_v48, %v13399_v45 }
 0x972   : > { %v7071_v14 = vpack.c.bf16 %v7060_v24, %v7059_v28  ;;  %v11230_v24 = vld [vmem:[%s16102_s3 + $0x184] sm:$0xff]  }
 0x973   : > { %v7070_v22 = vpack.c.bf16 %v7058_v3, %v7057_v21  ;;  %v7097_v49 = vrot.slane %v7073_v13, 2  ;;  %v16695_v3 = vld [vmem:[#allocation37_spill] sm:$0xff]  ;;  %v11229_v21 = vld [vmem:[%s16102_s3 + $0x17c] sm:$0xff]  }
 0x974   : > { %v7093_v61 = vrot.slane %v7071_v14, 2 }
 0x975   : > { %v15128_v27 = vpop.permute.xlu0 %7625 }
 0x978   : > { %10559 = vmatmul.mubr.msk.bf16.gmra.mrb[24].mxu1 %vm881_vm2, %v6908_v15  ;;  %v7091_v15 = vrot.slane %v7070_v22, 2 }
 0x979   : > { %10562 = vmatprep.mubr.msk.bf16.mxu1 %vm881_vm2, %v6910_v5  ;;  %v16691_v5 = vld [vmem:[#allocation35_spill] sm:$0xff]  ;;  %v15135_v37 = vpop.permute.xlu0 %7629 }
 0x97a   : > { %v7062_v35 = vmul.f32 %v14982_v20, %v16691_v5  ;;  %v7092_v62 = vsel %vm1641_vm5, %v7089_v51, %v7091_v15  ;;  %v7094_v47 = vsel %vm1641_vm5, %v7091_v15, %v7093_v61  ;;  %v7416_v15 = vmul.f32 %v14879_v4, %v13382_v36 }
 0x97b   : > { %v7417_v5 = vmul.f32 %v14875_v9, %v13372_v31 }
 0x97d   : > { %v15142_v28 = vpop.permute.xlu0 %7633 }
 0x980   : > { %10563 = vmatmul.mubr.msk.bf16.gmra.mrb[28].mxu1 %vm881_vm2, %v6912_v23 }
 0x981   : > { %10570 = vmatprep.mubr.msk.bf16.mxu1 %vm881_vm2, %v7086_v53  ;;  %v15153_v40 = vpop.permute.xlu0 %7637 }
 0x983   : > { %v6429_v1 = vpop.xlane.xlu1 %6428 }
 0x984   : > { %v6445_v33 = vmul.f32 0.03125, %v6429_v1 }
 0x985   : > { %v15162_v22 = vpop.permute.xlu0 %7641 }
 0x986   : > { %v6463_v18 = vadd.f32 1e-05, %v6445_v33 }
 0x988   : > { %11334 = vrsqrt.f32 %v6463_v18  ;;  %10571 = vmatmul.mubr.msk.bf16.vlgmr.msra.gmra.mrb[16].mxu1 %vm881_vm2, %v7088_v25  ;;  %v7256_v18 = vpack.c.bf16 %v14925_v48, %v14908_v50  ;;  %v7258_v25 = vpack.c.bf16 %v14962_v38, %v14950_v29 }
 0x989   : > { %10587 = vmatpush3.bf16.msra.mxu1 %v11226_v60  ;;  %10574 = vmatprep.mubr.msk.bf16.mxu1 %vm881_vm2, %v7090_v26  ;;  %v7061_v60 = vmul.f32 %v14977_v44, %v16693_v7  ;;  %v7418_v26 = vmul.f32 %v14901_v58, %v13375_v34  ;;  %v15168_v14 = vpop.permute.xlu0 %7645 }
 0x98a   : > { %10588 = vmatprep.subr.bf16.mxu1 %v11227_v54 }
 0x98b   : > { %v7072_v12 = vpack.c.bf16 %v7062_v35, %v7061_v60  ;;  %v7260_v35 = vpack.c.bf16 %v15018_v8, %v14982_v20  ;;  %v7432_v34 = vpack.c.bf16 %v7418_v26, %v7417_v5  ;;  %v16696_v60 = vld [vmem:[#allocation123_spill] sm:$0xff]  ;;  %v11232_v26 = vld [vmem:[%s16102_s3 + $0x194] sm:$0xff]  }
 0x98c   : > { %v7419_v31 = vmul.f32 %v14908_v50, %v16696_v60  ;;  %v16706_v60 = vld [vmem:[#allocation132_spill] sm:$0xff] }
 0x98d   : > { %10589 = vmatpush3.bf16.msra.mxu1 %v11227_v54  ;;  %v7095_v23 = vrot.slane %v7072_v12, 2  ;;  %v7257_v54 = vpack.c.bf16 %v14947_v52, %v14913_v41  ;;  %v15184_v7 = vpop.permute.xlu0 %7653  ;;  %v7448_v36 = vrot.slane %v7432_v34, 2 }
 0x98e   : > { %10606 = vmatprep.subr.bf16.mxu1 %v11228_v10 }
 0x98f   : > { %v7096_v1 = vsel %vm1641_vm5, %v7093_v61, %v7095_v23  ;;  %v7098_v43 = vsel %vm1641_vm5, %v7095_v23, %v7097_v49  ;;  %v7415_v61 = vmul.f32 %v14870_v57, %v13369_v16  ;;  %v16699_v23 = vld [vmem:[#allocation127_spill] sm:$0xff] }
 0x990   : > { %10575 = vmatmul.mubr.msk.bf16.gmra.mrb[20].mxu1 %vm881_vm2, %v7092_v62  ;;  %v16697_v62 = vld [vmem:[#allocation125_spill] sm:$0xff] }
 0x991   : > { %10578 = vmatprep.mubr.msk.bf16.mxu1 %vm881_vm2, %v7094_v47  ;;  %v7431_v56 = vpack.c.bf16 %v7416_v15, %v7415_v61  ;;  %v7422_v16 = vmul.f32 %v14947_v52, %v16697_v62  ;;  %v16698_v47 = vld [vmem:[#allocation124_spill] sm:$0xff]  ;;  %v15197_v13 = vpop.permute.xlu0 %7657  ;;  %v16703_v15 = vld [vmem:[#allocation131_spill] sm:$0xff]  ;;  %v16704_v61 = vld [vmem:[#allocation133_spill] sm:$0xff] }
 0x992   : > { %v11335_v11 = vpop.eup %11334  ;;  %v7421_v45 = vmul.f32 %v14913_v41, %v16698_v47  ;;  %v7428_v5 = vmul.f32 %v15018_v8, %v16703_v15 }
 0x993   : > { %v6495_v2 = vmul.f32 %v11335_v11, %v14838_v63  ;;  %v7447_v32 = vrot.slane %v7431_v56, 2  ;;  %v16705_v56 = vld [vmem:[#allocation130_spill] sm:$0xff] }
 0x994   : > { %v7434_v11 = vpack.c.bf16 %v7422_v16, %v7421_v45 }
 0x995   : > { %v6515_v53 = vmul.f32 %v14856_v39, %v6495_v2  ;;  %v7449_v12 = vsel %vm1641_vm5, %v7447_v32, %v7448_v36 }
 0x997   : > { %v15125_v19 = vadd.f32 %v14864_v55, %v6515_v53  ;;  %v7254_v55 = vpack.c.bf16 %v14879_v4, %v14870_v57  ;;  %v7433_v57 = vpack.c.bf16 %v7420_v30, %v7419_v31  ;;  %v16700_v53 = vld [vmem:[#allocation126_spill] sm:$0xff]  ;;  %v7429_v31 = vmul.f32 %v15012_v42, %v16706_v60 }
 0x998   : > { %10579 = vmatmul.mubr.msk.bf16.gmra.mrb[24].mxu1 %vm881_vm2, %v7096_v1  ;;  %v7423_v1 = vmul.f32 %v14950_v29, %v16700_v53  ;;  %v7681_v53 = vmul.f32 %v15120_v46, %v14875_v9  ;;  %v7682_v46 = vmul.f32 %v15128_v27, %v14901_v58 }
 0x999   : > { %10582 = vmatprep.mubr.msk.bf16.mxu1 %vm881_vm2, %v7098_v43  ;;  %v7065_v63 = vmul.f32 %v15125_v19, %v16695_v3  ;;  %v7261_v17 = vpack.c.bf16 %v15125_v19, %v15012_v42  ;;  %v7450_v2 = vrot.slane %v7433_v57, 2  ;;  %v15203_v43 = vpop.permute.xlu1 %7649  ;;  %v7452_v3 = vrot.slane %v7434_v11, 2 }
 0x99a   : > { %v7430_v34 = vmul.f32 %v15125_v19, %v16704_v61  ;;  %v7689_v61 = vmul.f32 %v15184_v7, %v14954_v6  ;;  %v7690_v7 = vmul.f32 %v15197_v13, %v14977_v44 }
 0x99b   : > { %v7074_v33 = vpack.c.bf16 %v7065_v63, %v7065_v63  ;;  %v16701_v63 = vld [vmem:[#allocation129_spill] sm:$0xff] }
 0x99c   : > { %v7438_v16 = vpack.c.bf16 %v7430_v34, %v7429_v31 }
 0x99d   : > { %v7099_v51 = vrot.slane %v7074_v33, 2  ;;  %v7426_v33 = vmul.f32 %v14977_v44, %v16701_v63 }
 0x99e   : > { %v7460_v45 = vrot.slane %v7438_v16, 2 }
 0x99f   : > { %v7100_v39 = vsel %vm1641_vm5, %v7097_v49, %v7099_v51  ;;  %v7424_v49 = vmul.f32 %v14962_v38, %v16699_v23  ;;  %v11231_v51 = vld [vmem:[%s16102_s3 + $0x18c] sm:$0xff]  }
 0x9a0   : > { %10583 = vmatmul.mubr.msk.bf16.gmra.mrb[28].mxu1 %vm881_vm2, %v7100_v39  ;;  %v7451_v39 = vsel %vm1641_vm5, %v7448_v36, %v7450_v2 }
 0x9a1   : > { %10590 = vmatprep.mubr.msk.bf16.mxu1 %vm881_vm2, %v7254_v55  ;;  %v7435_v55 = vpack.c.bf16 %v7424_v49, %v7423_v1  ;;  %v7680_v1 = vmul.f32 %v15108_v0, %v14879_v4 }
 0x9a8   : > { %10591 = vmatmul.mubr.msk.bf16.vlgmr.msra.gmra.mrb[16].mxu1 %vm881_vm2, %v7255_v59  ;;  %v15211_v59 = vpop.permute.xlu0 %7661 }
 0x9a9   : > { %10607 = vmatpush3.bf16.msra.mxu1 %v11228_v10  ;;  %10594 = vmatprep.mubr.msk.bf16.mxu1 %vm881_vm2, %v7256_v18  ;;  %v7259_v10 = vpack.c.bf16 %v14977_v44, %v14954_v6  ;;  %v16702_v18 = vld [vmem:[#allocation128_spill] sm:$0xff] }
 0x9aa   : > { %10608 = vmatprep.subr.bf16.mxu1 %v11229_v21 }
 0x9ac   : > { %v15229_v30 = vpop.permute.xlu0 %7665 }
 0x9ad   : > { %10609 = vmatpush3.bf16.msra.mxu1 %v11229_v21  ;;  %v7453_v21 = vsel %vm1641_vm5, %v7450_v2, %v7452_v3 }
 0x9ae   : > { %10626 = vmatprep.subr.bf16.mxu1 %v11230_v24 }
 0x9b0   : > { %10595 = vmatmul.mubr.msk.bf16.gmra.mrb[20].mxu1 %vm881_vm2, %v7257_v54  ;;  %v7425_v54 = vmul.f32 %v14954_v6, %v16702_v18  ;;  %v15239_v47 = vpop.permute.xlu0 %7673 }
 0x9b1   : > { %10598 = vmatprep.mubr.msk.bf16.mxu1 %vm881_vm2, %v7258_v25 }
 0x9b2   : > { %v7436_v25 = vpack.c.bf16 %v7426_v33, %v7425_v54  ;;  %v7696_v33 = vpack.c.bf16 %v7681_v53, %v7680_v1  ;;  %v7684_v54 = vmul.f32 %v15142_v28, %v14925_v48  ;;  %v7688_v28 = vmul.f32 %v15203_v43, %v14962_v38 }
 0x9b4   : > { %v7456_v36 = vrot.slane %v7436_v25, 2  ;;  %v7859_v49 = vpop.permute.xlu0 %7858 }
 0x9b5   : > { %v7905_v31 = vrot.slane %v7859_v49, 4 }
 0x9b8   : > { %10599 = vmatmul.mubr.msk.bf16.gmra.mrb[24].mxu1 %vm881_vm2, %v7259_v10  ;;  %v7454_v10 = vrot.slane %v7435_v55, 2  ;;  %v7683_v55 = vmul.f32 %v15135_v37, %v14908_v50  ;;  %v7687_v37 = vmul.f32 %v15168_v14, %v14950_v29 }
 0x9b9   : > { %10602 = vmatprep.mubr.msk.bf16.mxu1 %vm881_vm2, %v7260_v35  ;;  %v15223_v35 = vpop.permute.xlu1 %7669 }
 0x9ba   : > { %v7457_v62 = vsel %vm1641_vm5, %v7454_v10, %v7456_v36  ;;  %v7697_v25 = vpack.c.bf16 %v7683_v55, %v7682_v46 }
 0x9bd   : > { %v15237_v57 = vpop.permute.xlu1 %7677 }
 0x9c0   : > { %10603 = vmatmul.mubr.msk.bf16.gmra.mrb[28].mxu1 %vm881_vm2, %v7261_v17  ;;  %v7455_v17 = vsel %vm1641_vm5, %v7452_v3, %v7454_v10  ;;  %v7868_v3 = vpop.permute.xlu0 %7867  ;;  %v11233_v10 = vld [vmem:[%s16102_s3 + $0x19c] sm:$0xff]  }
 0x9c1   : > { %10610 = vmatprep.mubr.msk.bf16.mxu1 %vm881_vm2, %v7449_v12  ;;  %v7862_v2 = vpop.permute.xlu1 %7861  ;;  %v7910_v34 = vrot.slane %v7868_v3, 4  ;;  %v7953_v3 = vmul.f32 %v7905_v31, %v14879_v4 }
 0x9c4   : > { %v7874_v0 = vpop.permute.xlu0 %7873 }
 0x9c5   : > { %v7865_v63 = vpop.permute.xlu1 %7864 }
 0x9c8   : > { %10611 = vmatmul.mubr.msk.bf16.vlgmr.msra.gmra.mrb[16].mxu1 %vm881_vm2, %v7451_v39  ;;  %v15268_v27 = vpop.permute.xlu0 %7879 }
 0x9c9   : > { %10627 = vmatpush3.bf16.msra.mxu1 %v11230_v24  ;;  %10614 = vmatprep.mubr.msk.bf16.mxu1 %vm881_vm2, %v7453_v21  ;;  %v7427_v24 = vmul.f32 %v14982_v20, %v16705_v56  ;;  %v7685_v21 = vmul.f32 %v15153_v40, %v14913_v41  ;;  %v7871_v18 = vpop.permute.xlu1 %7870 }
 0x9ca   : > { %10628 = vmatprep.subr.bf16.mxu1 %v11231_v51 }
 0x9cb   : > { %v7437_v32 = vpack.c.bf16 %v7428_v5, %v7427_v24  ;;  %v7698_v15 = vpack.c.bf16 %v7685_v21, %v7684_v54  ;;  %v7686_v5 = vmul.f32 %v15162_v22, %v14947_v52  ;;  %v7700_v24 = vpack.c.bf16 %v7689_v61, %v7688_v28 }
 0x9cc   : > { %v7886_v14 = vpop.permute.xlu0 %7885  ;;  %v7691_v22 = vmul.f32 %v15211_v59, %v14982_v20 }
 0x9cd   : > { %10629 = vmatpush3.bf16.msra.mxu1 %v11231_v51  ;;  %v7458_v12 = vrot.slane %v7437_v32, 2  ;;  %v16707_v51 = vld [vmem:[#allocation134_spill] sm:$0xff]  ;;  %v7877_v40 = vpop.permute.xlu1 %7876  ;;  %v7699_v56 = vpack.c.bf16 %v7687_v37, %v7686_v5  ;;  %v7693_v32 = vmul.f32 %v15223_v35, %v15012_v42  ;;  %v7922_v21 = vrot.slane %v7886_v14, 4 }
 0x9ce   : > { %10646 = vmatprep.subr.bf16.mxu1 %v11232_v26  ;;  %v7462_v39 = vsel %vm1641_vm5, %v7460_v45, %v16707_v51  ;;  %v7916_v59 = vrot.slane %v7877_v40, 4  ;;  %v7701_v49 = vpack.c.bf16 %v7691_v22, %v7690_v7  ;;  %v7695_v51 = vmul.f32 0.0, %v15237_v57 }
 0x9cf   : > { %v7459_v11 = vsel %vm1641_vm5, %v7456_v36, %v7458_v12  ;;  %v7461_v23 = vsel %vm1641_vm5, %v7458_v12, %v7460_v45  ;;  %v7906_v36 = vrot.slane %v7862_v2, 4  ;;  %v7914_v45 = vrot.slane %v7874_v0, 4 }
 0x9d0   : > { %10615 = vmatmul.mubr.msk.bf16.gmra.mrb[20].mxu1 %vm881_vm2, %v7455_v17  ;;  %v7692_v2 = vmul.f32 %v15229_v30, %v15018_v8  ;;  %v7892_v53 = vpop.permute.xlu0 %7891 }
 0x9d1   : > { %10618 = vmatprep.mubr.msk.bf16.mxu1 %vm881_vm2, %v7457_v62  ;;  %v7883_v60 = vpop.permute.xlu1 %7882  ;;  %v7907_v62 = vsel %vm732_vm0, %v7905_v31, %v7906_v36  ;;  %v7917_v30 = vsel %vm732_vm0, %v7914_v45, %v7916_v59 }
 0x9d2   : > { %v7954_v13 = vmul.f32 %v7907_v62, %v14875_v9  ;;  %v7702_v35 = vpack.c.bf16 %v7693_v32, %v7692_v2  ;;  %v7694_v9 = vmul.f32 %v15239_v47, %v15125_v19  ;;  %v7959_v46 = vmul.f32 %v7917_v30, %v14947_v52 }
 0x9d4   : > { %v7898_v54 = vpop.permute.xlu0 %7897 }
 0x9d5   : > { %v7889_v1 = vpop.permute.xlu1 %7888 }
 0x9d6   : > { %v7924_v37 = vrot.slane %v7889_v1, 4 }
 0x9d8   : > { %10619 = vmatmul.mubr.msk.bf16.gmra.mrb[24].mxu1 %vm881_vm2, %v7459_v11  ;;  %v7912_v11 = vrot.slane %v7871_v18, 4  ;;  %v7920_v18 = vrot.slane %v7883_v60, 4  ;;  %v7925_v52 = vsel %vm732_vm0, %v7922_v21, %v7924_v37  ;;  %v7904_v5 = vpop.permute.xlu0 %7903 }
 0x9d9   : > { %10622 = vmatprep.mubr.msk.bf16.mxu1 %vm881_vm2, %v7461_v23  ;;  %v7918_v23 = vrot.slane %v15268_v27, 4  ;;  %v7703_v27 = vpack.c.bf16 %v7695_v51, %v7694_v9 }
 0x9db   : > { %v7921_v28 = vsel %vm732_vm0, %v7918_v23, %v7920_v18 }
 0x9e0   : > { %10623 = vmatmul.mubr.msk.bf16.gmra.mrb[28].mxu1 %vm881_vm2, %v7462_v39  ;;  %v7970_v39 = vpack.c.bf16 %v7954_v13, %v7953_v3 }
 0x9e1   : > { %10630 = vmatprep.mubr.msk.bf16.mxu1 %vm881_vm2, %v7696_v33  ;;  %v7919_v33 = vsel %vm732_vm0, %v7916_v59, %v7918_v23 }
 0x9e2   : > { %v7960_v0 = vmul.f32 %v7919_v33, %v14950_v29  ;;  %v7988_v47 = vrot.slane %v7970_v39, 2 }
 0x9e4   : > { %v7973_v57 = vpack.c.bf16 %v7960_v0, %v7959_v46 }
 0x9e6   : > { %v7993_v31 = vrot.slane %v7973_v57, 2  ;;  %v16710_v57 = vld [vmem:[#allocation40_spill] sm:$0xff] }
 0x9e8   : > { %10631 = vmatmul.mubr.msk.bf16.vlgmr.msra.gmra.mrb[16].mxu1 %vm881_vm2, %v7697_v25  ;;  %v7895_v25 = vpop.permute.xlu1 %7894 }
 0x9e9   : > { %10647 = vmatpush3.bf16.msra.mxu1 %v11232_v26  ;;  %10634 = vmatprep.mubr.msk.bf16.mxu1 %vm881_vm2, %v7698_v15  ;;  %v7908_v26 = vrot.slane %v7865_v63, 4  ;;  %v7926_v15 = vrot.slane %v7892_v53, 4  ;;  %v7928_v60 = vrot.slane %v7895_v25, 4  ;;  %v16708_v25 = vld [vmem:[#allocation44_spill] sm:$0xff] }
 0x9ea   : > { %10648 = vmatprep.subr.bf16.mxu1 %v11233_v10 }
 0x9eb   : > { %v7909_v17 = vsel %vm732_vm0, %v7906_v36, %v7908_v26  ;;  %v7911_v43 = vsel %vm732_vm0, %v7908_v26, %v7910_v34  ;;  %v7927_v29 = vsel %vm732_vm0, %v7924_v37, %v7926_v15  ;;  %v7961_v26 = vmul.f32 %v7921_v28, %v14962_v38  ;;  %v16709_v37 = vld [vmem:[#allocation46_spill] sm:$0xff] }
 0x9ec   : > { %v7955_v16 = vmul.f32 %v7909_v17, %v14901_v58  ;;  %v7956_v12 = vmul.f32 %v7911_v43, %v14908_v50  ;;  %v7913_v58 = vsel %vm732_vm0, %v7910_v34, %v7912_v11  ;;  %v7915_v50 = vsel %vm732_vm0, %v7912_v11, %v7914_v45  ;;  %v7901_v61 = vpop.permute.xlu1 %7900 }
 0x9ed   : > { %10649 = vmatpush3.bf16.msra.mxu1 %v11233_v10  ;;  %v7957_v4 = vmul.f32 %v7913_v58, %v14925_v48  ;;  %v7958_v55 = vmul.f32 %v7915_v50, %v14913_v41  ;;  %v7923_v48 = vsel %vm732_vm0, %v7920_v18, %v7922_v21  ;;  %v7963_v36 = vmul.f32 %v7925_v52, %v14977_v44  ;;  %v15342_v50 = vld [vmem:[%s16104_s5 + $0xe] ss:$0 sm:$0xff] }
 0x9ee   : > { %v7971_v63 = vpack.c.bf16 %v7956_v12, %v7955_v16  ;;  %v7964_v14 = vmul.f32 %v7927_v29, %v14982_v20  ;;  %v7934_v17 = vrot.slane %v7904_v5, 4  ;;  %v7932_v43 = vrot.slane %v7901_v61, 4 }
 0x9ef   : > { %v7972_v40 = vpack.c.bf16 %v7958_v55, %v7957_v4  ;;  %v7929_v62 = vsel %vm732_vm0, %v7926_v15, %v7928_v60 }
 0x9f0   : > { %10635 = vmatmul.mubr.msk.bf16.gmra.mrb[20].mxu1 %vm881_vm2, %v7699_v56  ;;  %v7989_v10 = vrot.slane %v7971_v63, 2  ;;  %v7962_v56 = vmul.f32 %v7923_v48, %v14954_v6  ;;  %v7975_v32 = vpack.c.bf16 %v7964_v14, %v7963_v36  ;;  %v7935_v44 = vsel %vm732_vm0, %v7932_v43, %v7934_v17  ;;  %v16711_v48 = vld [vmem:[#allocation43_spill] sm:$0xff] }
 0x9f1   : > { %10638 = vmatprep.mubr.msk.bf16.mxu1 %vm881_vm2, %v7700_v24  ;;  %v7991_v34 = vrot.slane %v7972_v40, 2  ;;  %v7930_v24 = vrot.slane %v7898_v54, 4  ;;  %v7965_v20 = vmul.f32 %v7929_v62, %v15018_v8  ;;  %v7968_v2 = vmul.f32 0.0, %v7935_v44  ;;  %v9771_v54 = vld [vmem:[%s11752_s8 + $0x180] sm:$0xff]  ;;  %v9774_v40 = vld [vmem:[%s11752_s8 + $0x198] sm:$0xff] }
 0x9f2   : > { %v7990_v41 = vsel %vm1641_vm5, %v7988_v47, %v7989_v10  ;;  %v7974_v22 = vpack.c.bf16 %v7962_v56, %v7961_v26  ;;  %v7997_v23 = vrot.slane %v7975_v32, 2  ;;  %v7969_v1 = vmul.f32 0.0, %v7934_v17  ;;  %v9772_v47 = vld [vmem:[%s11752_s8 + $0x188] sm:$0xff] }
 0x9f3   : > { %v7992_v7 = vsel %vm1641_vm5, %v7989_v10, %v7991_v34  ;;  %v7931_v16 = vsel %vm732_vm0, %v7928_v60, %v7930_v24  ;;  %v7994_v6 = vsel %vm1641_vm5, %v7991_v34, %v7993_v31  ;;  %v7933_v38 = vsel %vm732_vm0, %v7930_v24, %v7932_v43  ;;  %v9773_v34 = vld [vmem:[%s11752_s8 + $0x190] sm:$0xff] }
 0x9f4   : > { %v7966_v12 = vmul.f32 %v7931_v16, %v15012_v42  ;;  %v7995_v45 = vrot.slane %v7974_v22, 2  ;;  %v7967_v11 = vmul.f32 %v7933_v38, %v15125_v19  ;;  %v7978_v3 = vpack.c.bf16 %v7969_v1, %v7969_v1  ;;  %v9775_v16 = vld [vmem:[%s11752_s8 + $0x1a0] sm:$0xff] }
 0x9f6   : > { %v7976_v59 = vpack.c.bf16 %v7966_v12, %v7965_v20  ;;  %v7977_v13 = vpack.c.bf16 %v7968_v2, %v7967_v11  ;;  %v7998_v53 = vsel %vm1641_vm5, %v7995_v45, %v7997_v23  ;;  %v8003_v63 = vrot.slane %v7978_v3, 2  ;;  %v16713_v12 = vld [vmem:[#allocation45_spill] sm:$0xff]  ;;  %v16714_v11 = vld [vmem:[#allocation50_spill] sm:$0xff] }
 0x9f8   : > { %10639 = vmatmul.mubr.msk.bf16.gmra.mrb[24].mxu1 %vm881_vm2, %v7701_v49  ;;  %v7996_v49 = vsel %vm1641_vm5, %v7993_v31, %v7995_v45  ;;  %v8001_v8 = vrot.slane %v7977_v13, 2 }
 0x9f9   : > { %10642 = vmatprep.mubr.msk.bf16.mxu1 %vm881_vm2, %v7702_v35  ;;  %v7999_v35 = vrot.slane %v7976_v59, 2  ;;  %v16715_v59 = vld [vmem:[#allocation47_spill] sm:$0xff] }
 0x9fa   : > { %v8004_v58 = vsel %vm1641_vm5, %v8001_v8, %v8003_v63 }
 0x9fb   : > { %v8000_v42 = vsel %vm1641_vm5, %v7997_v23, %v7999_v35  ;;  %v8002_v19 = vsel %vm1641_vm5, %v7999_v35, %v8001_v8  ;;  %v9776_v23 = vld [vmem:[%s11752_s8 + $0x1a8] sm:$0xff]  ;;  %v9777_v35 = vld [vmem:[%s11752_s8 + $0x1b0] sm:$0xff]  ;;  %v9778_v8 = vld [vmem:[%s11752_s8 + $0x1b8] sm:$0xff] }
 0xa00   : > { %10643 = vmatmul.mubr.msk.bf16.gmra.mrb[28].mxu1 %vm881_vm2, %v7703_v27 }
 0xa01   : > { %10650 = vmatprep.mubr.msk.bf16.mxu1 %vm881_vm2, %v7990_v41 }
 0xa08   : > { %10651 = vmatmul.mubr.msk.bf16.vlgmr.msra.gmra.mrb[16].mxu1 %vm881_vm2, %v7992_v7 }
 0xa09   : > { %10654 = vmatprep.mubr.msk.bf16.mxu1 %vm881_vm2, %v7994_v6  ;;  %v16712_v6 = vld [vmem:[#allocation48_spill] sm:$0xff] }
 0xa10   : > { %10655 = vmatmul.mubr.msk.bf16.gmra.mrb[20].mxu1 %vm881_vm2, %v7996_v49 }
 0xa11   : > { %10658 = vmatprep.mubr.msk.bf16.mxu1 %vm881_vm2, %v7998_v53 }
 0xa18   : > { %10659 = vmatmul.mubr.msk.bf16.gmra.mrb[24].mxu1 %vm881_vm2, %v8000_v42 }
 0xa19   : > { %10662 = vmatprep.mubr.msk.bf16.mxu1 %vm881_vm2, %v8002_v19 }
 0xa20   : > { %10663 = vmatmul.mubr.msk.bf16.gmra.mrb[28].mxu1 %vm881_vm2, %v8004_v58 }
 0xadb   : > { %v10652_v30 = vpop.f32.mrb[16].mxu1 }
 0xadc   : > { %v8161_v33 = vadd.f32 %v10652_v30, %v15342_v50  ;;  %v8075_v9 = vpop.f32.mrb[17].mxu1 }
 0xadd   : > { %v8159_v51 = vadd.f32 %v15342_v50, %v8075_v9  ;;  %v10653_v39 = vpop.f32.mrb[18].mxu1 }
 0xade   : > { %v8162_v4 = vadd.f32 %v10653_v39, %v15342_v50  ;;  %v8078_v55 = vpop.f32.mrb[19].mxu1  ;;  %v8177_v21 = vmax.f32 %v8161_v33, 0.0 }
 0xadf   : > { %v8175_v46 = vmax.f32 %v8159_v51, 0.0  ;;  %v8160_v0 = vadd.f32 %v15342_v50, %v8078_v55 }
 0xae0   : > { %v8178_v18 = vmax.f32 %v8162_v4, 0.0  ;;  %v15358_v28 = vadd.f32 %v8177_v21, %v16710_v57 }
 0xae1   : > { %v15350_v10 = vadd.f32 %v8175_v46, %v16708_v25  ;;  %v8176_v15 = vmax.f32 %v8160_v0, 0.0 }
 0xae2   : > { %v15353_v27 = vadd.f32 %v8178_v18, %v16709_v37  ;;  %v15382_v32 = vadd.f32 %v9773_v34, %v15358_v28  ;;  %v9779_v18 = vld [vmem:[%s11752_s8 + $0x1c0] sm:$0xff]  ;;  %v16717_v37 = vld [vmem:[#allocation49_spill] sm:$0xff] }
 0xae3   : > { %v15361_v41 = vadd.f32 %v8176_v15, %v16711_v48  ;;  %v10656_v52 = vpop.f32.mrb[20].mxu1  ;;  %v15364_v29 = vadd.f32 %v9771_v54, %v15350_v10  ;;  %v16716_v54 = vld [vmem:[#allocation53_spill] sm:$0xff]  ;;  %v9780_v48 = vld [vmem:[%s11752_s8 + $0x1c8] sm:$0xff] }
 0xae4   : > { %v8165_v5 = vadd.f32 %v10656_v52, %v15342_v50  ;;  %v8091_v61 = vpop.f32.mrb[21].mxu1  ;;  %v15375_v14 = vadd.f32 %v9774_v40, %v15353_v27  ;;  %v8246_v53 = vsel %vm881_vm2, %v15382_v32, 0.0  ;;  %v16718_v40 = vld [vmem:[#allocation55_spill] sm:$0xff]  ;;  %v16719_v52 = vld [vmem:[#allocation56_spill] sm:$0xff] }
 0xae5   : > { %v8163_v26 = vadd.f32 %v15342_v50, %v8091_v61  ;;  %v10657_v56 = vpop.f32.mrb[22].mxu1  ;;  %v8240_v24 = vsel %vm881_vm2, %v15364_v29, 0.0  ;;  %v15372_v36 = vadd.f32 %v9772_v47, %v15361_v41 }
 0xae6   : > { %v8181_v60 = vmax.f32 %v8165_v5, 0.0  ;;  %v8166_v31 = vadd.f32 %v10657_v56, %v15342_v50  ;;  %8241 = vadd.xlane.f32.xlu1 %v8240_v24  ;;  %v8094_v17 = vpop.f32.mrb[23].mxu1  ;;  %v8249_v20 = vsel %vm881_vm2, %v15375_v14, 0.0  ;;  %v9781_v24 = vld [vmem:[%s11752_s8 + $0x1d0] sm:$0xff] }
 0xae7   : > { %v8179_v43 = vmax.f32 %v8163_v26, 0.0  ;;  %v8164_v22 = vadd.f32 %v15342_v50, %v8094_v17  ;;  %v8243_v7 = vsel %vm881_vm2, %v15372_v36, 0.0 }
 0xae8   : > { %v8182_v62 = vmax.f32 %v8166_v31, 0.0  ;;  %8244 = vadd.xlane.f32.xlu0 %v8243_v7  ;;  %v15391_v45 = vadd.f32 %v8181_v60, %v16713_v12  ;;  %v9782_v60 = vld [vmem:[%s11752_s8 + $0x1d8] sm:$0xff] }
 0xae9   : > { %v15386_v38 = vadd.f32 %v8179_v43, %v16712_v6  ;;  %v8180_v44 = vmax.f32 %v8164_v22, 0.0 }
 0xaea   : > { %v15394_v2 = vadd.f32 %v8182_v62, %v16714_v11  ;;  %8250 = vadd.xlane.f32.xlu1 %v8249_v20  ;;  %v15414_v51 = vadd.f32 %v9777_v35, %v15391_v45  ;;  %v16720_v35 = vld [vmem:[#allocation54_spill] sm:$0xff] }
 0xaeb   : > { %v15398_v49 = vadd.f32 %v8180_v44, %v16715_v59  ;;  %v10660_v13 = vpop.f32.mrb[24].mxu1  ;;  %v15403_v1 = vadd.f32 %v9775_v16, %v15386_v38 }
 0xaec   : > { %v8169_v3 = vadd.f32 %v10660_v13, %v15342_v50  ;;  %8247 = vadd.xlane.f32.xlu0 %v8246_v53  ;;  %v8107_v42 = vpop.f32.mrb[25].mxu1  ;;  %v15417_v39 = vadd.f32 %v9778_v8, %v15394_v2  ;;  %v8258_v34 = vsel %vm881_vm2, %v15414_v51, 0.0  ;;  %v9783_v53 = vld [vmem:[%s11752_s8 + $0x1e0] sm:$0xff] }
 0xaed   : > { %v8167_v19 = vadd.f32 %v15342_v50, %v8107_v42  ;;  %v10661_v63 = vpop.f32.mrb[26].mxu1  ;;  %v15410_v58 = vadd.f32 %v9776_v23, %v15398_v49  ;;  %v8252_v21 = vsel %vm881_vm2, %v15403_v1, 0.0 }
 0xaee   : > { %v8185_v30 = vmax.f32 %v8169_v3, 0.0  ;;  %v8170_v33 = vadd.f32 %v10661_v63, %v15342_v50  ;;  %v8110_v9 = vpop.f32.mrb[27].mxu1  ;;  %v8261_v26 = vsel %vm881_vm2, %v15417_v39, 0.0  ;;  %v16721_v63 = vld [vmem:[#allocation52_spill] sm:$0xff] }
 0xaef   : > { %v8183_v4 = vmax.f32 %v8167_v19, 0.0  ;;  %v8168_v55 = vadd.f32 %v15342_v50, %v8110_v9  ;;  %v8255_v46 = vsel %vm881_vm2, %v15410_v58, 0.0 }
 0xaf0   : > { %v8186_v0 = vmax.f32 %v8170_v33, 0.0  ;;  %8253 = vadd.xlane.f32.xlu0 %v8252_v21  ;;  %8256 = vadd.xlane.f32.xlu1 %v8255_v46  ;;  %v15429_v47 = vadd.f32 %v8185_v30, %v16717_v37  ;;  %v16722_v33 = vld [vmem:[#allocation58_spill] sm:$0xff]  ;;  %v9785_v46 = vld [vmem:[%s11752_s8 + $0x1f0] sm:$0xff] }
 0xaf1   : > { %v15426_v25 = vadd.f32 %v8183_v4, %v16716_v54  ;;  %v8184_v15 = vmax.f32 %v8168_v55, 0.0  ;;  %v16723_v4 = vld [vmem:[#allocation59_spill] sm:$0xff] }
 0xaf2   : > { %v15432_v57 = vadd.f32 %v8186_v0, %v16718_v40  ;;  %v15456_v44 = vadd.f32 %v9781_v24, %v15429_v47  ;;  %v9786_v0 = vld [vmem:[%s11752_s8 + $0x1f8] sm:$0xff] }
 0xaf3   : > { %v15436_v5 = vadd.f32 %v8184_v15, %v16719_v52  ;;  %v10664_v61 = vpop.f32.mrb[28].mxu1  ;;  %v15443_v56 = vadd.f32 %v9779_v18, %v15426_v25 }
 0xaf4   : > { %v8173_v31 = vadd.f32 %v10664_v61, %v15342_v50  ;;  %8259 = vadd.xlane.f32.xlu0 %v8258_v34  ;;  %8262 = vadd.xlane.f32.xlu1 %v8261_v26  ;;  %v8123_v17 = vpop.f32.mrb[29].mxu1  ;;  %v15459_v20 = vadd.f32 %v9782_v60, %v15432_v57  ;;  %v8270_v42 = vsel %vm881_vm2, %v15456_v44, 0.0  ;;  %v11234_v61 = vld [vmem:[%s16102_s3 + $0x1a4] sm:$0xff]  }
 0xaf5   : > { %v8171_v43 = vadd.f32 %v15342_v50, %v8123_v17  ;;  %v10665_v22 = vpop.f32.mrb[30].mxu1  ;;  %v15450_v7 = vadd.f32 %v9780_v48, %v15436_v5  ;;  %v8264_v6 = vsel %vm881_vm2, %v15443_v56, 0.0  ;;  %10666 = vmatprep.subr.bf16.mxu0 %v11234_v61 }
 0xaf6   : > { %v8174_v62 = vadd.f32 %v10665_v22, %v15342_v50  ;;  %v8126_v16 = vpop.f32.mrb[31].mxu1  ;;  %v8189_v12 = vmax.f32 %v8173_v31, 0.0  ;;  %v8273_v19 = vsel %vm881_vm2, %v15459_v20, 0.0  ;;  %10667 = vmatpush3.bf16.msra.mxu0 %v11234_v61 }
 0xaf7   : > { %v8187_v11 = vmax.f32 %v8171_v43, 0.0  ;;  %v8172_v23 = vadd.f32 %v15342_v50, %v8126_v16  ;;  %v8267_v59 = vsel %vm881_vm2, %v15450_v7, 0.0  ;;  %v9784_v50 = vld [vmem:[%s11752_s8 + $0x1e8] sm:$0xff] }
 0xaf8   : > { %v8190_v13 = vmax.f32 %v8174_v62, 0.0  ;;  %8265 = vadd.xlane.f32.xlu0 %v8264_v6  ;;  %8268 = vadd.xlane.f32.xlu1 %v8267_v59  ;;  %v15474_v30 = vadd.f32 %v8189_v12, %v16721_v63 }
 0xaf9   : > { %v15466_v8 = vadd.f32 %v8187_v11, %v16720_v35  ;;  %v8188_v3 = vmax.f32 %v8172_v23, 0.0 }
 0xafa   : > { %v15477_v9 = vadd.f32 %v8190_v13, %v16722_v33  ;;  %v15495_v37 = vadd.f32 %v9785_v46, %v15474_v30 }
 0xafb   : > { %v15480_v55 = vadd.f32 %v8188_v3, %v16723_v4  ;;  %v15483_v21 = vadd.f32 %v9783_v53, %v15466_v8 }
 0xafc   : > { %8271 = vadd.xlane.f32.xlu0 %v8270_v42  ;;  %8274 = vadd.xlane.f32.xlu1 %v8273_v19  ;;  %v15498_v40 = vadd.f32 %v9786_v0, %v15477_v9  ;;  %v8282_v48 = vsel %vm881_vm2, %v15495_v37, 0.0 }
 0xafd   : > { %v15488_v18 = vadd.f32 %v9784_v50, %v15480_v55  ;;  %v8276_v54 = vsel %vm881_vm2, %v15483_v21, 0.0 }
 0xafe   : > { %v8285_v52 = vsel %vm881_vm2, %v15498_v40, 0.0 }
 0xaff   : > { %v8279_v15 = vsel %vm881_vm2, %v15488_v18, 0.0 }
 0xb00   : > { %8277 = vadd.xlane.f32.xlu0 %v8276_v54  ;;  %8280 = vadd.xlane.f32.xlu1 %v8279_v15 }
 0xb04   : > { %8283 = vadd.xlane.f32.xlu0 %v8282_v48  ;;  %8286 = vadd.xlane.f32.xlu1 %v8285_v52 }
 0xb73   : > { %v8242_v34 = vpop.xlane.xlu1 %8241 }
 0xb74   : > { %v8288_v26 = vmul.f32 0.03125, %v8242_v34 }
 0xb75   : > { %v8245_v24 = vpop.xlane.xlu0 %8244 }
 0xb76   : > { %v15508_v60 = vsub.f32 %v15364_v29, %v8288_v26  ;;  %v8289_v31 = vmul.f32 0.03125, %v8245_v24 }
 0xb77   : > { %v8251_v17 = vpop.xlane.xlu1 %8250 }
 0xb78   : > { %v15511_v43 = vsub.f32 %v15372_v36, %v8289_v31  ;;  %v8291_v22 = vmul.f32 0.03125, %v8251_v17  ;;  %v8320_v62 = vmul.f32 %v15508_v60, %v15508_v60 }
 0xb79   : > { %v8248_v16 = vpop.xlane.xlu0 %8247 }
 0xb7a   : > { %v15516_v6 = vsub.f32 %v15375_v14, %v8291_v22  ;;  %v8290_v12 = vmul.f32 0.03125, %v8248_v16  ;;  %v8336_v11 = vsel %vm881_vm2, %v8320_v62, 0.0  ;;  %v8321_v29 = vmul.f32 %v15511_v43, %v15511_v43 }
 0xb7b   : > { %8337 = vadd.xlane.f32.xlu0 %v8336_v11 }
 0xb7c   : > { %v15522_v23 = vsub.f32 %v15382_v32, %v8290_v12  ;;  %v8339_v36 = vsel %vm881_vm2, %v8321_v29, 0.0  ;;  %v8323_v59 = vmul.f32 %v15516_v6, %v15516_v6 }
 0xb7d   : > { %v8254_v13 = vpop.xlane.xlu0 %8253  ;;  %8340 = vadd.xlane.f32.xlu1 %v8339_v36  ;;  %v8257_v53 = vpop.xlane.xlu1 %8256 }
 0xb7e   : > { %v8292_v14 = vmul.f32 0.03125, %v8254_v13  ;;  %v8293_v35 = vmul.f32 0.03125, %v8257_v53  ;;  %v8322_v3 = vmul.f32 %v15522_v23, %v15522_v23  ;;  %v8345_v50 = vsel %vm881_vm2, %v8323_v59, 0.0 }
 0xb80   : > { %v15530_v42 = vsub.f32 %v15403_v1, %v8292_v14  ;;  %v15533_v19 = vsub.f32 %v15410_v58, %v8293_v35  ;;  %v8342_v32 = vsel %vm881_vm2, %v8322_v3, 0.0 }
 0xb81   : > { %v8260_v63 = vpop.xlane.xlu0 %8259  ;;  %8343 = vadd.xlane.f32.xlu0 %v8342_v32  ;;  %8346 = vadd.xlane.f32.xlu1 %v8345_v50  ;;  %v8263_v33 = vpop.xlane.xlu1 %8262 }
 0xb82   : > { %v8294_v4 = vmul.f32 0.03125, %v8260_v63  ;;  %v8295_v46 = vmul.f32 0.03125, %v8263_v33  ;;  %v8324_v0 = vmul.f32 %v15530_v42, %v15530_v42  ;;  %v8325_v1 = vmul.f32 %v15533_v19, %v15533_v19 }
 0xb84   : > { %v15542_v54 = vsub.f32 %v15414_v51, %v8294_v4  ;;  %v15545_v58 = vsub.f32 %v15417_v39, %v8295_v46  ;;  %v8348_v15 = vsel %vm881_vm2, %v8324_v0, 0.0  ;;  %v8351_v48 = vsel %vm881_vm2, %v8325_v1, 0.0 }
 0xb85   : > { %v8266_v52 = vpop.xlane.xlu0 %8265  ;;  %8349 = vadd.xlane.f32.xlu0 %v8348_v15  ;;  %8352 = vadd.xlane.f32.xlu1 %v8351_v48  ;;  %v8269_v61 = vpop.xlane.xlu1 %8268 }
 0xb86   : > { %v8296_v34 = vmul.f32 0.03125, %v8266_v52  ;;  %v8297_v26 = vmul.f32 0.03125, %v8269_v61  ;;  %v8326_v24 = vmul.f32 %v15542_v54, %v15542_v54  ;;  %v8327_v51 = vmul.f32 %v15545_v58, %v15545_v58 }
 0xb88   : > { %v15554_v31 = vsub.f32 %v15443_v56, %v8296_v34  ;;  %v15557_v39 = vsub.f32 %v15450_v7, %v8297_v26  ;;  %v8354_v17 = vsel %vm881_vm2, %v8326_v24, 0.0  ;;  %v8357_v22 = vsel %vm881_vm2, %v8327_v51, 0.0 }
 0xb89   : > { %v8272_v62 = vpop.xlane.xlu0 %8271  ;;  %8355 = vadd.xlane.f32.xlu0 %v8354_v17  ;;  %8358 = vadd.xlane.f32.xlu1 %v8357_v22  ;;  %v8275_v16 = vpop.xlane.xlu1 %8274 }
 0xb8a   : > { %v8298_v12 = vmul.f32 0.03125, %v8272_v62  ;;  %v8299_v11 = vmul.f32 0.03125, %v8275_v16  ;;  %v8328_v29 = vmul.f32 %v15554_v31, %v15554_v31  ;;  %v8329_v56 = vmul.f32 %v15557_v39, %v15557_v39 }
 0xb8c   : > { %v15566_v36 = vsub.f32 %v15456_v44, %v8298_v12  ;;  %v15569_v7 = vsub.f32 %v15459_v20, %v8299_v11  ;;  %v8360_v59 = vsel %vm881_vm2, %v8328_v29, 0.0  ;;  %v8363_v13 = vsel %vm881_vm2, %v8329_v56, 0.0 }
 0xb8d   : > { %v8278_v53 = vpop.xlane.xlu0 %8277  ;;  %8361 = vadd.xlane.f32.xlu0 %v8360_v59  ;;  %8364 = vadd.xlane.f32.xlu1 %v8363_v13  ;;  %v8281_v14 = vpop.xlane.xlu1 %8280 }
 0xb8e   : > { %v8300_v35 = vmul.f32 0.03125, %v8278_v53  ;;  %v8301_v3 = vmul.f32 0.03125, %v8281_v14  ;;  %v8330_v32 = vmul.f32 %v15566_v36, %v15566_v36  ;;  %v8331_v44 = vmul.f32 %v15569_v7, %v15569_v7 }
 0xb90   : > { %v15578_v50 = vsub.f32 %v15483_v21, %v8300_v35  ;;  %v15581_v20 = vsub.f32 %v15488_v18, %v8301_v3  ;;  %v8366_v63 = vsel %vm881_vm2, %v8330_v32, 0.0  ;;  %v8369_v33 = vsel %vm881_vm2, %v8331_v44, 0.0 }
 0xb91   : > { %v8284_v4 = vpop.xlane.xlu0 %8283  ;;  %8367 = vadd.xlane.f32.xlu0 %v8366_v63  ;;  %8370 = vadd.xlane.f32.xlu1 %v8369_v33  ;;  %v8287_v46 = vpop.xlane.xlu1 %8286 }
 0xb92   : > { %v8302_v0 = vmul.f32 0.03125, %v8284_v4  ;;  %v8303_v1 = vmul.f32 0.03125, %v8287_v46  ;;  %v8332_v15 = vmul.f32 %v15578_v50, %v15578_v50  ;;  %v8333_v21 = vmul.f32 %v15581_v20, %v15581_v20 }
 0xb94   : > { %v15590_v48 = vsub.f32 %v15495_v37, %v8302_v0  ;;  %v15593_v18 = vsub.f32 %v15498_v40, %v8303_v1  ;;  %v8372_v52 = vsel %vm881_vm2, %v8332_v15, 0.0  ;;  %v8375_v61 = vsel %vm881_vm2, %v8333_v21, 0.0  ;;  %v11235_v40 = vld [vmem:[%s16102_s3 + $0x1ac] sm:$0xff]   ;;  %v15609_v0 = vld [vmem:[%s16104_s5 + $0x5] ss:$0 sm:$0xff] }
 0xb95   : > { %8373 = vadd.xlane.f32.xlu0 %v8372_v52  ;;  %8376 = vadd.xlane.f32.xlu1 %v8375_v61 }
 0xb96   : > { %v8334_v34 = vmul.f32 %v15590_v48, %v15590_v48  ;;  %v8335_v26 = vmul.f32 %v15593_v18, %v15593_v18  ;;  %10668 = vmatprep.subr.bf16.mxu0 %v11235_v40 }
 0xb97   : > { %10669 = vmatpush3.bf16.msra.mxu0 %v11235_v40 }
 0xb98   : > { %v8378_v24 = vsel %vm881_vm2, %v8334_v34, 0.0  ;;  %v8381_v37 = vsel %vm881_vm2, %v8335_v26, 0.0 }
 0xb99   : > { %8379 = vadd.xlane.f32.xlu0 %v8378_v24  ;;  %8382 = vadd.xlane.f32.xlu1 %v8381_v37 }
 0xc08   : > { %v8338_v51 = vpop.xlane.xlu0 %8337 }
 0xc09   : > { %v8384_v17 = vmul.f32 0.03125, %v8338_v51  ;;  %v15617_v51 = vld [vmem:[%s16104_s5 + $0xa] ss:$0 sm:$0xff] }
 0xc0a   : > { %v8341_v22 = vpop.xlane.xlu1 %8340 }
 0xc0b   : > { %v8402_v62 = vadd.f32 1e-05, %v8384_v17  ;;  %v8385_v16 = vmul.f32 0.03125, %v8341_v22 }
 0xc0d   : > { %11336 = vrsqrt.f32 %v8402_v62  ;;  %v8403_v12 = vadd.f32 1e-05, %v8385_v16 }
 0xc0e   : > { %v8344_v11 = vpop.xlane.xlu0 %8343  ;;  %v8347_v29 = vpop.xlane.xlu1 %8346 }
 0xc0f   : > { %11338 = vrsqrt.f32 %v8403_v12  ;;  %v8386_v56 = vmul.f32 0.03125, %v8344_v11  ;;  %v8387_v59 = vmul.f32 0.03125, %v8347_v29 }
 0xc11   : > { %v8404_v13 = vadd.f32 1e-05, %v8386_v56  ;;  %v8405_v53 = vadd.f32 1e-05, %v8387_v59 }
 0xc12   : > { %v8350_v14 = vpop.xlane.xlu0 %8349  ;;  %v8353_v35 = vpop.xlane.xlu1 %8352 }
 0xc13   : > { %11340 = vrsqrt.f32 %v8404_v13  ;;  %v8388_v3 = vmul.f32 0.03125, %v8350_v14  ;;  %v8389_v32 = vmul.f32 0.03125, %v8353_v35 }
 0xc14   : > { %11342 = vrsqrt.f32 %v8405_v53 }
 0xc15   : > { %v8406_v44 = vadd.f32 1e-05, %v8388_v3  ;;  %v8407_v63 = vadd.f32 1e-05, %v8389_v32 }
 0xc16   : > { %v8356_v33 = vpop.xlane.xlu0 %8355  ;;  %v8359_v4 = vpop.xlane.xlu1 %8358 }
 0xc17   : > { %v11337_v46 = vpop.eup %11336  ;;  %11344 = vrsqrt.f32 %v8406_v44  ;;  %v8390_v1 = vmul.f32 0.03125, %v8356_v33  ;;  %v8391_v15 = vmul.f32 0.03125, %v8359_v4 }
 0xc18   : > { %v8434_v21 = vmul.f32 %v11337_v46, %v15508_v60  ;;  %11346 = vrsqrt.f32 %v8407_v63 }
 0xc19   : > { %v11339_v52 = vpop.eup %11338  ;;  %v8408_v61 = vadd.f32 1e-05, %v8390_v1  ;;  %v8409_v34 = vadd.f32 1e-05, %v8391_v15 }
 0xc1a   : > { %v8435_v26 = vmul.f32 %v11339_v52, %v15511_v43  ;;  %v8362_v24 = vpop.xlane.xlu0 %8361  ;;  %v8365_v37 = vpop.xlane.xlu1 %8364  ;;  %v8454_v40 = vmul.f32 %v15609_v0, %v8434_v21 }
 0xc1b   : > { %11348 = vrsqrt.f32 %v8408_v61  ;;  %v8392_v17 = vmul.f32 0.03125, %v8362_v24  ;;  %v8393_v22 = vmul.f32 0.03125, %v8365_v37 }
 0xc1c   : > { %11350 = vrsqrt.f32 %v8409_v34  ;;  %v8455_v60 = vmul.f32 %v15609_v0, %v8435_v26  ;;  %v8474_v59 = vadd.f32 %v15617_v51, %v8454_v40 }
 0xc1d   : > { %v11341_v62 = vpop.eup %11340  ;;  %v8410_v16 = vadd.f32 1e-05, %v8392_v17  ;;  %v8411_v12 = vadd.f32 1e-05, %v8393_v22 }
 0xc1e   : > { %v11343_v11 = vpop.eup %11342  ;;  %v8436_v43 = vmul.f32 %v11341_v62, %v15522_v23  ;;  %v8368_v29 = vpop.xlane.xlu0 %8367  ;;  %v8475_v13 = vadd.f32 %v15617_v51, %v8455_v60 }
 0xc1f   : > { %v8371_v56 = vpop.xlane.xlu1 %8370  ;;  %v8437_v53 = vmul.f32 %v11343_v11, %v15516_v6  ;;  %11352 = vrsqrt.f32 %v8410_v16  ;;  %v8394_v14 = vmul.f32 0.03125, %v8368_v29 }
 0xc20   : > { %v8395_v35 = vmul.f32 0.03125, %v8371_v56  ;;  %v8456_v3 = vmul.f32 %v15609_v0, %v8436_v43  ;;  %11354 = vrsqrt.f32 %v8411_v12  ;;  %v8494_v32 = vpack.c.bf16 %v8475_v13, %v8474_v59 }
 0xc21   : > { %v11345_v44 = vpop.eup %11344  ;;  %v8457_v63 = vmul.f32 %v15609_v0, %v8437_v53  ;;  %v8412_v33 = vadd.f32 1e-05, %v8394_v14 }
 0xc22   : > { %v8413_v23 = vadd.f32 1e-05, %v8395_v35  ;;  %v11347_v4 = vpop.eup %11346  ;;  %v8476_v46 = vadd.f32 %v15617_v51, %v8456_v3  ;;  %v8438_v1 = vmul.f32 %v11345_v44, %v15530_v42  ;;  %v8374_v15 = vpop.xlane.xlu0 %8373  ;;  %10670 = vmatprep.mubr.msk.bf16.mxu0 %vm881_vm2, %v8494_v32 }
 0xc23   : > { %v8377_v6 = vpop.xlane.xlu1 %8376  ;;  %v8477_v21 = vadd.f32 %v15617_v51, %v8457_v63  ;;  %v8439_v52 = vmul.f32 %v11347_v4, %v15533_v19  ;;  %11356 = vrsqrt.f32 %v8412_v33  ;;  %v8396_v61 = vmul.f32 0.03125, %v8374_v15 }
 0xc24   : > { %11358 = vrsqrt.f32 %v8413_v23  ;;  %v8397_v34 = vmul.f32 0.03125, %v8377_v6  ;;  %v8458_v26 = vmul.f32 %v15609_v0, %v8438_v1 }
 0xc25   : > { %v11349_v24 = vpop.eup %11348  ;;  %v8414_v37 = vadd.f32 1e-05, %v8396_v61  ;;  %v8495_v40 = vpack.c.bf16 %v8477_v21, %v8476_v46  ;;  %v8459_v17 = vmul.f32 %v15609_v0, %v8439_v52 }
 0xc26   : > { %v11351_v42 = vpop.eup %11350  ;;  %v8440_v22 = vmul.f32 %v11349_v24, %v15542_v54  ;;  %v8415_v60 = vadd.f32 1e-05, %v8397_v34  ;;  %v8380_v62 = vpop.xlane.xlu0 %8379  ;;  %v8478_v12 = vadd.f32 %v15617_v51, %v8458_v26 }
 0xc27   : > { %v8383_v16 = vpop.xlane.xlu1 %8382  ;;  %v8441_v19 = vmul.f32 %v11351_v42, %v15545_v58  ;;  %11360 = vrsqrt.f32 %v8414_v37  ;;  %v8398_v11 = vmul.f32 0.03125, %v8380_v62  ;;  %10671 = vmatmul.mubr.msk.bf16.vlgmr.msra.gmra.mrb[44].mxu0 %vm881_vm2, %v8495_v40  ;;  %v8479_v29 = vadd.f32 %v15617_v51, %v8459_v17 }
 0xc28   : > { %v8399_v43 = vmul.f32 0.03125, %v8383_v16  ;;  %11362 = vrsqrt.f32 %v8415_v60  ;;  %v8460_v56 = vmul.f32 %v15609_v0, %v8440_v22 }
 0xc29   : > { %v11353_v59 = vpop.eup %11352  ;;  %v8416_v13 = vadd.f32 1e-05, %v8398_v11  ;;  %v8461_v53 = vmul.f32 %v15609_v0, %v8441_v19  ;;  %v8496_v3 = vpack.c.bf16 %v8479_v29, %v8478_v12 }
 0xc2a   : > { %v8417_v54 = vadd.f32 1e-05, %v8399_v43  ;;  %v11355_v14 = vpop.eup %11354  ;;  %v8442_v35 = vmul.f32 %v11353_v59, %v15554_v31  ;;  %v8480_v58 = vadd.f32 %v15617_v51, %v8460_v56 }
 0xc2b   : > { %v8443_v32 = vmul.f32 %v11355_v14, %v15557_v39  ;;  %11364 = vrsqrt.f32 %v8416_v13  ;;  %v8481_v44 = vadd.f32 %v15617_v51, %v8461_v53  ;;  %10674 = vmatprep.mubr.msk.bf16.mxu0 %vm881_vm2, %v8496_v3 }
 0xc2c   : > { %11366 = vrsqrt.f32 %v8417_v54  ;;  %v8462_v63 = vmul.f32 %v15609_v0, %v8442_v35 }
 0xc2d   : > { %v11357_v33 = vpop.eup %11356  ;;  %v8497_v23 = vpack.c.bf16 %v8481_v44, %v8480_v58  ;;  %v8463_v4 = vmul.f32 %v15609_v0, %v8443_v32  ;;  %v9800_v58 = vld [vmem:[%s11752_s8 + $0x200] sm:$0xff] }
 0xc2e   : > { %v11359_v46 = vpop.eup %11358  ;;  %v8444_v31 = vmul.f32 %v11357_v33, %v15566_v36  ;;  %v8482_v1 = vadd.f32 %v15617_v51, %v8462_v63  ;;  %v9801_v33 = vld [vmem:[%s11752_s8 + $0x208] sm:$0xff] }
 0xc2f   : > { %v8445_v15 = vmul.f32 %v11359_v46, %v15569_v7  ;;  %10675 = vmatmul.mubr.msk.bf16.gmra.mrb[48].mxu0 %vm881_vm2, %v8497_v23  ;;  %v8483_v39 = vadd.f32 %v15617_v51, %v8463_v4  ;;  %v9802_v23 = vld [vmem:[%s11752_s8 + $0x210] sm:$0xff] }
 0xc30   : > { %v8464_v6 = vmul.f32 %v15609_v0, %v8444_v31 }
 0xc31   : > { %v11361_v21 = vpop.eup %11360  ;;  %v8498_v52 = vpack.c.bf16 %v8483_v39, %v8482_v1  ;;  %v8465_v61 = vmul.f32 %v15609_v0, %v8445_v15  ;;  %v9803_v39 = vld [vmem:[%s11752_s8 + $0x218] sm:$0xff] }
 0xc32   : > { %v11363_v34 = vpop.eup %11362  ;;  %v8446_v26 = vmul.f32 %v11361_v21, %v15578_v50  ;;  %v8484_v24 = vadd.f32 %v15617_v51, %v8464_v6 }
 0xc33   : > { %v8447_v36 = vmul.f32 %v11363_v34, %v15581_v20  ;;  %10678 = vmatprep.mubr.msk.bf16.mxu0 %vm881_vm2, %v8498_v52  ;;  %v8485_v7 = vadd.f32 %v15617_v51, %v8465_v61 }
 0xc34   : > { %v8466_v37 = vmul.f32 %v15609_v0, %v8446_v26 }
 0xc35   : > { %v11365_v40 = vpop.eup %11364  ;;  %v8499_v17 = vpack.c.bf16 %v8485_v7, %v8484_v24  ;;  %v8467_v42 = vmul.f32 %v15609_v0, %v8447_v36 }
 0xc36   : > { %v11367_v22 = vpop.eup %11366  ;;  %v8448_v60 = vmul.f32 %v11365_v40, %v15590_v48  ;;  %v8486_v62 = vadd.f32 %v15617_v51, %v8466_v37  ;;  %v9804_v40 = vld [vmem:[%s11752_s8 + $0x220] sm:$0xff] }
 0xc37   : > { %v8449_v50 = vmul.f32 %v11367_v22, %v15593_v18  ;;  %10679 = vmatmul.mubr.msk.bf16.gmra.mrb[52].mxu0 %vm881_vm2, %v8499_v17  ;;  %v8487_v20 = vadd.f32 %v15617_v51, %v8467_v42  ;;  %v15675_v18 = vld [vmem:[%s16104_s5 + $0xf] ss:$0 sm:$0xff] }
 0xc38   : > { %v8468_v16 = vmul.f32 %v15609_v0, %v8448_v60 }
 0xc39   : > { %v8500_v12 = vpack.c.bf16 %v8487_v20, %v8486_v62  ;;  %v8469_v19 = vmul.f32 %v15609_v0, %v8449_v50  ;;  %v9805_v62 = vld [vmem:[%s11752_s8 + $0x228] sm:$0xff]  ;;  %v9806_v50 = vld [vmem:[%s11752_s8 + $0x230] sm:$0xff] }
 0xc3a   : > { %v8488_v11 = vadd.f32 %v15617_v51, %v8468_v16 }
 0xc3b   : > { %10682 = vmatprep.mubr.msk.bf16.mxu0 %vm881_vm2, %v8500_v12  ;;  %v8489_v48 = vadd.f32 %v15617_v51, %v8469_v19 }
 0xc3d   : > { %v8501_v43 = vpack.c.bf16 %v8489_v48, %v8488_v11  ;;  %v9807_v48 = vld [vmem:[%s11752_s8 + $0x238] sm:$0xff] }
 0xc3f   : > { %10683 = vmatmul.mubr.msk.bf16.gmra.mrb[56].mxu0 %vm881_vm2, %v8501_v43 }
 0xcfa   : > { %v10672_v29 = vpop.f32.mrb[44].mxu0 }
 0xcfb   : > { %v8586_v0 = vadd.f32 %v10672_v29, %v15675_v18  ;;  %v8577_v56 = vpop.f32.mrb[45].mxu0 }
 0xcfc   : > { %v8578_v59 = vadd.f32 %v15675_v18, %v8577_v56  ;;  %v10673_v13 = vpop.f32.mrb[46].mxu0 }
 0xcfd   : > { %v8642_v54 = vmax.f32 %v8586_v0, 0.0  ;;  %v8589_v51 = vadd.f32 %v10673_v13, %v15675_v18  ;;  %v8580_v53 = vpop.f32.mrb[47].mxu0 }
 0xcfe   : > { %v8640_v14 = vmax.f32 %v8578_v59, 0.0  ;;  %v8581_v35 = vadd.f32 %v15675_v18, %v8580_v53 }
 0xcff   : > { %v8643_v3 = vmax.f32 %v8589_v51, 0.0  ;;  %v15683_v32 = vadd.f32 %v8642_v54, %v15358_v28 }
 0xd00   : > { %v15686_v44 = vadd.f32 %v8640_v14, %v15350_v10  ;;  %v8641_v63 = vmax.f32 %v8581_v35, 0.0 }
 0xd01   : > { %v15691_v4 = vadd.f32 %v8643_v3, %v15353_v27  ;;  %v9808_v3 = vld [vmem:[%s11752_s8 + $0x240] sm:$0xff] }
 0xd02   : > { %v15694_v46 = vadd.f32 %v8641_v63, %v15361_v41  ;;  %v10676_v31 = vpop.f32.mrb[48].mxu0  ;;  %v15697_v1 = vadd.f32 %v9800_v58, %v15686_v44  ;;  %v15708_v41 = vadd.f32 %v9802_v23, %v15683_v32 }
 0xd03   : > { %v8602_v15 = vadd.f32 %v10676_v31, %v15675_v18  ;;  %v8593_v28 = vpop.f32.mrb[49].mxu0  ;;  %v15715_v7 = vadd.f32 %v9803_v39, %v15691_v4  ;;  %v9809_v31 = vld [vmem:[%s11752_s8 + $0x248] sm:$0xff] }
 0xd04   : > { %v8594_v10 = vadd.f32 %v15675_v18, %v8593_v28  ;;  %v10677_v6 = vpop.f32.mrb[50].mxu0  ;;  %v8705_v21 = vsel %vm881_vm2, %v15697_v1, 0.0  ;;  %v15705_v27 = vadd.f32 %v9801_v33, %v15694_v46  ;;  %v8711_v60 = vsel %vm881_vm2, %v15708_v41, 0.0 }
 0xd05   : > { %v8646_v52 = vmax.f32 %v8602_v15, 0.0  ;;  %v8605_v61 = vadd.f32 %v10677_v6, %v15675_v18  ;;  %8706 = vadd.xlane.f32.xlu0 %v8705_v21  ;;  %v8596_v34 = vpop.f32.mrb[51].mxu0  ;;  %v9810_v15 = vld [vmem:[%s11752_s8 + $0x250] sm:$0xff] }
 0xd06   : > { %v8644_v26 = vmax.f32 %v8594_v10, 0.0  ;;  %v8597_v24 = vadd.f32 %v15675_v18, %v8596_v34  ;;  %v8708_v36 = vsel %vm881_vm2, %v15705_v27, 0.0 }
 0xd07   : > { %v8647_v37 = vmax.f32 %v8605_v61, 0.0  ;;  %8709 = vadd.xlane.f32.xlu1 %v8708_v36  ;;  %v15719_v17 = vadd.f32 %v8646_v52, %v15391_v45  ;;  %v8714_v45 = vsel %vm881_vm2, %v15715_v7, 0.0  ;;  %v9811_v52 = vld [vmem:[%s11752_s8 + $0x258] sm:$0xff] }
 0xd08   : > { %v15722_v42 = vadd.f32 %v8644_v26, %v15386_v38  ;;  %v8645_v22 = vmax.f32 %v8597_v24, 0.0 }
 0xd09   : > { %8712 = vadd.xlane.f32.xlu0 %v8711_v60  ;;  %v15729_v20 = vadd.f32 %v8647_v37, %v15394_v2  ;;  %v15748_v0 = vadd.f32 %v9806_v50, %v15719_v17 }
 0xd0a   : > { %v15732_v16 = vadd.f32 %v8645_v22, %v15398_v49  ;;  %v10680_v12 = vpop.f32.mrb[52].mxu0  ;;  %v15737_v38 = vadd.f32 %v9804_v40, %v15722_v42 }
 0xd0b   : > { %v8618_v19 = vadd.f32 %v10680_v12, %v15675_v18  ;;  %8715 = vadd.xlane.f32.xlu1 %v8714_v45  ;;  %v8609_v11 = vpop.f32.mrb[53].mxu0  ;;  %v15755_v14 = vadd.f32 %v9807_v48, %v15729_v20  ;;  %v8723_v23 = vsel %vm881_vm2, %v15748_v0, 0.0  ;;  %v9812_v12 = vld [vmem:[%s11752_s8 + $0x260] sm:$0xff]  ;;  %v9813_v48 = vld [vmem:[%s11752_s8 + $0x268] sm:$0xff] }
 0xd0c   : > { %v8610_v43 = vadd.f32 %v15675_v18, %v8609_v11  ;;  %v10681_v2 = vpop.f32.mrb[54].mxu0  ;;  %v8717_v49 = vsel %vm881_vm2, %v15737_v38, 0.0  ;;  %v15745_v29 = vadd.f32 %v9805_v62, %v15732_v16 }
 0xd0d   : > { %v8650_v56 = vmax.f32 %v8618_v19, 0.0  ;;  %v8621_v59 = vadd.f32 %v10681_v2, %v15675_v18  ;;  %8718 = vadd.xlane.f32.xlu0 %v8717_v49  ;;  %v8612_v13 = vpop.f32.mrb[55].mxu0 }
 0xd0e   : > { %v8648_v54 = vmax.f32 %v8610_v43, 0.0  ;;  %v8613_v51 = vadd.f32 %v15675_v18, %v8612_v13  ;;  %v8720_v53 = vsel %vm881_vm2, %v15745_v29, 0.0  ;;  %v9814_v43 = vld [vmem:[%s11752_s8 + $0x270] sm:$0xff] }
 0xd0f   : > { %v8651_v35 = vmax.f32 %v8621_v59, 0.0  ;;  %8721 = vadd.xlane.f32.xlu1 %v8720_v53  ;;  %v15759_v58 = vadd.f32 %v8650_v56, %v15429_v47  ;;  %v8726_v47 = vsel %vm881_vm2, %v15755_v14, 0.0 }
 0xd10   : > { %v15762_v63 = vadd.f32 %v8648_v54, %v15426_v25  ;;  %v8649_v33 = vmax.f32 %v8613_v51, 0.0 }
 0xd11   : > { %8724 = vadd.xlane.f32.xlu0 %v8723_v23  ;;  %v15769_v28 = vadd.f32 %v8651_v35, %v15432_v57  ;;  %v15788_v26 = vadd.f32 %v9810_v15, %v15759_v58  ;;  %v11236_v35 = vld [vmem:[%s16102_s3 + $0x1b4] sm:$0xff]  }
 0xd12   : > { %v15772_v39 = vadd.f32 %v8649_v33, %v15436_v5  ;;  %v10684_v10 = vpop.f32.mrb[56].mxu0  ;;  %v15777_v25 = vadd.f32 %v9808_v3, %v15762_v63  ;;  %10686 = vmatprep.subr.bf16.mxu0 %v11236_v35 }
 0xd13   : > { %v8634_v6 = vadd.f32 %v10684_v10, %v15675_v18  ;;  %8727 = vadd.xlane.f32.xlu1 %v8726_v47  ;;  %v8625_v21 = vpop.f32.mrb[57].mxu0  ;;  %v15795_v62 = vadd.f32 %v9811_v52, %v15769_v28  ;;  %10687 = vmatpush3.bf16.msra.mxu0 %v11236_v35 }
 0xd14   : > { %v8626_v61 = vadd.f32 %v15675_v18, %v8625_v21  ;;  %v10685_v57 = vpop.f32.mrb[58].mxu0  ;;  %v8729_v5 = vsel %vm881_vm2, %v15777_v25, 0.0  ;;  %v15785_v34 = vadd.f32 %v9809_v31, %v15772_v39 }
 0xd15   : > { %v8654_v24 = vmax.f32 %v8634_v6, 0.0  ;;  %v8637_v36 = vadd.f32 %v10685_v57, %v15675_v18  ;;  %8730 = vadd.xlane.f32.xlu0 %v8729_v5  ;;  %v8628_v37 = vpop.f32.mrb[59].mxu0 }
 0xd16   : > { %v8652_v40 = vmax.f32 %v8626_v61, 0.0  ;;  %v8629_v22 = vadd.f32 %v15675_v18, %v8628_v37  ;;  %v8732_v60 = vsel %vm881_vm2, %v15785_v34, 0.0  ;;  %v8735_v18 = vsel %vm881_vm2, %v15788_v26, 0.0 }
 0xd17   : > { %v8655_v50 = vmax.f32 %v8637_v36, 0.0  ;;  %8733 = vadd.xlane.f32.xlu1 %v8732_v60  ;;  %v15799_v45 = vadd.f32 %v8654_v24, %v15474_v30  ;;  %v8738_v30 = vsel %vm881_vm2, %v15795_v62, 0.0 }
 0xd18   : > { %v15802_v19 = vadd.f32 %v8652_v40, %v15466_v8  ;;  %v8653_v11 = vmax.f32 %v8629_v22, 0.0  ;;  %v9815_v8 = vld [vmem:[%s11752_s8 + $0x278] sm:$0xff] }
 0xd19   : > { %8736 = vadd.xlane.f32.xlu0 %v8735_v18  ;;  %v15809_v2 = vadd.f32 %v8655_v50, %v15477_v9  ;;  %v15826_v9 = vadd.f32 %v9814_v43, %v15799_v45 }
 0xd1a   : > { %v15812_v49 = vadd.f32 %v8653_v11, %v15480_v55  ;;  %v15817_v56 = vadd.f32 %v9812_v12, %v15802_v19 }
 0xd1b   : > { %8739 = vadd.xlane.f32.xlu1 %v8738_v30  ;;  %v15831_v54 = vadd.f32 %v9815_v8, %v15809_v2  ;;  %v8747_v51 = vsel %vm881_vm2, %v15826_v9, 0.0 }
 0xd1c   : > { %v8741_v59 = vsel %vm881_vm2, %v15817_v56, 0.0  ;;  %v15823_v13 = vadd.f32 %v9813_v48, %v15812_v49 }
 0xd1d   : > { %8742 = vadd.xlane.f32.xlu0 %v8741_v59  ;;  %v8750_v53 = vsel %vm881_vm2, %v15831_v54, 0.0 }
 0xd1e   : > { %v8744_v55 = vsel %vm881_vm2, %v15823_v13, 0.0 }
 0xd1f   : > { %8745 = vadd.xlane.f32.xlu1 %v8744_v55 }
 0xd21   : > { %8748 = vadd.xlane.f32.xlu0 %v8747_v51 }
 0xd23   : > { %8751 = vadd.xlane.f32.xlu1 %v8750_v53 }
 0xd92   : > { %v8707_v3 = vpop.xlane.xlu0 %8706 }
 0xd93   : > { %v8753_v33 = vmul.f32 0.03125, %v8707_v3 }
 0xd94   : > { %v8710_v23 = vpop.xlane.xlu1 %8709 }
 0xd95   : > { %v15841_v31 = vsub.f32 %v15697_v1, %v8753_v33  ;;  %v8754_v15 = vmul.f32 0.03125, %v8710_v23 }
 0xd96   : > { %v8713_v10 = vpop.xlane.xlu0 %8712 }
 0xd97   : > { %v15844_v47 = vsub.f32 %v15705_v27, %v8754_v15  ;;  %v8755_v6 = vmul.f32 0.03125, %v8713_v10  ;;  %v8785_v21 = vmul.f32 %v15841_v31, %v15841_v31 }
 0xd98   : > { %v8716_v52 = vpop.xlane.xlu1 %8715 }
 0xd99   : > { %v15849_v61 = vsub.f32 %v15708_v41, %v8755_v6  ;;  %v8756_v57 = vmul.f32 0.03125, %v8716_v52  ;;  %v8801_v5 = vsel %vm881_vm2, %v8785_v21, 0.0  ;;  %v8786_v1 = vmul.f32 %v15844_v47, %v15844_v47 }
 0xd9a   : > { %v8719_v24 = vpop.xlane.xlu0 %8718  ;;  %8802 = vadd.xlane.f32.xlu0 %v8801_v5 }
 0xd9b   : > { %v15855_v36 = vsub.f32 %v15715_v7, %v8756_v57  ;;  %v8757_v27 = vmul.f32 0.03125, %v8719_v24  ;;  %v8804_v37 = vsel %vm881_vm2, %v8786_v1, 0.0  ;;  %v8787_v40 = vmul.f32 %v15849_v61, %v15849_v61 }
 0xd9c   : > { %8805 = vadd.xlane.f32.xlu1 %v8804_v37  ;;  %v8722_v41 = vpop.xlane.xlu1 %8721 }
 0xd9d   : > { %v15861_v22 = vsub.f32 %v15737_v38, %v8757_v27  ;;  %v8758_v60 = vmul.f32 0.03125, %v8722_v41  ;;  %v8807_v50 = vsel %vm881_vm2, %v8787_v40, 0.0  ;;  %v8788_v12 = vmul.f32 %v15855_v36, %v15855_v36 }
 0xd9e   : > { %v8725_v11 = vpop.xlane.xlu0 %8724  ;;  %8808 = vadd.xlane.f32.xlu0 %v8807_v50 }
 0xd9f   : > { %v15867_v7 = vsub.f32 %v15745_v29, %v8758_v60  ;;  %v8759_v18 = vmul.f32 0.03125, %v8725_v11  ;;  %v8810_v48 = vsel %vm881_vm2, %v8788_v12, 0.0  ;;  %v8789_v43 = vmul.f32 %v15861_v22, %v15861_v22 }
 0xda0   : > { %8811 = vadd.xlane.f32.xlu1 %v8810_v48  ;;  %v8728_v38 = vpop.xlane.xlu1 %8727 }
 0xda1   : > { %v15873_v30 = vsub.f32 %v15748_v0, %v8759_v18  ;;  %v8760_v8 = vmul.f32 0.03125, %v8728_v38  ;;  %v8813_v59 = vsel %vm881_vm2, %v8789_v43, 0.0  ;;  %v8790_v55 = vmul.f32 %v15867_v7, %v15867_v7 }
 0xda2   : > { %v8731_v51 = vpop.xlane.xlu0 %8730  ;;  %8814 = vadd.xlane.f32.xlu0 %v8813_v59 }
 0xda3   : > { %v15879_v29 = vsub.f32 %v15755_v14, %v8760_v8  ;;  %v8761_v53 = vmul.f32 0.03125, %v8731_v51  ;;  %v8816_v35 = vsel %vm881_vm2, %v8790_v55, 0.0  ;;  %v8791_v3 = vmul.f32 %v15873_v30, %v15873_v30 }
 0xda4   : > { %8817 = vadd.xlane.f32.xlu1 %v8816_v35  ;;  %v8734_v0 = vpop.xlane.xlu1 %8733 }
 0xda5   : > { %v15885_v33 = vsub.f32 %v15777_v25, %v8761_v53  ;;  %v8762_v23 = vmul.f32 0.03125, %v8734_v0  ;;  %v8819_v15 = vsel %vm881_vm2, %v8791_v3, 0.0  ;;  %v8792_v10 = vmul.f32 %v15879_v29, %v15879_v29 }
 0xda6   : > { %v8737_v6 = vpop.xlane.xlu0 %8736  ;;  %8820 = vadd.xlane.f32.xlu0 %v8819_v15  ;;  %v15942_v15 = vld [vmem:[%s16102_s3 + $0x1c4] sm:$0xff]  }
 0xda7   : > { %v15891_v14 = vsub.f32 %v15785_v34, %v8762_v23  ;;  %v8763_v21 = vmul.f32 0.03125, %v8737_v6  ;;  %v8822_v52 = vsel %vm881_vm2, %v8792_v10, 0.0  ;;  %v8793_v57 = vmul.f32 %v15885_v33, %v15885_v33 }
 0xda8   : > { %8823 = vadd.xlane.f32.xlu1 %v8822_v52  ;;  %v8740_v25 = vpop.xlane.xlu1 %8739 }
 0xda9   : > { %v15897_v5 = vsub.f32 %v15788_v26, %v8763_v21  ;;  %v8764_v1 = vmul.f32 0.03125, %v8740_v25  ;;  %v8825_v24 = vsel %vm881_vm2, %v8793_v57, 0.0  ;;  %v8794_v27 = vmul.f32 %v15891_v14, %v15891_v14 }
 0xdaa   : > { %8826 = vadd.xlane.f32.xlu0 %v8825_v24  ;;  %v8743_v34 = vpop.xlane.xlu0 %8742 }
 0xdab   : > { %v15903_v37 = vsub.f32 %v15795_v62, %v8764_v1  ;;  %v8765_v40 = vmul.f32 0.03125, %v8743_v34  ;;  %v8828_v41 = vsel %vm881_vm2, %v8794_v27, 0.0  ;;  %v8795_v60 = vmul.f32 %v15897_v5, %v15897_v5 }
 0xdac   : > { %8829 = vadd.xlane.f32.xlu1 %v8828_v41  ;;  %v8746_v26 = vpop.xlane.xlu1 %8745 }
 0xdad   : > { %v15909_v50 = vsub.f32 %v15817_v56, %v8765_v40  ;;  %v8766_v12 = vmul.f32 0.03125, %v8746_v26  ;;  %v8831_v11 = vsel %vm881_vm2, %v8795_v60, 0.0  ;;  %v8796_v18 = vmul.f32 %v15903_v37, %v15903_v37 }
 0xdae   : > { %8832 = vadd.xlane.f32.xlu0 %v8831_v11  ;;  %v8749_v62 = vpop.xlane.xlu0 %8748 }
 0xdaf   : > { %v15915_v48 = vsub.f32 %v15823_v13, %v8766_v12  ;;  %v8767_v43 = vmul.f32 0.03125, %v8749_v62  ;;  %v8834_v38 = vsel %vm881_vm2, %v8796_v18, 0.0  ;;  %v8797_v8 = vmul.f32 %v15909_v50, %v15909_v50 }
 0xdb0   : > { %8835 = vadd.xlane.f32.xlu1 %v8834_v38  ;;  %v8752_v56 = vpop.xlane.xlu1 %8751 }
 0xdb1   : > { %v15921_v59 = vsub.f32 %v15826_v9, %v8767_v43  ;;  %v8768_v55 = vmul.f32 0.03125, %v8752_v56  ;;  %v8837_v51 = vsel %vm881_vm2, %v8797_v8, 0.0  ;;  %v8798_v53 = vmul.f32 %v15915_v48, %v15915_v48 }
 0xdb2   : > { %8838 = vadd.xlane.f32.xlu0 %v8837_v51 }
 0xdb3   : > { %v15927_v13 = vsub.f32 %v15831_v54, %v8768_v55  ;;  %v8840_v35 = vsel %vm881_vm2, %v8798_v53, 0.0  ;;  %v8799_v3 = vmul.f32 %v15921_v59, %v15921_v59  ;;  %v11237_v54 = vld [vmem:[%s16102_s3 + $0x1bc] sm:$0xff]   ;;  %v15948_v55 = vld [vmem:[%s16104_s5 + $0x6] ss:$0 sm:$0xff] }
 0xdb4   : > { %8841 = vadd.xlane.f32.xlu1 %v8840_v35  ;;  %10688 = vmatprep.subr.bf16.mxu0 %v11237_v54 }
 0xdb5   : > { %v8843_v0 = vsel %vm881_vm2, %v8799_v3, 0.0  ;;  %v8800_v9 = vmul.f32 %v15927_v13, %v15927_v13  ;;  %10689 = vmatpush3.bf16.msra.mxu0 %v11237_v54 }
 0xdb6   : > { %8844 = vadd.xlane.f32.xlu0 %v8843_v0  ;;  %10706 = vmatprep.subr.bf16.mxu0 %v15942_v15 }
 0xdb7   : > { %v8846_v23 = vsel %vm881_vm2, %v8800_v9, 0.0 }
 0xdb8   : > { %8847 = vadd.xlane.f32.xlu1 %v8846_v23 }
 0xe27   : > { %v8803_v10 = vpop.xlane.xlu0 %8802 }
 0xe28   : > { %v8849_v6 = vmul.f32 0.03125, %v8803_v10 }
 0xe29   : > { %v8806_v21 = vpop.xlane.xlu1 %8805 }
 0xe2a   : > { %v8867_v52 = vadd.f32 1e-05, %v8849_v6  ;;  %v8850_v57 = vmul.f32 0.03125, %v8806_v21 }
 0xe2b   : > { %v8809_v25 = vpop.xlane.xlu0 %8808 }
 0xe2c   : > { %11368 = vrsqrt.f32 %v8867_v52  ;;  %v8868_v1 = vadd.f32 1e-05, %v8850_v57  ;;  %v8851_v24 = vmul.f32 0.03125, %v8809_v25  ;;  %v15956_v52 = vld [vmem:[%s16104_s5 + $0xb] ss:$0 sm:$0xff] }
 0xe2d   : > { %v8812_v27 = vpop.xlane.xlu1 %8811 }
 0xe2e   : > { %11370 = vrsqrt.f32 %v8868_v1  ;;  %v8869_v34 = vadd.f32 1e-05, %v8851_v24  ;;  %v8852_v40 = vmul.f32 0.03125, %v8812_v27 }
 0xe2f   : > { %v8815_v41 = vpop.xlane.xlu0 %8814 }
 0xe30   : > { %11372 = vrsqrt.f32 %v8869_v34  ;;  %v8870_v60 = vadd.f32 1e-05, %v8852_v40  ;;  %v8853_v26 = vmul.f32 0.03125, %v8815_v41 }
 0xe31   : > { %v8818_v12 = vpop.xlane.xlu1 %8817 }
 0xe32   : > { %11374 = vrsqrt.f32 %v8870_v60  ;;  %v8871_v11 = vadd.f32 1e-05, %v8853_v26  ;;  %v8854_v18 = vmul.f32 0.03125, %v8818_v12 }
 0xe33   : > { %v8821_v62 = vpop.xlane.xlu0 %8820 }
 0xe34   : > { %11376 = vrsqrt.f32 %v8871_v11  ;;  %v8872_v43 = vadd.f32 1e-05, %v8854_v18  ;;  %v8855_v38 = vmul.f32 0.03125, %v8821_v62 }
 0xe35   : > { %v8824_v8 = vpop.xlane.xlu1 %8823 }
 0xe36   : > { %v11369_v56 = vpop.eup %11368  ;;  %11378 = vrsqrt.f32 %v8872_v43  ;;  %v8873_v51 = vadd.f32 1e-05, %v8855_v38  ;;  %v8856_v53 = vmul.f32 0.03125, %v8824_v8 }
 0xe37   : > { %v8899_v35 = vmul.f32 %v11369_v56, %v15841_v31  ;;  %v8827_v3 = vpop.xlane.xlu0 %8826 }
 0xe38   : > { %v11371_v0 = vpop.eup %11370  ;;  %11380 = vrsqrt.f32 %v8873_v51  ;;  %v8874_v9 = vadd.f32 1e-05, %v8856_v53  ;;  %v8857_v23 = vmul.f32 0.03125, %v8827_v3 }
 0xe39   : > { %v8900_v54 = vmul.f32 %v11371_v0, %v15844_v47  ;;  %v8830_v10 = vpop.xlane.xlu1 %8829  ;;  %v8919_v6 = vmul.f32 %v15948_v55, %v8899_v35 }
 0xe3a   : > { %v11373_v21 = vpop.eup %11372  ;;  %11382 = vrsqrt.f32 %v8874_v9  ;;  %v8875_v57 = vadd.f32 1e-05, %v8857_v23  ;;  %v8858_v25 = vmul.f32 0.03125, %v8830_v10 }
 0xe3b   : > { %v8901_v31 = vmul.f32 %v11373_v21, %v15849_v61  ;;  %v8833_v1 = vpop.xlane.xlu0 %8832  ;;  %v8920_v24 = vmul.f32 %v15948_v55, %v8900_v54  ;;  %v8939_v26 = vadd.f32 %v15956_v52, %v8919_v6 }
 0xe3c   : > { %v11375_v27 = vpop.eup %11374  ;;  %11384 = vrsqrt.f32 %v8875_v57  ;;  %v8876_v47 = vadd.f32 1e-05, %v8858_v25  ;;  %v8859_v34 = vmul.f32 0.03125, %v8833_v1  ;;  %v11239_v25 = vld [vmem:[%s16102_s3 + $0x1cc] sm:$0xff]  }
 0xe3d   : > { %v8921_v40 = vmul.f32 %v15948_v55, %v8901_v31  ;;  %v8902_v41 = vmul.f32 %v11375_v27, %v15855_v36  ;;  %v8836_v60 = vpop.xlane.xlu1 %8835  ;;  %v8940_v12 = vadd.f32 %v15956_v52, %v8920_v24 }
 0xe3e   : > { %v11377_v11 = vpop.eup %11376  ;;  %11386 = vrsqrt.f32 %v8876_v47  ;;  %v8877_v18 = vadd.f32 1e-05, %v8859_v34  ;;  %v8860_v61 = vmul.f32 0.03125, %v8836_v60 }
 0xe3f   : > { %v8922_v62 = vmul.f32 %v15948_v55, %v8902_v41  ;;  %v8903_v43 = vmul.f32 %v11377_v11, %v15861_v22  ;;  %v8839_v38 = vpop.xlane.xlu0 %8838  ;;  %v8959_v8 = vpack.c.bf16 %v8940_v12, %v8939_v26  ;;  %v8941_v36 = vadd.f32 %v15956_v52, %v8921_v40 }
 0xe40   : > { %v11379_v56 = vpop.eup %11378  ;;  %11388 = vrsqrt.f32 %v8877_v18  ;;  %v8878_v51 = vadd.f32 1e-05, %v8860_v61  ;;  %v8861_v53 = vmul.f32 0.03125, %v8839_v38 }
 0xe41   : > { %v8942_v35 = vadd.f32 %v15956_v52, %v8922_v62  ;;  %v8904_v3 = vmul.f32 %v11379_v56, %v15867_v7  ;;  %10690 = vmatprep.mubr.msk.bf16.mxu0 %vm881_vm2, %v8959_v8  ;;  %v8842_v0 = vpop.xlane.xlu1 %8841  ;;  %v8923_v9 = vmul.f32 %v15948_v55, %v8903_v43 }
 0xe42   : > { %v11381_v23 = vpop.eup %11380  ;;  %11390 = vrsqrt.f32 %v8878_v51  ;;  %v8879_v22 = vadd.f32 1e-05, %v8861_v53  ;;  %v8862_v54 = vmul.f32 0.03125, %v8842_v0 }
 0xe43   : > { %v8905_v10 = vmul.f32 %v11381_v23, %v15873_v30  ;;  %v8845_v6 = vpop.xlane.xlu0 %8844  ;;  %v8960_v21 = vpack.c.bf16 %v8942_v35, %v8941_v36  ;;  %v8924_v57 = vmul.f32 %v15948_v55, %v8904_v3  ;;  %v8943_v47 = vadd.f32 %v15956_v52, %v8923_v9 }
 0xe44   : > { %v11383_v7 = vpop.eup %11382  ;;  %11392 = vrsqrt.f32 %v8879_v22  ;;  %v8880_v31 = vadd.f32 1e-05, %v8862_v54  ;;  %v8863_v1 = vmul.f32 0.03125, %v8845_v6 }
 0xe45   : > { %v8906_v24 = vmul.f32 %v11383_v7, %v15879_v29  ;;  %10691 = vmatmul.mubr.msk.bf16.vlgmr.msra.gmra.mrb[60].mxu0 %vm881_vm2, %v8960_v21  ;;  %v8848_v27 = vpop.xlane.xlu1 %8847  ;;  %v8944_v30 = vadd.f32 %v15956_v52, %v8924_v57  ;;  %v8925_v34 = vmul.f32 %v15948_v55, %v8905_v10 }
 0xe46   : > { %v11385_v40 = vpop.eup %11384  ;;  %11394 = vrsqrt.f32 %v8880_v31  ;;  %v8881_v41 = vadd.f32 1e-05, %v8863_v1  ;;  %v8864_v60 = vmul.f32 0.03125, %v8848_v27  ;;  %10707 = vmatpush3.bf16.msra.mxu0 %v15942_v15 }
 0xe47   : > { %v8907_v26 = vmul.f32 %v11385_v40, %v15885_v33  ;;  %v8961_v12 = vpack.c.bf16 %v8944_v30, %v8943_v47  ;;  %v8926_v29 = vmul.f32 %v15948_v55, %v8906_v24  ;;  %10708 = vmatprep.subr.bf16.mxu0 %v11239_v25  ;;  %v8945_v62 = vadd.f32 %v15956_v52, %v8925_v34 }
 0xe48   : > { %v11387_v11 = vpop.eup %11386  ;;  %11396 = vrsqrt.f32 %v8881_v41  ;;  %v8882_v18 = vadd.f32 1e-05, %v8864_v60 }
 0xe49   : > { %v8908_v61 = vmul.f32 %v11387_v11, %v15891_v14  ;;  %10694 = vmatprep.mubr.msk.bf16.mxu0 %vm881_vm2, %v8961_v12  ;;  %v8946_v43 = vadd.f32 %v15956_v52, %v8926_v29  ;;  %v8927_v38 = vmul.f32 %v15948_v55, %v8907_v26 }
 0xe4a   : > { %v11389_v15 = vpop.eup %11388  ;;  %11398 = vrsqrt.f32 %v8882_v18  ;;  %10709 = vmatpush3.bf16.msra.mxu0 %v11239_v25 }
 0xe4b   : > { %v8909_v33 = vmul.f32 %v11389_v15, %v15897_v5  ;;  %v8962_v8 = vpack.c.bf16 %v8946_v43, %v8945_v62  ;;  %v8928_v56 = vmul.f32 %v15948_v55, %v8908_v61  ;;  %v8947_v14 = vadd.f32 %v15956_v52, %v8927_v38 }
 0xe4c   : > { %v11391_v51 = vpop.eup %11390 }
 0xe4d   : > { %v8910_v53 = vmul.f32 %v11391_v51, %v15903_v37  ;;  %10695 = vmatmul.mubr.msk.bf16.gmra.mrb[64].mxu0 %vm881_vm2, %v8962_v8  ;;  %v8948_v36 = vadd.f32 %v15956_v52, %v8928_v56  ;;  %v8929_v35 = vmul.f32 %v15948_v55, %v8909_v33 }
 0xe4e   : > { %v11393_v3 = vpop.eup %11392 }
 0xe4f   : > { %v8911_v0 = vmul.f32 %v11393_v3, %v15909_v50  ;;  %v8963_v9 = vpack.c.bf16 %v8948_v36, %v8947_v14  ;;  %v8930_v5 = vmul.f32 %v15948_v55, %v8910_v53  ;;  %v8949_v37 = vadd.f32 %v15956_v52, %v8929_v35 }
 0xe50   : > { %v11395_v23 = vpop.eup %11394 }
 0xe51   : > { %v8912_v22 = vmul.f32 %v11395_v23, %v15915_v48  ;;  %10698 = vmatprep.mubr.msk.bf16.mxu0 %vm881_vm2, %v8963_v9  ;;  %v8950_v54 = vadd.f32 %v15956_v52, %v8930_v5  ;;  %v8931_v10 = vmul.f32 %v15948_v55, %v8911_v0 }
 0xe52   : > { %v11397_v6 = vpop.eup %11396 }
 0xe53   : > { %v8913_v21 = vmul.f32 %v11397_v6, %v15921_v59  ;;  %v8964_v57 = vpack.c.bf16 %v8950_v54, %v8949_v37  ;;  %v8932_v50 = vmul.f32 %v15948_v55, %v8912_v22  ;;  %v8951_v48 = vadd.f32 %v15956_v52, %v8931_v10 }
 0xe54   : > { %v11399_v25 = vpop.eup %11398 }
 0xe55   : > { %v8914_v7 = vmul.f32 %v11399_v25, %v15927_v13  ;;  %10699 = vmatmul.mubr.msk.bf16.gmra.mrb[68].mxu0 %vm881_vm2, %v8964_v57  ;;  %v8952_v31 = vadd.f32 %v15956_v52, %v8932_v50  ;;  %v8933_v1 = vmul.f32 %v15948_v55, %v8913_v21  ;;  %v16018_v13 = vld [vmem:[%s16104_s5 + $0x10] ss:$0 sm:$0xff] }
 0xe57   : > { %v8965_v24 = vpack.c.bf16 %v8952_v31, %v8951_v48  ;;  %v8934_v27 = vmul.f32 %v15948_v55, %v8914_v7  ;;  %v8953_v59 = vadd.f32 %v15956_v52, %v8933_v1 }
 0xe59   : > { %10702 = vmatprep.mubr.msk.bf16.mxu0 %vm881_vm2, %v8965_v24  ;;  %v8954_v47 = vadd.f32 %v15956_v52, %v8934_v27 }
 0xe5b   : > { %v8966_v30 = vpack.c.bf16 %v8954_v47, %v8953_v59 }
 0xe5d   : > { %10703 = vmatmul.mubr.msk.bf16.gmra.mrb[72].mxu0 %vm881_vm2, %v8966_v30 }
 0xf18   : > { %v10692_v34 = vpop.f32.mrb[60].mxu0 }
 0xf19   : > { %v9051_v40 = vadd.f32 %v10692_v34, %v16018_v13  ;;  %v9042_v41 = vpop.f32.mrb[61].mxu0 }
 0xf1a   : > { %v9043_v55 = vadd.f32 %v16018_v13, %v9042_v41  ;;  %v10693_v60 = vpop.f32.mrb[62].mxu0 }
 0xf1b   : > { %v9107_v26 = vmax.f32 %v9051_v40, 0.0  ;;  %v9054_v12 = vadd.f32 %v10693_v60, %v16018_v13  ;;  %v9045_v29 = vpop.f32.mrb[63].mxu0 }
 0xf1c   : > { %v9105_v52 = vmax.f32 %v9043_v55, 0.0  ;;  %v9046_v11 = vadd.f32 %v16018_v13, %v9045_v29 }
 0xf1d   : > { %v9108_v18 = vmax.f32 %v9054_v12, 0.0  ;;  %v9123_v62 = vadd.f32 %v9107_v26, %v15683_v32 }
 0xf1e   : > { %v9106_v61 = vmax.f32 %v9046_v11, 0.0  ;;  %v9121_v38 = vadd.f32 %v9105_v52, %v15686_v44 }
 0xf1f   : > { %v9124_v43 = vadd.f32 %v9108_v18, %v15691_v4 }
 0xf20   : > { %v9122_v15 = vadd.f32 %v9106_v61, %v15694_v46  ;;  %v10696_v33 = vpop.f32.mrb[64].mxu0 }
 0xf21   : > { %v9138_v8 = vpack.c.bf16 %v9124_v43, %v9123_v62  ;;  %v9067_v56 = vadd.f32 %v10696_v33, %v16018_v13  ;;  %v9058_v51 = vpop.f32.mrb[65].mxu0 }
 0xf22   : > { %v9137_v53 = vpack.c.bf16 %v9122_v15, %v9121_v38  ;;  %v9059_v14 = vadd.f32 %v16018_v13, %v9058_v51  ;;  %v10697_v36 = vpop.f32.mrb[66].mxu0 }
 0xf23   : > { %v9111_v35 = vmax.f32 %v9067_v56, 0.0  ;;  %v9070_v3 = vadd.f32 %v10697_v36, %v16018_v13  ;;  %v9061_v0 = vpop.f32.mrb[67].mxu0 }
 0xf24   : > { %v9109_v32 = vmax.f32 %v9059_v14, 0.0  ;;  %v9062_v4 = vadd.f32 %v16018_v13, %v9061_v0  ;;  %10710 = vmatprep.mubr.msk.bf16.mxu0 %vm881_vm2, %v9137_v53 }
 0xf25   : > { %v9112_v44 = vmax.f32 %v9070_v3, 0.0  ;;  %10711 = vmatmul.mubr.msk.bf16.vlgmr.msra.gmra.mrb[76].mxu0 %vm881_vm2, %v9138_v8  ;;  %v9127_v9 = vadd.f32 %v9111_v35, %v15719_v17 }
 0xf26   : > { %v9110_v46 = vmax.f32 %v9062_v4, 0.0  ;;  %v9125_v23 = vadd.f32 %v9109_v32, %v15722_v42 }
 0xf27   : > { %v9128_v5 = vadd.f32 %v9112_v44, %v15729_v20 }
 0xf28   : > { %v9126_v22 = vadd.f32 %v9110_v46, %v15732_v16  ;;  %v10700_v37 = vpop.f32.mrb[68].mxu0 }
 0xf29   : > { %v9140_v54 = vpack.c.bf16 %v9128_v5, %v9127_v9  ;;  %v9083_v10 = vadd.f32 %v10700_v37, %v16018_v13  ;;  %v9074_v6 = vpop.f32.mrb[69].mxu0 }
 0xf2a   : > { %v9139_v21 = vpack.c.bf16 %v9126_v22, %v9125_v23  ;;  %v9075_v57 = vadd.f32 %v16018_v13, %v9074_v6  ;;  %v10701_v50 = vpop.f32.mrb[70].mxu0 }
 0xf2b   : > { %v9115_v25 = vmax.f32 %v9083_v10, 0.0  ;;  %v9086_v7 = vadd.f32 %v10701_v50, %v16018_v13  ;;  %v9077_v48 = vpop.f32.mrb[71].mxu0 }
 0xf2c   : > { %v9113_v17 = vmax.f32 %v9075_v57, 0.0  ;;  %v9078_v20 = vadd.f32 %v16018_v13, %v9077_v48  ;;  %10714 = vmatprep.mubr.msk.bf16.mxu0 %vm881_vm2, %v9139_v21 }
 0xf2d   : > { %v9116_v42 = vmax.f32 %v9086_v7, 0.0  ;;  %10715 = vmatmul.mubr.msk.bf16.gmra.mrb[80].mxu0 %vm881_vm2, %v9140_v54  ;;  %v9131_v31 = vadd.f32 %v9115_v25, %v15759_v58 }
 0xf2e   : > { %v9114_v16 = vmax.f32 %v9078_v20, 0.0  ;;  %v9129_v24 = vadd.f32 %v9113_v17, %v15762_v63 }
 0xf2f   : > { %v9132_v1 = vadd.f32 %v9116_v42, %v15769_v28 }
 0xf30   : > { %v9130_v27 = vadd.f32 %v9114_v16, %v15772_v39  ;;  %v10704_v59 = vpop.f32.mrb[72].mxu0 }
 0xf31   : > { %v9142_v47 = vpack.c.bf16 %v9132_v1, %v9131_v31  ;;  %v9099_v30 = vadd.f32 %v10704_v59, %v16018_v13  ;;  %v9090_v34 = vpop.f32.mrb[73].mxu0 }
 0xf32   : > { %v9141_v40 = vpack.c.bf16 %v9130_v27, %v9129_v24  ;;  %v9091_v41 = vadd.f32 %v16018_v13, %v9090_v34  ;;  %v10705_v55 = vpop.f32.mrb[74].mxu0 }
 0xf33   : > { %v9119_v60 = vmax.f32 %v9099_v30, 0.0  ;;  %v9102_v26 = vadd.f32 %v10705_v55, %v16018_v13  ;;  %v9093_v12 = vpop.f32.mrb[75].mxu0 }
 0xf34   : > { %v9117_v58 = vmax.f32 %v9091_v41, 0.0  ;;  %v9094_v28 = vadd.f32 %v16018_v13, %v9093_v12  ;;  %10718 = vmatprep.mubr.msk.bf16.mxu0 %vm881_vm2, %v9141_v40  ;;  %v11478_v13 = vmov 0.0  }
 0xf35   : > { %v9120_v63 = vmax.f32 %v9102_v26, 0.0  ;;  %10719 = vmatmul.mubr.msk.bf16.gmra.mrb[84].mxu0 %vm881_vm2, %v9142_v47  ;;  %v9135_v29 = vadd.f32 %v9119_v60, %v15799_v45  ;;  %10726 = vmatprep.subr.bf16.mxu0 %v11478_v13  ;;  %v9829_v45 = vld [vmem:[%s16104_s5 + $0x1] ss:$0 sm:$0xff] }
 0xf36   : > { %v9118_v39 = vmax.f32 %v9094_v28, 0.0  ;;  %v9133_v11 = vadd.f32 %v9117_v58, %v15802_v19 }
 0xf37   : > { %v9136_v52 = vadd.f32 %v9120_v63, %v15809_v2 }
 0xf38   : > { %v9134_v18 = vadd.f32 %v9118_v39, %v15812_v49 }
 0xf39   : > { %v9144_v61 = vpack.c.bf16 %v9136_v52, %v9135_v29 }
 0xf3a   : > { %v9143_v62 = vpack.c.bf16 %v9134_v18, %v9133_v11 }
 0xf3c   : > { %10722 = vmatprep.mubr.msk.bf16.mxu0 %vm881_vm2, %v9143_v62 }
 0xf3d   : > { %10723 = vmatmul.mubr.msk.bf16.gmra.mrb[88].mxu0 %vm881_vm2, %v9144_v61 }
 0xf3e   : > { %10742 = vmatprep.mubr.msk.bf16.mxu0 %vm11479_vm13, %v11478_v13 }
 0xff8   : > { %v10712_v2 = vpop.f32.mrb[76].mxu0 }
 0xff9   : > { %v9232_v19 = vadd.f32 %v10712_v2, %v9829_v45  ;;  %v9223_v43 = vpop.f32.mrb[77].mxu0 }
 0xffa   : > { %v9224_v49 = vadd.f32 %v9829_v45, %v9223_v43  ;;  %v10713_v38 = vpop.f32.mrb[78].mxu0 }
 0xffb   : > { %v9235_v15 = vadd.f32 %v10713_v38, %v9829_v45  ;;  %v9226_v33 = vpop.f32.mrb[79].mxu0  ;;  %v9288_v56 = vmax.f32 %v9232_v19, 0.0  ;;  %v9302_v19 = vld [vmem:[%s16103_s4] sm:$0xf] }
 0xffc   : > { %v9227_v8 = vadd.f32 %v9829_v45, %v9226_v33  ;;  %v9286_v53 = vmax.f32 %v9224_v49, 0.0 }
 0xffd   : > { %v9289_v51 = vmax.f32 %v9235_v15, 0.0 }
 0xffe   : > { %v9287_v14 = vmax.f32 %v9227_v8, 0.0 }
 0xfff   : > { %v9304_v36 = vpack.c.bf16 %v9289_v51, %v9288_v56 }
0x1000   : > { %v9303_v35 = vpack.c.bf16 %v9287_v14, %v9286_v53  ;;  %v10716_v3 = vpop.f32.mrb[80].mxu0 }
0x1001   : > { %v9248_v0 = vadd.f32 %v10716_v3, %v9829_v45  ;;  %v9239_v32 = vpop.f32.mrb[81].mxu0  ;;  %v9318_v17 = vsel %vm881_vm2, %v9304_v36, 0 }
0x1002   : > { %v9240_v4 = vadd.f32 %v9829_v45, %v9239_v32  ;;  %v10717_v44 = vpop.f32.mrb[82].mxu0  ;;  %v9315_v46 = vsel %vm881_vm2, %v9303_v35, 0 }
0x1003   : > { %v9251_v9 = vadd.f32 %v10717_v44, %v9829_v45  ;;  %v9242_v5 = vpop.f32.mrb[83].mxu0  ;;  %10727 = vmatpush3.bf16.xpose.msra.mxu0 %v9315_v46  ;;  %v9292_v22 = vmax.f32 %v9248_v0, 0.0 }
0x1004   : > { %v9243_v23 = vadd.f32 %v9829_v45, %v9242_v5  ;;  %10728 = vmatprep.subr.bf16.mxu0 %v11478_v13  ;;  %v9290_v54 = vmax.f32 %v9240_v4, 0.0 }
0x1005   : > { %v9293_v37 = vmax.f32 %v9251_v9, 0.0 }
0x1006   : > { %v9291_v10 = vmax.f32 %v9243_v23, 0.0 }
0x1007   : > { %v9306_v6 = vpack.c.bf16 %v9293_v37, %v9292_v22 }
0x1008   : > { %v9305_v21 = vpack.c.bf16 %v9291_v10, %v9290_v54  ;;  %v10720_v57 = vpop.f32.mrb[84].mxu0 }
0x1009   : > { %v9264_v50 = vadd.f32 %v10720_v57, %v9829_v45  ;;  %v9255_v25 = vpop.f32.mrb[85].mxu0  ;;  %v9324_v18 = vsel %vm881_vm2, %v9306_v6, 0 }
0x100a   : > { %v9256_v7 = vadd.f32 %v9829_v45, %v9255_v25  ;;  %v10721_v48 = vpop.f32.mrb[86].mxu0  ;;  %v9321_v60 = vsel %vm881_vm2, %v9305_v21, 0 }
0x100b   : > { %v9267_v20 = vadd.f32 %v10721_v48, %v9829_v45  ;;  %v9258_v42 = vpop.f32.mrb[87].mxu0  ;;  %10729 = vmatpush3.bf16.xpose.msra.mxu0 %v9318_v17  ;;  %v9296_v31 = vmax.f32 %v9264_v50, 0.0 }
0x100c   : > { %v9259_v16 = vadd.f32 %v9829_v45, %v9258_v42  ;;  %10730 = vmatprep.subr.bf16.mxu0 %v11478_v13  ;;  %v9294_v24 = vmax.f32 %v9256_v7, 0.0 }
0x100d   : > { %v9297_v1 = vmax.f32 %v9267_v20, 0.0 }
0x100e   : > { %v9295_v27 = vmax.f32 %v9259_v16, 0.0 }
0x100f   : > { %v9308_v59 = vpack.c.bf16 %v9297_v1, %v9296_v31 }
0x1010   : > { %v9307_v47 = vpack.c.bf16 %v9295_v27, %v9294_v24  ;;  %v10724_v30 = vpop.f32.mrb[88].mxu0 }
0x1011   : > { %v9280_v34 = vadd.f32 %v10724_v30, %v9829_v45  ;;  %v9271_v40 = vpop.f32.mrb[89].mxu0  ;;  %v9330_v62 = vsel %vm881_vm2, %v9308_v59, 0 }
0x1012   : > { %v9272_v41 = vadd.f32 %v9829_v45, %v9271_v40  ;;  %v10725_v55 = vpop.f32.mrb[90].mxu0  ;;  %v9327_v61 = vsel %vm881_vm2, %v9307_v47, 0 }
0x1013   : > { %v9283_v26 = vadd.f32 %v10725_v55, %v9829_v45  ;;  %v9274_v12 = vpop.f32.mrb[91].mxu0  ;;  %10731 = vmatpush3.bf16.xpose.msra.mxu0 %v9321_v60  ;;  %v9300_v28 = vmax.f32 %v9280_v34, 0.0 }
0x1014   : > { %v9275_v58 = vadd.f32 %v9829_v45, %v9274_v12  ;;  %10732 = vmatprep.subr.bf16.mxu0 %v11478_v13  ;;  %v9298_v39 = vmax.f32 %v9272_v41, 0.0 }
0x1015   : > { %v9301_v63 = vmax.f32 %v9283_v26, 0.0 }
0x1016   : > { %v9299_v29 = vmax.f32 %v9275_v58, 0.0 }
0x1017   : > { %v9310_v52 = vpack.c.bf16 %v9301_v63, %v9300_v28 }
0x1018   : > { %v9309_v11 = vpack.c.bf16 %v9299_v29, %v9298_v39 }
0x1019   : > { %v9336_v2 = vsel %vm881_vm2, %v9310_v52, 0 }
0x101a   : > { %v9333_v45 = vsel %vm881_vm2, %v9309_v11, 0 }
0x101b   : > { %10733 = vmatpush3.bf16.xpose.msra.mxu0 %v9324_v18 }
0x101c   : > { %10734 = vmatprep.subr.bf16.mxu0 %v11478_v13 }
0x1023   : > { %10735 = vmatpush3.bf16.xpose.msra.mxu0 %v9327_v61 }
0x1024   : > { %10736 = vmatprep.subr.bf16.mxu0 %v11478_v13 }
0x102b   : > { %10737 = vmatpush3.bf16.xpose.msra.mxu0 %v9330_v62 }
0x102c   : > { %10738 = vmatprep.subr.bf16.mxu0 %v11478_v13 }
0x1033   : > { %10739 = vmatpush3.bf16.xpose.msra.mxu0 %v9333_v45 }
0x1034   : > { %10740 = vmatprep.subr.bf16.mxu0 %v11478_v13 }
0x103b   : > { %10741 = vmatpush3.bf16.xpose.msra.mxu0 %v9336_v2 }
0x1042   : > { %10743 = vmatmul.mubr.msk.bf16.vlgmr.msra.gmra.mrb[92].mxu0 %vm881_vm2, %v9302_v19 }
0x1115   : > { %v9372_v43 = vpop.f32.mrb[92].mxu0 }
0x1116   : > { %9378 = vst [vmem:[%s623_s29] sm:$0xff] %v9372_v43  ;;  %v10744_v49 = vpop.f32.mrb[93].mxu0 }
0x1117   : > { %v9375_v13 = vpop.f32.mrb[94].mxu0 }
0x1118   : > { %v10745_v38 = vpop.f32.mrb[95].mxu0 }
0x1119 PF: > { %p13_p10 = scmp.ge.s32.totalorder %s11534_s25, 4   ;;  %s16724_s21 = smov %s11460_s22 }
0x111a   : > { %s16725_s22 = smov %s11543_s28  ;;  %s16726_s23 = smov %s11534_s25 }
0x111b   :  { %15 = sbr.rel (!%p13_p10) target bundleno = 2 (0x2), region = 124 }

</bundles_post_ra>
